<compile_context>
chip_gen: v7x
topology: tpu7x:2x2x1
jax: 0.10.0
libtpu: 0.0.40
codegen_flags: <defaults>
</compile_context>

<pallas_src>
import functools

import jax
import jax.numpy as jnp
from jax import lax
from jax.experimental import pallas as pl
from jax.experimental.pallas import tpu as pltpu


C1X1 = 64      # branch1x1 output channels
CMID = 48      # branch3x3_1 / branch5x5_1 output channels
CMIDP = 128    # CMID zero-padded to a full lane tile (alignment)
COUT = 64      # branch3x3_2 / branch5x5_2 output channels
C_TOTAL = 3 * COUT  # 192


def _inorm_relu(y, gamma, beta, inv_hw):
    """Per-channel InstanceNorm (biased var, eps=1e-5, affine) + ReLU.

    y: (HW, C) activations of one sample; gamma/beta: (1, C).
    One-pass statistics: var = E[x^2] - mean^2.
    """
    mean = jnp.sum(y, axis=0, keepdims=True) * inv_hw
    ex2 = jnp.sum(y * y, axis=0, keepdims=True) * inv_hw
    var = ex2 - mean * mean
    out = (y - mean) * lax.rsqrt(var + 1e-5) * gamma + beta
    return jnp.maximum(out, 0.0)


def _inception_a_kernel(x_ref, w1_ref, g1_ref, b1_ref,
                        w3_ref, g3_ref, b3_ref,
                        w5_ref, g5_ref, b5_ref,
                        o_ref,
                        pad3_ref, pad5_ref, patch3_ref, patch5_ref,
                        *, H, W):
    HW = H * W
    inv_hw = 1.0 / HW
    cin = x_ref.shape[-1]

    # ---- Stage 1: three 1x1 convs merged into ONE matmul ------------------
    # packed columns: [mid3 (48) | 0-pad | mid5 (48) | 0-pad | branch1x1 (64)]
    x = x_ref[0].reshape(HW, cin)
    y1 = jnp.dot(x, w1_ref[...], preferred_element_type=jnp.float32)
    y1 = _inorm_relu(y1, g1_ref[...], b1_ref[...], inv_hw)

    mid3 = y1[:, 0:CMIDP]                       # (HW, 128), lanes 48.. are 0
    mid5 = y1[:, CMIDP:2 * CMIDP]               # (HW, 128)
    b1x1 = y1[:, 2 * CMIDP:2 * CMIDP + C1X1]    # (HW, 64)

    # ---- Zero-padded intermediates kept entirely in VMEM scratch ----------
    pad3_ref[...] = jnp.zeros_like(pad3_ref)
    pad5_ref[...] = jnp.zeros_like(pad5_ref)
    pad3_ref[1:H + 1, 1:W + 1, :] = mid3.reshape(H, W, CMIDP)
    pad5_ref[2:H + 2, 2:W + 2, :] = mid5.reshape(H, W, CMIDP)

    # ---- Stage 2: KxK conv = one im2col copy + one big MXU matmul ---------
    def conv_im2col(pad_ref, patch_ref, w_ref, g_ref, beta_ref, K):
        xp = pad_ref[...]                       # (H+K-1, W+K-1, 128)
        for kh in range(K):
            for kw in range(K):
                t = kh * K + kw
                patch_ref[:, t * CMIDP:(t + 1) * CMIDP] = (
                    xp[kh:kh + H, kw:kw + W, :].reshape(HW, CMIDP))
        y = jnp.dot(patch_ref[...], w_ref[...],
                    preferred_element_type=jnp.float32)
        return _inorm_relu(y, g_ref[...], beta_ref[...], inv_hw)

    y3 = conv_im2col(pad3_ref, patch3_ref, w3_ref, g3_ref, b3_ref, 3)
    y5 = conv_im2col(pad5_ref, patch5_ref, w5_ref, g5_ref, b5_ref, 5)

    # ---- Lane-dense concatenated write: [branch1x1 | branch3x3 | branch5x5]
    o_ref[0] = jnp.concatenate([b1x1, y3, y5], axis=-1).reshape(H, W, C_TOTAL)


def inception_a_fused(x_nhwc, packed):
    """Runs the fused InceptionA kernel on NHWC input, returns NHWC output."""
    N, H, W, Cin = x_nhwc.shape
    w1, g1, b1, w3, g3, b3, w5, g5, b5 = packed
    kernel = functools.partial(_inception_a_kernel, H=H, W=W)

    def full2d(a):
        return pl.BlockSpec(a.shape, lambda n: (0, 0))

    return pl.pallas_call(
        kernel,
        out_shape=jax.ShapeDtypeStruct((N, H, W, C_TOTAL), jnp.float32),
        grid=(N,),
        in_specs=[
            pl.BlockSpec((1, H, W, Cin), lambda n: (n, 0, 0, 0)),
            full2d(w1), full2d(g1), full2d(b1),
            full2d(w3), full2d(g3), full2d(b3),
            full2d(w5), full2d(g5), full2d(b5),
        ],
        out_specs=pl.BlockSpec((1, H, W, C_TOTAL), lambda n: (n, 0, 0, 0)),
        scratch_shapes=[
            pltpu.VMEM((H + 2, W + 2, CMIDP), jnp.float32),   # padded mid3
            pltpu.VMEM((H + 4, W + 4, CMIDP), jnp.float32),   # padded mid5
            pltpu.VMEM((H * W, 9 * CMIDP), jnp.float32),      # im2col 3x3
            pltpu.VMEM((H * W, 25 * CMIDP), jnp.float32),     # im2col 5x5
        ],
        compiler_params=pltpu.CompilerParams(
            dimension_semantics=("parallel",),
            vmem_limit_bytes=32 * 1024 * 1024),
    )(x_nhwc, w1, g1, b1, w3, g3, b3, w5, g5, b5)


def init_basic_conv_params(key, in_ch, out_ch, k):
    """Deterministic synthetic params for one BasicConv2d block (HWIO weights)."""
    kw_, kb_, kg_, kbt_ = jax.random.split(key, 4)
    scale = 1.0 / jnp.sqrt(jnp.float32(in_ch * k * k))
    return {
        "w": jax.random.normal(kw_, (k, k, in_ch, out_ch), jnp.float32) * scale,
        # Conv bias exists in the PyTorch module but is mathematically
        # cancelled by the InstanceNorm mean subtraction -> unused in kernel.
        "b": jax.random.normal(kb_, (out_ch,), jnp.float32) * 0.1,
        "gamma": 1.0 + 0.1 * jax.random.normal(kg_, (out_ch,), jnp.float32),
        "beta": 0.1 * jax.random.normal(kbt_, (out_ch,), jnp.float32),
    }


def pack_inception_params(params, in_ch):
    """Host-side packing: merged 1x1 weights and im2col-reshaped KxK weights."""
    pad_w = CMIDP - CMID

    def w1x1(p, cout):
        return p["w"].reshape(in_ch, cout)          # (1,1,Cin,Cout) -> (Cin,Cout)

    zcol = jnp.zeros((in_ch, pad_w), jnp.float32)
    # Stage-1 merged weight columns: [3x3_1 | zeros | 5x5_1 | zeros | 1x1]
    w1 = jnp.concatenate(
        [w1x1(params["branch3x3_1"], CMID), zcol,
         w1x1(params["branch5x5_1"], CMID), zcol,
         w1x1(params["branch1x1"], C1X1)], axis=1)              # (Cin, 320)
    gpad = jnp.ones((pad_w,), jnp.float32)
    bpad = jnp.zeros((pad_w,), jnp.float32)
    g1 = jnp.concatenate([params["branch3x3_1"]["gamma"], gpad,
                          params["branch5x5_1"]["gamma"], gpad,
                          params["branch1x1"]["gamma"]]).reshape(1, -1)
    b1 = jnp.concatenate([params["branch3x3_1"]["beta"], bpad,
                          params["branch5x5_1"]["beta"], bpad,
                          params["branch1x1"]["beta"]]).reshape(1, -1)

    def im2col_weight(p, k):
        w = p["w"]                                   # (K, K, CMID, COUT)
        w = jnp.pad(w, ((0, 0), (0, 0), (0, pad_w), (0, 0)))
        return w.reshape(k * k * CMIDP, COUT)        # rows: [kh, kw, cin_pad]

    w3 = im2col_weight(params["branch3x3_2"], 3)
    g3 = params["branch3x3_2"]["gamma"].reshape(1, COUT)
    b3 = params["branch3x3_2"]["beta"].reshape(1, COUT)
    w5 = im2col_weight(params["branch5x5_2"], 5)
    g5 = params["branch5x5_2"]["gamma"].reshape(1, COUT)
    b5 = params["branch5x5_2"]["beta"].reshape(1, COUT)
    return (w1, g1, b1, w3, g3, b3, w5, g5, b5)


def inception_a(x_nchw, params):
    """InceptionA forward. NCHW in / NCHW out to match the PyTorch module."""
    N, C, H, W = x_nchw.shape
    x = jnp.transpose(x_nchw, (0, 2, 3, 1))          # single pre-transpose
    packed = pack_inception_params(params, C)
    out = inception_a_fused(x, packed)
    return jnp.transpose(out, (0, 3, 1, 2))          # single post-transpose


if __name__ == "__main__":
    key = jax.random.PRNGKey(0)
    k_x, k1, k2, k3, k4, k5 = jax.random.split(key, 6)

    N, C_in, H, W = 2, 4, 16, 16
    x = jax.random.normal(k_x, (N, C_in, H, W), jnp.float32)

    params = {
        "branch1x1":   init_basic_conv_params(k1, C_in, 64, 1),
        "branch3x3_1": init_basic_conv_params(k2, C_in, 48, 1),
        "branch3x3_2": init_basic_conv_params(k3, 48, 64, 3),
        "branch5x5_1": init_basic_conv_params(k4, C_in, 48, 1),
        "branch5x5_2": init_basic_conv_params(k5, 48, 64, 5),
    }

    out = jax.jit(inception_a)(x, params)
    out = jax.block_until_ready(out)

    assert out.shape == (N, 64 + 64 + 64, H, W), out.shape
    assert out.dtype == jnp.float32
    print("KERNEL_OK")
</pallas_src>

<mosaic_0001>
module attributes {stable_mosaic.version = 11 : i64} {
  func.func @_inception_a_kernel(%arg0: i32, %arg1: memref<1x16x16x4xf32, #tpu.memory_space<vmem>>, %arg2: memref<4x320xf32, #tpu.memory_space<vmem>>, %arg3: memref<1x320xf32, #tpu.memory_space<vmem>>, %arg4: memref<1x320xf32, #tpu.memory_space<vmem>>, %arg5: memref<1152x64xf32, #tpu.memory_space<vmem>>, %arg6: memref<1x64xf32, #tpu.memory_space<vmem>>, %arg7: memref<1x64xf32, #tpu.memory_space<vmem>>, %arg8: memref<3200x64xf32, #tpu.memory_space<vmem>>, %arg9: memref<1x64xf32, #tpu.memory_space<vmem>>, %arg10: memref<1x64xf32, #tpu.memory_space<vmem>>, %arg11: memref<1x16x16x192xf32, #tpu.memory_space<vmem>>, %arg12: memref<18x18x128xf32, #tpu.memory_space<vmem>>, %arg13: memref<20x20x128xf32, #tpu.memory_space<vmem>>, %arg14: memref<256x1152xf32, #tpu.memory_space<vmem>>, %arg15: memref<256x3200xf32, #tpu.memory_space<vmem>>) attributes {dimension_semantics = [#tpu.dimension_semantics<parallel>], iteration_bounds = array<i64: 2>, scalar_prefetch = 0 : i64, scratch_operands = 4 : i64, tpu.core_type = #tpu.core_type<tc>, window_params = [{transform_indices = @transform_0, window_bounds = array<i64: 1, 16, 16, 4>}, {pipeline_mode = #tpu.pipeline_mode<synchronous>, transform_indices = @transform_1, window_bounds = array<i64: 4, 320>}, {pipeline_mode = #tpu.pipeline_mode<synchronous>, transform_indices = @transform_2, window_bounds = array<i64: 1, 320>}, {pipeline_mode = #tpu.pipeline_mode<synchronous>, transform_indices = @transform_3, window_bounds = array<i64: 1, 320>}, {pipeline_mode = #tpu.pipeline_mode<synchronous>, transform_indices = @transform_4, window_bounds = array<i64: 1152, 64>}, {pipeline_mode = #tpu.pipeline_mode<synchronous>, transform_indices = @transform_5, window_bounds = array<i64: 1, 64>}, {pipeline_mode = #tpu.pipeline_mode<synchronous>, transform_indices = @transform_6, window_bounds = array<i64: 1, 64>}, {pipeline_mode = #tpu.pipeline_mode<synchronous>, transform_indices = @transform_7, window_bounds = array<i64: 3200, 64>}, {pipeline_mode = #tpu.pipeline_mode<synchronous>, transform_indices = @transform_8, window_bounds = array<i64: 1, 64>}, {pipeline_mode = #tpu.pipeline_mode<synchronous>, transform_indices = @transform_9, window_bounds = array<i64: 1, 64>}, {transform_indices = @transform_10, window_bounds = array<i64: 1, 16, 16, 192>}]} {
    %c0 = arith.constant 0 : index
    %c0_0 = arith.constant 0 : index
    %c0_1 = arith.constant 0 : index
    %c0_2 = arith.constant 0 : index
    %0 = vector.load %arg1[%c0, %c0_0, %c0_1, %c0_2] : memref<1x16x16x4xf32, #tpu.memory_space<vmem>>, vector<1x16x16x4xf32>
    %1 = vector.shape_cast %0 : vector<1x16x16x4xf32> to vector<16x16x4xf32>
    %2 = vector.shape_cast %1 : vector<16x16x4xf32> to vector<256x4xf32>
    %c0_3 = arith.constant 0 : index
    %c0_4 = arith.constant 0 : index
    %3 = vector.load %arg2[%c0_3, %c0_4] : memref<4x320xf32, #tpu.memory_space<vmem>>, vector<4x320xf32>
    %cst = arith.constant dense<0.000000e+00> : vector<256x320xf32>
    %4 = tpu.matmul %2, %3, %cst {dimension_numbers = #tpu.dot_dimension_numbers<[1], [0], [0], [1], [0, 0, 1, 1], [], []>} : vector<256x4xf32>, vector<4x320xf32>, vector<256x320xf32> -> vector<256x320xf32>
    %c0_5 = arith.constant 0 : index
    %c0_6 = arith.constant 0 : index
    %5 = vector.load %arg3[%c0_5, %c0_6] : memref<1x320xf32, #tpu.memory_space<vmem>>, vector<1x320xf32>
    %c0_7 = arith.constant 0 : index
    %c0_8 = arith.constant 0 : index
    %6 = vector.load %arg4[%c0_7, %c0_8] : memref<1x320xf32, #tpu.memory_space<vmem>>, vector<1x320xf32>
    %cst_9 = arith.constant dense<0.000000e+00> : vector<320xf32>
    %7 = vector.multi_reduction <add>, %4, %cst_9 [0] : vector<256x320xf32> to vector<320xf32>
    %8 = vector.shape_cast %7 : vector<320xf32> to vector<1x320xf32>
    %cst_10 = arith.constant 3.906250e-03 : f32
    %9 = vector.broadcast %cst_10 : f32 to vector<1x320xf32>
    %10 = arith.mulf %8, %9 : vector<1x320xf32>
    %11 = arith.mulf %4, %4 : vector<256x320xf32>
    %cst_11 = arith.constant dense<0.000000e+00> : vector<320xf32>
    %12 = vector.multi_reduction <add>, %11, %cst_11 [0] : vector<256x320xf32> to vector<320xf32>
    %13 = vector.shape_cast %12 : vector<320xf32> to vector<1x320xf32>
    %cst_12 = arith.constant 3.906250e-03 : f32
    %14 = vector.broadcast %cst_12 : f32 to vector<1x320xf32>
    %15 = arith.mulf %13, %14 : vector<1x320xf32>
    %16 = arith.mulf %10, %10 : vector<1x320xf32>
    %17 = arith.subf %15, %16 : vector<1x320xf32>
    %18 = vector.broadcast %10 : vector<1x320xf32> to vector<256x320xf32>
    %19 = arith.subf %4, %18 : vector<256x320xf32>
    %cst_13 = arith.constant 9.99999974E-6 : f32
    %20 = vector.broadcast %cst_13 : f32 to vector<1x320xf32>
    %21 = arith.addf %17, %20 : vector<1x320xf32>
    %22 = math.rsqrt %21 : vector<1x320xf32>
    %23 = vector.broadcast %22 : vector<1x320xf32> to vector<256x320xf32>
    %24 = arith.mulf %19, %23 : vector<256x320xf32>
    %25 = vector.broadcast %5 : vector<1x320xf32> to vector<256x320xf32>
    %26 = arith.mulf %24, %25 : vector<256x320xf32>
    %27 = vector.broadcast %6 : vector<1x320xf32> to vector<256x320xf32>
    %28 = arith.addf %26, %27 : vector<256x320xf32>
    %cst_14 = arith.constant 0.000000e+00 : f32
    %29 = vector.broadcast %cst_14 : f32 to vector<256x320xf32>
    %30 = arith.maximumf %28, %29 : vector<256x320xf32>
    %31 = vector.extract_strided_slice %30 {offsets = [0, 0], sizes = [256, 128], strides = [1, 1]} : vector<256x320xf32> to vector<256x128xf32>
    %32 = vector.extract_strided_slice %30 {offsets = [0, 128], sizes = [256, 128], strides = [1, 1]} : vector<256x320xf32> to vector<256x128xf32>
    %33 = vector.extract_strided_slice %30 {offsets = [0, 256], sizes = [256, 64], strides = [1, 1]} : vector<256x320xf32> to vector<256x64xf32>
    %cst_15 = arith.constant 0.000000e+00 : f32
    %34 = vector.broadcast %cst_15 : f32 to vector<18x18x128xf32>
    %c0_16 = arith.constant 0 : index
    %c0_17 = arith.constant 0 : index
    %c0_18 = arith.constant 0 : index
    %35 = vector.load %arg12[%c0_16, %c0_17, %c0_18] : memref<18x18x128xf32, #tpu.memory_space<vmem>>, vector<18x18x128xf32>
    tpu.vector_store %arg12[%c0_16, %c0_17, %c0_18], %34 {strides = array<i32>} : memref<18x18x128xf32, #tpu.memory_space<vmem>>, vector<18x18x128xf32>,
    %cst_19 = arith.constant 0.000000e+00 : f32
    %36 = vector.broadcast %cst_19 : f32 to vector<20x20x128xf32>
    %c0_20 = arith.constant 0 : index
    %c0_21 = arith.constant 0 : index
    %c0_22 = arith.constant 0 : index
    %37 = vector.load %arg13[%c0_20, %c0_21, %c0_22] : memref<20x20x128xf32, #tpu.memory_space<vmem>>, vector<20x20x128xf32>
    tpu.vector_store %arg13[%c0_20, %c0_21, %c0_22], %36 {strides = array<i32>} : memref<20x20x128xf32, #tpu.memory_space<vmem>>, vector<20x20x128xf32>,
    %38 = vector.shape_cast %31 : vector<256x128xf32> to vector<16x16x128xf32>
    %c1 = arith.constant 1 : index
    %c1_23 = arith.constant 1 : index
    %c0_24 = arith.constant 0 : index
    %39 = vector.load %arg12[%c1, %c1_23, %c0_24] : memref<18x18x128xf32, #tpu.memory_space<vmem>>, vector<16x16x128xf32>
    tpu.vector_store %arg12[%c1, %c1_23, %c0_24], %38 {strides = array<i32>} : memref<18x18x128xf32, #tpu.memory_space<vmem>>, vector<16x16x128xf32>,
    %40 = vector.shape_cast %32 : vector<256x128xf32> to vector<16x16x128xf32>
    %c2 = arith.constant 2 : index
    %c2_25 = arith.constant 2 : index
    %c0_26 = arith.constant 0 : index
    %41 = vector.load %arg13[%c2, %c2_25, %c0_26] : memref<20x20x128xf32, #tpu.memory_space<vmem>>, vector<16x16x128xf32>
    tpu.vector_store %arg13[%c2, %c2_25, %c0_26], %40 {strides = array<i32>} : memref<20x20x128xf32, #tpu.memory_space<vmem>>, vector<16x16x128xf32>,
    %c0_27 = arith.constant 0 : index
    %c0_28 = arith.constant 0 : index
    %c0_29 = arith.constant 0 : index
    %42 = vector.load %arg12[%c0_27, %c0_28, %c0_29] : memref<18x18x128xf32, #tpu.memory_space<vmem>>, vector<18x18x128xf32>
    %43 = vector.extract_strided_slice %42 {offsets = [0, 0, 0], sizes = [16, 16, 128], strides = [1, 1, 1]} : vector<18x18x128xf32> to vector<16x16x128xf32>
    %44 = vector.shape_cast %43 : vector<16x16x128xf32> to vector<256x128xf32>
    %c0_30 = arith.constant 0 : index
    %c0_31 = arith.constant 0 : index
    %45 = vector.load %arg14[%c0_30, %c0_31] : memref<256x1152xf32, #tpu.memory_space<vmem>>, vector<256x128xf32>
    tpu.vector_store %arg14[%c0_30, %c0_31], %44 {strides = array<i32>} : memref<256x1152xf32, #tpu.memory_space<vmem>>, vector<256x128xf32>,
    %46 = vector.extract_strided_slice %42 {offsets = [0, 1, 0], sizes = [16, 16, 128], strides = [1, 1, 1]} : vector<18x18x128xf32> to vector<16x16x128xf32>
    %47 = vector.shape_cast %46 : vector<16x16x128xf32> to vector<256x128xf32>
    %c0_32 = arith.constant 0 : index
    %c128 = arith.constant 128 : index
    %48 = vector.load %arg14[%c0_32, %c128] : memref<256x1152xf32, #tpu.memory_space<vmem>>, vector<256x128xf32>
    tpu.vector_store %arg14[%c0_32, %c128], %47 {strides = array<i32>} : memref<256x1152xf32, #tpu.memory_space<vmem>>, vector<256x128xf32>,
    %49 = vector.extract_strided_slice %42 {offsets = [0, 2, 0], sizes = [16, 16, 128], strides = [1, 1, 1]} : vector<18x18x128xf32> to vector<16x16x128xf32>
    %50 = vector.shape_cast %49 : vector<16x16x128xf32> to vector<256x128xf32>
    %c0_33 = arith.constant 0 : index
    %c256 = arith.constant 256 : index
    %51 = vector.load %arg14[%c0_33, %c256] : memref<256x1152xf32, #tpu.memory_space<vmem>>, vector<256x128xf32>
    tpu.vector_store %arg14[%c0_33, %c256], %50 {strides = array<i32>} : memref<256x1152xf32, #tpu.memory_space<vmem>>, vector<256x128xf32>,
    %52 = vector.extract_strided_slice %42 {offsets = [1, 0, 0], sizes = [16, 16, 128], strides = [1, 1, 1]} : vector<18x18x128xf32> to vector<16x16x128xf32>
    %53 = vector.shape_cast %52 : vector<16x16x128xf32> to vector<256x128xf32>
    %c0_34 = arith.constant 0 : index
    %c384 = arith.constant 384 : index
    %54 = vector.load %arg14[%c0_34, %c384] : memref<256x1152xf32, #tpu.memory_space<vmem>>, vector<256x128xf32>
    tpu.vector_store %arg14[%c0_34, %c384], %53 {strides = array<i32>} : memref<256x1152xf32, #tpu.memory_space<vmem>>, vector<256x128xf32>,
    %55 = vector.extract_strided_slice %42 {offsets = [1, 1, 0], sizes = [16, 16, 128], strides = [1, 1, 1]} : vector<18x18x128xf32> to vector<16x16x128xf32>
    %56 = vector.shape_cast %55 : vector<16x16x128xf32> to vector<256x128xf32>
    %c0_35 = arith.constant 0 : index
    %c512 = arith.constant 512 : index
    %57 = vector.load %arg14[%c0_35, %c512] : memref<256x1152xf32, #tpu.memory_space<vmem>>, vector<256x128xf32>
    tpu.vector_store %arg14[%c0_35, %c512], %56 {strides = array<i32>} : memref<256x1152xf32, #tpu.memory_space<vmem>>, vector<256x128xf32>,
    %58 = vector.extract_strided_slice %42 {offsets = [1, 2, 0], sizes = [16, 16, 128], strides = [1, 1, 1]} : vector<18x18x128xf32> to vector<16x16x128xf32>
    %59 = vector.shape_cast %58 : vector<16x16x128xf32> to vector<256x128xf32>
    %c0_36 = arith.constant 0 : index
    %c640 = arith.constant 640 : index
    %60 = vector.load %arg14[%c0_36, %c640] : memref<256x1152xf32, #tpu.memory_space<vmem>>, vector<256x128xf32>
    tpu.vector_store %arg14[%c0_36, %c640], %59 {strides = array<i32>} : memref<256x1152xf32, #tpu.memory_space<vmem>>, vector<256x128xf32>,
    %61 = vector.extract_strided_slice %42 {offsets = [2, 0, 0], sizes = [16, 16, 128], strides = [1, 1, 1]} : vector<18x18x128xf32> to vector<16x16x128xf32>
    %62 = vector.shape_cast %61 : vector<16x16x128xf32> to vector<256x128xf32>
    %c0_37 = arith.constant 0 : index
    %c768 = arith.constant 768 : index
    %63 = vector.load %arg14[%c0_37, %c768] : memref<256x1152xf32, #tpu.memory_space<vmem>>, vector<256x128xf32>
    tpu.vector_store %arg14[%c0_37, %c768], %62 {strides = array<i32>} : memref<256x1152xf32, #tpu.memory_space<vmem>>, vector<256x128xf32>,
    %64 = vector.extract_strided_slice %42 {offsets = [2, 1, 0], sizes = [16, 16, 128], strides = [1, 1, 1]} : vector<18x18x128xf32> to vector<16x16x128xf32>
    %65 = vector.shape_cast %64 : vector<16x16x128xf32> to vector<256x128xf32>
    %c0_38 = arith.constant 0 : index
    %c896 = arith.constant 896 : index
    %66 = vector.load %arg14[%c0_38, %c896] : memref<256x1152xf32, #tpu.memory_space<vmem>>, vector<256x128xf32>
    tpu.vector_store %arg14[%c0_38, %c896], %65 {strides = array<i32>} : memref<256x1152xf32, #tpu.memory_space<vmem>>, vector<256x128xf32>,
    %67 = vector.extract_strided_slice %42 {offsets = [2, 2, 0], sizes = [16, 16, 128], strides = [1, 1, 1]} : vector<18x18x128xf32> to vector<16x16x128xf32>
    %68 = vector.shape_cast %67 : vector<16x16x128xf32> to vector<256x128xf32>
    %c0_39 = arith.constant 0 : index
    %c1024 = arith.constant 1024 : index
    %69 = vector.load %arg14[%c0_39, %c1024] : memref<256x1152xf32, #tpu.memory_space<vmem>>, vector<256x128xf32>
    tpu.vector_store %arg14[%c0_39, %c1024], %68 {strides = array<i32>} : memref<256x1152xf32, #tpu.memory_space<vmem>>, vector<256x128xf32>,
    %c0_40 = arith.constant 0 : index
    %c0_41 = arith.constant 0 : index
    %70 = vector.load %arg14[%c0_40, %c0_41] : memref<256x1152xf32, #tpu.memory_space<vmem>>, vector<256x1152xf32>
    %c0_42 = arith.constant 0 : index
    %c0_43 = arith.constant 0 : index
    %71 = vector.load %arg5[%c0_42, %c0_43] : memref<1152x64xf32, #tpu.memory_space<vmem>>, vector<1152x64xf32>
    %cst_44 = arith.constant dense<0.000000e+00> : vector<256x64xf32>
    %72 = tpu.matmul %70, %71, %cst_44 {dimension_numbers = #tpu.dot_dimension_numbers<[1], [0], [0], [1], [0, 0, 1, 1], [], []>} : vector<256x1152xf32>, vector<1152x64xf32>, vector<256x64xf32> -> vector<256x64xf32>
    %c0_45 = arith.constant 0 : index
    %c0_46 = arith.constant 0 : index
    %73 = vector.load %arg6[%c0_45, %c0_46] : memref<1x64xf32, #tpu.memory_space<vmem>>, vector<1x64xf32>
    %c0_47 = arith.constant 0 : index
    %c0_48 = arith.constant 0 : index
    %74 = vector.load %arg7[%c0_47, %c0_48] : memref<1x64xf32, #tpu.memory_space<vmem>>, vector<1x64xf32>
    %cst_49 = arith.constant dense<0.000000e+00> : vector<64xf32>
    %75 = vector.multi_reduction <add>, %72, %cst_49 [0] : vector<256x64xf32> to vector<64xf32>
    %76 = vector.shape_cast %75 : vector<64xf32> to vector<1x64xf32>
    %cst_50 = arith.constant 3.906250e-03 : f32
    %77 = vector.broadcast %cst_50 : f32 to vector<1x64xf32>
    %78 = arith.mulf %76, %77 : vector<1x64xf32>
    %79 = arith.mulf %72, %72 : vector<256x64xf32>
    %cst_51 = arith.constant dense<0.000000e+00> : vector<64xf32>
    %80 = vector.multi_reduction <add>, %79, %cst_51 [0] : vector<256x64xf32> to vector<64xf32>
    %81 = vector.shape_cast %80 : vector<64xf32> to vector<1x64xf32>
    %cst_52 = arith.constant 3.906250e-03 : f32
    %82 = vector.broadcast %cst_52 : f32 to vector<1x64xf32>
    %83 = arith.mulf %81, %82 : vector<1x64xf32>
    %84 = arith.mulf %78, %78 : vector<1x64xf32>
    %85 = arith.subf %83, %84 : vector<1x64xf32>
    %86 = vector.broadcast %78 : vector<1x64xf32> to vector<256x64xf32>
    %87 = arith.subf %72, %86 : vector<256x64xf32>
    %cst_53 = arith.constant 9.99999974E-6 : f32
    %88 = vector.broadcast %cst_53 : f32 to vector<1x64xf32>
    %89 = arith.addf %85, %88 : vector<1x64xf32>
    %90 = math.rsqrt %89 : vector<1x64xf32>
    %91 = vector.broadcast %90 : vector<1x64xf32> to vector<256x64xf32>
    %92 = arith.mulf %87, %91 : vector<256x64xf32>
    %93 = vector.broadcast %73 : vector<1x64xf32> to vector<256x64xf32>
    %94 = arith.mulf %92, %93 : vector<256x64xf32>
    %95 = vector.broadcast %74 : vector<1x64xf32> to vector<256x64xf32>
    %96 = arith.addf %94, %95 : vector<256x64xf32>
    %cst_54 = arith.constant 0.000000e+00 : f32
    %97 = vector.broadcast %cst_54 : f32 to vector<256x64xf32>
    %98 = arith.maximumf %96, %97 : vector<256x64xf32>
    %c0_55 = arith.constant 0 : index
    %c0_56 = arith.constant 0 : index
    %c0_57 = arith.constant 0 : index
    %99 = vector.load %arg13[%c0_55, %c0_56, %c0_57] : memref<20x20x128xf32, #tpu.memory_space<vmem>>, vector<20x20x128xf32>
    %100 = vector.extract_strided_slice %99 {offsets = [0, 0, 0], sizes = [16, 16, 128], strides = [1, 1, 1]} : vector<20x20x128xf32> to vector<16x16x128xf32>
    %101 = vector.shape_cast %100 : vector<16x16x128xf32> to vector<256x128xf32>
    %c0_58 = arith.constant 0 : index
    %c0_59 = arith.constant 0 : index
    %102 = vector.load %arg15[%c0_58, %c0_59] : memref<256x3200xf32, #tpu.memory_space<vmem>>, vector<256x128xf32>
    tpu.vector_store %arg15[%c0_58, %c0_59], %101 {strides = array<i32>} : memref<256x3200xf32, #tpu.memory_space<vmem>>, vector<256x128xf32>,
    %103 = vector.extract_strided_slice %99 {offsets = [0, 1, 0], sizes = [16, 16, 128], strides = [1, 1, 1]} : vector<20x20x128xf32> to vector<16x16x128xf32>
    %104 = vector.shape_cast %103 : vector<16x16x128xf32> to vector<256x128xf32>
    %c0_60 = arith.constant 0 : index
    %c128_61 = arith.constant 128 : index
    %105 = vector.load %arg15[%c0_60, %c128_61] : memref<256x3200xf32, #tpu.memory_space<vmem>>, vector<256x128xf32>
    tpu.vector_store %arg15[%c0_60, %c128_61], %104 {strides = array<i32>} : memref<256x3200xf32, #tpu.memory_space<vmem>>, vector<256x128xf32>,
    %106 = vector.extract_strided_slice %99 {offsets = [0, 2, 0], sizes = [16, 16, 128], strides = [1, 1, 1]} : vector<20x20x128xf32> to vector<16x16x128xf32>
    %107 = vector.shape_cast %106 : vector<16x16x128xf32> to vector<256x128xf32>
    %c0_62 = arith.constant 0 : index
    %c256_63 = arith.constant 256 : index
    %108 = vector.load %arg15[%c0_62, %c256_63] : memref<256x3200xf32, #tpu.memory_space<vmem>>, vector<256x128xf32>
    tpu.vector_store %arg15[%c0_62, %c256_63], %107 {strides = array<i32>} : memref<256x3200xf32, #tpu.memory_space<vmem>>, vector<256x128xf32>,
    %109 = vector.extract_strided_slice %99 {offsets = [0, 3, 0], sizes = [16, 16, 128], strides = [1, 1, 1]} : vector<20x20x128xf32> to vector<16x16x128xf32>
    %110 = vector.shape_cast %109 : vector<16x16x128xf32> to vector<256x128xf32>
    %c0_64 = arith.constant 0 : index
    %c384_65 = arith.constant 384 : index
    %111 = vector.load %arg15[%c0_64, %c384_65] : memref<256x3200xf32, #tpu.memory_space<vmem>>, vector<256x128xf32>
    tpu.vector_store %arg15[%c0_64, %c384_65], %110 {strides = array<i32>} : memref<256x3200xf32, #tpu.memory_space<vmem>>, vector<256x128xf32>,
    %112 = vector.extract_strided_slice %99 {offsets = [0, 4, 0], sizes = [16, 16, 128], strides = [1, 1, 1]} : vector<20x20x128xf32> to vector<16x16x128xf32>
    %113 = vector.shape_cast %112 : vector<16x16x128xf32> to vector<256x128xf32>
    %c0_66 = arith.constant 0 : index
    %c512_67 = arith.constant 512 : index
    %114 = vector.load %arg15[%c0_66, %c512_67] : memref<256x3200xf32, #tpu.memory_space<vmem>>, vector<256x128xf32>
    tpu.vector_store %arg15[%c0_66, %c512_67], %113 {strides = array<i32>} : memref<256x3200xf32, #tpu.memory_space<vmem>>, vector<256x128xf32>,
    %115 = vector.extract_strided_slice %99 {offsets = [1, 0, 0], sizes = [16, 16, 128], strides = [1, 1, 1]} : vector<20x20x128xf32> to vector<16x16x128xf32>
    %116 = vector.shape_cast %115 : vector<16x16x128xf32> to vector<256x128xf32>
    %c0_68 = arith.constant 0 : index
    %c640_69 = arith.constant 640 : index
    %117 = vector.load %arg15[%c0_68, %c640_69] : memref<256x3200xf32, #tpu.memory_space<vmem>>, vector<256x128xf32>
    tpu.vector_store %arg15[%c0_68, %c640_69], %116 {strides = array<i32>} : memref<256x3200xf32, #tpu.memory_space<vmem>>, vector<256x128xf32>,
    %118 = vector.extract_strided_slice %99 {offsets = [1, 1, 0], sizes = [16, 16, 128], strides = [1, 1, 1]} : vector<20x20x128xf32> to vector<16x16x128xf32>
    %119 = vector.shape_cast %118 : vector<16x16x128xf32> to vector<256x128xf32>
    %c0_70 = arith.constant 0 : index
    %c768_71 = arith.constant 768 : index
    %120 = vector.load %arg15[%c0_70, %c768_71] : memref<256x3200xf32, #tpu.memory_space<vmem>>, vector<256x128xf32>
    tpu.vector_store %arg15[%c0_70, %c768_71], %119 {strides = array<i32>} : memref<256x3200xf32, #tpu.memory_space<vmem>>, vector<256x128xf32>,
    %121 = vector.extract_strided_slice %99 {offsets = [1, 2, 0], sizes = [16, 16, 128], strides = [1, 1, 1]} : vector<20x20x128xf32> to vector<16x16x128xf32>
    %122 = vector.shape_cast %121 : vector<16x16x128xf32> to vector<256x128xf32>
    %c0_72 = arith.constant 0 : index
    %c896_73 = arith.constant 896 : index
    %123 = vector.load %arg15[%c0_72, %c896_73] : memref<256x3200xf32, #tpu.memory_space<vmem>>, vector<256x128xf32>
    tpu.vector_store %arg15[%c0_72, %c896_73], %122 {strides = array<i32>} : memref<256x3200xf32, #tpu.memory_space<vmem>>, vector<256x128xf32>,
    %124 = vector.extract_strided_slice %99 {offsets = [1, 3, 0], sizes = [16, 16, 128], strides = [1, 1, 1]} : vector<20x20x128xf32> to vector<16x16x128xf32>
    %125 = vector.shape_cast %124 : vector<16x16x128xf32> to vector<256x128xf32>
    %c0_74 = arith.constant 0 : index
    %c1024_75 = arith.constant 1024 : index
    %126 = vector.load %arg15[%c0_74, %c1024_75] : memref<256x3200xf32, #tpu.memory_space<vmem>>, vector<256x128xf32>
    tpu.vector_store %arg15[%c0_74, %c1024_75], %125 {strides = array<i32>} : memref<256x3200xf32, #tpu.memory_space<vmem>>, vector<256x128xf32>,
    %127 = vector.extract_strided_slice %99 {offsets = [1, 4, 0], sizes = [16, 16, 128], strides = [1, 1, 1]} : vector<20x20x128xf32> to vector<16x16x128xf32>
    %128 = vector.shape_cast %127 : vector<16x16x128xf32> to vector<256x128xf32>
    %c0_76 = arith.constant 0 : index
    %c1152 = arith.constant 1152 : index
    %129 = vector.load %arg15[%c0_76, %c1152] : memref<256x3200xf32, #tpu.memory_space<vmem>>, vector<256x128xf32>
    tpu.vector_store %arg15[%c0_76, %c1152], %128 {strides = array<i32>} : memref<256x3200xf32, #tpu.memory_space<vmem>>, vector<256x128xf32>,
    %130 = vector.extract_strided_slice %99 {offsets = [2, 0, 0], sizes = [16, 16, 128], strides = [1, 1, 1]} : vector<20x20x128xf32> to vector<16x16x128xf32>
    %131 = vector.shape_cast %130 : vector<16x16x128xf32> to vector<256x128xf32>
    %c0_77 = arith.constant 0 : index
    %c1280 = arith.constant 1280 : index
    %132 = vector.load %arg15[%c0_77, %c1280] : memref<256x3200xf32, #tpu.memory_space<vmem>>, vector<256x128xf32>
    tpu.vector_store %arg15[%c0_77, %c1280], %131 {strides = array<i32>} : memref<256x3200xf32, #tpu.memory_space<vmem>>, vector<256x128xf32>,
    %133 = vector.extract_strided_slice %99 {offsets = [2, 1, 0], sizes = [16, 16, 128], strides = [1, 1, 1]} : vector<20x20x128xf32> to vector<16x16x128xf32>
    %134 = vector.shape_cast %133 : vector<16x16x128xf32> to vector<256x128xf32>
    %c0_78 = arith.constant 0 : index
    %c1408 = arith.constant 1408 : index
    %135 = vector.load %arg15[%c0_78, %c1408] : memref<256x3200xf32, #tpu.memory_space<vmem>>, vector<256x128xf32>
    tpu.vector_store %arg15[%c0_78, %c1408], %134 {strides = array<i32>} : memref<256x3200xf32, #tpu.memory_space<vmem>>, vector<256x128xf32>,
    %136 = vector.extract_strided_slice %99 {offsets = [2, 2, 0], sizes = [16, 16, 128], strides = [1, 1, 1]} : vector<20x20x128xf32> to vector<16x16x128xf32>
    %137 = vector.shape_cast %136 : vector<16x16x128xf32> to vector<256x128xf32>
    %c0_79 = arith.constant 0 : index
    %c1536 = arith.constant 1536 : index
    %138 = vector.load %arg15[%c0_79, %c1536] : memref<256x3200xf32, #tpu.memory_space<vmem>>, vector<256x128xf32>
    tpu.vector_store %arg15[%c0_79, %c1536], %137 {strides = array<i32>} : memref<256x3200xf32, #tpu.memory_space<vmem>>, vector<256x128xf32>,
    %139 = vector.extract_strided_slice %99 {offsets = [2, 3, 0], sizes = [16, 16, 128], strides = [1, 1, 1]} : vector<20x20x128xf32> to vector<16x16x128xf32>
    %140 = vector.shape_cast %139 : vector<16x16x128xf32> to vector<256x128xf32>
    %c0_80 = arith.constant 0 : index
    %c1664 = arith.constant 1664 : index
    %141 = vector.load %arg15[%c0_80, %c1664] : memref<256x3200xf32, #tpu.memory_space<vmem>>, vector<256x128xf32>
    tpu.vector_store %arg15[%c0_80, %c1664], %140 {strides = array<i32>} : memref<256x3200xf32, #tpu.memory_space<vmem>>, vector<256x128xf32>,
    %142 = vector.extract_strided_slice %99 {offsets = [2, 4, 0], sizes = [16, 16, 128], strides = [1, 1, 1]} : vector<20x20x128xf32> to vector<16x16x128xf32>
    %143 = vector.shape_cast %142 : vector<16x16x128xf32> to vector<256x128xf32>
    %c0_81 = arith.constant 0 : index
    %c1792 = arith.constant 1792 : index
    %144 = vector.load %arg15[%c0_81, %c1792] : memref<256x3200xf32, #tpu.memory_space<vmem>>, vector<256x128xf32>
    tpu.vector_store %arg15[%c0_81, %c1792], %143 {strides = array<i32>} : memref<256x3200xf32, #tpu.memory_space<vmem>>, vector<256x128xf32>,
    %145 = vector.extract_strided_slice %99 {offsets = [3, 0, 0], sizes = [16, 16, 128], strides = [1, 1, 1]} : vector<20x20x128xf32> to vector<16x16x128xf32>
    %146 = vector.shape_cast %145 : vector<16x16x128xf32> to vector<256x128xf32>
    %c0_82 = arith.constant 0 : index
    %c1920 = arith.constant 1920 : index
    %147 = vector.load %arg15[%c0_82, %c1920] : memref<256x3200xf32, #tpu.memory_space<vmem>>, vector<256x128xf32>
    tpu.vector_store %arg15[%c0_82, %c1920], %146 {strides = array<i32>} : memref<256x3200xf32, #tpu.memory_space<vmem>>, vector<256x128xf32>,
    %148 = vector.extract_strided_slice %99 {offsets = [3, 1, 0], sizes = [16, 16, 128], strides = [1, 1, 1]} : vector<20x20x128xf32> to vector<16x16x128xf32>
    %149 = vector.shape_cast %148 : vector<16x16x128xf32> to vector<256x128xf32>
    %c0_83 = arith.constant 0 : index
    %c2048 = arith.constant 2048 : index
    %150 = vector.load %arg15[%c0_83, %c2048] : memref<256x3200xf32, #tpu.memory_space<vmem>>, vector<256x128xf32>
    tpu.vector_store %arg15[%c0_83, %c2048], %149 {strides = array<i32>} : memref<256x3200xf32, #tpu.memory_space<vmem>>, vector<256x128xf32>,
    %151 = vector.extract_strided_slice %99 {offsets = [3, 2, 0], sizes = [16, 16, 128], strides = [1, 1, 1]} : vector<20x20x128xf32> to vector<16x16x128xf32>
    %152 = vector.shape_cast %151 : vector<16x16x128xf32> to vector<256x128xf32>
    %c0_84 = arith.constant 0 : index
    %c2176 = arith.constant 2176 : index
    %153 = vector.load %arg15[%c0_84, %c2176] : memref<256x3200xf32, #tpu.memory_space<vmem>>, vector<256x128xf32>
    tpu.vector_store %arg15[%c0_84, %c2176], %152 {strides = array<i32>} : memref<256x3200xf32, #tpu.memory_space<vmem>>, vector<256x128xf32>,
    %154 = vector.extract_strided_slice %99 {offsets = [3, 3, 0], sizes = [16, 16, 128], strides = [1, 1, 1]} : vector<20x20x128xf32> to vector<16x16x128xf32>
    %155 = vector.shape_cast %154 : vector<16x16x128xf32> to vector<256x128xf32>
    %c0_85 = arith.constant 0 : index
    %c2304 = arith.constant 2304 : index
    %156 = vector.load %arg15[%c0_85, %c2304] : memref<256x3200xf32, #tpu.memory_space<vmem>>, vector<256x128xf32>
    tpu.vector_store %arg15[%c0_85, %c2304], %155 {strides = array<i32>} : memref<256x3200xf32, #tpu.memory_space<vmem>>, vector<256x128xf32>,
    %157 = vector.extract_strided_slice %99 {offsets = [3, 4, 0], sizes = [16, 16, 128], strides = [1, 1, 1]} : vector<20x20x128xf32> to vector<16x16x128xf32>
    %158 = vector.shape_cast %157 : vector<16x16x128xf32> to vector<256x128xf32>
    %c0_86 = arith.constant 0 : index
    %c2432 = arith.constant 2432 : index
    %159 = vector.load %arg15[%c0_86, %c2432] : memref<256x3200xf32, #tpu.memory_space<vmem>>, vector<256x128xf32>
    tpu.vector_store %arg15[%c0_86, %c2432], %158 {strides = array<i32>} : memref<256x3200xf32, #tpu.memory_space<vmem>>, vector<256x128xf32>,
    %160 = vector.extract_strided_slice %99 {offsets = [4, 0, 0], sizes = [16, 16, 128], strides = [1, 1, 1]} : vector<20x20x128xf32> to vector<16x16x128xf32>
    %161 = vector.shape_cast %160 : vector<16x16x128xf32> to vector<256x128xf32>
    %c0_87 = arith.constant 0 : index
    %c2560 = arith.constant 2560 : index
    %162 = vector.load %arg15[%c0_87, %c2560] : memref<256x3200xf32, #tpu.memory_space<vmem>>, vector<256x128xf32>
    tpu.vector_store %arg15[%c0_87, %c2560], %161 {strides = array<i32>} : memref<256x3200xf32, #tpu.memory_space<vmem>>, vector<256x128xf32>,
    %163 = vector.extract_strided_slice %99 {offsets = [4, 1, 0], sizes = [16, 16, 128], strides = [1, 1, 1]} : vector<20x20x128xf32> to vector<16x16x128xf32>
    %164 = vector.shape_cast %163 : vector<16x16x128xf32> to vector<256x128xf32>
    %c0_88 = arith.constant 0 : index
    %c2688 = arith.constant 2688 : index
    %165 = vector.load %arg15[%c0_88, %c2688] : memref<256x3200xf32, #tpu.memory_space<vmem>>, vector<256x128xf32>
    tpu.vector_store %arg15[%c0_88, %c2688], %164 {strides = array<i32>} : memref<256x3200xf32, #tpu.memory_space<vmem>>, vector<256x128xf32>,
    %166 = vector.extract_strided_slice %99 {offsets = [4, 2, 0], sizes = [16, 16, 128], strides = [1, 1, 1]} : vector<20x20x128xf32> to vector<16x16x128xf32>
    %167 = vector.shape_cast %166 : vector<16x16x128xf32> to vector<256x128xf32>
    %c0_89 = arith.constant 0 : index
    %c2816 = arith.constant 2816 : index
    %168 = vector.load %arg15[%c0_89, %c2816] : memref<256x3200xf32, #tpu.memory_space<vmem>>, vector<256x128xf32>
    tpu.vector_store %arg15[%c0_89, %c2816], %167 {strides = array<i32>} : memref<256x3200xf32, #tpu.memory_space<vmem>>, vector<256x128xf32>,
    %169 = vector.extract_strided_slice %99 {offsets = [4, 3, 0], sizes = [16, 16, 128], strides = [1, 1, 1]} : vector<20x20x128xf32> to vector<16x16x128xf32>
    %170 = vector.shape_cast %169 : vector<16x16x128xf32> to vector<256x128xf32>
    %c0_90 = arith.constant 0 : index
    %c2944 = arith.constant 2944 : index
    %171 = vector.load %arg15[%c0_90, %c2944] : memref<256x3200xf32, #tpu.memory_space<vmem>>, vector<256x128xf32>
    tpu.vector_store %arg15[%c0_90, %c2944], %170 {strides = array<i32>} : memref<256x3200xf32, #tpu.memory_space<vmem>>, vector<256x128xf32>,
    %172 = vector.extract_strided_slice %99 {offsets = [4, 4, 0], sizes = [16, 16, 128], strides = [1, 1, 1]} : vector<20x20x128xf32> to vector<16x16x128xf32>
    %173 = vector.shape_cast %172 : vector<16x16x128xf32> to vector<256x128xf32>
    %c0_91 = arith.constant 0 : index
    %c3072 = arith.constant 3072 : index
    %174 = vector.load %arg15[%c0_91, %c3072] : memref<256x3200xf32, #tpu.memory_space<vmem>>, vector<256x128xf32>
    tpu.vector_store %arg15[%c0_91, %c3072], %173 {strides = array<i32>} : memref<256x3200xf32, #tpu.memory_space<vmem>>, vector<256x128xf32>,
    %c0_92 = arith.constant 0 : index
    %c0_93 = arith.constant 0 : index
    %175 = vector.load %arg15[%c0_92, %c0_93] : memref<256x3200xf32, #tpu.memory_space<vmem>>, vector<256x3200xf32>
    %c0_94 = arith.constant 0 : index
    %c0_95 = arith.constant 0 : index
    %176 = vector.load %arg8[%c0_94, %c0_95] : memref<3200x64xf32, #tpu.memory_space<vmem>>, vector<3200x64xf32>
    %cst_96 = arith.constant dense<0.000000e+00> : vector<256x64xf32>
    %177 = tpu.matmul %175, %176, %cst_96 {dimension_numbers = #tpu.dot_dimension_numbers<[1], [0], [0], [1], [0, 0, 1, 1], [], []>} : vector<256x3200xf32>, vector<3200x64xf32>, vector<256x64xf32> -> vector<256x64xf32>
    %c0_97 = arith.constant 0 : index
    %c0_98 = arith.constant 0 : index
    %178 = vector.load %arg9[%c0_97, %c0_98] : memref<1x64xf32, #tpu.memory_space<vmem>>, vector<1x64xf32>
    %c0_99 = arith.constant 0 : index
    %c0_100 = arith.constant 0 : index
    %179 = vector.load %arg10[%c0_99, %c0_100] : memref<1x64xf32, #tpu.memory_space<vmem>>, vector<1x64xf32>
    %cst_101 = arith.constant dense<0.000000e+00> : vector<64xf32>
    %180 = vector.multi_reduction <add>, %177, %cst_101 [0] : vector<256x64xf32> to vector<64xf32>
    %181 = vector.shape_cast %180 : vector<64xf32> to vector<1x64xf32>
    %cst_102 = arith.constant 3.906250e-03 : f32
    %182 = vector.broadcast %cst_102 : f32 to vector<1x64xf32>
    %183 = arith.mulf %181, %182 : vector<1x64xf32>
    %184 = arith.mulf %177, %177 : vector<256x64xf32>
    %cst_103 = arith.constant dense<0.000000e+00> : vector<64xf32>
    %185 = vector.multi_reduction <add>, %184, %cst_103 [0] : vector<256x64xf32> to vector<64xf32>
    %186 = vector.shape_cast %185 : vector<64xf32> to vector<1x64xf32>
    %cst_104 = arith.constant 3.906250e-03 : f32
    %187 = vector.broadcast %cst_104 : f32 to vector<1x64xf32>
    %188 = arith.mulf %186, %187 : vector<1x64xf32>
    %189 = arith.mulf %183, %183 : vector<1x64xf32>
    %190 = arith.subf %188, %189 : vector<1x64xf32>
    %191 = vector.broadcast %183 : vector<1x64xf32> to vector<256x64xf32>
    %192 = arith.subf %177, %191 : vector<256x64xf32>
    %cst_105 = arith.constant 9.99999974E-6 : f32
    %193 = vector.broadcast %cst_105 : f32 to vector<1x64xf32>
    %194 = arith.addf %190, %193 : vector<1x64xf32>
    %195 = math.rsqrt %194 : vector<1x64xf32>
    %196 = vector.broadcast %195 : vector<1x64xf32> to vector<256x64xf32>
    %197 = arith.mulf %192, %196 : vector<256x64xf32>
    %198 = vector.broadcast %178 : vector<1x64xf32> to vector<256x64xf32>
    %199 = arith.mulf %197, %198 : vector<256x64xf32>
    %200 = vector.broadcast %179 : vector<1x64xf32> to vector<256x64xf32>
    %201 = arith.addf %199, %200 : vector<256x64xf32>
    %cst_106 = arith.constant 0.000000e+00 : f32
    %202 = vector.broadcast %cst_106 : f32 to vector<256x64xf32>
    %203 = arith.maximumf %201, %202 : vector<256x64xf32>
    %204 = tpu.concatenate %33, %98, %203 in 1 : vector<256x64xf32>, vector<256x64xf32>, vector<256x64xf32> -> vector<256x192xf32>
    %205 = vector.shape_cast %204 : vector<256x192xf32> to vector<16x16x192xf32>
    %c0_107 = arith.constant 0 : index
    %c0_108 = arith.constant 0 : index
    %c0_109 = arith.constant 0 : index
    %c0_110 = arith.constant 0 : index
    %206 = vector.load %arg11[%c0_107, %c0_108, %c0_109, %c0_110] : memref<1x16x16x192xf32, #tpu.memory_space<vmem>>, vector<1x16x16x192xf32>
    %207 = vector.shape_cast %206 : vector<1x16x16x192xf32> to vector<16x16x192xf32>
    %208 = vector.shape_cast %205 : vector<16x16x192xf32> to vector<1x16x16x192xf32>
    tpu.vector_store %arg11[%c0_107, %c0_108, %c0_109, %c0_110], %208 {strides = array<i32>} : memref<1x16x16x192xf32, #tpu.memory_space<vmem>>, vector<1x16x16x192xf32>,
    return
  }
  func.func @transform_0(%arg0: i32) -> (i32, i32, i32, i32) {
    %c0_i32 = arith.constant 0 : i32
    %c0_i32_0 = arith.constant 0 : i32
    %c0_i32_1 = arith.constant 0 : i32
    %c0_i32_2 = arith.constant 0 : i32
    return %arg0, %c0_i32, %c0_i32_0, %c0_i32_1 : i32, i32, i32, i32
  }
  func.func @transform_1(%arg0: i32) -> (i32, i32) {
    %c0_i32 = arith.constant 0 : i32
    %c0_i32_0 = arith.constant 0 : i32
    %c0_i32_1 = arith.constant 0 : i32
    return %c0_i32, %c0_i32_0 : i32, i32
  }
  func.func @transform_2(%arg0: i32) -> (i32, i32) {
    %c0_i32 = arith.constant 0 : i32
    %c0_i32_0 = arith.constant 0 : i32
    %c0_i32_1 = arith.constant 0 : i32
    return %c0_i32, %c0_i32_0 : i32, i32
  }
  func.func @transform_3(%arg0: i32) -> (i32, i32) {
    %c0_i32 = arith.constant 0 : i32
    %c0_i32_0 = arith.constant 0 : i32
    %c0_i32_1 = arith.constant 0 : i32
    return %c0_i32, %c0_i32_0 : i32, i32
  }
  func.func @transform_4(%arg0: i32) -> (i32, i32) {
    %c0_i32 = arith.constant 0 : i32
    %c0_i32_0 = arith.constant 0 : i32
    %c0_i32_1 = arith.constant 0 : i32
    return %c0_i32, %c0_i32_0 : i32, i32
  }
  func.func @transform_5(%arg0: i32) -> (i32, i32) {
    %c0_i32 = arith.constant 0 : i32
    %c0_i32_0 = arith.constant 0 : i32
    %c0_i32_1 = arith.constant 0 : i32
    return %c0_i32, %c0_i32_0 : i32, i32
  }
  func.func @transform_6(%arg0: i32) -> (i32, i32) {
    %c0_i32 = arith.constant 0 : i32
    %c0_i32_0 = arith.constant 0 : i32
    %c0_i32_1 = arith.constant 0 : i32
    return %c0_i32, %c0_i32_0 : i32, i32
  }
  func.func @transform_7(%arg0: i32) -> (i32, i32) {
    %c0_i32 = arith.constant 0 : i32
    %c0_i32_0 = arith.constant 0 : i32
    %c0_i32_1 = arith.constant 0 : i32
    return %c0_i32, %c0_i32_0 : i32, i32
  }
  func.func @transform_8(%arg0: i32) -> (i32, i32) {
    %c0_i32 = arith.constant 0 : i32
    %c0_i32_0 = arith.constant 0 : i32
    %c0_i32_1 = arith.constant 0 : i32
    return %c0_i32, %c0_i32_0 : i32, i32
  }
  func.func @transform_9(%arg0: i32) -> (i32, i32) {
    %c0_i32 = arith.constant 0 : i32
    %c0_i32_0 = arith.constant 0 : i32
    %c0_i32_1 = arith.constant 0 : i32
    return %c0_i32, %c0_i32_0 : i32, i32
  }
  func.func @transform_10(%arg0: i32) -> (i32, i32, i32, i32) {
    %c0_i32 = arith.constant 0 : i32
    %c0_i32_0 = arith.constant 0 : i32
    %c0_i32_1 = arith.constant 0 : i32
    %c0_i32_2 = arith.constant 0 : i32
    return %arg0, %c0_i32, %c0_i32_0, %c0_i32_1 : i32, i32, i32, i32
  }
}

</mosaic_0001>

<bundles_post_ra>
// kernel: inception_a.1
= control target key start
LH: loop header
LB: loop body
LE: loop exit
PB: predicated region body
PF: predicated region fallthrough
CT: control target
= control target key end

     0   :  { %15 = vsyncpa [#allocation7], 0  ;;  %s20907_s0 = inlined_call_operand.vmem [shape: f32[2,16,16,4], index: 0, kind: input, shape index: {}]   ;;  %s20908_s1 = inlined_call_operand.vmem [shape: f32[4,320], index: 1, kind: input, shape index: {}]   ;;  %s20909_s2 = inlined_call_operand.vmem [shape: f32[1,320], index: 2, kind: input, shape index: {}]   ;;  %s20910_s3 = inlined_call_operand.vmem [shape: f32[1,320], index: 3, kind: input, shape index: {}]   ;;  %s20911_s4 = inlined_call_operand.vmem [shape: f32[1152,64], index: 4, kind: input, shape index: {}]   ;;  %s20912_s5 = inlined_call_operand.vmem [shape: f32[1,64], index: 5, kind: input, shape index: {}]   ;;  %s20913_s6 = inlined_call_operand.vmem [shape: f32[1,64], index: 6, kind: input, shape index: {}]   ;;  %s20914_s7 = inlined_call_operand.vmem [shape: f32[3200,64], index: 7, kind: input, shape index: {}]   ;;  %s20915_s8 = inlined_call_operand.vmem [shape: f32[1,64], index: 8, kind: input, shape index: {}]   ;;  %s20916_s9 = inlined_call_operand.vmem [shape: f32[1,64], index: 9, kind: input, shape index: {}]   ;;  %s20917_s10 = inlined_call_operand.hbm [shape: f32[2,16,16,192], index: 10, kind: output, shape index: {}]  }
   0x1   :  { %17 = vsyncpa [#allocation7 + $0x1], 0  ;;  %s13379_s13 = smov 0   ;;  %s13381_s14 = smov 0  }
   0x2   :  { %s13383_s15 = smov 0   ;;  %s13385_s16 = smov 0  }
   0x3 LB: > { %s13400_s17 = sadd.s32 4294967295, %s13316_s16   ;;  %s10889_s18 = sadd.s32 4294967294, %s13316_s16   ;;  %s13316_s16 = sphi %s13385_s16, %s22590_s16   ;;  %s13312_s15 = sphi %s13383_s15, %s22589_s15   ;;  %s13308_s14 = sphi %s13381_s14, %s22588_s14   ;;  %s13304_s13 = sphi %s13379_s13, %s22587_s13  }
   0x4   : > { %s13404_s19 = sadd.s32 1, %s13316_s16   ;;  %s245_s20 = sadd.s32 1, %s13312_s15 }
   0x5   : > { %s242_s21 = ssub.s32 %s13316_s16, %s13404_s19  ;;  %p255_p0 = scmp.ne.s32.totalorder %s13312_s15, %s13308_s14 }
   0x6   : > { %p243_p1 = scmp.eq.s32.totalorder %s242_s21, 0  ;;  %p256_p2 = scmp.eq.s32.totalorder %s13400_s17, 1 }
   0x7   : > { %p261_p3 = scmp.ne.s32.totalorder %s13308_s14, %s13304_s13  ;;  %p262_p4 = scmp.eq.s32.totalorder %s10889_s18, 1 }
   0x8   : > { %s13415_s22 = scalar_select %p243_p1, %s13312_s15, %s245_s20  }
   0x9   : > { %p13417_p5 = por %p256_p2, %p255_p0  ;;  %p13421_p6 = por %p262_p4, %p261_p3 }
   0xa   : > { %p10892_p7 = scmp.ge.s32.totalorder %s13316_s16, 1  ;;  %p315_p8 = scmp.lt.s32.totalorder %s13316_s16, 3 }
   0xc   : > { %p316_p9 = pnand %p10892_p7, %p315_p8 }
   0xe   : > { %319 = sbr.rel (%p316_p9) target bundleno = 1872 (0x750), region = 60 }
  0x15   : > { %v13430_v0 = vld [vmem:[%s20908_s1] sm:$0xff]  ;;  %vm492_vm0 = vcmask 1043456   ;;  %p353_p10 = scmp.lt.s32.totalorder %s13400_s17, 1  ;;  %v13318_v2 = vmov 0.0   ;;  %vm395_vm1 = vcmask 31744   ;;  %v3143_v37 = vld [vmem:[%s20911_s4 + $0x408] sm:$0xff] }
  0x16   : > { %v13435_v1 = vcombine.high %v13430_v0, %v13430_v0  ;;  %563 = vmatprep.mubr.f32.mxu0 %v13318_v2  ;;  %1896 = vst [vmem:[#allocation2] sm:$0xff] %v13318_v2  ;;  %1898 = vst [vmem:[#allocation2 + $0x10] sm:$0x3] %v13318_v2  ;;  %707 = vmatprep.mubr.f32.mxu1 %v13318_v2  ;;  %v391_v33 = vld [vmem:[%s20908_s1 + $0x8] sm:$0xf]  ;;  %v3142_v36 = vld [vmem:[%s20911_s4 + $0x400] sm:$0xff] }
  0x17   : > { %1899 = vst [vmem:[#allocation2 + $0x18] sm:$0xff] %v13318_v2  ;;  %1900 = vst [vmem:[#allocation2 + $0x20] sm:$0xff] %v13318_v2  ;;  %s354_s27 = scalar_select %p353_p10, %s13400_s17, 1  ;;  %v11505_v38 = vpack.c.bf16 %v3143_v37, %v3142_v36  ;;  %v3144_v39 = vld [vmem:[%s20911_s4 + $0x410] sm:$0xff]  ;;  %v3145_v40 = vld [vmem:[%s20911_s4 + $0x418] sm:$0xff]  ;;  %v20918_v45 = vmov 0.0|0.0  }
  0x18   : > { %1901 = vst [vmem:[#allocation2 + $0x28] sm:$0x3] %v13318_v2  ;;  %1902 = vst [vmem:[#allocation2 + $0x30] sm:$0xff] %v13318_v2  ;;  %10896 = vmatprep.subr.msk.mxu0 %vm492_vm0, %v13435_v1  ;;  %12145 = vmatprep.subr.msk.mxu1 %vm492_vm0, %v13435_v1  ;;  %v11509_v41 = vpack.c.bf16 %v3145_v40, %v3144_v39  ;;  %v3014_v42 = vld [vmem:[%s20911_s4] sm:$0xff]  ;;  %v3015_v43 = vld [vmem:[%s20911_s4 + $0x8] sm:$0xff]  ;;  %vm2210_vm2 = vcmask 1046528  }
  0x19   : > { %1903 = vst [vmem:[#allocation2 + $0x38] sm:$0xff] %v13318_v2  ;;  %1904 = vst [vmem:[#allocation2 + $0x40] sm:$0x3] %v13318_v2  ;;  %10897 = vmatpush1.msk.msra.mxu0 %vm492_vm0, %v13430_v0  ;;  %s10972_s28 = sshll.u32 %s354_s27, 8  ;;  %12146 = vmatpush1.msk.msra.mxu1 %vm492_vm0, %v13430_v0  ;;  %v11314_v44 = vpack.c.bf16 %v3015_v43, %v3014_v42  ;;  %v3146_v46 = vld [vmem:[%s20911_s4 + $0x420] sm:$0xff]  ;;  %v3147_v47 = vld [vmem:[%s20911_s4 + $0x428] sm:$0xff] }
  0x1a   : > { %1905 = vst [vmem:[#allocation2 + $0x48] sm:$0xff] %v13318_v2  ;;  %1906 = vst [vmem:[#allocation2 + $0x50] sm:$0xff] %v13318_v2  ;;  %s13556_s11 = scalar_lea.vmem %s20907_s0, %s10972_s28  ;;  %11103 = vmatprep.subr.msk.mxu1 %vm492_vm0, %v391_v33  ;;  %11506 = vmatprep.subr.bf16.mxu0 %v11505_v38  ;;  %v3016_v48 = vld [vmem:[%s20911_s4 + $0x10] sm:$0xff]  ;;  %v11513_v49 = vpack.c.bf16 %v3147_v47, %v3146_v46  ;;  %v3017_v50 = vld [vmem:[%s20911_s4 + $0x18] sm:$0xff]  ;;  %vm2355_vm3 = vcmask 1045504   ;;  %vm1057_vm4 = vcmask 523264  }
  0x1b   : > { %1907 = vst [vmem:[#allocation2 + $0x58] sm:$0x3] %v13318_v2  ;;  %1908 = vst [vmem:[#allocation2 + $0x60] sm:$0xff] %v13318_v2  ;;  %v358_v3 = vld [vmem:[%s13556_s11] sm:$0xff]  ;;  %v13562_v4 = vld [vmem:[%s13556_s11 + $0x8] sm:$0xff]  ;;  %v11317_v51 = vpack.c.bf16 %v3017_v50, %v3016_v48  ;;  %vm5061_vm5 = vcmask 1044480  }
  0x1c   : > { %1909 = vst [vmem:[#allocation2 + $0x68] sm:$0xff] %v13318_v2  ;;  %1910 = vst [vmem:[#allocation2 + $0x70] sm:$0x3] %v13318_v2  ;;  %10898 = vmatmul.mubr.msk.f32.vlgmr.msra.gmra.mrb[0].mxu0 %vm395_vm1, %v358_v3  ;;  %v13568_v5 = vld [vmem:[%s13556_s11 + $0x10] sm:$0xff]  ;;  %v13571_v6 = vld [vmem:[%s13556_s11 + $0xc0] sm:$0xff]  ;;  %s13320_s20 = smov 64  }
  0x1d   : > { %1911 = vst [vmem:[#allocation2 + $0x78] sm:$0xff] %v13318_v2  ;;  %1912 = vst [vmem:[#allocation2 + $0x80] sm:$0xff] %v13318_v2  ;;  %569 = vmatprep.mubr.f32.mxu0 %v13318_v2  ;;  %10922 = vmatmul.mubr.msk.f32.vlgmr.msra.gmra.mrb[0].mxu1 %vm395_vm1, %v13571_v6  ;;  %v13577_v7 = vld [vmem:[%s13556_s11 + $0xc8] sm:$0xff]  ;;  %v13583_v8 = vld [vmem:[%s13556_s11 + $0x18] sm:$0xff]  ;;  %s350_s26 = sand.u32 1, %s13308_s14   ;;  %s10973_s21 = sshll.u32 %s13400_s17, 13 }
  0x1e   : > { %1913 = vst [vmem:[#allocation2 + $0x88] sm:$0x3] %v13318_v2  ;;  %1914 = vst [vmem:[#allocation2 + $0x90] sm:$0xff] %v13318_v2  ;;  %713 = vmatprep.mubr.f32.mxu1 %v13318_v2  ;;  %v13589_v9 = vld [vmem:[%s13556_s11 + $0xd0] sm:$0xff]  ;;  %v13595_v10 = vld [vmem:[%s13556_s11 + $0x20] sm:$0xff]  ;;  %11104 = vmatpush3.msk.msra.mxu1 %vm492_vm0, %v391_v33  ;;  %s10893_s30 = sshll.u32 %s350_s26, 9  ;;  %s20832_s28 = scalar_lea.hbm %s20917_s10, %s10973_s21 }
  0x1f   : > { %1915 = vst [vmem:[#allocation2 + $0x98] sm:$0xff] %v13318_v2  ;;  %1916 = vst [vmem:[#allocation2 + $0xa0] sm:$0x3] %v13318_v2  ;;  %v13601_v11 = vld [vmem:[%s13556_s11 + $0xd8] sm:$0xff]  ;;  %v13607_v12 = vld [vmem:[%s13556_s11 + $0x28] sm:$0xff]  ;;  %11508 = vmatpush3.bf16.msra.mxu0 %v11505_v38  ;;  %11313 = vmatprep.subr.bf16.mxu1 %v20918_v45  ;;  %s19850_s25 = scalar_lea.vmem [#allocation6], %s10893_s30 }
  0x20   : > { %1917 = vst [vmem:[#allocation2 + $0xa8] sm:$0xff] %v13318_v2  ;;  %1918 = vst [vmem:[#allocation2 + $0xb0] sm:$0xff] %v13318_v2  ;;  %10899 = vmatmul.mubr.msk.f32.gmra.mrb[2].mxu0 %vm395_vm1, %v13562_v4  ;;  %v13613_v13 = vld [vmem:[%s13556_s11 + $0xe0] sm:$0xff]  ;;  %v13619_v14 = vld [vmem:[%s13556_s11 + $0x30] sm:$0xff]  ;;  %11510 = vmatprep.subr.bf16.mxu0 %v11509_v41  ;;  %s10827_s27 = sshll.u32 %s19850_s25, 4  ;;  %s20866_s29 = scalar_lea.sflag [#allocation7], %s350_s26  ;;  %s20834_s27 = int_to_ptr.vmem [resolvable:$true] %s10827_s27 }
  0x21   : > { %1919 = vst [vmem:[#allocation2 + $0xb8] sm:$0x3] %v13318_v2  ;;  %1920 = vst [vmem:[#allocation2 + $0xc0] sm:$0xff] %v13318_v2  ;;  %575 = vmatprep.mubr.f32.mxu0 %v13318_v2  ;;  %10923 = vmatmul.mubr.msk.f32.gmra.mrb[2].mxu1 %vm395_vm1, %v13577_v7  ;;  %v13625_v15 = vld [vmem:[%s13556_s11 + $0xe8] sm:$0xff]  ;;  %v13631_v16 = vld [vmem:[%s13556_s11 + $0x38] sm:$0xff]  ;;  %s13254_s30 = scalar_lea.vmem %s20834_s27, 8192 }
  0x22   : > { %1921 = vst [vmem:[#allocation2 + $0xc8] sm:$0xff] %v13318_v2  ;;  %1922 = vst [vmem:[#allocation2 + $0xd0] sm:$0x3] %v13318_v2  ;;  %719 = vmatprep.mubr.f32.mxu1 %v13318_v2  ;;  %v13637_v17 = vld [vmem:[%s13556_s11 + $0xf0] sm:$0xff]  ;;  %v366_v18 = vld [vmem:[%s13556_s11 + $0x40] sm:$0xff]  ;;  %p13255_p11 = scmp.ne.s32.totalorder %s20834_s27, %s13254_s30 }
  0x23   : > { %1923 = vst [vmem:[#allocation2 + $0xd8] sm:$0xff] %v13318_v2  ;;  %1924 = vst [vmem:[#allocation2 + $0xe0] sm:$0xff] %v13318_v2  ;;  %v13647_v19 = vld [vmem:[%s13556_s11 + $0xf8] sm:$0xff]  ;;  %v367_v20 = vld [vmem:[%s13556_s11 + $0x48] sm:$0xff]  ;;  %11512 = vmatpush3.bf16.msra.mxu0 %v11509_v41 }
  0x24   : > { %1925 = vst [vmem:[#allocation2 + $0xe8] sm:$0x3] %v13318_v2  ;;  %1926 = vst [vmem:[#allocation2 + $0xf0] sm:$0xff] %v13318_v2  ;;  %10900 = vmatmul.mubr.msk.f32.gmra.mrb[4].mxu0 %vm395_vm1, %v13568_v5  ;;  %v368_v21 = vld [vmem:[%s13556_s11 + $0x50] sm:$0xff]  ;;  %v369_v22 = vld [vmem:[%s13556_s11 + $0x58] sm:$0xff]  ;;  %11514 = vmatprep.subr.bf16.mxu0 %v11513_v49  ;;  %p13256_p12 = pnand %p13255_p11, %p13417_p5 }
  0x25   : > { %1927 = vst [vmem:[#allocation2 + $0xf8] sm:$0xff] %v13318_v2  ;;  %1928 = vst [vmem:[#allocation2 + $0x100] sm:$0x3] %v13318_v2  ;;  %581 = vmatprep.mubr.f32.mxu0 %v13318_v2  ;;  %10924 = vmatmul.mubr.msk.f32.gmra.mrb[4].mxu1 %vm395_vm1, %v13589_v9  ;;  %v370_v23 = vld [vmem:[%s13556_s11 + $0x60] sm:$0xff]  ;;  %v371_v24 = vld [vmem:[%s13556_s11 + $0x68] sm:$0xff] }
  0x26   : > { %1929 = vst [vmem:[#allocation2 + $0x108] sm:$0xff] %v13318_v2  ;;  %1930 = vst [vmem:[#allocation2 + $0x110] sm:$0xff] %v13318_v2  ;;  %725 = vmatprep.mubr.f32.mxu1 %v13318_v2  ;;  %v372_v25 = vld [vmem:[%s13556_s11 + $0x70] sm:$0xff]  ;;  %v373_v26 = vld [vmem:[%s13556_s11 + $0x78] sm:$0xff]  ;;  %p13257_p13 = pneg %p13256_p12 }
  0x27   : > { %1931 = vst [vmem:[#allocation2 + $0x118] sm:$0x3] %v13318_v2  ;;  %1932 = vst [vmem:[#allocation2 + $0x120] sm:$0xff] %v13318_v2  ;;  %v374_v27 = vld [vmem:[%s13556_s11 + $0x80] sm:$0xff]  ;;  %v375_v28 = vld [vmem:[%s13556_s11 + $0x88] sm:$0xff]  ;;  %11516 = vmatpush3.bf16.msra.mxu0 %v11513_v49 }
  0x28   : > { %1933 = vst [vmem:[#allocation2 + $0x128] sm:$0xff] %v13318_v2  ;;  %1934 = vst [vmem:[#allocation2 + $0x130] sm:$0x3] %v13318_v2  ;;  %10901 = vmatmul.mubr.msk.f32.gmra.mrb[6].mxu0 %vm395_vm1, %v13583_v8  ;;  %v376_v29 = vld [vmem:[%s13556_s11 + $0x90] sm:$0xff]  ;;  %v377_v30 = vld [vmem:[%s13556_s11 + $0x98] sm:$0xff] }
  0x29   : > { %1935 = vst [vmem:[#allocation2 + $0x138] sm:$0xff] %v13318_v2  ;;  %1936 = vst [vmem:[#allocation2 + $0x140] sm:$0xff] %v13318_v2  ;;  %587 = vmatprep.mubr.f32.mxu0 %v13318_v2  ;;  %10925 = vmatmul.mubr.msk.f32.gmra.mrb[6].mxu1 %vm395_vm1, %v13601_v11  ;;  %v378_v31 = vld [vmem:[%s13556_s11 + $0xa0] sm:$0xff]  ;;  %v379_v32 = vld [vmem:[%s13556_s11 + $0xa8] sm:$0xff] }
  0x2a   : > { %1937 = vst [vmem:[#allocation2 + $0x148] sm:$0x3] %v13318_v2  ;;  %1938 = vst [vmem:[#allocation2 + $0x150] sm:$0xff] %v13318_v2  ;;  %731 = vmatprep.mubr.f32.mxu1 %v13318_v2  ;;  %v380_v34 = vld [vmem:[%s13556_s11 + $0xb0] sm:$0xff]  ;;  %v381_v35 = vld [vmem:[%s13556_s11 + $0xb8] sm:$0xff]  ;;  %s13321_s11 = smov [#allocation6]  }
  0x2b   : > { %1939 = vst [vmem:[#allocation2 + $0x158] sm:$0xff] %v13318_v2  ;;  %1940 = vst [vmem:[#allocation2 + $0x160] sm:$0x3] %v13318_v2  ;;  %v3018_v52 = vld [vmem:[%s20911_s4 + $0x20] sm:$0xff]  ;;  %v3019_v53 = vld [vmem:[%s20911_s4 + $0x28] sm:$0xff]  ;;  %s13258_s12 = sshll.u32 %s13321_s11, 4  ;;  %s13259_s12 = int_to_ptr.vmem [resolvable:$false] %s13258_s12 }
  0x2c   : > { %1941 = vst [vmem:[#allocation2 + $0x168] sm:$0xff] %v13318_v2  ;;  %1942 = vst [vmem:[#allocation2 + $0x170] sm:$0xff] %v13318_v2  ;;  %10902 = vmatmul.mubr.msk.f32.gmra.mrb[8].mxu0 %vm395_vm1, %v13595_v10  ;;  %v11320_v54 = vpack.c.bf16 %v3019_v53, %v3018_v52  ;;  %v3020_v55 = vld [vmem:[%s20911_s4 + $0x30] sm:$0xff]  ;;  %v3021_v56 = vld [vmem:[%s20911_s4 + $0x38] sm:$0xff]  ;;  %s13260_s18 = scalar_lea.vmem %s13259_s12, 16384  ;;  %p13261_p0 = scmp.lt.s32.totalorder %s20834_s27, %s13259_s12 }
  0x2d   : > { %1943 = vst [vmem:[#allocation2 + $0x178] sm:$0x3] %v13318_v2  ;;  %1944 = vst [vmem:[#allocation2 + $0x180] sm:$0xff] %v13318_v2  ;;  %593 = vmatprep.mubr.f32.mxu0 %v13318_v2  ;;  %10926 = vmatmul.mubr.msk.f32.gmra.mrb[8].mxu1 %vm395_vm1, %v13613_v13  ;;  %v11323_v57 = vpack.c.bf16 %v3021_v56, %v3020_v55  ;;  %v3148_v58 = vld [vmem:[%s20911_s4 + $0x430] sm:$0xff]  ;;  %v3149_v59 = vld [vmem:[%s20911_s4 + $0x438] sm:$0xff]  ;;  %p13262_p1 = scmp.lt.s32.totalorder %s13260_s18, %s13254_s30 }
  0x2e   : > { %1945 = vst [vmem:[#allocation2 + $0x188] sm:$0xff] %v13318_v2  ;;  %1946 = vst [vmem:[#allocation2 + $0x190] sm:$0x3] %v13318_v2  ;;  %737 = vmatprep.mubr.f32.mxu1 %v13318_v2  ;;  %v11517_v60 = vpack.c.bf16 %v3149_v59, %v3148_v58  ;;  %v3022_v63 = vld [vmem:[%s20911_s4 + $0x40] sm:$0xff]  ;;  %v3023_v0 = vld [vmem:[%s20911_s4 + $0x48] sm:$0xff] }
  0x2f   : > { %1949 = vst [vmem:[#allocation2 + $0x1a8] sm:$0x3] %v13318_v2  ;;  %1952 = vst [vmem:[#allocation3 + $0x10] sm:$0xf] %v13318_v2  ;;  %v11326_v1 = vpack.c.bf16 %v3023_v0, %v3022_v63  ;;  %p13263_p2 = por %p13262_p1, %p13261_p0 }
  0x30   : > { %1955 = vst [vmem:[#allocation3 + $0x28] sm:$0xf] %v13318_v2  ;;  %1956 = vst [vmem:[#allocation3 + $0x30] sm:$0xff] %v13318_v2  ;;  %10903 = vmatmul.mubr.msk.f32.gmra.mrb[10].mxu0 %vm395_vm1, %v13607_v12  ;;  %11518 = vmatprep.subr.bf16.mxu0 %v11517_v60 }
  0x31   : > { %1957 = vst [vmem:[#allocation3 + $0x38] sm:$0xff] %v13318_v2  ;;  %1958 = vst [vmem:[#allocation3 + $0x40] sm:$0xf] %v13318_v2  ;;  %599 = vmatprep.mubr.f32.mxu0 %v13318_v2  ;;  %10927 = vmatmul.mubr.msk.f32.gmra.mrb[10].mxu1 %vm395_vm1, %v13625_v15  ;;  %p13264_p3 = pnand %p13263_p2, %p13257_p13 }
  0x32   : > { %1959 = vst [vmem:[#allocation3 + $0x48] sm:$0xff] %v13318_v2  ;;  %1960 = vst [vmem:[#allocation3 + $0x50] sm:$0xff] %v13318_v2  ;;  %743 = vmatprep.mubr.f32.mxu1 %v13318_v2  ;;  %11520 = vmatpush3.bf16.msra.mxu0 %v11517_v60 }
  0x33   : > { %1961 = vst [vmem:[#allocation3 + $0x58] sm:$0xf] %v13318_v2  ;;  %1962 = vst [vmem:[#allocation3 + $0x60] sm:$0xff] %v13318_v2 }
  0x34   : > { %1963 = vst [vmem:[#allocation3 + $0x68] sm:$0xff] %v13318_v2  ;;  %1964 = vst [vmem:[#allocation3 + $0x70] sm:$0xf] %v13318_v2  ;;  %10904 = vmatmul.mubr.msk.f32.gmra.mrb[12].mxu0 %vm395_vm1, %v13619_v14 }
  0x35   : > { %1965 = vst [vmem:[#allocation3 + $0x78] sm:$0xff] %v13318_v2  ;;  %1966 = vst [vmem:[#allocation3 + $0x80] sm:$0xff] %v13318_v2  ;;  %605 = vmatprep.mubr.f32.mxu0 %v13318_v2  ;;  %10928 = vmatmul.mubr.msk.f32.gmra.mrb[12].mxu1 %vm395_vm1, %v13637_v17 }
  0x36   : > { %1967 = vst [vmem:[#allocation3 + $0x88] sm:$0xf] %v13318_v2  ;;  %1968 = vst [vmem:[#allocation3 + $0x90] sm:$0xff] %v13318_v2  ;;  %749 = vmatprep.mubr.f32.mxu1 %v13318_v2 }
  0x37   : > { %1969 = vst [vmem:[#allocation3 + $0x98] sm:$0xff] %v13318_v2  ;;  %1970 = vst [vmem:[#allocation3 + $0xa0] sm:$0xf] %v13318_v2 }
  0x38   : > { %1971 = vst [vmem:[#allocation3 + $0xa8] sm:$0xff] %v13318_v2  ;;  %1972 = vst [vmem:[#allocation3 + $0xb0] sm:$0xff] %v13318_v2  ;;  %10905 = vmatmul.mubr.msk.f32.gmra.mrb[14].mxu0 %vm395_vm1, %v13631_v16 }
  0x39   : > { %1973 = vst [vmem:[#allocation3 + $0xb8] sm:$0xf] %v13318_v2  ;;  %1974 = vst [vmem:[#allocation3 + $0xc0] sm:$0xff] %v13318_v2  ;;  %611 = vmatprep.mubr.f32.mxu0 %v13318_v2  ;;  %10929 = vmatmul.mubr.msk.f32.gmra.mrb[14].mxu1 %vm395_vm1, %v13647_v19 }
  0x3a   : > { %1975 = vst [vmem:[#allocation3 + $0xc8] sm:$0xff] %v13318_v2  ;;  %1976 = vst [vmem:[#allocation3 + $0xd0] sm:$0xf] %v13318_v2  ;;  %11105 = vmatprep.mubr.msk.f32.mxu1 %vm395_vm1, %v358_v3 }
  0x3b   : > { %1977 = vst [vmem:[#allocation3 + $0xd8] sm:$0xff] %v13318_v2  ;;  %1978 = vst [vmem:[#allocation3 + $0xe0] sm:$0xff] %v13318_v2 }
  0x3c   : > { %1979 = vst [vmem:[#allocation3 + $0xe8] sm:$0xf] %v13318_v2  ;;  %1980 = vst [vmem:[#allocation3 + $0xf0] sm:$0xff] %v13318_v2  ;;  %10906 = vmatmul.mubr.msk.f32.gmra.mrb[16].mxu0 %vm395_vm1, %v366_v18 }
  0x3d   : > { %1981 = vst [vmem:[#allocation3 + $0xf8] sm:$0xff] %v13318_v2  ;;  %1982 = vst [vmem:[#allocation3 + $0x100] sm:$0xf] %v13318_v2  ;;  %617 = vmatprep.mubr.f32.mxu0 %v13318_v2  ;;  %11106 = vmatmul.mubr.msk.f32.vlgmr.msra.gmra.mrb[16].mxu1 %vm395_vm1, %v13562_v4 }
  0x3e   : > { %1983 = vst [vmem:[#allocation3 + $0x108] sm:$0xff] %v13318_v2  ;;  %1984 = vst [vmem:[#allocation3 + $0x110] sm:$0xff] %v13318_v2  ;;  %11108 = vmatprep.mubr.msk.f32.mxu1 %vm395_vm1, %v13568_v5  ;;  %11315 = vmatpush1.bf16.msra.mxu1 %v11314_v44 }
  0x3f   : > { %1985 = vst [vmem:[#allocation3 + $0x118] sm:$0xf] %v13318_v2  ;;  %1986 = vst [vmem:[#allocation3 + $0x120] sm:$0xff] %v13318_v2  ;;  %11316 = vmatprep.subr.bf16.mxu1 %v20918_v45 }
  0x40   : > { %1987 = vst [vmem:[#allocation3 + $0x128] sm:$0xff] %v13318_v2  ;;  %1988 = vst [vmem:[#allocation3 + $0x130] sm:$0xf] %v13318_v2  ;;  %10907 = vmatmul.mubr.msk.f32.gmra.mrb[18].mxu0 %vm395_vm1, %v367_v20 }
  0x41   : > { %1989 = vst [vmem:[#allocation3 + $0x138] sm:$0xff] %v13318_v2  ;;  %1990 = vst [vmem:[#allocation3 + $0x140] sm:$0xff] %v13318_v2  ;;  %623 = vmatprep.mubr.f32.mxu0 %v13318_v2  ;;  %11109 = vmatmul.mubr.msk.f32.gmra.mrb[18].mxu1 %vm395_vm1, %v13583_v8 }
  0x42   : > { %1991 = vst [vmem:[#allocation3 + $0x148] sm:$0xf] %v13318_v2  ;;  %1992 = vst [vmem:[#allocation3 + $0x150] sm:$0xff] %v13318_v2  ;;  %11111 = vmatprep.mubr.msk.f32.mxu1 %vm395_vm1, %v13595_v10  ;;  %11318 = vmatpush1.bf16.msra.mxu1 %v11317_v51 }
  0x43   : > { %1993 = vst [vmem:[#allocation3 + $0x158] sm:$0xff] %v13318_v2  ;;  %1994 = vst [vmem:[#allocation3 + $0x160] sm:$0xf] %v13318_v2  ;;  %11319 = vmatprep.subr.bf16.mxu1 %v20918_v45 }
  0x44   : > { %1995 = vst [vmem:[#allocation3 + $0x168] sm:$0xff] %v13318_v2  ;;  %1996 = vst [vmem:[#allocation3 + $0x170] sm:$0xff] %v13318_v2  ;;  %10908 = vmatmul.mubr.msk.f32.gmra.mrb[20].mxu0 %vm395_vm1, %v368_v21 }
  0x45   : > { %1997 = vst [vmem:[#allocation3 + $0x178] sm:$0xf] %v13318_v2  ;;  %1998 = vst [vmem:[#allocation3 + $0x180] sm:$0xff] %v13318_v2  ;;  %629 = vmatprep.mubr.f32.mxu0 %v13318_v2  ;;  %11112 = vmatmul.mubr.msk.f32.gmra.mrb[20].mxu1 %vm395_vm1, %v13607_v12 }
  0x46   : > { %1999 = vst [vmem:[#allocation3 + $0x188] sm:$0xff] %v13318_v2  ;;  %2000 = vst [vmem:[#allocation3 + $0x190] sm:$0xf] %v13318_v2  ;;  %11114 = vmatprep.mubr.msk.f32.mxu1 %vm395_vm1, %v13619_v14  ;;  %11321 = vmatpush1.bf16.msra.mxu1 %v11320_v54 }
  0x47   : > { %2001 = vst [vmem:[#allocation3 + $0x198] sm:$0xff] %v13318_v2  ;;  %2002 = vst [vmem:[#allocation3 + $0x1a0] sm:$0xff] %v13318_v2  ;;  %11322 = vmatprep.subr.bf16.mxu1 %v20918_v45 }
  0x48   : > { %2003 = vst [vmem:[#allocation3 + $0x1a8] sm:$0xf] %v13318_v2  ;;  %2006 = vst [vmem:[#allocation3 + $0x1c0] sm:$0xf] %v13318_v2  ;;  %10909 = vmatmul.mubr.msk.f32.gmra.mrb[22].mxu0 %vm395_vm1, %v369_v22 }
  0x49   : > { %2009 = vst [vmem:[#allocation3 + $0x1d8] sm:$0xf] %v13318_v2  ;;  %635 = vmatprep.mubr.f32.mxu0 %v13318_v2  ;;  %11115 = vmatmul.mubr.msk.f32.gmra.mrb[22].mxu1 %vm395_vm1, %v13631_v16 }
  0x4a   : > { %11117 = vmatprep.mubr.msk.f32.mxu1 %vm395_vm1, %v366_v18  ;;  %11324 = vmatpush1.bf16.msra.mxu1 %v11323_v57 }
  0x4b   : > { %11325 = vmatprep.subr.bf16.mxu1 %v20918_v45 }
  0x4c   : > { %10910 = vmatmul.mubr.msk.f32.gmra.mrb[24].mxu0 %vm395_vm1, %v370_v23 }
  0x4d   : > { %641 = vmatprep.mubr.f32.mxu0 %v13318_v2  ;;  %11118 = vmatmul.mubr.msk.f32.gmra.mrb[24].mxu1 %vm395_vm1, %v367_v20 }
  0x4e   : > { %11120 = vmatprep.mubr.msk.f32.mxu1 %vm395_vm1, %v368_v21  ;;  %11327 = vmatpush1.bf16.msra.mxu1 %v11326_v1 }
  0x4f   : > { %11328 = vmatprep.subr.bf16.mxu1 %v20918_v45 }
  0x50   : > { %10911 = vmatmul.mubr.msk.f32.gmra.mrb[26].mxu0 %vm395_vm1, %v371_v24 }
  0x51   : > { %647 = vmatprep.mubr.f32.mxu0 %v13318_v2  ;;  %11121 = vmatmul.mubr.msk.f32.gmra.mrb[26].mxu1 %vm395_vm1, %v369_v22 }
  0x52   : > { %11123 = vmatprep.mubr.msk.f32.mxu1 %vm395_vm1, %v370_v23 }
  0x54   : > { %10912 = vmatmul.mubr.msk.f32.gmra.mrb[28].mxu0 %vm395_vm1, %v372_v25 }
  0x55   : > { %653 = vmatprep.mubr.f32.mxu0 %v13318_v2  ;;  %11124 = vmatmul.mubr.msk.f32.gmra.mrb[28].mxu1 %vm395_vm1, %v371_v24 }
  0x56   : > { %11126 = vmatprep.mubr.msk.f32.mxu1 %vm395_vm1, %v372_v25 }
  0x58   : > { %10913 = vmatmul.mubr.msk.f32.gmra.mrb[30].mxu0 %vm395_vm1, %v373_v26 }
  0x59   : > { %659 = vmatprep.mubr.f32.mxu0 %v13318_v2  ;;  %11127 = vmatmul.mubr.msk.f32.gmra.mrb[30].mxu1 %vm395_vm1, %v373_v26 }
  0x5a   : > { %11129 = vmatprep.mubr.msk.f32.mxu1 %vm395_vm1, %v374_v27 }
  0x5c   : > { %10914 = vmatmul.mubr.msk.f32.gmra.mrb[32].mxu0 %vm395_vm1, %v374_v27 }
  0x5d   : > { %665 = vmatprep.mubr.f32.mxu0 %v13318_v2  ;;  %11130 = vmatmul.mubr.msk.f32.gmra.mrb[32].mxu1 %vm395_vm1, %v375_v28 }
  0x5e   : > { %11132 = vmatprep.mubr.msk.f32.mxu1 %vm395_vm1, %v376_v29 }
  0x60   : > { %10915 = vmatmul.mubr.msk.f32.gmra.mrb[34].mxu0 %vm395_vm1, %v375_v28 }
  0x61   : > { %671 = vmatprep.mubr.f32.mxu0 %v13318_v2  ;;  %11133 = vmatmul.mubr.msk.f32.gmra.mrb[34].mxu1 %vm395_vm1, %v377_v30 }
  0x62   : > { %11135 = vmatprep.mubr.msk.f32.mxu1 %vm395_vm1, %v378_v31 }
  0x64   : > { %10916 = vmatmul.mubr.msk.f32.gmra.mrb[36].mxu0 %vm395_vm1, %v376_v29 }
  0x65   : > { %677 = vmatprep.mubr.f32.mxu0 %v13318_v2  ;;  %11136 = vmatmul.mubr.msk.f32.gmra.mrb[36].mxu1 %vm395_vm1, %v379_v32 }
  0x66   : > { %11138 = vmatprep.mubr.msk.f32.mxu1 %vm395_vm1, %v380_v34 }
  0x68   : > { %10917 = vmatmul.mubr.msk.f32.gmra.mrb[38].mxu0 %vm395_vm1, %v377_v30 }
  0x69   : > { %683 = vmatprep.mubr.f32.mxu0 %v13318_v2  ;;  %11139 = vmatmul.mubr.msk.f32.gmra.mrb[38].mxu1 %vm395_vm1, %v381_v35 }
  0x6a   : > { %11141 = vmatprep.mubr.msk.f32.mxu1 %vm395_vm1, %v13571_v6 }
  0x6c   : > { %10918 = vmatmul.mubr.msk.f32.gmra.mrb[40].mxu0 %vm395_vm1, %v378_v31 }
  0x6d   : > { %689 = vmatprep.mubr.f32.mxu0 %v13318_v2  ;;  %11142 = vmatmul.mubr.msk.f32.gmra.mrb[40].mxu1 %vm395_vm1, %v13577_v7 }
  0x6e   : > { %11144 = vmatprep.mubr.msk.f32.mxu1 %vm395_vm1, %v13589_v9 }
  0x70   : > { %10919 = vmatmul.mubr.msk.f32.gmra.mrb[42].mxu0 %vm395_vm1, %v379_v32 }
  0x71   : > { %695 = vmatprep.mubr.f32.mxu0 %v13318_v2  ;;  %11145 = vmatmul.mubr.msk.f32.gmra.mrb[42].mxu1 %vm395_vm1, %v13601_v11 }
  0x72   : > { %11147 = vmatprep.mubr.msk.f32.mxu1 %vm395_vm1, %v13613_v13 }
  0x74   : > { %10920 = vmatmul.mubr.msk.f32.gmra.mrb[44].mxu0 %vm395_vm1, %v380_v34 }
  0x75   : > { %701 = vmatprep.mubr.f32.mxu0 %v13318_v2  ;;  %11148 = vmatmul.mubr.msk.f32.gmra.mrb[44].mxu1 %vm395_vm1, %v13625_v15 }
  0x76   : > { %11150 = vmatprep.mubr.msk.f32.mxu1 %vm395_vm1, %v13637_v17 }
  0x78   : > { %10921 = vmatmul.mubr.msk.f32.gmra.mrb[46].mxu0 %vm395_vm1, %v381_v35 }
  0x79   : > { %11151 = vmatmul.mubr.msk.f32.gmra.mrb[46].mxu1 %vm395_vm1, %v13647_v19 }
  0xef   : > { %v13802_v61 = vpop.f32.mrb[0].mxu0 }
  0xf0   : > { %v13804_v62 = vpop.f32.mrb[1].mxu0  ;;  %v1130_v3 = vmul.f32 %v13802_v61, %v13802_v61  ;;  %v13829_v10 = vpop.f32.mrb[0].mxu1 }
  0xf1   : > { %v1131_v7 = vmul.f32 %v13804_v62, %v13804_v62  ;;  %v13831_v12 = vpop.f32.mrb[1].mxu1 }
  0xf2   : > { %21507 = vst [vmem:[#allocation9_spill] sm:$0xff] %v13831_v12 }
  0xf3   : > { %v13812_v2 = vpop.f32.mrb[2].mxu0 }
  0xf4   : > { %v983_v4 = vadd.f32 %v13812_v2, %v13802_v61  ;;  %v1133_v5 = vmul.f32 %v13812_v2, %v13812_v2  ;;  %v13820_v6 = vpop.f32.mrb[3].mxu0  ;;  %v13843_v20 = vpop.f32.mrb[2].mxu1 }
  0xf5   : > { %v1020_v8 = vadd.f32 %v13820_v6, %v13804_v62  ;;  %v1134_v9 = vmul.f32 %v13820_v6, %v13820_v6  ;;  %v13845_v22 = vpop.f32.mrb[3].mxu1 }
  0xf6   : > { %v1226_v11 = vadd.f32 %v1133_v5, %v1130_v3 }
  0xf7   : > { %v1263_v13 = vadd.f32 %v1134_v9, %v1131_v7  ;;  %v13833_v14 = vpop.f32.mrb[4].mxu0 }
  0xf8   : > { %v984_v15 = vadd.f32 %v983_v4, %v13833_v14  ;;  %v1136_v16 = vmul.f32 %v13833_v14, %v13833_v14  ;;  %v13838_v17 = vpop.f32.mrb[5].mxu0  ;;  %v13857_v30 = vpop.f32.mrb[4].mxu1 }
  0xf9   : > { %v1021_v18 = vadd.f32 %v1020_v8, %v13838_v17  ;;  %v1137_v19 = vmul.f32 %v13838_v17, %v13838_v17  ;;  %v13859_v32 = vpop.f32.mrb[5].mxu1 }
  0xfa   : > { %v1227_v21 = vadd.f32 %v1226_v11, %v1136_v16  ;;  %21509 = vst [vmem:[#allocation11_spill] sm:$0xff] %v13859_v32 }
  0xfb   : > { %v1264_v23 = vadd.f32 %v1263_v13, %v1137_v19  ;;  %v13847_v24 = vpop.f32.mrb[6].mxu0 }
  0xfc   : > { %v985_v25 = vadd.f32 %v984_v15, %v13847_v24  ;;  %v1139_v26 = vmul.f32 %v13847_v24, %v13847_v24  ;;  %v13852_v27 = vpop.f32.mrb[7].mxu0  ;;  %v13871_v40 = vpop.f32.mrb[6].mxu1 }
  0xfd   : > { %21508 = vst [vmem:[#allocation10_spill] sm:$0xff] %v13852_v27  ;;  %v1022_v28 = vadd.f32 %v1021_v18, %v13852_v27  ;;  %v1140_v29 = vmul.f32 %v13852_v27, %v13852_v27  ;;  %v13873_v42 = vpop.f32.mrb[7].mxu1 }
  0xfe   : > { %v1228_v31 = vadd.f32 %v1227_v21, %v1139_v26  ;;  %21511 = vst [vmem:[#allocation13_spill] sm:$0xff] %v13873_v42 }
  0xff   : > { %v1265_v33 = vadd.f32 %v1264_v23, %v1140_v29  ;;  %v13861_v34 = vpop.f32.mrb[8].mxu0 }
 0x100   : > { %v986_v35 = vadd.f32 %v985_v25, %v13861_v34  ;;  %v1142_v36 = vmul.f32 %v13861_v34, %v13861_v34  ;;  %v13866_v37 = vpop.f32.mrb[9].mxu0  ;;  %v13885_v51 = vpop.f32.mrb[8].mxu1 }
 0x101   : > { %21510 = vst [vmem:[#allocation12_spill] sm:$0xff] %v13866_v37  ;;  %v1023_v38 = vadd.f32 %v1022_v28, %v13866_v37  ;;  %v1143_v39 = vmul.f32 %v13866_v37, %v13866_v37  ;;  %v13887_v53 = vpop.f32.mrb[9].mxu1 }
 0x102   : > { %v1229_v41 = vadd.f32 %v1228_v31, %v1142_v36  ;;  %21513 = vst [vmem:[#allocation15_spill] sm:$0xff] %v13887_v53 }
 0x103   : > { %v1266_v43 = vadd.f32 %v1265_v33, %v1143_v39  ;;  %v13875_v44 = vpop.f32.mrb[10].mxu0 }
 0x104   : > { %v987_v46 = vadd.f32 %v986_v35, %v13875_v44  ;;  %v1145_v47 = vmul.f32 %v13875_v44, %v13875_v44  ;;  %v13880_v48 = vpop.f32.mrb[11].mxu0  ;;  %v13899_v63 = vpop.f32.mrb[10].mxu1 }
 0x105   : > { %21512 = vst [vmem:[#allocation14_spill] sm:$0xff] %v13880_v48  ;;  %v1024_v49 = vadd.f32 %v1023_v38, %v13880_v48  ;;  %v1146_v50 = vmul.f32 %v13880_v48, %v13880_v48  ;;  %v13901_v1 = vpop.f32.mrb[11].mxu1 }
 0x106   : > { %v1230_v52 = vadd.f32 %v1229_v41, %v1145_v47  ;;  %21515 = vst [vmem:[#allocation17_spill] sm:$0xff] %v13901_v1  ;;  %v3024_v47 = vld [vmem:[%s20911_s4 + $0x50] sm:$0xff] }
 0x107   : > { %v1267_v54 = vadd.f32 %v1266_v43, %v1146_v50  ;;  %v13889_v55 = vpop.f32.mrb[12].mxu0 }
 0x108   : > { %v988_v56 = vadd.f32 %v987_v46, %v13889_v55  ;;  %v1148_v57 = vmul.f32 %v13889_v55, %v13889_v55  ;;  %v13894_v58 = vpop.f32.mrb[13].mxu0  ;;  %v13913_v13 = vpop.f32.mrb[12].mxu1 }
 0x109   : > { %21514 = vst [vmem:[#allocation16_spill] sm:$0xff] %v13894_v58  ;;  %v1025_v59 = vadd.f32 %v1024_v49, %v13894_v58  ;;  %v1149_v60 = vmul.f32 %v13894_v58, %v13894_v58  ;;  %v13915_v16 = vpop.f32.mrb[13].mxu1  ;;  %v3025_v49 = vld [vmem:[%s20911_s4 + $0x58] sm:$0xff] }
 0x10a   : > { %v1231_v0 = vadd.f32 %v1230_v52, %v1148_v57  ;;  %21517 = vst [vmem:[#allocation19_spill] sm:$0xff] %v13915_v16  ;;  %v11329_v52 = vpack.c.bf16 %v3025_v49, %v3024_v47 }
 0x10b   : > { %v1268_v3 = vadd.f32 %v1267_v54, %v1149_v60  ;;  %v13903_v4 = vpop.f32.mrb[14].mxu0 }
 0x10c   : > { %v989_v5 = vadd.f32 %v988_v56, %v13903_v4  ;;  %v1151_v7 = vmul.f32 %v13903_v4, %v13903_v4  ;;  %v13908_v8 = vpop.f32.mrb[15].mxu0  ;;  %v13927_v29 = vpop.f32.mrb[14].mxu1  ;;  %11330 = vmatpush1.bf16.msra.mxu1 %v11329_v52 }
 0x10d   : > { %21516 = vst [vmem:[#allocation18_spill] sm:$0xff] %v13908_v8  ;;  %v1026_v9 = vadd.f32 %v1025_v59, %v13908_v8  ;;  %v1152_v11 = vmul.f32 %v13908_v8, %v13908_v8  ;;  %v13929_v33 = vpop.f32.mrb[15].mxu1  ;;  %11331 = vmatprep.subr.bf16.mxu1 %v20918_v45 }
 0x10e   : > { %v1232_v15 = vadd.f32 %v1231_v0, %v1151_v7  ;;  %v3027_v7 = vld [vmem:[%s20911_s4 + $0x68] sm:$0xff] }
 0x10f   : > { %v1269_v18 = vadd.f32 %v1268_v3, %v1152_v11  ;;  %v13917_v19 = vpop.f32.mrb[16].mxu0 }
 0x110   : > { %v990_v21 = vadd.f32 %v989_v5, %v13917_v19  ;;  %v1154_v23 = vmul.f32 %v13917_v19, %v13917_v19  ;;  %v13922_v25 = vpop.f32.mrb[17].mxu0  ;;  %v3026_v5 = vld [vmem:[%s20911_s4 + $0x60] sm:$0xff] }
 0x111   : > { %21518 = vst [vmem:[#allocation20_spill] sm:$0xff] %v13922_v25  ;;  %v1027_v26 = vadd.f32 %v1026_v9, %v13922_v25  ;;  %v1155_v28 = vmul.f32 %v13922_v25, %v13922_v25  ;;  %v11332_v11 = vpack.c.bf16 %v3027_v7, %v3026_v5  ;;  %v3154_v25 = vld [vmem:[%s20911_s4 + $0x460] sm:$0xff] }
 0x112   : > { %v1233_v31 = vadd.f32 %v1232_v15, %v1154_v23 }
 0x113   : > { %v1270_v35 = vadd.f32 %v1269_v18, %v1155_v28  ;;  %v13931_v36 = vpop.f32.mrb[18].mxu0  ;;  %11333 = vmatpush1.bf16.msra.mxu1 %v11332_v11 }
 0x114   : > { %v991_v38 = vadd.f32 %v990_v21, %v13931_v36  ;;  %v1157_v39 = vmul.f32 %v13931_v36, %v13931_v36  ;;  %v13936_v41 = vpop.f32.mrb[19].mxu0  ;;  %11334 = vmatprep.subr.bf16.mxu1 %v20918_v45 }
 0x115   : > { %21519 = vst [vmem:[#allocation21_spill] sm:$0xff] %v13936_v41  ;;  %v1028_v43 = vadd.f32 %v1027_v26, %v13936_v41  ;;  %v1158_v46 = vmul.f32 %v13936_v41, %v13936_v41 }
 0x116   : > { %v1234_v50 = vadd.f32 %v1233_v31, %v1157_v39 }
 0x117   : > { %v1271_v54 = vadd.f32 %v1270_v35, %v1158_v46  ;;  %v13947_v56 = vpop.f32.mrb[20].mxu0  ;;  %v3028_v35 = vld [vmem:[%s20911_s4 + $0x70] sm:$0xff] }
 0x118   : > { %v992_v57 = vadd.f32 %v991_v38, %v13947_v56  ;;  %v1160_v59 = vmul.f32 %v13947_v56, %v13947_v56  ;;  %v13952_v60 = vpop.f32.mrb[21].mxu0  ;;  %v3029_v38 = vld [vmem:[%s20911_s4 + $0x78] sm:$0xff] }
 0x119   : > { %21520 = vst [vmem:[#allocation22_spill] sm:$0xff] %v13952_v60  ;;  %v1029_v0 = vadd.f32 %v1028_v43, %v13952_v60  ;;  %v1161_v3 = vmul.f32 %v13952_v60, %v13952_v60  ;;  %v11335_v43 = vpack.c.bf16 %v3029_v38, %v3028_v35  ;;  %v3033_v35 = vld [vmem:[%s20911_s4 + $0x98] sm:$0xff] }
 0x11a   : > { %v1235_v9 = vadd.f32 %v1234_v50, %v1160_v59  ;;  %v3030_v59 = vld [vmem:[%s20911_s4 + $0x80] sm:$0xff] }
 0x11b   : > { %v1272_v15 = vadd.f32 %v1271_v54, %v1161_v3  ;;  %v13964_v18 = vpop.f32.mrb[22].mxu0  ;;  %11336 = vmatpush1.bf16.msra.mxu1 %v11335_v43 }
 0x11c   : > { %v993_v21 = vadd.f32 %v992_v57, %v13964_v18  ;;  %v1163_v23 = vmul.f32 %v13964_v18, %v13964_v18  ;;  %v13969_v26 = vpop.f32.mrb[23].mxu0  ;;  %11337 = vmatprep.subr.bf16.mxu1 %v20918_v45 }
 0x11d   : > { %21521 = vst [vmem:[#allocation23_spill] sm:$0xff] %v13969_v26  ;;  %v1030_v28 = vadd.f32 %v1029_v0, %v13969_v26  ;;  %v1164_v31 = vmul.f32 %v13969_v26, %v13969_v26  ;;  %v3031_v0 = vld [vmem:[%s20911_s4 + $0x88] sm:$0xff] }
 0x11e   : > { %v1236_v39 = vadd.f32 %v1235_v9, %v1163_v23  ;;  %v11338_v5 = vpack.c.bf16 %v3031_v0, %v3030_v59  ;;  %v3034_v0 = vld [vmem:[%s20911_s4 + $0xa0] sm:$0xff] }
 0x11f   : > { %v1273_v46 = vadd.f32 %v1272_v15, %v1164_v31  ;;  %v13981_v47 = vpop.f32.mrb[24].mxu0  ;;  %v3032_v31 = vld [vmem:[%s20911_s4 + $0x90] sm:$0xff] }
 0x120   : > { %v994_v49 = vadd.f32 %v993_v21, %v13981_v47  ;;  %v1166_v50 = vmul.f32 %v13981_v47, %v13981_v47  ;;  %v13986_v52 = vpop.f32.mrb[25].mxu0  ;;  %11339 = vmatpush1.bf16.msra.mxu1 %v11338_v5 }
 0x121   : > { %21522 = vst [vmem:[#allocation24_spill] sm:$0xff] %v13986_v52  ;;  %v1031_v54 = vadd.f32 %v1030_v28, %v13986_v52  ;;  %v1167_v57 = vmul.f32 %v13986_v52, %v13986_v52  ;;  %11340 = vmatprep.subr.bf16.mxu1 %v20918_v45  ;;  %v3151_v52 = vld [vmem:[%s20911_s4 + $0x448] sm:$0xff] }
 0x122   : > { %v1237_v3 = vadd.f32 %v1236_v39, %v1166_v50  ;;  %v11341_v39 = vpack.c.bf16 %v3033_v35, %v3032_v31 }
 0x123   : > { %v1274_v7 = vadd.f32 %v1273_v46, %v1167_v57  ;;  %v13998_v9 = vpop.f32.mrb[26].mxu0 }
 0x124   : > { %v995_v11 = vadd.f32 %v994_v49, %v13998_v9  ;;  %v1169_v15 = vmul.f32 %v13998_v9, %v13998_v9  ;;  %v14003_v21 = vpop.f32.mrb[27].mxu0  ;;  %11342 = vmatpush1.bf16.msra.mxu1 %v11341_v39 }
 0x125   : > { %21523 = vst [vmem:[#allocation25_spill] sm:$0xff] %v14003_v21  ;;  %v1032_v23 = vadd.f32 %v1031_v54, %v14003_v21  ;;  %v1170_v28 = vmul.f32 %v14003_v21, %v14003_v21  ;;  %11343 = vmatprep.subr.bf16.mxu1 %v20918_v45 }
 0x126   : > { %v1238_v38 = vadd.f32 %v1237_v3, %v1169_v15  ;;  %v3035_v3 = vld [vmem:[%s20911_s4 + $0xa8] sm:$0xff] }
 0x127   : > { %v1275_v43 = vadd.f32 %v1274_v7, %v1170_v28  ;;  %v14015_v46 = vpop.f32.mrb[28].mxu0  ;;  %v11344_v7 = vpack.c.bf16 %v3035_v3, %v3034_v0 }
 0x128   : > { %v996_v49 = vadd.f32 %v995_v11, %v14015_v46  ;;  %v1172_v50 = vmul.f32 %v14015_v46, %v14015_v46  ;;  %v14020_v54 = vpop.f32.mrb[29].mxu0 }
 0x129   : > { %21524 = vst [vmem:[#allocation26_spill] sm:$0xff] %v14020_v54  ;;  %v1033_v57 = vadd.f32 %v1032_v23, %v14020_v54  ;;  %v1173_v59 = vmul.f32 %v14020_v54, %v14020_v54  ;;  %11345 = vmatpush1.bf16.msra.mxu1 %v11344_v7  ;;  %v21527_v54 = vmov 0.0|0.0  }
 0x12a   : > { %v1239_v5 = vadd.f32 %v1238_v38, %v1172_v50  ;;  %11346 = vmatprep.subr.bf16.mxu1 %v20918_v45  ;;  %v3036_v38 = vld [vmem:[%s20911_s4 + $0xb0] sm:$0xff] }
 0x12b   : > { %v1276_v11 = vadd.f32 %v1275_v43, %v1173_v59  ;;  %v14032_v15 = vpop.f32.mrb[30].mxu0  ;;  %v3037_v43 = vld [vmem:[%s20911_s4 + $0xb8] sm:$0xff] }
 0x12c   : > { %v997_v23 = vadd.f32 %v996_v49, %v14032_v15  ;;  %v1175_v28 = vmul.f32 %v14032_v15, %v14032_v15  ;;  %v14037_v31 = vpop.f32.mrb[31].mxu0  ;;  %v11347_v50 = vpack.c.bf16 %v3037_v43, %v3036_v38 }
 0x12d   : > { %21525 = vst [vmem:[#allocation27_spill] sm:$0xff] %v14037_v31  ;;  %v1034_v35 = vadd.f32 %v1033_v57, %v14037_v31  ;;  %v1176_v39 = vmul.f32 %v14037_v31, %v14037_v31 }
 0x12e   : > { %v1240_v49 = vadd.f32 %v1239_v5, %v1175_v28  ;;  %11348 = vmatpush1.bf16.msra.mxu1 %v11347_v50  ;;  %v3038_v5 = vld [vmem:[%s20911_s4 + $0xc0] sm:$0xff] }
 0x12f   : > { %v1277_v59 = vadd.f32 %v1276_v11, %v1176_v39  ;;  %v14049_v0 = vpop.f32.mrb[32].mxu0  ;;  %11349 = vmatprep.subr.bf16.mxu1 %v21527_v54  ;;  %v3039_v11 = vld [vmem:[%s20911_s4 + $0xc8] sm:$0xff] }
 0x130   : > { %v998_v57 = vadd.f32 %v997_v23, %v14049_v0  ;;  %v1178_v3 = vmul.f32 %v14049_v0, %v14049_v0  ;;  %v14054_v7 = vpop.f32.mrb[33].mxu0  ;;  %v11350_v28 = vpack.c.bf16 %v3039_v11, %v3038_v5 }
 0x131   : > { %21526 = vst [vmem:[#allocation28_spill] sm:$0xff] %v14054_v7  ;;  %v1035_v45 = vadd.f32 %v1034_v35, %v14054_v7  ;;  %v1179_v31 = vmul.f32 %v14054_v7, %v14054_v7 }
 0x132   : > { %v1241_v23 = vadd.f32 %v1240_v49, %v1178_v3  ;;  %11351 = vmatpush1.bf16.msra.mxu1 %v11350_v28  ;;  %v3041_v49 = vld [vmem:[%s20911_s4 + $0xd8] sm:$0xff] }
 0x133   : > { %v1278_v39 = vadd.f32 %v1277_v59, %v1179_v31  ;;  %v14066_v38 = vpop.f32.mrb[34].mxu0  ;;  %11352 = vmatprep.subr.bf16.mxu1 %v21527_v54  ;;  %v3040_v31 = vld [vmem:[%s20911_s4 + $0xd0] sm:$0xff] }
 0x134   : > { %v999_v35 = vadd.f32 %v998_v57, %v14066_v38  ;;  %v1181_v43 = vmul.f32 %v14066_v38, %v14066_v38  ;;  %v14071_v50 = vpop.f32.mrb[35].mxu0  ;;  %v11353_v57 = vpack.c.bf16 %v3041_v49, %v3040_v31 }
 0x135   : > { %21528 = vst [vmem:[#allocation29_spill] sm:$0xff] %v14071_v50  ;;  %v1036_v7 = vadd.f32 %v1035_v45, %v14071_v50  ;;  %v1182_v21 = vmul.f32 %v14071_v50, %v14071_v50  ;;  %v3150_v50 = vld [vmem:[%s20911_s4 + $0x440] sm:$0xff] }
 0x136   : > { %v1242_v59 = vadd.f32 %v1241_v23, %v1181_v43  ;;  %11354 = vmatpush1.bf16.msra.mxu1 %v11353_v57  ;;  %v3043_v43 = vld [vmem:[%s20911_s4 + $0xe8] sm:$0xff] }
 0x137   : > { %v1279_v3 = vadd.f32 %v1278_v39, %v1182_v21  ;;  %v14083_v5 = vpop.f32.mrb[36].mxu0  ;;  %v11521_v39 = vpack.c.bf16 %v3151_v52, %v3150_v50  ;;  %11355 = vmatprep.subr.bf16.mxu1 %v21527_v54 }
 0x138   : > { %v1000_v45 = vadd.f32 %v999_v35, %v14083_v5  ;;  %v1184_v11 = vmul.f32 %v14083_v5, %v14083_v5  ;;  %v14088_v28 = vpop.f32.mrb[37].mxu0  ;;  %v3042_v35 = vld [vmem:[%s20911_s4 + $0xe0] sm:$0xff] }
 0x139   : > { %21529 = vst [vmem:[#allocation30_spill] sm:$0xff] %v14088_v28  ;;  %v1037_v21 = vadd.f32 %v1036_v7, %v14088_v28  ;;  %v1185_v23 = vmul.f32 %v14088_v28, %v14088_v28  ;;  %v11356_v49 = vpack.c.bf16 %v3043_v43, %v3042_v35  ;;  %11522 = vmatprep.subr.bf16.mxu0 %v11521_v39  ;;  %v3152_v28 = vld [vmem:[%s20911_s4 + $0x450] sm:$0xff] }
 0x13a   : > { %v1243_v31 = vadd.f32 %v1242_v59, %v1184_v11  ;;  %11524 = vmatpush3.bf16.msra.mxu0 %v11521_v39  ;;  %v3153_v59 = vld [vmem:[%s20911_s4 + $0x458] sm:$0xff] }
 0x13b   : > { %v1280_v26 = vadd.f32 %v1279_v3, %v1185_v23  ;;  %v14106_v57 = vpop.f32.mrb[38].mxu0  ;;  %11357 = vmatpush1.bf16.msra.mxu1 %v11356_v49  ;;  %v11525_v11 = vpack.c.bf16 %v3153_v59, %v3152_v28  ;;  %v3044_v23 = vld [vmem:[%s20911_s4 + $0xf0] sm:$0xff]  ;;  %v3045_v39 = vld [vmem:[%s20911_s4 + $0xf8] sm:$0xff] }
 0x13c   : > { %v1001_v7 = vadd.f32 %v1000_v45, %v14106_v57  ;;  %v1187_v52 = vmul.f32 %v14106_v57, %v14106_v57  ;;  %v14111_v50 = vpop.f32.mrb[39].mxu0  ;;  %11358 = vmatprep.subr.bf16.mxu1 %v21527_v54  ;;  %v11359_v43 = vpack.c.bf16 %v3045_v39, %v3044_v23  ;;  %v2078_v23 = vld [vmem:[#allocation2 + $0x10] sm:$0x3]  ;;  %v3046_v39 = vld [vmem:[%s20911_s4 + $0x100] sm:$0xff] }
 0x13d   : > { %21530 = vst [vmem:[#allocation31_spill] sm:$0xff] %v14111_v50  ;;  %v1038_v3 = vadd.f32 %v1037_v21, %v14111_v50  ;;  %v1188_v45 = vmul.f32 %v14111_v50, %v14111_v50  ;;  %11526 = vmatprep.subr.bf16.mxu0 %v11525_v11  ;;  %v13066_v21 = vld [vmem:[#allocation2] sm:$0xff]  ;;  %v2214_v58 = vrot.slane %v2078_v23, 1 }
 0x13e   : > { %v1244_v35 = vadd.f32 %v1243_v31, %v1187_v52  ;;  %v2211_v41 = vrot.slane %v13066_v21, 1  ;;  %11528 = vmatpush3.bf16.msra.mxu0 %v11525_v11  ;;  %v3156_v31 = vld [vmem:[%s20911_s4 + $0x470] sm:$0xff]  ;;  %v3157_v11 = vld [vmem:[%s20911_s4 + $0x478] sm:$0xff] }
 0x13f   : > { %v1281_v60 = vadd.f32 %v1280_v26, %v1188_v45  ;;  %v14129_v49 = vpop.f32.mrb[40].mxu0  ;;  %v3155_v26 = vld [vmem:[%s20911_s4 + $0x468] sm:$0xff]  ;;  %11360 = vmatpush1.bf16.msra.mxu1 %v11359_v43  ;;  %v11533_v43 = vpack.c.bf16 %v3157_v11, %v3156_v31 }
 0x140   : > { %v1002_v28 = vadd.f32 %v1001_v7, %v14129_v49  ;;  %v1190_v59 = vmul.f32 %v14129_v49, %v14129_v49  ;;  %v14134_v50 = vpop.f32.mrb[41].mxu0  ;;  %v11529_v45 = vpack.c.bf16 %v3155_v26, %v3154_v25  ;;  %11361 = vmatprep.subr.bf16.mxu1 %v21527_v54  ;;  %3222 = vmatprep.mubr.f32.mxu1 %v2211_v41 }
 0x141   : > { %21531 = vst [vmem:[#allocation32_spill] sm:$0xff] %v14134_v50  ;;  %v1039_v7 = vadd.f32 %v1038_v3, %v14134_v50  ;;  %v1191_v52 = vmul.f32 %v14134_v50, %v14134_v50  ;;  %v3047_v3 = vld [vmem:[%s20911_s4 + $0x108] sm:$0xff] }
 0x142   : > { %v1245_v8 = vadd.f32 %v1244_v35, %v1190_v59  ;;  %11530 = vmatprep.subr.bf16.mxu0 %v11529_v45  ;;  %3223 = vmatmul.mubr.f32.vlgmr.msra.gmra.mrb[48].mxu1 %v13066_v21  ;;  %v11362_v50 = vpack.c.bf16 %v3047_v3, %v3046_v39  ;;  %v2215_v35 = vsel %vm2210_vm2, %v2211_v41, %v2214_v58 }
 0x143   : > { %v1282_v25 = vadd.f32 %v1281_v60, %v1191_v52  ;;  %v14158_v26 = vpop.f32.mrb[42].mxu0  ;;  %11532 = vmatpush3.bf16.msra.mxu0 %v11529_v45  ;;  %3227 = vmatprep.mubr.f32.mxu1 %v2215_v35 }
 0x144   : > { %v1003_v48 = vadd.f32 %v1002_v28, %v14158_v26  ;;  %v1193_v37 = vmul.f32 %v14158_v26, %v14158_v26  ;;  %v14163_v27 = vpop.f32.mrb[43].mxu0  ;;  %11534 = vmatprep.subr.bf16.mxu0 %v11533_v43  ;;  %11363 = vmatpush1.bf16.msra.mxu1 %v11362_v50 }
 0x145   : > { %v1040_v59 = vadd.f32 %v1039_v7, %v14163_v27  ;;  %v1194_v60 = vmul.f32 %v14163_v27, %v14163_v27  ;;  %11364 = vmatprep.subr.bf16.mxu1 %v21527_v54  ;;  %v3048_v7 = vld [vmem:[%s20911_s4 + $0x110] sm:$0xff] }
 0x146   : > { %v1246_v31 = vadd.f32 %v1245_v8, %v1193_v37  ;;  %3228 = vmatmul.mubr.f32.gmra.mrb[50].mxu1 %v13066_v21  ;;  %v3049_v37 = vld [vmem:[%s20911_s4 + $0x118] sm:$0xff] }
 0x147   : > { %v1283_v52 = vadd.f32 %v1282_v25, %v1194_v60  ;;  %v14169_v11 = vpop.f32.mrb[44].mxu0  ;;  %11536 = vmatpush3.bf16.msra.mxu0 %v11533_v43 }
 0x148   : > { %v1004_v28 = vadd.f32 %v1003_v48, %v14169_v11  ;;  %v1196_v58 = vmul.f32 %v14169_v11, %v14169_v11  ;;  %v14175_v41 = vpop.f32.mrb[45].mxu0  ;;  %11729 = vmatprep.subr.bf16.mxu0 %v21527_v54  ;;  %v11365_v48 = vpack.c.bf16 %v3049_v37, %v3048_v7  ;;  %v1205_v7 = vmul.f32 %v13843_v20, %v13843_v20 }
 0x149   : > { %21532 = vst [vmem:[#allocation33_spill] sm:$0xff] %v14175_v41  ;;  %v1041_v8 = vadd.f32 %v1040_v59, %v14175_v41  ;;  %v1197_v50 = vmul.f32 %v14175_v41, %v14175_v41  ;;  %v1202_v59 = vmul.f32 %v13829_v10, %v13829_v10 }
 0x14a   : > { %v1247_v21 = vadd.f32 %v1246_v31, %v1196_v58  ;;  %11366 = vmatpush1.bf16.msra.mxu1 %v11365_v48  ;;  %v3051_v48 = vld [vmem:[%s20911_s4 + $0x128] sm:$0xff] }
 0x14b   : > { %v1284_v45 = vadd.f32 %v1283_v52, %v1197_v50  ;;  %v14187_v23 = vpop.f32.mrb[46].mxu0  ;;  %11367 = vmatprep.subr.bf16.mxu1 %v21527_v54  ;;  %v1203_v52 = vmul.f32 %v13831_v12, %v13831_v12  ;;  %v3050_v50 = vld [vmem:[%s20911_s4 + $0x120] sm:$0xff] }
 0x14c   : > { %v1005_v39 = vadd.f32 %v1004_v28, %v14187_v23  ;;  %v1199_v43 = vmul.f32 %v14187_v23, %v14187_v23  ;;  %v14192_v3 = vpop.f32.mrb[47].mxu0 }
 0x14d   : > { %21533 = vst [vmem:[#allocation34_spill] sm:$0xff] %v14192_v3  ;;  %v1042_v25 = vadd.f32 %v1041_v8, %v14192_v3  ;;  %v1200_v35 = vmul.f32 %v14192_v3, %v14192_v3  ;;  %v1211_v3 = vmul.f32 %v13871_v40, %v13871_v40 }
 0x14e   : > { %v1006_v60 = vadd.f32 %v1005_v39, %v13829_v10  ;;  %v1248_v31 = vadd.f32 %v1247_v21, %v1199_v43  ;;  %v1206_v21 = vmul.f32 %v13845_v22, %v13845_v22  ;;  %v11368_v43 = vpack.c.bf16 %v3051_v48, %v3050_v50 }
 0x14f   : > { %v1043_v28 = vadd.f32 %v1042_v25, %v13831_v12  ;;  %v1285_v58 = vadd.f32 %v1284_v45, %v1200_v35  ;;  %v1208_v25 = vmul.f32 %v13857_v30, %v13857_v30  ;;  %v1214_v50 = vmul.f32 %v13885_v51, %v13885_v51 }
 0x150   : > { %v1007_v37 = vadd.f32 %v1006_v60, %v13843_v20  ;;  %v1249_v8 = vadd.f32 %v1248_v31, %v1202_v59  ;;  %v1209_v60 = vmul.f32 %v13859_v32, %v13859_v32  ;;  %11369 = vmatpush1.bf16.msra.mxu1 %v11368_v43 }
 0x151   : > { %v1044_v39 = vadd.f32 %v1043_v28, %v13845_v22  ;;  %v1286_v45 = vadd.f32 %v1285_v58, %v1203_v52  ;;  %11370 = vmatprep.subr.bf16.mxu1 %v21527_v54  ;;  %v1212_v58 = vmul.f32 %v13873_v42, %v13873_v42 }
 0x152   : > { %v1250_v35 = vadd.f32 %v1249_v8, %v1205_v7  ;;  %v1008_v59 = vadd.f32 %v1007_v37, %v13857_v30 }
 0x153   : > { %v1287_v31 = vadd.f32 %v1286_v45, %v1206_v21  ;;  %v1045_v12 = vadd.f32 %v1044_v39, %v13859_v32  ;;  %v1215_v39 = vmul.f32 %v13887_v53, %v13887_v53 }
 0x154   : > { %v1009_v28 = vadd.f32 %v1008_v59, %v13871_v40  ;;  %v1251_v52 = vadd.f32 %v1250_v35, %v1208_v25  ;;  %v1217_v35 = vmul.f32 %v13899_v63, %v13899_v63 }
 0x155   : > { %v1046_v7 = vadd.f32 %v1045_v12, %v13873_v42  ;;  %v1288_v37 = vadd.f32 %v1287_v31, %v1209_v60  ;;  %v3052_v12 = vld [vmem:[%s20911_s4 + $0x130] sm:$0xff]  ;;  %v1218_v31 = vmul.f32 %v13901_v1, %v13901_v1 }
 0x156   : > { %v1010_v8 = vadd.f32 %v1009_v28, %v13885_v51  ;;  %v1252_v48 = vadd.f32 %v1251_v52, %v1211_v3  ;;  %v3053_v3 = vld [vmem:[%s20911_s4 + $0x138] sm:$0xff] }
 0x157   : > { %v1047_v21 = vadd.f32 %v1046_v7, %v13887_v53  ;;  %v1289_v45 = vadd.f32 %v1288_v37, %v1212_v58  ;;  %v11371_v28 = vpack.c.bf16 %v3053_v3, %v3052_v12  ;;  %v1220_v7 = vmul.f32 %v13913_v13, %v13913_v13 }
 0x158   : > { %v1253_v43 = vadd.f32 %v1252_v48, %v1214_v50  ;;  %v1011_v25 = vadd.f32 %v1010_v8, %v13899_v63  ;;  %v1223_v37 = vmul.f32 %v13927_v29, %v13927_v29  ;;  %v1221_v48 = vmul.f32 %v13915_v16, %v13915_v16 }
 0x159   : > { %v1290_v59 = vadd.f32 %v1289_v45, %v1215_v39  ;;  %v1048_v60 = vadd.f32 %v1047_v21, %v13901_v1  ;;  %v1224_v21 = vmul.f32 %v13929_v33, %v13929_v33  ;;  %11372 = vmatpush1.bf16.msra.mxu1 %v11371_v28  ;;  %v3055_v28 = vld [vmem:[%s20911_s4 + $0x148] sm:$0xff] }
 0x15a   : > { %v1254_v52 = vadd.f32 %v1253_v43, %v1217_v35  ;;  %v1012_v58 = vadd.f32 %v1011_v25, %v13913_v13  ;;  %11373 = vmatprep.subr.bf16.mxu1 %v21527_v54  ;;  %v1577_v35 = vlaneseq }
 0x15b   : > { %v1291_v8 = vadd.f32 %v1290_v59, %v1218_v31  ;;  %v1049_v50 = vadd.f32 %v1048_v60, %v13915_v16  ;;  %v3054_v16 = vld [vmem:[%s20911_s4 + $0x140] sm:$0xff] }
 0x15c   : > { %v1255_v39 = vadd.f32 %v1254_v52, %v1220_v7  ;;  %v1013_v45 = vadd.f32 %v1012_v58, %v13927_v29  ;;  %v11374_v7 = vpack.c.bf16 %v3055_v28, %v3054_v16  ;;  %v981_v16 = vld [vmem:[%s20909_s2] sm:$0x7]  ;;  %v3057_v28 = vld [vmem:[%s20911_s4 + $0x158] sm:$0xff] }
 0x15d   : > { %v1292_v43 = vadd.f32 %v1291_v8, %v1221_v48  ;;  %v1050_v25 = vadd.f32 %v1049_v50, %v13929_v33  ;;  %v14266_v8 = vshrl.u32 %v1577_v35, 7 }
 0x15e   : > { %v1014_v12 = vrot.slane %v1013_v45, 4  ;;  %v1256_v3 = vadd.f32 %v1255_v39, %v1223_v37  ;;  %11375 = vmatpush1.bf16.msra.mxu1 %v11374_v7 }
 0x15f   : > { %v1051_v59 = vrot.slane %v1050_v25, 4  ;;  %v1293_v60 = vadd.f32 %v1292_v43, %v1224_v21  ;;  %21534 = vst [vmem:[#allocation35_spill] sm:$0xff] %v14266_v8  ;;  %11376 = vmatprep.subr.bf16.mxu1 %v21527_v54  ;;  %v1579_v53 = vsub.s32 0, %v14266_v8 }
 0x160   : > { %v1015_v31 = vadd.f32 %v1014_v12, %v1013_v45  ;;  %v1257_v1 = vrot.slane %v1256_v3, 4 }
 0x161   : > { %v1052_v52 = vadd.f32 %v1051_v59, %v1050_v25  ;;  %v1294_v58 = vrot.slane %v1293_v60, 4  ;;  %v1583_v25 = vsub.s32 1, %v14266_v8 }
 0x162   : > { %v1016_v50 = vrot.slane %v1015_v31, 2  ;;  %v1258_v48 = vadd.f32 %v1257_v1, %v1256_v3  ;;  %v982_v1 = vld [vmem:[%s20910_s3] sm:$0x7] }
 0x163   : > { %v1053_v37 = vrot.slane %v1052_v52, 2  ;;  %v1295_v39 = vadd.f32 %v1294_v58, %v1293_v60 }
 0x164   : > { %v1017_v21 = vadd.f32 %v1016_v50, %v1015_v31  ;;  %v1259_v45 = vrot.slane %v1258_v48, 2  ;;  %v3056_v31 = vld [vmem:[%s20911_s4 + $0x150] sm:$0xff]  ;;  %v14283_v50 = vrot.slane %v981_v16, %v1579_v53 }
 0x165   : > { %v1054_v43 = vadd.f32 %v1053_v37, %v1052_v52  ;;  %v1296_v12 = vrot.slane %v1295_v39, 2  ;;  %v11377_v7 = vpack.c.bf16 %v3057_v28, %v3056_v31  ;;  %v21536_v28 = vld [vmem:[#allocation10_spill] sm:$0xff]  ;;  %v21550_v31 = vld [vmem:[#allocation27_spill] sm:$0xff] }
 0x166   : > { %v1018_v42 = vrot.slane %v1017_v21, 1  ;;  %v1260_v32 = vadd.f32 %v1259_v45, %v1258_v48  ;;  %v14285_v48 = vrot.slane %v982_v1, %v1579_v53 }
 0x167   : > { %v1055_v35 = vrot.slane %v1054_v43, 1  ;;  %v1297_v3 = vadd.f32 %v1296_v12, %v1295_v39  ;;  %11378 = vmatpush1.bf16.msra.mxu1 %v11377_v7 }
 0x168   : > { %v1019_v59 = vadd.f32 %v1018_v42, %v1017_v21  ;;  %v1261_v60 = vrot.slane %v1260_v32, 1  ;;  %v14289_v42 = vrot.slane %v981_v16, %v1583_v25  ;;  %v14291_v21 = vrot.slane %v982_v1, %v1583_v25  ;;  %11379 = vmatprep.subr.bf16.mxu1 %v21527_v54 }
 0x169   : > { %v1056_v52 = vadd.f32 %v1055_v35, %v1054_v43  ;;  %v1298_v58 = vrot.slane %v1297_v3, 1 }
 0x16a   : > { %v14287_v37 = vmul.f32 0.00390625, %v1019_v59  ;;  %v1262_v39 = vadd.f32 %v1261_v60, %v1260_v32  ;;  %21535 = vst [vmem:[#allocation36_spill] sm:$0xff] %v14291_v21  ;;  %v21538_v59 = vld [vmem:[#allocation14_spill] sm:$0xff] }
 0x16b   : > { %v14293_v45 = vmul.f32 0.00390625, %v1056_v52  ;;  %v1299_v12 = vadd.f32 %v1298_v58, %v1297_v3 }
 0x16c   : > { %v1369_v8 = vmul.f32 0.00390625, %v1262_v39  ;;  %v1372_v43 = vmul.f32 %v14287_v37, %v14287_v37  ;;  %v21561_v32 = vsub.f32 %v13927_v29, %v14287_v37  ;;  %v21566_v54 = vsub.f32 %v13847_v24, %v14287_v37 }
 0x16d   : > { %v1373_v58 = vmul.f32 %v14293_v45, %v14293_v45  ;;  %v21567_v29 = vsub.f32 %v13861_v34, %v14287_v37  ;;  %v21571_v24 = vsub.f32 %v13917_v19, %v14287_v37  ;;  %v21572_v34 = vsub.f32 %v13931_v36, %v14287_v37 }
 0x16e   : > { %v1375_v3 = vsub.f32 %v1369_v8, %v1372_v43  ;;  %v21541_v43 = vld [vmem:[#allocation20_spill] sm:$0xff]  ;;  %v14388_v8 = vpop.f32.mrb[16].mxu1  ;;  %v21576_v19 = vsub.f32 %v13998_v9, %v14287_v37  ;;  %v21582_v9 = vsub.f32 %v14066_v38, %v14287_v37  ;;  %v21587_v38 = vsub.f32 %v14169_v11, %v14287_v37 }
 0x16f   : > { %21544 = vst [vmem:[#allocation10_spill] sm:$0xff] %v14388_v8  ;;  %v14396_v39 = vpop.f32.mrb[17].mxu1  ;;  %v21551_v8 = vld [vmem:[#allocation28_spill] sm:$0xff]  ;;  %v21592_v11 = vsub.f32 %v13871_v40, %v14287_v37 }
 0x170   : > { %v1474_v7 = vadd.f32 1e-05, %v1375_v3  ;;  %v1370_v3 = vmul.f32 0.00390625, %v1299_v12  ;;  %v21537_v12 = vld [vmem:[#allocation12_spill] sm:$0xff]  ;;  %v14406_v25 = vpop.f32.mrb[18].mxu1 }
 0x171   : > { %21548 = vst [vmem:[#allocation12_spill] sm:$0xff] %v14396_v39  ;;  %21553 = vst [vmem:[#allocation14_spill] sm:$0xff] %v14406_v25  ;;  %v21555_v39 = vld [vmem:[#allocation31_spill] sm:$0xff]  ;;  %v14414_v1 = vpop.f32.mrb[19].mxu1  ;;  %v21564_v25 = vsub.f32 %v13833_v14, %v14287_v37 }
 0x172   : > { %13056 = vrsqrt.f32 %v1474_v7  ;;  %v1376_v52 = vsub.f32 %v1370_v3, %v1373_v58  ;;  %v21539_v7 = vld [vmem:[#allocation16_spill] sm:$0xff]  ;;  %v14424_v58 = vpop.f32.mrb[20].mxu1 }
 0x173   : > { %21557 = vst [vmem:[#allocation16_spill] sm:$0xff] %v14414_v1  ;;  %21560 = vst [vmem:[#allocation20_spill] sm:$0xff] %v14424_v58  ;;  %v21562_v1 = vsub.f32 %v13802_v61, %v14287_v37  ;;  %v14438_v41 = vpop.f32.mrb[21].mxu1  ;;  %v21568_v61 = vsub.f32 %v13875_v44, %v14287_v37  ;;  %v21573_v44 = vsub.f32 %v13947_v56, %v14287_v37 }
 0x174   : > { %v1475_v60 = vadd.f32 1e-05, %v1376_v52  ;;  %v21563_v52 = vsub.f32 %v13812_v2, %v14287_v37  ;;  %21565 = vst [vmem:[#allocation27_spill] sm:$0xff] %v14438_v41  ;;  %v21569_v2 = vsub.f32 %v13889_v55, %v14287_v37  ;;  %v21574_v55 = vsub.f32 %v13964_v18, %v14287_v37 }
 0x175   : > { %v21578_v56 = vsub.f32 %v14015_v46, %v14287_v37  ;;  %v21579_v18 = vsub.f32 %v14032_v15, %v14287_v37  ;;  %v21584_v46 = vsub.f32 %v14106_v57, %v14287_v37  ;;  %v21585_v15 = vsub.f32 %v14129_v49, %v14287_v37 }
 0x176   : > { %13058 = vrsqrt.f32 %v1475_v60  ;;  %v21589_v57 = vsub.f32 %v13829_v10, %v14287_v37  ;;  %v21590_v49 = vsub.f32 %v13843_v20, %v14287_v37  ;;  %v21594_v10 = vsub.f32 %v13885_v51, %v14287_v37 }
 0x177   : > { %v21595_v20 = vsub.f32 %v13899_v63, %v14287_v37 }
 0x17c   : > { %v13057_v3 = vpop.eup %13056 }
 0x17d   : > { %v1573_v16 = vmul.f32 %v13057_v3, %v21561_v32  ;;  %v1480_v53 = vmul.f32 %v13057_v3, %v21562_v1  ;;  %v1483_v35 = vmul.f32 %v13057_v3, %v21563_v52  ;;  %v1486_v60 = vmul.f32 %v13057_v3, %v21564_v25 }
 0x17e   : > { %v1489_v58 = vmul.f32 %v13057_v3, %v21566_v54  ;;  %v1492_v32 = vmul.f32 %v13057_v3, %v21567_v29  ;;  %v1495_v1 = vmul.f32 %v13057_v3, %v21568_v61  ;;  %v1498_v52 = vmul.f32 %v13057_v3, %v21569_v2 }
 0x17f   : > { %v1685_v14 = vmul.f32 %v14283_v50, %v1573_v16  ;;  %v21570_v25 = vsub.f32 %v13903_v4, %v14287_v37  ;;  %v1504_v54 = vmul.f32 %v13057_v3, %v21571_v24  ;;  %v1507_v29 = vmul.f32 %v13057_v3, %v21572_v34  ;;  %v14474_v24 = vpop.f32.mrb[22].mxu1 }
 0x180   : > { %v1510_v61 = vmul.f32 %v13057_v3, %v21573_v44  ;;  %v1513_v16 = vmul.f32 %v13057_v3, %v21574_v55  ;;  %v21575_v4 = vsub.f32 %v13981_v47, %v14287_v37  ;;  %21577 = vst [vmem:[#allocation28_spill] sm:$0xff] %v14474_v24  ;;  %v1522_v34 = vmul.f32 %v13057_v3, %v21578_v56 }
 0x181   : > { %v1501_v41 = vmul.f32 %v13057_v3, %v21570_v25  ;;  %v1519_v25 = vmul.f32 %v13057_v3, %v21576_v19  ;;  %v1797_v36 = vadd.f32 %v14285_v48, %v1685_v14  ;;  %v1525_v44 = vmul.f32 %v13057_v3, %v21579_v18 }
 0x182   : > { %v1516_v2 = vmul.f32 %v13057_v3, %v21575_v4  ;;  %v21580_v47 = vsub.f32 %v14049_v0, %v14287_v37  ;;  %v14486_v4 = vpop.f32.mrb[23].mxu1  ;;  %v1531_v19 = vmul.f32 %v13057_v3, %v21582_v9  ;;  %v21583_v14 = vsub.f32 %v14083_v5, %v14287_v37 }
 0x183   : > { %21581 = vst [vmem:[#allocation31_spill] sm:$0xff] %v14486_v4  ;;  %v1537_v56 = vmul.f32 %v13057_v3, %v21584_v46  ;;  %v1540_v18 = vmul.f32 %v13057_v3, %v21585_v15  ;;  %v1893_v0 = vmax.f32 %v1797_v36, 0.0  ;;  %v1546_v9 = vmul.f32 %v13057_v3, %v21587_v38  ;;  %v14521_v38 = vpop.f32.mrb[24].mxu1 }
 0x184   : > { %v1528_v55 = vmul.f32 %v13057_v3, %v21580_v47  ;;  %v1534_v24 = vmul.f32 %v13057_v3, %v21583_v14  ;;  %v21586_v47 = vsub.f32 %v14158_v26, %v14287_v37  ;;  %v21588_v5 = vsub.f32 %v14187_v23, %v14287_v37  ;;  %21593 = vst [vmem:[#allocation37_spill] sm:$0xff] %v14521_v38  ;;  %v14523_v23 = vpop.eup %13058 }
 0x185   : > { %v1552_v46 = vmul.f32 %v13057_v3, %v21589_v57  ;;  %v1555_v36 = vmul.f32 %v13057_v3, %v21590_v49  ;;  %v21591_v26 = vsub.f32 %v13857_v30, %v14287_v37  ;;  %2042 = vst [vmem:[#allocation2 + $0x189] sm:$0xff] %v1893_v0  ;;  %v1567_v57 = vmul.f32 %v13057_v3, %v21595_v20 }
 0x186   : > { %v1543_v4 = vmul.f32 %v13057_v3, %v21586_v47  ;;  %v1549_v14 = vmul.f32 %v13057_v3, %v21588_v5  ;;  %v1561_v47 = vmul.f32 %v13057_v3, %v21592_v11  ;;  %v1564_v5 = vmul.f32 %v13057_v3, %v21594_v10 }
 0x187   : > { %v1558_v15 = vmul.f32 %v13057_v3, %v21591_v26  ;;  %v21596_v30 = vsub.f32 %v13913_v13, %v14287_v37  ;;  %v1592_v40 = vmul.f32 %v14283_v50, %v1480_v53  ;;  %v14535_v26 = vpop.f32.mrb[25].mxu1  ;;  %v1595_v11 = vmul.f32 %v14283_v50, %v1483_v35 }
 0x188   : > { %21597 = vst [vmem:[#allocation38_spill] sm:$0xff] %v14535_v26  ;;  %v1598_v0 = vmul.f32 %v14283_v50, %v1486_v60  ;;  %v1601_v38 = vmul.f32 %v14283_v50, %v1489_v58  ;;  %v1604_v51 = vmul.f32 %v14283_v50, %v1492_v32  ;;  %v1607_v10 = vmul.f32 %v14283_v50, %v1495_v1  ;;  %v14549_v60 = vpop.f32.mrb[26].mxu1 }
 0x189   : > { %v1570_v49 = vmul.f32 %v13057_v3, %v21596_v30  ;;  %v1610_v63 = vmul.f32 %v14283_v50, %v1498_v52  ;;  %v1613_v20 = vmul.f32 %v14283_v50, %v1501_v41  ;;  %v1616_v13 = vmul.f32 %v14283_v50, %v1504_v54  ;;  %21598 = vst [vmem:[#allocation39_spill] sm:$0xff] %v14549_v60  ;;  %v14555_v52 = vpop.f32.mrb[27].mxu1 }
 0x18a   : > { %v1619_v37 = vmul.f32 %v14283_v50, %v1507_v29  ;;  %v1622_v53 = vmul.f32 %v14283_v50, %v1510_v61  ;;  %v1625_v35 = vmul.f32 %v14283_v50, %v1513_v16  ;;  %v1628_v3 = vmul.f32 %v14283_v50, %v1516_v2  ;;  %21599 = vst [vmem:[#allocation40_spill] sm:$0xff] %v14555_v52  ;;  %v14569_v52 = vpop.f32.mrb[28].mxu1 }
 0x18b   : > { %v1631_v58 = vmul.f32 %v14283_v50, %v1519_v25  ;;  %v1634_v32 = vmul.f32 %v14283_v50, %v1522_v34  ;;  %v1637_v1 = vmul.f32 %v14283_v50, %v1525_v44  ;;  %v1640_v41 = vmul.f32 %v14283_v50, %v1528_v55  ;;  %21600 = vst [vmem:[#allocation41_spill] sm:$0xff] %v14569_v52 }
 0x18c   : > { %v1643_v54 = vmul.f32 %v14283_v50, %v1531_v19  ;;  %v1646_v29 = vmul.f32 %v14283_v50, %v1534_v24  ;;  %v1649_v61 = vmul.f32 %v14283_v50, %v1537_v56  ;;  %v1652_v16 = vmul.f32 %v14283_v50, %v1540_v18 }
 0x18d   : > { %v1655_v2 = vmul.f32 %v14283_v50, %v1543_v4  ;;  %v1658_v25 = vmul.f32 %v14283_v50, %v1546_v9  ;;  %v1661_v34 = vmul.f32 %v14283_v50, %v1549_v14  ;;  %v1664_v44 = vmul.f32 %v14283_v50, %v1552_v46  ;;  %v14575_v14 = vpop.f32.mrb[29].mxu1 }
 0x18e   : > { %v1667_v55 = vmul.f32 %v14283_v50, %v1555_v36  ;;  %v1670_v30 = vmul.f32 %v14283_v50, %v1558_v15  ;;  %v1673_v19 = vmul.f32 %v14283_v50, %v1561_v47  ;;  %v1676_v24 = vmul.f32 %v14283_v50, %v1564_v5  ;;  %21601 = vst [vmem:[#allocation42_spill] sm:$0xff] %v14575_v14  ;;  %v14589_v14 = vpop.f32.mrb[30].mxu1 }
 0x18f   : > { %v1679_v56 = vmul.f32 %v14283_v50, %v1567_v57  ;;  %v1682_v4 = vmul.f32 %v14283_v50, %v1570_v49  ;;  %v1704_v18 = vadd.f32 %v14285_v48, %v1592_v40  ;;  %v1707_v9 = vadd.f32 %v14285_v48, %v1595_v11  ;;  %21602 = vst [vmem:[#allocation43_spill] sm:$0xff] %v14589_v14 }
 0x190   : > { %v1710_v46 = vadd.f32 %v14285_v48, %v1598_v0  ;;  %v1713_v36 = vadd.f32 %v14285_v48, %v1601_v38  ;;  %v1716_v15 = vadd.f32 %v14285_v48, %v1604_v51  ;;  %v1719_v47 = vadd.f32 %v14285_v48, %v1607_v10 }
 0x191   : > { %v1722_v5 = vadd.f32 %v14285_v48, %v1610_v63  ;;  %v1725_v57 = vadd.f32 %v14285_v48, %v1613_v20  ;;  %v1728_v50 = vadd.f32 %v14285_v48, %v1616_v13  ;;  %v1731_v49 = vadd.f32 %v14285_v48, %v1619_v37  ;;  %v14601_v13 = vpop.f32.mrb[31].mxu1 }
 0x192   : > { %v1734_v40 = vadd.f32 %v14285_v48, %v1622_v53  ;;  %v1737_v11 = vadd.f32 %v14285_v48, %v1625_v35  ;;  %v1740_v0 = vadd.f32 %v14285_v48, %v1628_v3  ;;  %v1743_v38 = vadd.f32 %v14285_v48, %v1631_v58  ;;  %21603 = vst [vmem:[#allocation44_spill] sm:$0xff] %v14601_v13 }
 0x193   : > { %v1746_v51 = vadd.f32 %v14285_v48, %v1634_v32  ;;  %v14593_v10 = vadd.f32 %v14285_v48, %v1637_v1  ;;  %v14596_v63 = vadd.f32 %v14285_v48, %v1640_v41  ;;  %v14599_v20 = vadd.f32 %v14285_v48, %v1643_v54 }
 0x194   : > { %v1758_v37 = vadd.f32 %v14285_v48, %v1646_v29  ;;  %v14605_v53 = vadd.f32 %v14285_v48, %v1649_v61  ;;  %v14608_v35 = vadd.f32 %v14285_v48, %v1652_v16  ;;  %v14611_v3 = vadd.f32 %v14285_v48, %v1655_v2  ;;  %v14637_v2 = vpop.f32.mrb[32].mxu1 }
 0x195   : > { %v14614_v58 = vadd.f32 %v14285_v48, %v1658_v25  ;;  %v14617_v32 = vadd.f32 %v14285_v48, %v1661_v34  ;;  %v14620_v1 = vadd.f32 %v14285_v48, %v1664_v44  ;;  %v14623_v41 = vadd.f32 %v14285_v48, %v1667_v55  ;;  %21604 = vst [vmem:[#allocation45_spill] sm:$0xff] %v14637_v2  ;;  %v14642_v13 = vpop.f32.mrb[33].mxu1 }
 0x196   : > { %v14626_v54 = vadd.f32 %v14285_v48, %v1670_v30  ;;  %v14629_v29 = vadd.f32 %v14285_v48, %v1673_v19  ;;  %v14632_v61 = vadd.f32 %v14285_v48, %v1676_v24  ;;  %v14635_v16 = vadd.f32 %v14285_v48, %v1679_v56  ;;  %21605 = vst [vmem:[#allocation46_spill] sm:$0xff] %v14642_v13 }
 0x197   : > { %v14640_v25 = vadd.f32 %v14285_v48, %v1682_v4  ;;  %v1800_v34 = vmax.f32 %v1704_v18, 0.0  ;;  %v1803_v44 = vmax.f32 %v1707_v9, 0.0  ;;  %v1806_v55 = vmax.f32 %v1710_v46, 0.0  ;;  %v14644_v18 = vpop.f32.mrb[34].mxu1 }
 0x198   : > { %v1809_v30 = vmax.f32 %v1713_v36, 0.0  ;;  %v1812_v14 = vmax.f32 %v1716_v15, 0.0  ;;  %v1815_v19 = vmax.f32 %v1719_v47, 0.0  ;;  %v1818_v52 = vmax.f32 %v1722_v5, 0.0  ;;  %21606 = vst [vmem:[#allocation47_spill] sm:$0xff] %v14644_v18  ;;  %v14649_v47 = vpop.f32.mrb[35].mxu1 }
 0x199   : > { %v1821_v60 = vmax.f32 %v1725_v57, 0.0  ;;  %v1824_v24 = vmax.f32 %v1728_v50, 0.0  ;;  %v1827_v26 = vmax.f32 %v1731_v49, 0.0  ;;  %v1830_v21 = vmax.f32 %v1734_v40, 0.0  ;;  %2011 = vst [vmem:[#allocation2 + $0x19] sm:$0xff] %v1800_v34  ;;  %2012 = vst [vmem:[#allocation2 + $0x21] sm:$0xff] %v1803_v44 }
 0x19a   : > { %2013 = vst [vmem:[#allocation2 + $0x31] sm:$0xff] %v1806_v55  ;;  %v1833_v56 = vmax.f32 %v1737_v11, 0.0  ;;  %v1836_v2 = vmax.f32 %v1740_v0, 0.0  ;;  %v1839_v48 = vmax.f32 %v1743_v38, 0.0  ;;  %v1842_v4 = vmax.f32 %v1746_v51, 0.0  ;;  %2014 = vst [vmem:[#allocation2 + $0x39] sm:$0xff] %v1809_v30 }
 0x19b   : > { %2015 = vst [vmem:[#allocation2 + $0x49] sm:$0xff] %v1812_v14  ;;  %2016 = vst [vmem:[#allocation2 + $0x51] sm:$0xff] %v1815_v19  ;;  %v1845_v9 = vmax.f32 %v14593_v10, 0.0  ;;  %v1848_v46 = vmax.f32 %v14596_v63, 0.0  ;;  %v1851_v36 = vmax.f32 %v14599_v20, 0.0  ;;  %v1854_v15 = vmax.f32 %v1758_v37, 0.0 }
 0x19c   : > { %2017 = vst [vmem:[#allocation2 + $0x61] sm:$0xff] %v1818_v52  ;;  %2018 = vst [vmem:[#allocation2 + $0x69] sm:$0xff] %v1821_v60  ;;  %v1857_v5 = vmax.f32 %v14605_v53, 0.0  ;;  %v1860_v14 = vmax.f32 %v14608_v35, 0.0  ;;  %v1863_v52 = vmax.f32 %v14611_v3, 0.0  ;;  %v1866_v57 = vmax.f32 %v14614_v58, 0.0 }
 0x19d   : > { %2019 = vst [vmem:[#allocation2 + $0x79] sm:$0xff] %v1824_v24  ;;  %2020 = vst [vmem:[#allocation2 + $0x81] sm:$0xff] %v1827_v26  ;;  %v1869_v50 = vmax.f32 %v14617_v32, 0.0  ;;  %v1872_v60 = vmax.f32 %v14620_v1, 0.0  ;;  %v1878_v26 = vmax.f32 %v14626_v54, 0.0  ;;  %v1881_v49 = vmax.f32 %v14629_v29, 0.0 }
 0x19e   : > { %2021 = vst [vmem:[#allocation2 + $0x91] sm:$0xff] %v1830_v21  ;;  %21607 = vst [vmem:[#allocation48_spill] sm:$0xff] %v14649_v47  ;;  %v1875_v21 = vmax.f32 %v14623_v41, 0.0  ;;  %v1884_v40 = vmax.f32 %v14632_v61, 0.0  ;;  %v1887_v11 = vmax.f32 %v14635_v16, 0.0  ;;  %v1890_v0 = vmax.f32 %v14640_v25, 0.0 }
 0x19f   : > { %2022 = vst [vmem:[#allocation2 + $0x99] sm:$0xff] %v1833_v56  ;;  %2023 = vst [vmem:[#allocation2 + $0xa9] sm:$0xff] %v1836_v2  ;;  %v14663_v38 = vpop.f32.mrb[36].mxu1  ;;  %v21609_v51 = vsub.f32 %v13929_v33, %v14293_v45  ;;  %v1454_v63 = vsub.f32 %v13845_v22, %v14293_v45  ;;  %v21610_v20 = vld [vmem:[#allocation11_spill] sm:$0xff]  ;;  %v21611_v53 = vld [vmem:[#allocation13_spill] sm:$0xff]  ;;  %v21616_v54 = vsub.f32 %v13804_v62, %v14293_v45 }
 0x1a0   : > { %2024 = vst [vmem:[#allocation2 + $0xb1] sm:$0xff] %v1839_v48  ;;  %2025 = vst [vmem:[#allocation2 + $0xc1] sm:$0xff] %v1842_v4  ;;  %v1457_v37 = vsub.f32 %v21610_v20, %v14293_v45  ;;  %v1460_v35 = vsub.f32 %v21611_v53, %v14293_v45  ;;  %v14675_v3 = vpop.f32.mrb[37].mxu1  ;;  %v21613_v58 = vld [vmem:[#allocation15_spill] sm:$0xff]  ;;  %v21614_v32 = vld [vmem:[#allocation17_spill] sm:$0xff]  ;;  %v21617_v16 = vsub.f32 %v13820_v6, %v14293_v45 }
 0x1a1   : > { %2026 = vst [vmem:[#allocation2 + $0xc9] sm:$0xff] %v1845_v9  ;;  %2027 = vst [vmem:[#allocation2 + $0xd9] sm:$0xff] %v1848_v46  ;;  %v1574_v10 = vmul.f32 %v14523_v23, %v21609_v51  ;;  %v1463_v33 = vsub.f32 %v21613_v58, %v14293_v45  ;;  %v1466_v1 = vsub.f32 %v21614_v32, %v14293_v45  ;;  %v21615_v22 = vld [vmem:[#allocation19_spill] sm:$0xff]  ;;  %v21623_v56 = vld [vmem:[#allocation18_spill] sm:$0xff]  ;;  %v14716_v4 = vpop.f32.mrb[38].mxu1 }
 0x1a2   : > { %2028 = vst [vmem:[#allocation2 + $0xe1] sm:$0xff] %v1851_v36  ;;  %2029 = vst [vmem:[#allocation2 + $0xf1] sm:$0xff] %v1854_v15  ;;  %v1469_v41 = vsub.f32 %v21615_v22, %v14293_v45  ;;  %v1481_v29 = vmul.f32 %v14523_v23, %v21616_v54  ;;  %v1484_v2 = vmul.f32 %v14523_v23, %v21617_v16  ;;  %v21628_v36 = vld [vmem:[#allocation21_spill] sm:$0xff]  ;;  %v21639_v51 = vld [vmem:[#allocation26_spill] sm:$0xff] }
 0x1a3   : > { %2030 = vst [vmem:[#allocation2 + $0xf9] sm:$0xff] %v1857_v5  ;;  %2031 = vst [vmem:[#allocation2 + $0x109] sm:$0xff] %v1860_v14  ;;  %v1686_v61 = vmul.f32 %v14289_v42, %v1574_v10  ;;  %v21618_v25 = vsub.f32 %v13838_v17, %v14293_v45  ;;  %v21619_v44 = vsub.f32 %v21536_v28, %v14293_v45  ;;  %v21630_v5 = vld [vmem:[#allocation22_spill] sm:$0xff]  ;;  %v3058_v18 = vld [vmem:[%s20911_s4 + $0x160] sm:$0xff] }
 0x1a4   : > { %2032 = vst [vmem:[#allocation2 + $0x111] sm:$0xff] %v1863_v52  ;;  %2033 = vst [vmem:[#allocation2 + $0x121] sm:$0xff] %v1866_v57  ;;  %v21620_v62 = vsub.f32 %v21537_v12, %v14293_v45  ;;  %v21621_v6 = vsub.f32 %v21538_v59, %v14293_v45  ;;  %v21622_v17 = vsub.f32 %v21539_v7, %v14293_v45  ;;  %v21626_v12 = vld [vmem:[#allocation36_spill] sm:$0xff]  ;;  %v14731_v57 = vpop.f32.mrb[39].mxu1 }
 0x1a5   : > { %21608 = vst [vmem:[#allocation49_spill] sm:$0xff] %v14663_v38  ;;  %2034 = vst [vmem:[#allocation2 + $0x129] sm:$0xff] %v1869_v50  ;;  %v1487_v34 = vmul.f32 %v14523_v23, %v21618_v25  ;;  %v1490_v55 = vmul.f32 %v14523_v23, %v21619_v44  ;;  %v21624_v28 = vsub.f32 %v21623_v56, %v14293_v45  ;;  %v21633_v50 = vld [vmem:[#allocation23_spill] sm:$0xff]  ;;  %v21645_v44 = vld [vmem:[#allocation30_spill] sm:$0xff] }
 0x1a6   : > { %2035 = vst [vmem:[#allocation2 + $0x139] sm:$0xff] %v1872_v60  ;;  %2036 = vst [vmem:[#allocation2 + $0x141] sm:$0xff] %v1875_v21  ;;  %v1493_v30 = vmul.f32 %v14523_v23, %v21620_v62  ;;  %v1496_v19 = vmul.f32 %v14523_v23, %v21621_v6  ;;  %v1499_v24 = vmul.f32 %v14523_v23, %v21622_v17  ;;  %v21648_v56 = vld [vmem:[#allocation32_spill] sm:$0xff] }
 0x1a7   : > { %2037 = vst [vmem:[#allocation2 + $0x151] sm:$0xff] %v1878_v26  ;;  %21612 = vst [vmem:[#allocation11_spill] sm:$0xff] %v14675_v3  ;;  %v1502_v48 = vmul.f32 %v14523_v23, %v21624_v28  ;;  %v1798_v9 = vadd.f32 %v21626_v12, %v1686_v61  ;;  %v21627_v46 = vsub.f32 %v21541_v43, %v14293_v45  ;;  %v21635_v43 = vld [vmem:[#allocation24_spill] sm:$0xff]  ;;  %v21643_v61 = vld [vmem:[#allocation29_spill] sm:$0xff] }
 0x1a8   : > { %2038 = vst [vmem:[#allocation2 + $0x159] sm:$0xff] %v1881_v49  ;;  %2039 = vst [vmem:[#allocation2 + $0x169] sm:$0xff] %v1884_v40  ;;  %v21629_v15 = vsub.f32 %v21628_v36, %v14293_v45  ;;  %v21631_v14 = vsub.f32 %v21630_v5, %v14293_v45  ;;  %v21634_v60 = vsub.f32 %v21633_v50, %v14293_v45  ;;  %v21637_v40 = vld [vmem:[#allocation25_spill] sm:$0xff]  ;;  %v14777_v36 = vpop.f32.mrb[40].mxu1 }
 0x1a9   : > { %2040 = vst [vmem:[#allocation2 + $0x171] sm:$0xff] %v1887_v11  ;;  %2041 = vst [vmem:[#allocation2 + $0x181] sm:$0xff] %v1890_v0  ;;  %v1505_v59 = vmul.f32 %v14523_v23, %v21627_v46  ;;  %v21636_v26 = vsub.f32 %v21635_v43, %v14293_v45  ;;  %v21638_v11 = vsub.f32 %v21637_v40, %v14293_v45  ;;  %v1894_v53 = vmax.f32 %v1798_v9, 0.0  ;;  %v21656_v43 = vld [vmem:[#allocation9_spill] sm:$0xff] }
 0x1aa   : > { %21625 = vst [vmem:[#allocation13_spill] sm:$0xff] %v14716_v4  ;;  %v1508_v7 = vmul.f32 %v14523_v23, %v21629_v15  ;;  %v1511_v52 = vmul.f32 %v14523_v23, %v21631_v14  ;;  %21632 = vst [vmem:[#allocation15_spill] sm:$0xff] %v14731_v57  ;;  %v1514_v21 = vmul.f32 %v14523_v23, %v21634_v60  ;;  %v21652_v15 = vld [vmem:[#allocation33_spill] sm:$0xff]  ;;  %v21654_v14 = vld [vmem:[#allocation34_spill] sm:$0xff] }
 0x1ab   : > { %v1517_v49 = vmul.f32 %v14523_v23, %v21636_v26  ;;  %v1520_v0 = vmul.f32 %v14523_v23, %v21638_v11  ;;  %v21640_v10 = vsub.f32 %v21639_v51, %v14293_v45  ;;  %v21641_v58 = vsub.f32 %v21550_v31, %v14293_v45  ;;  %21651 = vst [vmem:[#allocation17_spill] sm:$0xff] %v14777_v36  ;;  %v14792_v11 = vpop.f32.mrb[41].mxu1  ;;  %v15208_v3 = vld [vmem:[#allocation2 + $0x108] sm:$0xff]  ;;  %v15234_v47 = vld [vmem:[#allocation2 + $0x120] sm:$0xff] }
 0x1ac   : > { %v21642_v22 = vsub.f32 %v21551_v8, %v14293_v45  ;;  %v21644_v16 = vsub.f32 %v21643_v61, %v14293_v45  ;;  %v21646_v62 = vsub.f32 %v21645_v44, %v14293_v45  ;;  %v21647_v31 = vsub.f32 %v21555_v39, %v14293_v45  ;;  %2075 = vst [vmem:[#allocation3 + $0x1a2] sm:$0xff] %v1894_v53  ;;  %v15255_v13 = vld [vmem:[#allocation2 + $0x130] sm:$0x3] }
 0x1ad   : > { %v1523_v20 = vmul.f32 %v14523_v23, %v21640_v10  ;;  %v1526_v32 = vmul.f32 %v14523_v23, %v21641_v58  ;;  %v21649_v8 = vsub.f32 %v21648_v56, %v14293_v45  ;;  %v21650_v9 = vsub.f32 %v14163_v27, %v14293_v45  ;;  %21658 = vst [vmem:[#allocation19_spill] sm:$0xff] %v14792_v11 }
 0x1ae   : > { %v1529_v54 = vmul.f32 %v14523_v23, %v21642_v22  ;;  %v1532_v25 = vmul.f32 %v14523_v23, %v21644_v16  ;;  %v1535_v6 = vmul.f32 %v14523_v23, %v21646_v62  ;;  %v1538_v17 = vmul.f32 %v14523_v23, %v21647_v31  ;;  %v14806_v62 = vpop.f32.mrb[42].mxu1  ;;  %21684 = vst [vmem:[#allocation59_spill] sm:$0xff] %v15208_v3 }
 0x1af   : > { %v1541_v28 = vmul.f32 %v14523_v23, %v21649_v8  ;;  %v1544_v46 = vmul.f32 %v14523_v23, %v21650_v9  ;;  %v21653_v5 = vsub.f32 %v21652_v15, %v14293_v45  ;;  %v21655_v50 = vsub.f32 %v21654_v14, %v14293_v45  ;;  %21659 = vst [vmem:[#allocation18_spill] sm:$0xff] %v14806_v62 }
 0x1b0   : > { %v21657_v26 = vsub.f32 %v21656_v43, %v14293_v45  ;;  %v1556_v40 = vmul.f32 %v14523_v23, %v1454_v63  ;;  %v1559_v51 = vmul.f32 %v14523_v23, %v1457_v37  ;;  %v1562_v10 = vmul.f32 %v14523_v23, %v1460_v35  ;;  %21692 = vst [vmem:[#allocation67_spill] sm:$0xff] %v15234_v47 }
 0x1b1   : > { %v1547_v39 = vmul.f32 %v14523_v23, %v21653_v5  ;;  %v1550_v60 = vmul.f32 %v14523_v23, %v21655_v50  ;;  %v1565_v53 = vmul.f32 %v14523_v23, %v1463_v33  ;;  %v1568_v58 = vmul.f32 %v14523_v23, %v1466_v1  ;;  %21697 = vst [vmem:[#allocation72_spill] sm:$0xff] %v15255_v13 }
 0x1b2   : > { %v1553_v27 = vmul.f32 %v14523_v23, %v21657_v26  ;;  %v1571_v22 = vmul.f32 %v14523_v23, %v1469_v41  ;;  %v1593_v61 = vmul.f32 %v14289_v42, %v1481_v29  ;;  %v1596_v45 = vmul.f32 %v14289_v42, %v1484_v2  ;;  %v14812_v29 = vpop.f32.mrb[43].mxu1 }
 0x1b3   : > { %v1599_v16 = vmul.f32 %v14289_v42, %v1487_v34  ;;  %v1602_v63 = vmul.f32 %v14289_v42, %v1490_v55  ;;  %v1605_v44 = vmul.f32 %v14289_v42, %v1493_v30  ;;  %v1608_v37 = vmul.f32 %v14289_v42, %v1496_v19  ;;  %21660 = vst [vmem:[#allocation36_spill] sm:$0xff] %v14812_v29  ;;  %v14826_v31 = vpop.f32.mrb[44].mxu1 }
 0x1b4   : > { %v1611_v35 = vmul.f32 %v14289_v42, %v1499_v24  ;;  %v1614_v33 = vmul.f32 %v14289_v42, %v1502_v48  ;;  %v1617_v23 = vmul.f32 %v14289_v42, %v1505_v59  ;;  %v1620_v1 = vmul.f32 %v14289_v42, %v1508_v7  ;;  %21661 = vst [vmem:[#allocation21_spill] sm:$0xff] %v14826_v31  ;;  %v15191_v31 = vld [vmem:[#allocation2 + $0x100] sm:$0x3] }
 0x1b5   : > { %v1623_v41 = vmul.f32 %v14289_v42, %v1511_v52  ;;  %v1626_v2 = vmul.f32 %v14289_v42, %v1514_v21  ;;  %v1629_v34 = vmul.f32 %v14289_v42, %v1517_v49  ;;  %v1632_v55 = vmul.f32 %v14289_v42, %v1520_v0  ;;  %21681 = vst [vmem:[#allocation56_spill] sm:$0xff] %v15191_v31 }
 0x1b6   : > { %v1635_v30 = vmul.f32 %v14289_v42, %v1523_v20  ;;  %v1638_v19 = vmul.f32 %v14289_v42, %v1526_v32  ;;  %v1641_v24 = vmul.f32 %v14289_v42, %v1529_v54  ;;  %v1644_v48 = vmul.f32 %v14289_v42, %v1532_v25  ;;  %v14832_v25 = vpop.f32.mrb[45].mxu1 }
 0x1b7   : > { %v1647_v59 = vmul.f32 %v14289_v42, %v1535_v6  ;;  %v1650_v7 = vmul.f32 %v14289_v42, %v1538_v17  ;;  %v1653_v52 = vmul.f32 %v14289_v42, %v1541_v28  ;;  %v1656_v21 = vmul.f32 %v14289_v42, %v1544_v46  ;;  %21662 = vst [vmem:[#allocation22_spill] sm:$0xff] %v14832_v25 }
 0x1b8   : > { %v1659_v49 = vmul.f32 %v14289_v42, %v1547_v39  ;;  %v1662_v0 = vmul.f32 %v14289_v42, %v1550_v60  ;;  %v1665_v20 = vmul.f32 %v14289_v42, %v1553_v27  ;;  %v1668_v32 = vmul.f32 %v14289_v42, %v1556_v40  ;;  %v14846_v60 = vpop.f32.mrb[46].mxu1 }
 0x1b9   : > { %v1671_v54 = vmul.f32 %v14289_v42, %v1559_v51  ;;  %v1674_v6 = vmul.f32 %v14289_v42, %v1562_v10  ;;  %v1677_v17 = vmul.f32 %v14289_v42, %v1565_v53  ;;  %v1680_v56 = vmul.f32 %v14289_v42, %v1568_v58  ;;  %21663 = vst [vmem:[#allocation23_spill] sm:$0xff] %v14846_v60  ;;  %v14852_v40 = vpop.f32.mrb[47].mxu1  ;;  %v15159_v60 = vld [vmem:[#allocation2 + $0xd0] sm:$0x3] }
 0x1ba   : > { %v1683_v8 = vmul.f32 %v14289_v42, %v1571_v22  ;;  %v1705_v28 = vadd.f32 %v21626_v12, %v1593_v61  ;;  %v1708_v9 = vadd.f32 %v21626_v12, %v1596_v45  ;;  %v1711_v46 = vadd.f32 %v21626_v12, %v1599_v16  ;;  %21664 = vst [vmem:[#allocation24_spill] sm:$0xff] %v14852_v40 }
 0x1bb   : > { %v1714_v15 = vadd.f32 %v21626_v12, %v1602_v63  ;;  %v1717_v5 = vadd.f32 %v21626_v12, %v1605_v44  ;;  %v1720_v39 = vadd.f32 %v21626_v12, %v1608_v37  ;;  %v1723_v14 = vadd.f32 %v21626_v12, %v1611_v35 }
 0x1bc   : > { %v1726_v50 = vadd.f32 %v21626_v12, %v1614_v33  ;;  %v1729_v42 = vadd.f32 %v21626_v12, %v1617_v23  ;;  %v1732_v43 = vadd.f32 %v21626_v12, %v1620_v1  ;;  %v1735_v26 = vadd.f32 %v21626_v12, %v1623_v41 }
 0x1bd   : > { %v1738_v27 = vadd.f32 %v21626_v12, %v1626_v2  ;;  %v1741_v51 = vadd.f32 %v21626_v12, %v1629_v34  ;;  %v14856_v10 = vadd.f32 %v21626_v12, %v1632_v55  ;;  %v14859_v53 = vadd.f32 %v21626_v12, %v1635_v30 }
 0x1be   : > { %v14862_v58 = vadd.f32 %v21626_v12, %v1638_v19  ;;  %v14865_v22 = vadd.f32 %v21626_v12, %v1641_v24  ;;  %v14868_v61 = vadd.f32 %v21626_v12, %v1644_v48  ;;  %v14871_v45 = vadd.f32 %v21626_v12, %v1647_v59 }
 0x1bf   : > { %v14874_v16 = vadd.f32 %v21626_v12, %v1650_v7  ;;  %v14877_v63 = vadd.f32 %v21626_v12, %v1653_v52  ;;  %v14880_v44 = vadd.f32 %v21626_v12, %v1656_v21  ;;  %v14883_v37 = vadd.f32 %v21626_v12, %v1659_v49 }
 0x1c0   : > { %v14886_v35 = vadd.f32 %v21626_v12, %v1662_v0  ;;  %v14889_v33 = vadd.f32 %v21626_v12, %v1665_v20  ;;  %v14892_v23 = vadd.f32 %v21626_v12, %v1668_v32  ;;  %v14895_v1 = vadd.f32 %v21626_v12, %v1671_v54 }
 0x1c1   : > { %v14898_v41 = vadd.f32 %v21626_v12, %v1674_v6  ;;  %v14901_v2 = vadd.f32 %v21626_v12, %v1677_v17  ;;  %v14904_v34 = vadd.f32 %v21626_v12, %v1680_v56  ;;  %v14907_v55 = vadd.f32 %v21626_v12, %v1683_v8  ;;  %v14909_v12 = vld [vmem:[#allocation2 + $0x18] sm:$0xff]  ;;  %v14911_v6 = vld [vmem:[#allocation2 + $0x20] sm:$0xff] }
 0x1c2   : > { %v1801_v30 = vmax.f32 %v1705_v28, 0.0  ;;  %v1804_v19 = vmax.f32 %v1708_v9, 0.0  ;;  %v1807_v24 = vmax.f32 %v1711_v46, 0.0  ;;  %v1810_v48 = vmax.f32 %v1714_v15, 0.0  ;;  %v14917_v9 = vld [vmem:[#allocation2 + $0x30] sm:$0xff]  ;;  %v14919_v46 = vld [vmem:[#allocation2 + $0x38] sm:$0xff] }
 0x1c3   : > { %v1813_v59 = vmax.f32 %v1717_v5, 0.0  ;;  %v1816_v7 = vmax.f32 %v1720_v39, 0.0  ;;  %v1819_v52 = vmax.f32 %v1723_v14, 0.0  ;;  %v1822_v21 = vmax.f32 %v1726_v50, 0.0  ;;  %v14925_v50 = vld [vmem:[#allocation2 + $0x40] sm:$0x3] }
 0x1c4   : > { %v1825_v49 = vmax.f32 %v1729_v42, 0.0  ;;  %2044 = vst [vmem:[#allocation3 + $0x32] sm:$0xff] %v1801_v30  ;;  %v1828_v0 = vmax.f32 %v1732_v43, 0.0  ;;  %v1831_v20 = vmax.f32 %v1735_v26, 0.0  ;;  %v1834_v32 = vmax.f32 %v1738_v27, 0.0  ;;  %2045 = vst [vmem:[#allocation3 + $0x3a] sm:$0xff] %v1804_v19 }
 0x1c5   : > { %v1837_v54 = vmax.f32 %v1741_v51, 0.0  ;;  %2046 = vst [vmem:[#allocation3 + $0x4a] sm:$0xff] %v1807_v24  ;;  %2047 = vst [vmem:[#allocation3 + $0x52] sm:$0xff] %v1810_v48  ;;  %v1840_v17 = vmax.f32 %v14856_v10, 0.0  ;;  %v1843_v56 = vmax.f32 %v14859_v53, 0.0  ;;  %v1846_v8 = vmax.f32 %v14862_v58, 0.0 }
 0x1c6   : > { %2048 = vst [vmem:[#allocation3 + $0x62] sm:$0xff] %v1813_v59  ;;  %v1849_v28 = vmax.f32 %v14865_v22, 0.0  ;;  %2049 = vst [vmem:[#allocation3 + $0x6a] sm:$0xff] %v1816_v7  ;;  %v1852_v15 = vmax.f32 %v14868_v61, 0.0  ;;  %v1855_v5 = vmax.f32 %v14871_v45, 0.0  ;;  %v1858_v39 = vmax.f32 %v14874_v16, 0.0 }
 0x1c7   : > { %2050 = vst [vmem:[#allocation3 + $0x7a] sm:$0xff] %v1819_v52  ;;  %2051 = vst [vmem:[#allocation3 + $0x82] sm:$0xff] %v1822_v21  ;;  %v1861_v14 = vmax.f32 %v14877_v63, 0.0  ;;  %v14930_v42 = vld [vmem:[%s20914_s7 + $0x400] sm:$0xff]  ;;  %v14935_v43 = vld [vmem:[%s20914_s7 + $0x408] sm:$0xff]  ;;  %v1864_v26 = vmax.f32 %v14880_v44, 0.0 }
 0x1c8   : > { %2052 = vst [vmem:[#allocation3 + $0x92] sm:$0xff] %v1825_v49  ;;  %2053 = vst [vmem:[#allocation3 + $0x9a] sm:$0xff] %v1828_v0  ;;  %v1867_v27 = vmax.f32 %v14883_v37, 0.0  ;;  %v1870_v51 = vmax.f32 %v14886_v35, 0.0  ;;  %v1873_v10 = vmax.f32 %v14889_v33, 0.0  ;;  %v1876_v58 = vmax.f32 %v14892_v23, 0.0 }
 0x1c9   : > { %2054 = vst [vmem:[#allocation3 + $0xaa] sm:$0xff] %v1831_v20  ;;  %2055 = vst [vmem:[#allocation3 + $0xb2] sm:$0xff] %v1834_v32  ;;  %v2081_v53 = vld [vmem:[#allocation2 + $0x28] sm:$0x3]  ;;  %v1879_v22 = vmax.f32 %v14895_v1, 0.0  ;;  %v1882_v61 = vmax.f32 %v14898_v41, 0.0  ;;  %v11730_v30 = vpack.c.bf16 %v14935_v43, %v14930_v42 }
 0x1ca   : > { %2056 = vst [vmem:[#allocation3 + $0xc2] sm:$0xff] %v1837_v54  ;;  %2057 = vst [vmem:[#allocation3 + $0xca] sm:$0xff] %v1840_v17  ;;  %v1885_v45 = vmax.f32 %v14901_v2, 0.0  ;;  %v14945_v16 = vld [vmem:[#allocation2 + $0x48] sm:$0xff]  ;;  %v14947_v63 = vld [vmem:[#allocation2 + $0x50] sm:$0xff]  ;;  %v1888_v44 = vmax.f32 %v14904_v34, 0.0 }
 0x1cb   : > { %2058 = vst [vmem:[#allocation3 + $0xda] sm:$0xff] %v1843_v56  ;;  %2059 = vst [vmem:[#allocation3 + $0xe2] sm:$0xff] %v1846_v8  ;;  %v1891_v37 = vmax.f32 %v14907_v55, 0.0  ;;  %v2216_v35 = vrot.slane %v14909_v12, 1  ;;  %v2217_v33 = vrot.slane %v14911_v6, 1  ;;  %v2366_v1 = vrot.slane %v14917_v9, 2 }
 0x1cc   : > { %2060 = vst [vmem:[#allocation3 + $0xf2] sm:$0xff] %v1849_v28  ;;  %2061 = vst [vmem:[#allocation3 + $0xfa] sm:$0xff] %v1852_v15  ;;  %v14953_v23 = vld [vmem:[#allocation2 + $0x58] sm:$0x3]  ;;  %v2367_v41 = vrot.slane %v14919_v46, 2  ;;  %v2369_v2 = vrot.slane %v14925_v50, 2 }
 0x1cd   : > { %2062 = vst [vmem:[#allocation3 + $0x10a] sm:$0xff] %v1855_v5  ;;  %2063 = vst [vmem:[#allocation3 + $0x112] sm:$0xff] %v1858_v39  ;;  %v2219_v34 = vrot.slane %v2081_v53, 1  ;;  %v14959_v55 = vsel %vm2210_vm2, %v2216_v35, %v2217_v33  ;;  %v2371_v19 = vrot.slane %v14945_v16, 2  ;;  %v2372_v24 = vrot.slane %v14947_v63, 2  ;;  %v7044_v48 = vld [vmem:[%s20914_s7 + $0x410] sm:$0xff] }
 0x1ce   : > { %2064 = vst [vmem:[#allocation3 + $0x122] sm:$0xff] %v1861_v14  ;;  %2065 = vst [vmem:[#allocation3 + $0x12a] sm:$0xff] %v1864_v26  ;;  %v14968_v59 = vld [vmem:[#allocation2 + $0x60] sm:$0xff]  ;;  %v14970_v7 = vld [vmem:[#allocation2 + $0x68] sm:$0xff]  ;;  %3232 = vmatprep.mubr.f32.mxu1 %v14959_v55  ;;  %v14974_v52 = vsel %vm2355_vm3, %v2366_v1, %v2367_v41  ;;  %v14977_v21 = vsel %vm2355_vm3, %v2367_v41, %v2369_v2  ;;  %v2374_v49 = vrot.slane %v14953_v23, 2  ;;  %v2221_v17 = vrot.slane %v14917_v9, 1 }
 0x1cf   : > { %2066 = vst [vmem:[#allocation3 + $0x13a] sm:$0xff] %v1867_v27  ;;  %2067 = vst [vmem:[#allocation3 + $0x142] sm:$0xff] %v1870_v51  ;;  %v7045_v0 = vld [vmem:[%s20914_s7 + $0x418] sm:$0xff]  ;;  %v14986_v20 = vld [vmem:[%s20914_s7 + $0x420] sm:$0xff]  ;;  %11185 = vmatprep.mubr.f32.mxu0 %v14974_v52  ;;  %3233 = vmatmul.mubr.f32.gmra.mrb[52].mxu1 %v14909_v12  ;;  %v14996_v54 = vsel %vm2210_vm2, %v2217_v33, %v2219_v34  ;;  %v20986_v56 = vrot.slane %v14919_v46, 1  ;;  %v15015_v12 = vsel %vm2355_vm3, %v2371_v19, %v2372_v24 }
 0x1d0   : > { %2068 = vst [vmem:[#allocation3 + $0x152] sm:$0xff] %v1873_v10  ;;  %2069 = vst [vmem:[#allocation3 + $0x15a] sm:$0xff] %v1876_v58  ;;  %v14991_v32 = vld [vmem:[%s20914_s7 + $0x428] sm:$0xff]  ;;  %v15000_v8 = vld [vmem:[#allocation2 + $0x70] sm:$0x3]  ;;  %11186 = vmatmul.mubr.f32.vlgmr.msra.gmra.mrb[48].mxu0 %v14977_v21  ;;  %3237 = vmatprep.mubr.f32.mxu1 %v14996_v54  ;;  %v2376_v5 = vrot.slane %v14968_v59, 2  ;;  %v11733_v53 = vpack.c.bf16 %v7045_v0, %v7044_v48 }
 0x1d1   : > { %2070 = vst [vmem:[#allocation3 + $0x16a] sm:$0xff] %v1879_v22  ;;  %2071 = vst [vmem:[#allocation3 + $0x172] sm:$0xff] %v1882_v61  ;;  %v15005_v28 = vld [vmem:[%s20914_s7 + $0x430] sm:$0xff]  ;;  %v15010_v15 = vld [vmem:[%s20914_s7 + $0x438] sm:$0xff]  ;;  %v2377_v39 = vrot.slane %v14970_v7, 2  ;;  %11731 = vmatpush1.bf16.msra.mxu0 %v11730_v30  ;;  %11188 = vmatprep.mubr.f32.mxu0 %v15015_v12  ;;  %v2379_v35 = vrot.slane %v15000_v8, 2  ;;  %v11736_v33 = vpack.c.bf16 %v14991_v32, %v14986_v20 }
 0x1d2   : > { %2072 = vst [vmem:[#allocation3 + $0x182] sm:$0xff] %v1885_v45  ;;  %2073 = vst [vmem:[#allocation3 + $0x18a] sm:$0xff] %v1888_v44  ;;  %v15019_v14 = vld [vmem:[#allocation2 + $0x78] sm:$0xff]  ;;  %v15021_v42 = vld [vmem:[#allocation2 + $0x80] sm:$0xff]  ;;  %v21670_v44 = vmov 0.0|0.0   ;;  %v2224_v1 = vrot.slane %v14925_v50, 1  ;;  %v15087_v30 = vsel %vm2210_vm2, %v2221_v17, %v20986_v56  ;;  %v11739_v20 = vpack.c.bf16 %v15010_v15, %v15005_v28 }
 0x1d3   : > { %2074 = vst [vmem:[#allocation3 + $0x19a] sm:$0xff] %v1891_v37  ;;  %21665 = vst [vmem:[#allocation25_spill] sm:$0xff] %v14959_v55  ;;  %v15023_v43 = vld [vmem:[#allocation2 + $0x88] sm:$0x3]  ;;  %v15028_v26 = vld [vmem:[%s20914_s7 + $0x440] sm:$0xff]  ;;  %11732 = vmatprep.subr.bf16.mxu0 %v21670_v44  ;;  %v15068_v37 = vsel %vm2355_vm3, %v2372_v24, %v2374_v49  ;;  %3238 = vmatmul.mubr.f32.gmra.mrb[54].mxu1 %v14911_v6  ;;  %v2381_v19 = vrot.slane %v15019_v14, 2  ;;  %v15110_v0 = vsel %vm2355_vm3, %v2376_v5, %v2377_v39 }
 0x1d4   : > { %21666 = vst [vmem:[#allocation26_spill] sm:$0xff] %v14974_v52  ;;  %21667 = vst [vmem:[#allocation29_spill] sm:$0xff] %v14977_v21  ;;  %v15033_v27 = vld [vmem:[%s20914_s7 + $0x448] sm:$0xff]  ;;  %v15038_v51 = vld [vmem:[%s20914_s7 + $0x450] sm:$0xff]  ;;  %v2382_v50 = vrot.slane %v15021_v42, 2  ;;  %v2384_v24 = vrot.slane %v15023_v43, 2  ;;  %11189 = vmatmul.mubr.f32.gmra.mrb[50].mxu0 %v15068_v37  ;;  %3242 = vmatprep.mubr.f32.mxu1 %v15087_v30  ;;  %v15144_v21 = vsel %vm2355_vm3, %v2377_v39, %v2379_v35 }
 0x1d5   : > { %21668 = vst [vmem:[#allocation30_spill] sm:$0xff] %v14996_v54  ;;  %21669 = vst [vmem:[#allocation32_spill] sm:$0xff] %v15015_v12  ;;  %v15043_v10 = vld [vmem:[%s20914_s7 + $0x458] sm:$0xff]  ;;  %v15049_v58 = vld [vmem:[%s20914_s7 + $0x460] sm:$0xff]  ;;  %v2226_v32 = vrot.slane %v14945_v16, 1  ;;  %v2227_v17 = vrot.slane %v14947_v63, 1  ;;  %11734 = vmatpush1.bf16.msra.mxu0 %v11733_v53  ;;  %11191 = vmatprep.mubr.f32.mxu0 %v15110_v0 }
 0x1d6   : > { %v15054_v22 = vld [vmem:[%s20914_s7 + $0x468] sm:$0xff]  ;;  %v15059_v61 = vld [vmem:[%s20914_s7 + $0x470] sm:$0xff]  ;;  %v15064_v45 = vld [vmem:[%s20914_s7 + $0x478] sm:$0xff]  ;;  %21671 = vst [vmem:[#allocation33_spill] sm:$0xff] %v15068_v37  ;;  %11735 = vmatprep.subr.bf16.mxu0 %v21670_v44  ;;  %v21675_v52 = vrot.slane %v14919_v46, 1  ;;  %v15152_v37 = vsel %vm2355_vm3, %v2381_v19, %v2382_v50  ;;  %v15155_v12 = vsel %vm2355_vm3, %v2382_v50, %v2384_v24  ;;  %v2229_v39 = vrot.slane %v14953_v23, 1 }
 0x1d7   : > { %v15074_v41 = vld [vmem:[#allocation2 + $0x90] sm:$0xff]  ;;  %v15076_v2 = vld [vmem:[#allocation2 + $0x98] sm:$0xff]  ;;  %v15081_v34 = vld [vmem:[%s20914_s7 + $0x480] sm:$0xff]  ;;  %21672 = vst [vmem:[#allocation34_spill] sm:$0xff] %v15087_v30  ;;  %3243 = vmatmul.mubr.f32.gmra.mrb[56].mxu1 %v14917_v9  ;;  %v15166_v9 = vsel %vm2210_vm2, %v2226_v32, %v2227_v17  ;;  %v2232_v25 = vrot.slane %v14970_v7, 1  ;;  %v2234_v29 = vrot.slane %v15000_v8, 1 }
 0x1d8   : > { %v15095_v48 = vld [vmem:[%s20914_s7 + $0x488] sm:$0xff]  ;;  %v15100_v6 = vld [vmem:[%s20914_s7 + $0x490] sm:$0xff]  ;;  %v15105_v49 = vld [vmem:[%s20914_s7 + $0x498] sm:$0xff]  ;;  %21673 = vst [vmem:[#allocation9_spill] sm:$0xff] %v15110_v0  ;;  %v2386_v56 = vrot.slane %v15074_v41, 2  ;;  %v2387_v54 = vrot.slane %v15076_v2, 2  ;;  %v15149_v40 = vsel %vm2210_vm2, %v21675_v52, %v2224_v1  ;;  %11192 = vmatmul.mubr.f32.gmra.mrb[52].mxu0 %v15144_v21  ;;  %v15204_v4 = vsel %vm2210_vm2, %v2227_v17, %v2229_v39 }
 0x1d9   : > { %v15119_v55 = vld [vmem:[#allocation2 + $0xa0] sm:$0x3]  ;;  %v15123_v30 = vld [vmem:[#allocation2 + $0xa8] sm:$0xff]  ;;  %v15128_v15 = vld [vmem:[#allocation2 + $0xb0] sm:$0xff]  ;;  %21674 = vst [vmem:[#allocation50_spill] sm:$0xff] %v15144_v21  ;;  %3247 = vmatprep.mubr.f32.mxu1 %v15149_v40  ;;  %11737 = vmatpush1.bf16.msra.mxu0 %v11736_v33  ;;  %v2237_v8 = vrot.slane %v15021_v42, 1 }
 0x1da   : > { %v15130_v53 = vld [vmem:[#allocation2 + $0xb8] sm:$0x3]  ;;  %v15132_v0 = vld [vmem:[#allocation2 + $0xc0] sm:$0xff]  ;;  %21676 = vst [vmem:[#allocation51_spill] sm:$0xff] %v15149_v40  ;;  %21677 = vst [vmem:[#allocation52_spill] sm:$0xff] %v15152_v37  ;;  %v2389_v52 = vrot.slane %v15119_v55, 2  ;;  %11194 = vmatprep.mubr.f32.mxu0 %v15152_v37  ;;  %v15177_v50 = vsel %vm2355_vm3, %v2386_v56, %v2387_v54  ;;  %11738 = vmatprep.subr.bf16.mxu0 %v21670_v44 }
 0x1db   : > { %21678 = vst [vmem:[#allocation53_spill] sm:$0xff] %v15155_v12  ;;  %v15157_v5 = vld [vmem:[#allocation2 + $0xc8] sm:$0xff]  ;;  %v15161_v28 = vld [vmem:[#allocation2 + $0xd8] sm:$0xff]  ;;  %21679 = vst [vmem:[#allocation54_spill] sm:$0xff] %v15166_v9  ;;  %v2391_v35 = vrot.slane %v15123_v30, 2  ;;  %v2392_v24 = vrot.slane %v15128_v15, 2  ;;  %3248 = vmatmul.mubr.f32.gmra.mrb[58].mxu1 %v14919_v46 }
 0x1dc   : > { %v15171_v1 = vld [vmem:[#allocation2 + $0xe0] sm:$0xff]  ;;  %v15173_v19 = vld [vmem:[#allocation2 + $0xe8] sm:$0x3]  ;;  %21680 = vst [vmem:[#allocation55_spill] sm:$0xff] %v15177_v50  ;;  %v2394_v32 = vrot.slane %v15130_v53, 2  ;;  %v2231_v40 = vrot.slane %v14968_v59, 1  ;;  %11195 = vmatmul.mubr.f32.gmra.mrb[54].mxu0 %v15155_v12  ;;  %3252 = vmatprep.mubr.f32.mxu1 %v15166_v9  ;;  %v15201_v57 = vsel %vm2355_vm3, %v2387_v54, %v2389_v52 }
 0x1dd   : > { %v15182_v21 = vld [vmem:[#allocation2 + $0xf0] sm:$0xff]  ;;  %v15184_v23 = vld [vmem:[#allocation2 + $0xf8] sm:$0xff]  ;;  %v2396_v33 = vrot.slane %v15132_v0, 2  ;;  %v2397_v37 = vrot.slane %v15157_v5, 2  ;;  %v2399_v56 = vrot.slane %v15159_v60, 2  ;;  %v2401_v62 = vrot.slane %v15161_v28, 2  ;;  %11740 = vmatpush1.bf16.msra.mxu0 %v11739_v20  ;;  %11197 = vmatprep.mubr.f32.mxu0 %v15177_v50 }
 0x1de   : > { %v2402_v11 = vrot.slane %v15171_v1, 2  ;;  %v2404_v36 = vrot.slane %v15173_v19, 2  ;;  %21682 = vst [vmem:[#allocation57_spill] sm:$0xff] %v15201_v57  ;;  %21683 = vst [vmem:[#allocation58_spill] sm:$0xff] %v15204_v4  ;;  %v2236_v46 = vrot.slane %v15019_v14, 1  ;;  %v15212_v38 = vsel %vm2355_vm3, %v2391_v35, %v2392_v24  ;;  %v15217_v17 = vld [vmem:[#allocation2 + $0x110] sm:$0xff]  ;;  %11741 = vmatprep.subr.bf16.mxu0 %v21670_v44 }
 0x1df   : > { %21685 = vst [vmem:[#allocation60_spill] sm:$0xff] %v15212_v38  ;;  %v2406_v9 = vrot.slane %v15182_v21, 2  ;;  %v2407_v54 = vrot.slane %v15184_v23, 2  ;;  %v2409_v52 = vrot.slane %v15191_v31, 2  ;;  %21686 = vst [vmem:[#allocation61_spill] sm:$0xff] %v15217_v17  ;;  %v15223_v12 = vsel %vm2355_vm3, %v2392_v24, %v2394_v32  ;;  %v3059_v24 = vld [vmem:[%s20911_s4 + $0x168] sm:$0xff]  ;;  %3253 = vmatmul.mubr.f32.gmra.mrb[60].mxu1 %v14945_v16 }
 0x1e0   : > { %v15219_v39 = vld [vmem:[#allocation2 + $0x118] sm:$0x3]  ;;  %21688 = vst [vmem:[#allocation63_spill] sm:$0xff] %v15223_v12  ;;  %v15226_v20 = vsel %vm2210_vm2, %v2231_v40, %v2232_v25  ;;  %v15229_v35 = vsel %vm2355_vm3, %v2396_v33, %v2397_v37  ;;  %v15232_v50 = vsel %vm2355_vm3, %v2397_v37, %v2399_v56  ;;  %v15244_v40 = vsel %vm2210_vm2, %v2232_v25, %v2234_v29  ;;  %v15253_v56 = vld [vmem:[#allocation2 + $0x128] sm:$0xff]  ;;  %v15267_v25 = vld [vmem:[#allocation2 + $0x140] sm:$0xff] }
 0x1e1   : > { %21687 = vst [vmem:[#allocation62_spill] sm:$0xff] %v15219_v39  ;;  %21689 = vst [vmem:[#allocation64_spill] sm:$0xff] %v15226_v20  ;;  %v15247_v32 = vsel %vm2355_vm3, %v2401_v62, %v2402_v11  ;;  %v15250_v37 = vsel %vm2355_vm3, %v2402_v11, %v2404_v36  ;;  %v2239_v33 = vrot.slane %v15023_v43, 1  ;;  %v15257_v31 = vld [vmem:[#allocation2 + $0x138] sm:$0xff]  ;;  %11198 = vmatmul.mubr.f32.gmra.mrb[56].mxu0 %v15201_v57  ;;  %3257 = vmatprep.mubr.f32.mxu1 %v15204_v4  ;;  %v15269_v16 = vld [vmem:[#allocation2 + $0x148] sm:$0x3] }
 0x1e2   : > { %21690 = vst [vmem:[#allocation65_spill] sm:$0xff] %v15229_v35  ;;  %21691 = vst [vmem:[#allocation66_spill] sm:$0xff] %v15232_v50  ;;  %v15262_v29 = vsel %vm2210_vm2, %v2236_v46, %v2237_v8  ;;  %v2411_v62 = vrot.slane %v15208_v3, 2  ;;  %v2412_v36 = vrot.slane %v15217_v17, 2  ;;  %v2414_v11 = vrot.slane %v15219_v39, 2  ;;  %11200 = vmatprep.mubr.f32.mxu0 %v15212_v38 }
 0x1e3   : > { %21693 = vst [vmem:[#allocation68_spill] sm:$0xff] %v15244_v40  ;;  %21694 = vst [vmem:[#allocation69_spill] sm:$0xff] %v15247_v32  ;;  %v21702_v43 = vpack.c.bf16 %v15033_v27, %v15028_v26  ;;  %v15276_v4 = vsel %vm2355_vm3, %v2406_v9, %v2407_v54  ;;  %v15279_v46 = vsel %vm2355_vm3, %v2407_v54, %v2409_v52  ;;  %v2241_v57 = vrot.slane %v15074_v41, 1  ;;  %v15290_v27 = vld [vmem:[%s20914_s7 + $0x4a0] sm:$0xff]  ;;  %v15295_v9 = vld [vmem:[%s20914_s7 + $0x4a8] sm:$0xff] }
 0x1e4   : > { %21695 = vst [vmem:[#allocation70_spill] sm:$0xff] %v15250_v37  ;;  %21696 = vst [vmem:[#allocation71_spill] sm:$0xff] %v15253_v56  ;;  %v2242_v39 = vrot.slane %v15076_v2, 1  ;;  %v2416_v17 = vrot.slane %v15234_v47, 2  ;;  %v2417_v3 = vrot.slane %v15253_v56, 2  ;;  %v2419_v26 = vrot.slane %v15255_v13, 2  ;;  %3258 = vmatmul.mubr.f32.gmra.mrb[62].mxu1 %v14947_v63 }
 0x1e5   : > { %21698 = vst [vmem:[#allocation73_spill] sm:$0xff] %v15257_v31  ;;  %21699 = vst [vmem:[#allocation74_spill] sm:$0xff] %v15262_v29  ;;  %11743 = vmatpush1.bf16.msra.mxu0 %v21702_v43  ;;  %v2244_v54 = vrot.slane %v15119_v55, 1  ;;  %v2421_v52 = vrot.slane %v15257_v31, 2  ;;  %v2422_v43 = vrot.slane %v15267_v25, 2  ;;  %v2424_v38 = vrot.slane %v15269_v16, 2  ;;  %3262 = vmatprep.mubr.f32.mxu1 %v15226_v20 }
 0x1e6   : > { %21700 = vst [vmem:[#allocation75_spill] sm:$0xff] %v15267_v25  ;;  %21701 = vst [vmem:[#allocation76_spill] sm:$0xff] %v15269_v16  ;;  %11744 = vmatprep.subr.bf16.mxu0 %v21670_v44  ;;  %v11380_v13 = vpack.c.bf16 %v3059_v24, %v3058_v18  ;;  %11201 = vmatmul.mubr.f32.gmra.mrb[58].mxu0 %v15223_v12  ;;  %v15305_v56 = vsel %vm2210_vm2, %v2237_v8, %v2239_v33  ;;  %v15316_v63 = vld [vmem:[%s20914_s7 + $0x4b0] sm:$0xff]  ;;  %v15321_v18 = vld [vmem:[%s20914_s7 + $0x4b8] sm:$0xff] }
 0x1e7   : > { %21703 = vst [vmem:[#allocation77_spill] sm:$0xff] %v15276_v4  ;;  %21704 = vst [vmem:[#allocation78_spill] sm:$0xff] %v15279_v46  ;;  %v15308_v47 = vsel %vm2355_vm3, %v2411_v62, %v2412_v36  ;;  %v15311_v55 = vsel %vm2355_vm3, %v2412_v36, %v2414_v11  ;;  %v21708_v8 = vpack.c.bf16 %v15043_v10, %v15038_v51  ;;  %11203 = vmatprep.mubr.f32.mxu0 %v15229_v35  ;;  %v15334_v11 = vld [vmem:[#allocation2 + $0x150] sm:$0xff]  ;;  %v15336_v20 = vld [vmem:[#allocation2 + $0x158] sm:$0xff] }
 0x1e8   : > { %21705 = vst [vmem:[#allocation79_spill] sm:$0xff] %v15305_v56  ;;  %21706 = vst [vmem:[#allocation80_spill] sm:$0xff] %v15308_v47  ;;  %v15328_v24 = vsel %vm2210_vm2, %v2241_v57, %v2242_v39  ;;  %v2246_v62 = vrot.slane %v15123_v30, 1  ;;  %v15338_v12 = vld [vmem:[#allocation2 + $0x160] sm:$0x3]  ;;  %v15342_v51 = vsel %vm2355_vm3, %v2416_v17, %v2417_v3  ;;  %v15345_v57 = vsel %vm2355_vm3, %v2417_v3, %v2419_v26  ;;  %v21724_v25 = vld [vmem:[#allocation16_spill] sm:$0xff] }
 0x1e9   : > { %21707 = vst [vmem:[#allocation81_spill] sm:$0xff] %v15311_v55  ;;  %11746 = vmatpush1.bf16.msra.mxu0 %v21708_v8  ;;  %21709 = vst [vmem:[#allocation82_spill] sm:$0xff] %v15328_v24  ;;  %11381 = vmatpush1.bf16.msra.mxu1 %v11380_v13  ;;  %v15350_v10 = vld [vmem:[%s20914_s7 + $0x4c0] sm:$0xff]  ;;  %v21715_v8 = vld [vmem:[#allocation10_spill] sm:$0xff]  ;;  %v15356_v36 = vsel %vm2210_vm2, %v2242_v39, %v2244_v54  ;;  %v15359_v17 = vsel %vm2355_vm3, %v2421_v52, %v2422_v43  ;;  %v2426_v54 = vrot.slane %v15334_v11, 2 }
 0x1ea   : > { %21710 = vst [vmem:[#allocation83_spill] sm:$0xff] %v15334_v11  ;;  %21711 = vst [vmem:[#allocation84_spill] sm:$0xff] %v15336_v20  ;;  %11747 = vmatprep.subr.bf16.mxu0 %v21670_v44  ;;  %v1135_v33 = vmul.f32 %v21715_v8, %v21715_v8  ;;  %3263 = vmatmul.mubr.f32.gmra.mrb[64].mxu1 %v14968_v59  ;;  %v15362_v3 = vsel %vm2355_vm3, %v2422_v43, %v2424_v38  ;;  %v15367_v13 = vld [vmem:[%s20914_s7 + $0x4c8] sm:$0xff]  ;;  %v1059_v26 = vsel %vm1057_vm4, %v21715_v8, 0.0  ;;  %v3060_v59 = vld [vmem:[%s20911_s4 + $0x170] sm:$0xff] }
 0x1eb   : > { %21712 = vst [vmem:[#allocation85_spill] sm:$0xff] %v15338_v12  ;;  %21713 = vst [vmem:[#allocation86_spill] sm:$0xff] %v15342_v51  ;;  %11382 = vmatprep.subr.bf16.mxu1 %v21670_v44  ;;  %v3061_v39 = vld [vmem:[%s20911_s4 + $0x178] sm:$0xff]  ;;  %11204 = vmatmul.mubr.f32.gmra.mrb[60].mxu0 %v15232_v50  ;;  %v2427_v52 = vrot.slane %v15336_v20, 2  ;;  %v2429_v43 = vrot.slane %v15338_v12, 2  ;;  %v21719_v35 = vpack.c.bf16 %v15054_v22, %v15049_v58  ;;  %v21720_v8 = vrot.slane %v15128_v15, 1 }
 0x1ec   : > { %21714 = vst [vmem:[#allocation87_spill] sm:$0xff] %v15345_v57  ;;  %21716 = vst [vmem:[#allocation88_spill] sm:$0xff] %v15356_v36  ;;  %3267 = vmatprep.mubr.f32.mxu1 %v15244_v40  ;;  %11206 = vmatprep.mubr.f32.mxu0 %v15247_v32  ;;  %v15394_v40 = vld [vmem:[#allocation2 + $0x168] sm:$0xff]  ;;  %v1301_v38 = vsel %vm1057_vm4, %v1135_v33, 0.0  ;;  %v15404_v22 = vld [vmem:[#allocation2 + $0x170] sm:$0xff]  ;;  %v11383_v32 = vpack.c.bf16 %v3061_v39, %v3060_v59  ;;  %v2249_v33 = vrot.slane %v15130_v53, 1 }
 0x1ed   : > { %21717 = vst [vmem:[#allocation89_spill] sm:$0xff] %v15359_v17  ;;  %21718 = vst [vmem:[#allocation90_spill] sm:$0xff] %v15362_v3  ;;  %11749 = vmatpush1.bf16.msra.mxu0 %v21719_v35  ;;  %v15392_v50 = vsel %vm2210_vm2, %v2246_v62, %v21720_v8  ;;  %v21722_v11 = vld [vmem:[#allocation12_spill] sm:$0xff]  ;;  %v21723_v62 = vld [vmem:[#allocation14_spill] sm:$0xff]  ;;  %v1138_v31 = vmul.f32 %v21724_v25, %v21724_v25  ;;  %v15427_v39 = vsel %vm2355_vm3, %v2426_v54, %v2427_v52 }
 0x1ee   : > { %21721 = vst [vmem:[#allocation91_spill] sm:$0xff] %v15392_v50  ;;  %v1058_v20 = vsel %vm1057_vm4, %v21722_v11, 0.0  ;;  %v1132_v12 = vmul.f32 %v21722_v11, %v21722_v11  ;;  %11750 = vmatprep.subr.bf16.mxu0 %v21670_v44  ;;  %v1141_v8 = vmul.f32 %v21723_v62, %v21723_v62  ;;  %3268 = vmatmul.mubr.f32.gmra.mrb[66].mxu1 %v14970_v7  ;;  %v1061_v11 = vsel %vm1057_vm4, %v21724_v25, 0.0  ;;  %v21728_v54 = vld [vmem:[#allocation20_spill] sm:$0xff] }
 0x1ef   : > { %v1060_v35 = vadd.f32 %v1059_v26, %v1058_v20  ;;  %11207 = vmatmul.mubr.f32.gmra.mrb[62].mxu0 %v15250_v37  ;;  %3272 = vmatprep.mubr.f32.mxu1 %v15262_v29  ;;  %v2431_v20 = vrot.slane %v15394_v40, 2  ;;  %v15418_v26 = vld [vmem:[#allocation2 + $0x178] sm:$0x3]  ;;  %v1063_v7 = vsel %vm1057_vm4, %v21723_v62, 0.0  ;;  %21726 = vst [vmem:[#allocation16_spill] sm:$0xff] %v15427_v39  ;;  %v2432_v58 = vrot.slane %v15404_v22, 2 }
 0x1f0   : > { %v1300_v16 = vsel %vm1057_vm4, %v1132_v12, 0.0  ;;  %v21725_v12 = vpack.c.bf16 %v15064_v45, %v15059_v61  ;;  %11209 = vmatprep.mubr.f32.mxu0 %v15276_v4  ;;  %v15433_v29 = vld [vmem:[%s20914_s7 + $0x4d0] sm:$0xff]  ;;  %v1305_v61 = vsel %vm1057_vm4, %v1141_v8, 0.0  ;;  %v1303_v45 = vsel %vm1057_vm4, %v1138_v31, 0.0  ;;  %11384 = vmatpush1.bf16.msra.mxu1 %v11383_v32  ;;  %v2124_v4 = vld [vmem:[#allocation2 + $0x180] sm:$0xff] }
 0x1f1   : > { %v1302_v59 = vadd.f32 %v1301_v38, %v1300_v16  ;;  %v1062_v53 = vadd.f32 %v1061_v11, %v1060_v35  ;;  %v15438_v16 = vld [vmem:[%s20914_s7 + $0x4d8] sm:$0xff]  ;;  %v15444_v11 = vsel %vm2355_vm3, %v2427_v52, %v2429_v43  ;;  %v1147_v35 = vmul.f32 %v21728_v54, %v21728_v54  ;;  %v21729_v62 = vld [vmem:[#allocation27_spill] sm:$0xff]  ;;  %11385 = vmatprep.subr.bf16.mxu1 %v21670_v44  ;;  %v2125_v43 = vld [vmem:[#allocation2 + $0x188] sm:$0xff] }
 0x1f2   : > { %11752 = vmatpush1.bf16.msra.mxu0 %v21725_v12  ;;  %21727 = vst [vmem:[#allocation92_spill] sm:$0xff] %v15444_v11  ;;  %3273 = vmatmul.mubr.f32.gmra.mrb[68].mxu1 %v15019_v14  ;;  %v2434_v12 = vrot.slane %v15418_v26, 2  ;;  %v1065_v8 = vsel %vm1057_vm4, %v21729_v62, 0.0  ;;  %v1144_v31 = vmul.f32 %v21729_v62, %v21729_v62  ;;  %v21730_v32 = vrot.slane %v15128_v15, 1  ;;  %v2126_v62 = vld [vmem:[#allocation2 + $0x190] sm:$0x3] }
 0x1f3   : > { %11753 = vmatprep.subr.bf16.mxu0 %v21670_v44  ;;  %v1304_v38 = vadd.f32 %v1303_v45, %v1302_v59  ;;  %v1064_v37 = vadd.f32 %v1063_v7, %v1062_v53  ;;  %11210 = vmatmul.mubr.f32.gmra.mrb[64].mxu0 %v15279_v46  ;;  %v1067_v59 = vsel %vm1057_vm4, %v21728_v54, 0.0  ;;  %v3062_v53 = vld [vmem:[%s20911_s4 + $0x180] sm:$0xff]  ;;  %v3063_v45 = vld [vmem:[%s20911_s4 + $0x188] sm:$0xff]  ;;  %v1309_v52 = vsel %vm1057_vm4, %v1147_v35, 0.0 }
 0x1f4   : > { %3277 = vmatprep.mubr.f32.mxu1 %v15305_v56  ;;  %v15460_v14 = vsel %vm2210_vm2, %v21730_v32, %v2249_v33  ;;  %v21732_v33 = vpack.c.bf16 %v15095_v48, %v15081_v34  ;;  %11212 = vmatprep.mubr.f32.mxu0 %v15308_v47  ;;  %v15477_v32 = vsel %vm2355_vm3, %v2431_v20, %v2432_v58  ;;  %v2251_v56 = vrot.slane %v15132_v0, 1 }
 0x1f5   : > { %21731 = vst [vmem:[#allocation93_spill] sm:$0xff] %v15460_v14  ;;  %v1306_v7 = vadd.f32 %v1305_v61, %v1304_v38  ;;  %21733 = vst [vmem:[#allocation94_spill] sm:$0xff] %v15477_v32  ;;  %v1066_v61 = vadd.f32 %v1065_v8, %v1064_v37  ;;  %v1307_v38 = vsel %vm1057_vm4, %v1144_v31, 0.0  ;;  %v2252_v46 = vrot.slane %v15157_v5, 1  ;;  %v21736_v8 = vld [vmem:[#allocation31_spill] sm:$0xff] }
 0x1f6   : > { %11755 = vmatpush1.bf16.msra.mxu0 %v21732_v33  ;;  %v2574_v54 = vrot.slane %v2124_v4, 2  ;;  %3278 = vmatmul.mubr.f32.gmra.mrb[70].mxu1 %v15021_v42  ;;  %v2575_v48 = vrot.slane %v2125_v43, 2  ;;  %v21734_v33 = vld [vmem:[#allocation28_spill] sm:$0xff]  ;;  %v11386_v47 = vpack.c.bf16 %v3063_v45, %v3062_v53  ;;  %v15490_v37 = vsel %vm2355_vm3, %v2432_v58, %v2434_v12 }
 0x1f7   : > { %11756 = vmatprep.subr.bf16.mxu0 %v21670_v44  ;;  %v1308_v34 = vadd.f32 %v1307_v38, %v1306_v7  ;;  %v1153_v20 = vmul.f32 %v21734_v33, %v21734_v33  ;;  %v1068_v35 = vadd.f32 %v1067_v59, %v1066_v61  ;;  %11213 = vmatmul.mubr.f32.gmra.mrb[66].mxu0 %v15311_v55  ;;  %v1069_v4 = vsel %vm1057_vm4, %v21736_v8, 0.0  ;;  %v15503_v7 = vld [vmem:[%s20914_s7 + $0x4e0] sm:$0xff]  ;;  %v15508_v58 = vld [vmem:[%s20914_s7 + $0x4e8] sm:$0xff] }
 0x1f8   : > { %3282 = vmatprep.mubr.f32.mxu1 %v15328_v24  ;;  %21735 = vst [vmem:[#allocation28_spill] sm:$0xff] %v15490_v37  ;;  %v1150_v31 = vmul.f32 %v21736_v8, %v21736_v8  ;;  %v21737_v43 = vpack.c.bf16 %v15105_v49, %v15100_v6  ;;  %11215 = vmatprep.mubr.f32.mxu0 %v15342_v51  ;;  %v2577_v59 = vrot.slane %v2126_v62, 2  ;;  %v2254_v12 = vrot.slane %v15159_v60, 1  ;;  %v13067_v62 = vld [vmem:[#allocation2] sm:$0xff]  ;;  %v15952_v51 = vld [vmem:[#allocation3 + $0x88] sm:$0xf] }
 0x1f9   : > { %v1310_v42 = vadd.f32 %v1309_v52, %v1308_v34  ;;  %v1071_v52 = vsel %vm1057_vm4, %v21734_v33, 0.0  ;;  %v1070_v6 = vadd.f32 %v1069_v4, %v1068_v35  ;;  %v15515_v49 = vsel %vm2210_vm2, %v2251_v56, %v2252_v46  ;;  %11387 = vmatpush1.bf16.msra.mxu1 %v11386_v47  ;;  %v21740_v34 = vld [vmem:[#allocation37_spill] sm:$0xff]  ;;  %v2129_v56 = vld [vmem:[#allocation2 + $0x1a8] sm:$0x3]  ;;  %v21741_v4 = vld [vmem:[#allocation38_spill] sm:$0xff] }
 0x1fa   : > { %11758 = vmatpush1.bf16.msra.mxu0 %v21737_v43  ;;  %21738 = vst [vmem:[#allocation31_spill] sm:$0xff] %v15515_v49  ;;  %v15517_v53 = vrot.slane %v13067_v62, 2  ;;  %v1313_v45 = vsel %vm1057_vm4, %v1153_v20, 0.0  ;;  %v1311_v61 = vsel %vm1057_vm4, %v1150_v31, 0.0  ;;  %3283 = vmatmul.mubr.f32.gmra.mrb[72].mxu1 %v15074_v41  ;;  %v15523_v60 = vsel %vm2355_vm3, %v2574_v54, %v2575_v48  ;;  %v15535_v41 = vld [vmem:[%s20914_s7 + $0x4f0] sm:$0xff]  ;;  %v15540_v54 = vld [vmem:[%s20914_s7 + $0x4f8] sm:$0xff] }
 0x1fb   : > { %11759 = vmatprep.subr.bf16.mxu0 %v21670_v44  ;;  %21739 = vst [vmem:[#allocation95_spill] sm:$0xff] %v15523_v60  ;;  %v1312_v38 = vadd.f32 %v1311_v61, %v1310_v42  ;;  %v1159_v35 = vmul.f32 %v21740_v34, %v21740_v34  ;;  %11388 = vmatprep.subr.bf16.mxu1 %v21670_v44  ;;  %v1073_v31 = vsel %vm1057_vm4, %v21741_v4, 0.0  ;;  %v15589_v24 = vrot.slane %v13067_v62, 3 }
 0x1fc   : > { %11216 = vmatmul.mubr.f32.gmra.mrb[68].mxu0 %v15345_v57  ;;  %3287 = vmatprep.mubr.f32.mxu1 %v15356_v36  ;;  %v1072_v20 = vadd.f32 %v1071_v52, %v1070_v6  ;;  %v1156_v42 = vmul.f32 %v21741_v4, %v21741_v4  ;;  %v21742_v43 = vpack.c.bf16 %v15295_v9, %v15290_v27  ;;  %v3064_v52 = vld [vmem:[%s20911_s4 + $0x190] sm:$0xff]  ;;  %v3065_v6 = vld [vmem:[%s20911_s4 + $0x198] sm:$0xff]  ;;  %v1075_v27 = vsel %vm1057_vm4, %v21740_v34, 0.0 }
 0x1fd   : > { %11218 = vmatprep.mubr.f32.mxu0 %v15359_v17  ;;  %v15551_v61 = vsel %vm2355_vm3, %v2575_v48, %v2577_v59  ;;  %v15554_v47 = vsel %vm2210_vm2, %v2252_v46, %v2254_v12  ;;  %v1314_v36 = vadd.f32 %v1313_v45, %v1312_v38  ;;  %v2690_v46 = vrot.slane %v2129_v56, 2 }
 0x1fe   : > { %11761 = vmatpush1.bf16.msra.mxu0 %v21742_v43  ;;  %21743 = vst [vmem:[#allocation37_spill] sm:$0xff] %v15551_v61  ;;  %21744 = vst [vmem:[#allocation38_spill] sm:$0xff] %v15554_v47  ;;  %v1074_v9 = vadd.f32 %v1073_v31, %v1072_v20  ;;  %v1315_v48 = vsel %vm1057_vm4, %v1156_v42, 0.0  ;;  %3288 = vmatmul.mubr.f32.gmra.mrb[74].mxu1 %v15076_v2  ;;  %v1317_v12 = vsel %vm1057_vm4, %v1159_v35, 0.0  ;;  %v2256_v38 = vrot.slane %v15161_v28, 1  ;;  %v21745_v31 = vld [vmem:[#allocation39_spill] sm:$0xff] }
 0x1ff   : > { %11762 = vmatprep.subr.bf16.mxu0 %v21670_v44  ;;  %v1316_v45 = vadd.f32 %v1315_v48, %v1314_v36  ;;  %3292 = vmatprep.mubr.f32.mxu1 %v15392_v50  ;;  %v2257_v43 = vrot.slane %v15171_v1, 1  ;;  %v15574_v20 = vld [vmem:[#allocation3 + $0x28] sm:$0xf]  ;;  %v1165_v2 = vmul.f32 %v21745_v31, %v21745_v31  ;;  %v11389_v56 = vpack.c.bf16 %v3065_v6, %v3064_v52  ;;  %v21748_v48 = vld [vmem:[#allocation40_spill] sm:$0xff]  ;;  %v15598_v6 = vld [vmem:[%s20914_s7 + $0x500] sm:$0xff] }
 0x200   : > { %11219 = vmatmul.mubr.f32.gmra.mrb[70].mxu0 %v15362_v3  ;;  %v21746_v42 = vpack.c.bf16 %v15321_v18, %v15316_v63  ;;  %v15582_v36 = vrot.slane %v13067_v62, 4  ;;  %v1076_v35 = vadd.f32 %v1075_v27, %v1074_v9  ;;  %v1077_v59 = vsel %vm1057_vm4, %v21748_v48, 0.0  ;;  %21749 = vst [vmem:[#allocation40_spill] sm:$0xff] %v15589_v24  ;;  %v15603_v27 = vld [vmem:[%s20914_s7 + $0x508] sm:$0xff] }
 0x201   : > { %11221 = vmatprep.mubr.f32.mxu0 %v15427_v39  ;;  %v1162_v50 = vmul.f32 %v21748_v48, %v21748_v48  ;;  %v2259_v52 = vrot.slane %v15173_v19, 1  ;;  %v1079_v63 = vsel %vm1057_vm4, %v21745_v31, 0.0  ;;  %11390 = vmatpush1.bf16.msra.mxu1 %v11389_v56  ;;  %v1318_v18 = vadd.f32 %v1317_v12, %v1316_v45 }
 0x202   : > { %11764 = vmatpush1.bf16.msra.mxu0 %v21746_v42  ;;  %21747 = vst [vmem:[#allocation39_spill] sm:$0xff] %v15582_v36  ;;  %3293 = vmatmul.mubr.f32.gmra.mrb[76].mxu1 %v15123_v30  ;;  %v5214_v62 = vrot.slane %v15574_v20, 4  ;;  %v1321_v19 = vsel %vm1057_vm4, %v1165_v2, 0.0  ;;  %v1078_v9 = vadd.f32 %v1077_v59, %v1076_v35  ;;  %v15613_v30 = vsel %vm2355_vm3, %v15517_v53, %v2690_v46  ;;  %v21753_v35 = vld [vmem:[#allocation42_spill] sm:$0xff]  ;;  %v3066_v46 = vld [vmem:[%s20911_s4 + $0x1a0] sm:$0xff] }
 0x203   : > { %11765 = vmatprep.subr.bf16.mxu0 %v21670_v44  ;;  %v1319_v56 = vsel %vm1057_vm4, %v1162_v50, 0.0  ;;  %11391 = vmatprep.subr.bf16.mxu1 %v21670_v44  ;;  %v15616_v12 = vsel %vm2210_vm2, %v2256_v38, %v2257_v43  ;;  %v21751_v59 = vpack.c.bf16 %v15367_v13, %v15350_v10  ;;  %v21752_v50 = vld [vmem:[#allocation41_spill] sm:$0xff]  ;;  %v4639_v38 = vld [vmem:[#allocation3 + $0x30] sm:$0xff]  ;;  %v15633_v13 = vsel %vm2210_vm2, %v2257_v43, %v2259_v52 }
 0x204   : > { %11222 = vmatmul.mubr.f32.gmra.mrb[72].mxu0 %v15444_v11  ;;  %3297 = vmatprep.mubr.f32.mxu1 %v15460_v14  ;;  %21750 = vst [vmem:[#allocation96_spill] sm:$0xff] %v15616_v12  ;;  %v1320_v45 = vadd.f32 %v1319_v56, %v1318_v18  ;;  %v1171_v2 = vmul.f32 %v21752_v50, %v21752_v50  ;;  %v1081_v14 = vsel %vm1057_vm4, %v21753_v35, 0.0  ;;  %21754 = vst [vmem:[#allocation41_spill] sm:$0xff] %v15633_v13 }
 0x205   : > { %11224 = vmatprep.mubr.f32.mxu0 %v15477_v32  ;;  %v1080_v42 = vadd.f32 %v1079_v63, %v1078_v9  ;;  %v1168_v18 = vmul.f32 %v21753_v35, %v21753_v35  ;;  %v15637_v63 = vsel %vm492_vm0, %v15582_v36, %v5214_v62  ;;  %v15639_v9 = vld [vmem:[#allocation3 + $0x38] sm:$0xff]  ;;  %v1083_v56 = vsel %vm1057_vm4, %v21752_v50, 0.0  ;;  %v21757_v32 = vld [vmem:[#allocation43_spill] sm:$0xff] }
 0x206   : > { %11767 = vmatpush1.bf16.msra.mxu0 %v21751_v59  ;;  %v1322_v10 = vadd.f32 %v1321_v19, %v1320_v45  ;;  %3298 = vmatmul.mubr.f32.gmra.mrb[78].mxu1 %v15128_v15  ;;  %21755 = vst [vmem:[#allocation42_spill] sm:$0xff] %v15637_v63  ;;  %v3067_v15 = vld [vmem:[%s20911_s4 + $0x1a8] sm:$0xff]  ;;  %v5070_v43 = vrot.slane %v15574_v20, 3  ;;  %v2261_v52 = vrot.slane %v15182_v21, 1  ;;  %v1325_v62 = vsel %vm1057_vm4, %v1171_v2, 0.0 }
 0x207   : > { %11768 = vmatprep.subr.bf16.mxu0 %v21670_v44  ;;  %v1082_v59 = vadd.f32 %v1081_v14, %v1080_v42  ;;  %3302 = vmatprep.mubr.f32.mxu1 %v15515_v49  ;;  %v1323_v14 = vsel %vm1057_vm4, %v1168_v18, 0.0  ;;  %v21756_v19 = vpack.c.bf16 %v15438_v16, %v15433_v29  ;;  %v2262_v45 = vrot.slane %v15184_v23, 1  ;;  %v21758_v18 = vld [vmem:[#allocation44_spill] sm:$0xff] }
 0x208   : > { %11225 = vmatmul.mubr.f32.gmra.mrb[74].mxu0 %v15490_v37  ;;  %v5216_v42 = vrot.slane %v4639_v38, 4  ;;  %v1324_v37 = vadd.f32 %v1323_v14, %v1322_v10  ;;  %v1177_v49 = vmul.f32 %v21757_v32, %v21757_v32  ;;  %v11392_v2 = vpack.c.bf16 %v3067_v15, %v3066_v46  ;;  %v15671_v10 = vld [vmem:[%s20914_s7 + $0x510] sm:$0xff]  ;;  %v15676_v14 = vld [vmem:[%s20914_s7 + $0x518] sm:$0xff] }
 0x209   : > { %11227 = vmatprep.mubr.f32.mxu0 %v15523_v60  ;;  %v1084_v11 = vadd.f32 %v1083_v56, %v1082_v59  ;;  %v1085_v39 = vsel %vm1057_vm4, %v21758_v18, 0.0  ;;  %v5072_v29 = vrot.slane %v4639_v38, 3  ;;  %v1174_v46 = vmul.f32 %v21758_v18, %v21758_v18  ;;  %v21760_v38 = vld [vmem:[#allocation56_spill] sm:$0xff]  ;;  %v15716_v60 = vld [vmem:[#allocation3 + $0x48] sm:$0xff] }
 0x20a   : > { %11770 = vmatpush1.bf16.msra.mxu0 %v21756_v19  ;;  %3303 = vmatmul.mubr.f32.gmra.mrb[80].mxu1 %v15132_v0  ;;  %v1326_v56 = vadd.f32 %v1325_v62, %v1324_v37  ;;  %v15684_v0 = vsel %vm5061_vm5, %v15589_v24, %v5070_v43  ;;  %v2264_v59 = vrot.slane %v21760_v38, 1  ;;  %v1087_v15 = vsel %vm1057_vm4, %v21757_v32, 0.0  ;;  %v4641_v62 = vld [vmem:[#allocation3 + $0x40] sm:$0xf] }
 0x20b   : > { %11771 = vmatprep.subr.bf16.mxu0 %v21670_v44  ;;  %3307 = vmatprep.mubr.f32.mxu1 %v15554_v47  ;;  %21759 = vst [vmem:[#allocation43_spill] sm:$0xff] %v15684_v0  ;;  %v1086_v19 = vadd.f32 %v1085_v39, %v1084_v11  ;;  %v21761_v16 = vpack.c.bf16 %v15508_v58, %v15503_v7  ;;  %v1329_v20 = vsel %vm1057_vm4, %v1177_v49, 0.0  ;;  %v1327_v43 = vsel %vm1057_vm4, %v1174_v46, 0.0  ;;  %v21772_v7 = vld [vmem:[#allocation61_spill] sm:$0xff] }
 0x20c   : > { %11228 = vmatmul.mubr.f32.gmra.mrb[76].mxu0 %v15551_v61  ;;  %v15694_v37 = vsel %vm2210_vm2, %v2261_v52, %v2262_v45  ;;  %v21763_v61 = vld [vmem:[#allocation45_spill] sm:$0xff]  ;;  %v21764_v39 = vrot.slane %v15639_v9, 4  ;;  %11393 = vmatpush1.bf16.msra.mxu1 %v11392_v2  ;;  %v1328_v58 = vadd.f32 %v1327_v43, %v1326_v56  ;;  %v21766_v52 = vld [vmem:[#allocation46_spill] sm:$0xff]  ;;  %v15724_v2 = vsel %vm2210_vm2, %v2262_v45, %v2264_v59  ;;  %v15726_v56 = vld [vmem:[#allocation3 + $0x50] sm:$0xff] }
 0x20d   : > { %11230 = vmatprep.mubr.f32.mxu0 %v15517_v53  ;;  %21762 = vst [vmem:[#allocation44_spill] sm:$0xff] %v15694_v37  ;;  %v1183_v38 = vmul.f32 %v21763_v61, %v21763_v61  ;;  %v1089_v49 = vsel %vm1057_vm4, %v21766_v52, 0.0  ;;  %v1088_v47 = vadd.f32 %v1087_v15, %v1086_v19  ;;  %11394 = vmatprep.subr.bf16.mxu1 %v21670_v44  ;;  %21769 = vst [vmem:[#allocation46_spill] sm:$0xff] %v15724_v2  ;;  %v3068_v15 = vld [vmem:[%s20911_s4 + $0x1b0] sm:$0xff] }
 0x20e   : > { %11773 = vmatpush1.bf16.msra.mxu0 %v21761_v16  ;;  %v15704_v11 = vsel %vm492_vm0, %v5216_v42, %v21764_v39  ;;  %3308 = vmatmul.mubr.f32.gmra.mrb[82].mxu1 %v15157_v5  ;;  %v21767_v16 = vrot.slane %v15639_v9, 3  ;;  %v1180_v42 = vmul.f32 %v21766_v52, %v21766_v52  ;;  %v5219_v5 = vrot.slane %v4641_v62, 4 }
 0x20f   : > { %11774 = vmatprep.subr.bf16.mxu0 %v21670_v44  ;;  %21765 = vst [vmem:[#allocation56_spill] sm:$0xff] %v15704_v11  ;;  %3312 = vmatprep.mubr.f32.mxu1 %v15616_v12  ;;  %v1330_v43 = vadd.f32 %v1329_v20, %v1328_v58  ;;  %v21770_v19 = vpack.c.bf16 %v15540_v54, %v15535_v41  ;;  %v5075_v45 = vrot.slane %v4641_v62, 3  ;;  %v1333_v59 = vsel %vm1057_vm4, %v1183_v38, 0.0  ;;  %v21771_v58 = vld [vmem:[#allocation59_spill] sm:$0xff] }
 0x210   : > { %v15714_v46 = vsel %vm5061_vm5, %v5072_v29, %v21767_v16  ;;  %11231 = vmatmul.mubr.f32.gmra.mrb[78].mxu0 %v15613_v30  ;;  %v1091_v29 = vsel %vm1057_vm4, %v21763_v61, 0.0  ;;  %v3069_v30 = vld [vmem:[%s20911_s4 + $0x1b8] sm:$0xff]  ;;  %v1090_v39 = vadd.f32 %v1089_v49, %v1088_v47  ;;  %v1331_v20 = vsel %vm1057_vm4, %v1180_v42, 0.0  ;;  %v21773_v54 = vld [vmem:[#allocation47_spill] sm:$0xff]  ;;  %v21774_v42 = vld [vmem:[#allocation48_spill] sm:$0xff] }
 0x211   : > { %21768 = vst [vmem:[#allocation45_spill] sm:$0xff] %v15714_v46  ;;  %8278 = vmatprep.mubr.f32.mxu0 %v15582_v36  ;;  %v2266_v16 = vrot.slane %v21771_v58, 1  ;;  %v2267_v12 = vrot.slane %v21772_v7, 1  ;;  %v5221_v3 = vrot.slane %v15716_v60, 4  ;;  %v1332_v17 = vadd.f32 %v1331_v20, %v1330_v43  ;;  %v7078_v41 = vld [vmem:[%s20914_s7 + $0x520] sm:$0xff] }
 0x212   : > { %11776 = vmatpush1.bf16.msra.mxu0 %v21770_v19  ;;  %3313 = vmatmul.mubr.f32.gmra.mrb[84].mxu1 %v15161_v28  ;;  %v1189_v62 = vmul.f32 %v21773_v54, %v21773_v54  ;;  %v11395_v38 = vpack.c.bf16 %v3069_v30, %v3068_v15  ;;  %v1092_v47 = vadd.f32 %v1091_v29, %v1090_v39  ;;  %v1095_v49 = vsel %vm1057_vm4, %v21773_v54, 0.0 }
 0x213   : > { %11777 = vmatprep.subr.bf16.mxu0 %v21670_v44  ;;  %3317 = vmatprep.mubr.f32.mxu1 %v15633_v13  ;;  %v1093_v19 = vsel %vm1057_vm4, %v21774_v42, 0.0  ;;  %v1186_v28 = vmul.f32 %v21774_v42, %v21774_v42  ;;  %v1334_v43 = vadd.f32 %v1333_v59, %v1332_v17  ;;  %v21775_v20 = vpack.c.bf16 %v15603_v27, %v15598_v6  ;;  %v7079_v17 = vld [vmem:[%s20914_s7 + $0x528] sm:$0xff]  ;;  %v21780_v59 = vld [vmem:[#allocation62_spill] sm:$0xff] }
 0x214   : > { %v21776_v29 = vrot.slane %v15639_v9, 4  ;;  %v5077_v30 = vrot.slane %v15716_v60, 3  ;;  %v1094_v6 = vadd.f32 %v1093_v19, %v1092_v47  ;;  %v21778_v27 = vrot.slane %v15639_v9, 3  ;;  %11396 = vmatpush1.bf16.msra.mxu1 %v11395_v38 }
 0x215   : > { %8279 = vmatmul.mubr.f32.vlgmr.msra.gmra.mrb[80].mxu0 %v15589_v24  ;;  %v2269_v60 = vrot.slane %v21780_v59, 1  ;;  %v1335_v39 = vsel %vm1057_vm4, %v1186_v28, 0.0  ;;  %v15788_v47 = vsel %vm2210_vm2, %v2266_v16, %v2267_v12  ;;  %v11784_v38 = vpack.c.bf16 %v7079_v17, %v7078_v41  ;;  %v21785_v28 = vld [vmem:[#allocation11_spill] sm:$0xff]  ;;  %v15813_v41 = vld [vmem:[#allocation3 + $0x60] sm:$0xff]  ;;  %11397 = vmatprep.subr.bf16.mxu1 %v21670_v44 }
 0x216   : > { %11779 = vmatpush1.bf16.msra.mxu0 %v21775_v20  ;;  %8283 = vmatprep.mubr.f32.mxu0 %v15637_v63  ;;  %v15765_v15 = vsel %vm492_vm0, %v21776_v29, %v5219_v5  ;;  %v15779_v5 = vsel %vm5061_vm5, %v21778_v27, %v5075_v45  ;;  %v15782_v20 = vld [vmem:[#allocation3 + $0x58] sm:$0xf]  ;;  %v1337_v29 = vsel %vm1057_vm4, %v1189_v62, 0.0  ;;  %21781 = vst [vmem:[#allocation47_spill] sm:$0xff] %v15788_v47  ;;  %v21782_v63 = vld [vmem:[#allocation49_spill] sm:$0xff]  ;;  %v21783_v27 = vrot.slane %v15726_v56, 4 }
 0x217   : > { %21777 = vst [vmem:[#allocation59_spill] sm:$0xff] %v15765_v15  ;;  %11780 = vmatprep.subr.bf16.mxu0 %v21670_v44  ;;  %21779 = vst [vmem:[#allocation61_spill] sm:$0xff] %v15779_v5  ;;  %3318 = vmatmul.mubr.f32.gmra.mrb[86].mxu1 %v15171_v1  ;;  %v1336_v19 = vadd.f32 %v1335_v39, %v1334_v43  ;;  %v1195_v9 = vmul.f32 %v21782_v63, %v21782_v63  ;;  %v1097_v1 = vsel %vm1057_vm4, %v21785_v28, 0.0  ;;  %v3070_v59 = vld [vmem:[%s20911_s4 + $0x1c0] sm:$0xff]  ;;  %v21792_v24 = vld [vmem:[#allocation13_spill] sm:$0xff] }
 0x218   : > { %v1096_v45 = vadd.f32 %v1095_v49, %v1094_v6  ;;  %3322 = vmatprep.mubr.f32.mxu1 %v15694_v37  ;;  %v15797_v62 = vsel %vm492_vm0, %v5221_v3, %v21783_v27  ;;  %v1192_v16 = vmul.f32 %v21785_v28, %v21785_v28  ;;  %v21786_v49 = vpack.c.bf16 %v15676_v14, %v15671_v10  ;;  %v3071_v10 = vld [vmem:[%s20911_s4 + $0x1c8] sm:$0xff]  ;;  %v15826_v27 = vld [vmem:[#allocation3 + $0x68] sm:$0xff]  ;;  %v21793_v37 = vld [vmem:[#allocation15_spill] sm:$0xff] }
 0x219   : > { %8284 = vmatmul.mubr.f32.gmra.mrb[82].mxu0 %v15684_v0  ;;  %21784 = vst [vmem:[#allocation48_spill] sm:$0xff] %v15797_v62  ;;  %v21787_v43 = vrot.slane %v15726_v56, 3  ;;  %v5224_v3 = vrot.slane %v15782_v20, 4  ;;  %v1338_v6 = vadd.f32 %v1337_v29, %v1336_v19  ;;  %v15823_v14 = vsel %vm2210_vm2, %v2267_v12, %v2269_v60  ;;  %v7080_v29 = vld [vmem:[%s20914_s7 + $0x530] sm:$0xff]  ;;  %v7081_v19 = vld [vmem:[%s20914_s7 + $0x538] sm:$0xff]  ;;  %v21790_v12 = vld [vmem:[#allocation67_spill] sm:$0xff] }
 0x21a   : > { %8288 = vmatprep.mubr.f32.mxu0 %v15704_v11  ;;  %11782 = vmatpush1.bf16.msra.mxu0 %v21786_v49  ;;  %v1098_v17 = vadd.f32 %v1097_v1, %v1096_v45  ;;  %21789 = vst [vmem:[#allocation49_spill] sm:$0xff] %v15823_v14  ;;  %v1099_v45 = vsel %vm1057_vm4, %v21782_v63, 0.0  ;;  %v1339_v1 = vsel %vm1057_vm4, %v1192_v16, 0.0  ;;  %v2271_v60 = vrot.slane %v21790_v12, 1 }
 0x21b   : > { %v15810_v39 = vsel %vm5061_vm5, %v5077_v30, %v21787_v43  ;;  %11783 = vmatprep.subr.bf16.mxu0 %v21670_v44  ;;  %v5080_v30 = vrot.slane %v15782_v20, 3  ;;  %3323 = vmatmul.mubr.f32.gmra.mrb[88].mxu1 %v15182_v21  ;;  %v21791_v20 = vld [vmem:[#allocation71_spill] sm:$0xff]  ;;  %v1341_v43 = vsel %vm1057_vm4, %v1195_v9, 0.0  ;;  %v1340_v36 = vadd.f32 %v1339_v1, %v1338_v6 }
 0x21c   : > { %21788 = vst [vmem:[#allocation62_spill] sm:$0xff] %v15810_v39  ;;  %v2272_v49 = vrot.slane %v21791_v20, 1  ;;  %3327 = vmatprep.mubr.f32.mxu1 %v15724_v2  ;;  %v5226_v0 = vrot.slane %v15813_v41, 4  ;;  %v1201_v16 = vmul.f32 %v21792_v24, %v21792_v24  ;;  %v11398_v11 = vpack.c.bf16 %v3071_v10, %v3070_v59  ;;  %v15851_v6 = vld [vmem:[#allocation3 + $0x70] sm:$0xf] }
 0x21d   : > { %8289 = vmatmul.mubr.f32.gmra.mrb[84].mxu0 %v15714_v46  ;;  %v1101_v21 = vsel %vm1057_vm4, %v21793_v37, 0.0  ;;  %v5227_v13 = vrot.slane %v15826_v27, 4  ;;  %v11787_v9 = vpack.c.bf16 %v7081_v19, %v7080_v29  ;;  %v1100_v1 = vadd.f32 %v1099_v45, %v1098_v17  ;;  %v7082_v29 = vld [vmem:[%s20914_s7 + $0x540] sm:$0xff]  ;;  %v7083_v17 = vld [vmem:[%s20914_s7 + $0x548] sm:$0xff] }
 0x21e   : > { %8293 = vmatprep.mubr.f32.mxu0 %v15765_v15  ;;  %11785 = vmatpush1.bf16.msra.mxu0 %v11784_v38  ;;  %v1198_v2 = vmul.f32 %v21793_v37, %v21793_v37  ;;  %v5082_v46 = vrot.slane %v15813_v41, 3  ;;  %v1103_v10 = vsel %vm1057_vm4, %v21792_v24, 0.0  ;;  %v1342_v38 = vadd.f32 %v1341_v43, %v1340_v36  ;;  %v21794_v19 = vld [vmem:[#allocation72_spill] sm:$0xff] }
 0x21f   : > { %11786 = vmatprep.subr.bf16.mxu0 %v21670_v44  ;;  %11399 = vmatpush1.bf16.msra.mxu1 %v11398_v11  ;;  %v2274_v45 = vrot.slane %v21794_v19, 1  ;;  %v1345_v41 = vsel %vm1057_vm4, %v1201_v16, 0.0  ;;  %v1102_v59 = vadd.f32 %v1101_v21, %v1100_v1  ;;  %v21795_v36 = vrot.slane %v15726_v56, 4  ;;  %v21797_v19 = vld [vmem:[#allocation17_spill] sm:$0xff] }
 0x220   : > { %3328 = vmatmul.mubr.f32.gmra.mrb[90].mxu1 %v15184_v23  ;;  %v1343_v15 = vsel %vm1057_vm4, %v1198_v2, 0.0  ;;  %11400 = vmatprep.subr.bf16.mxu1 %v21670_v44  ;;  %v5229_v23 = vrot.slane %v15851_v6, 4  ;;  %v1207_v16 = vmul.f32 %v21797_v19, %v21797_v19  ;;  %v21798_v2 = vrot.slane %v15726_v56, 3 }
 0x221   : > { %8294 = vmatmul.mubr.f32.gmra.mrb[86].mxu0 %v15779_v5  ;;  %3332 = vmatprep.mubr.f32.mxu1 %v15788_v47  ;;  %v15876_v11 = vsel %vm492_vm0, %v21795_v36, %v5224_v3  ;;  %v1344_v43 = vadd.f32 %v1343_v15, %v1342_v38  ;;  %v11790_v1 = vpack.c.bf16 %v7083_v17, %v7082_v29  ;;  %v21800_v5 = vld [vmem:[#allocation19_spill] sm:$0xff]  ;;  %v4648_v29 = vld [vmem:[#allocation3 + $0x78] sm:$0xff]  ;;  %v15921_v17 = vld [vmem:[#allocation3 + $0x80] sm:$0xff] }
 0x222   : > { %21796 = vst [vmem:[#allocation11_spill] sm:$0xff] %v15876_v11  ;;  %8298 = vmatprep.mubr.f32.mxu0 %v15797_v62  ;;  %v15885_v21 = vsel %vm5061_vm5, %v21798_v2, %v5080_v30  ;;  %11788 = vmatpush1.bf16.msra.mxu0 %v11787_v9  ;;  %v1104_v47 = vadd.f32 %v1103_v10, %v1102_v59  ;;  %v1105_v3 = vsel %vm1057_vm4, %v21800_v5, 0.0  ;;  %v21803_v30 = vrot.slane %v15826_v27, 3  ;;  %v3072_v10 = vld [vmem:[%s20911_s4 + $0x1d0] sm:$0xff] }
 0x223   : > { %21799 = vst [vmem:[#allocation67_spill] sm:$0xff] %v15885_v21  ;;  %v15890_v36 = vsel %vm2210_vm2, %v2271_v60, %v2272_v49  ;;  %v15893_v15 = vsel %vm492_vm0, %v5226_v0, %v5227_v13  ;;  %11789 = vmatprep.subr.bf16.mxu0 %v21670_v44  ;;  %v1204_v56 = vmul.f32 %v21800_v5, %v21800_v5  ;;  %v1107_v0 = vsel %vm1057_vm4, %v21797_v19, 0.0 }
 0x224   : > { %21801 = vst [vmem:[#allocation71_spill] sm:$0xff] %v15890_v36  ;;  %21802 = vst [vmem:[#allocation13_spill] sm:$0xff] %v15893_v15  ;;  %v1346_v38 = vadd.f32 %v1345_v41, %v1344_v43  ;;  %3333 = vmatmul.mubr.f32.gmra.mrb[92].mxu1 %v21771_v58  ;;  %v15902_v9 = vsel %vm5061_vm5, %v5082_v46, %v21803_v30  ;;  %v15905_v59 = vsel %vm2210_vm2, %v2272_v49, %v2274_v45  ;;  %v3073_v58 = vld [vmem:[%s20911_s4 + $0x1d8] sm:$0xff]  ;;  %v21807_v41 = vld [vmem:[#allocation73_spill] sm:$0xff] }
 0x225   : > { %21804 = vst [vmem:[#allocation15_spill] sm:$0xff] %v15902_v9  ;;  %21805 = vst [vmem:[#allocation72_spill] sm:$0xff] %v15905_v59  ;;  %v1106_v60 = vadd.f32 %v1105_v3, %v1104_v47  ;;  %8299 = vmatmul.mubr.f32.gmra.mrb[88].mxu0 %v15810_v39  ;;  %3337 = vmatprep.mubr.f32.mxu1 %v15823_v14  ;;  %v15918_v46 = vsel %vm492_vm0, %v5227_v13, %v5229_v23  ;;  %v5085_v49 = vrot.slane %v15851_v6, 3  ;;  %v21808_v3 = vld [vmem:[#allocation18_spill] sm:$0xff]  ;;  %v21809_v13 = vld [vmem:[#allocation36_spill] sm:$0xff] }
 0x226   : > { %21806 = vst [vmem:[#allocation17_spill] sm:$0xff] %v15918_v46  ;;  %v1349_v47 = vsel %vm1057_vm4, %v1207_v16, 0.0  ;;  %v1347_v45 = vsel %vm1057_vm4, %v1204_v56, 0.0  ;;  %8303 = vmatprep.mubr.f32.mxu0 %v15876_v11  ;;  %v2276_v43 = vrot.slane %v21807_v41, 1  ;;  %11791 = vmatpush1.bf16.msra.mxu0 %v11790_v1  ;;  %v1213_v30 = vmul.f32 %v21808_v3, %v21808_v3  ;;  %v7084_v6 = vld [vmem:[%s20914_s7 + $0x550] sm:$0xff]  ;;  %v7085_v16 = vld [vmem:[%s20914_s7 + $0x558] sm:$0xff] }
 0x227   : > { %v1348_v2 = vadd.f32 %v1347_v45, %v1346_v38  ;;  %v1109_v23 = vsel %vm1057_vm4, %v21809_v13, 0.0  ;;  %v21810_v56 = vld [vmem:[#allocation75_spill] sm:$0xff]  ;;  %v11401_v62 = vpack.c.bf16 %v3073_v58, %v3072_v10  ;;  %11792 = vmatprep.subr.bf16.mxu0 %v21670_v44  ;;  %v1108_v1 = vadd.f32 %v1107_v0, %v1106_v60  ;;  %v21811_v41 = vld [vmem:[#allocation76_spill] sm:$0xff] }
 0x228   : > { %v2277_v11 = vrot.slane %v21810_v56, 1  ;;  %v1210_v38 = vmul.f32 %v21809_v13, %v21809_v13  ;;  %3338 = vmatmul.mubr.f32.gmra.mrb[94].mxu1 %v21772_v7  ;;  %v5231_v45 = vrot.slane %v4648_v29, 4  ;;  %v1111_v14 = vsel %vm1057_vm4, %v21808_v3, 0.0 }
 0x229   : > { %v1350_v39 = vadd.f32 %v1349_v47, %v1348_v2  ;;  %8304 = vmatmul.mubr.f32.gmra.mrb[90].mxu0 %v15885_v21  ;;  %3342 = vmatprep.mubr.f32.mxu1 %v15890_v36  ;;  %v1353_v10 = vsel %vm1057_vm4, %v1213_v30, 0.0  ;;  %v1110_v58 = vadd.f32 %v1109_v23, %v1108_v1  ;;  %v11793_v60 = vpack.c.bf16 %v7085_v16, %v7084_v6  ;;  %v21814_v30 = vld [vmem:[#allocation21_spill] sm:$0xff]  ;;  %v21815_v16 = vld [vmem:[#allocation22_spill] sm:$0xff] }
 0x22a   : > { %v1351_v0 = vsel %vm1057_vm4, %v1210_v38, 0.0  ;;  %8308 = vmatprep.mubr.f32.mxu0 %v15893_v15  ;;  %v5087_v7 = vrot.slane %v4648_v29, 3  ;;  %v21146_v56 = vrot.slane %v15921_v17, 3  ;;  %v2279_v57 = vrot.slane %v21811_v41, 1  ;;  %11402 = vmatpush1.bf16.msra.mxu1 %v11401_v62  ;;  %v3074_v38 = vld [vmem:[%s20911_s4 + $0x1e0] sm:$0xff]  ;;  %v3075_v41 = vld [vmem:[%s20911_s4 + $0x1e8] sm:$0xff] }
 0x22b   : > { %v1352_v47 = vadd.f32 %v1351_v0, %v1350_v39  ;;  %v21812_v2 = vrot.slane %v15826_v27, 3  ;;  %11794 = vmatpush1.bf16.msra.mxu0 %v11793_v60  ;;  %v1219_v23 = vmul.f32 %v21814_v30, %v21814_v30  ;;  %v1112_v6 = vadd.f32 %v1111_v14, %v1110_v58  ;;  %11403 = vmatprep.subr.bf16.mxu1 %v21670_v44  ;;  %v4651_v58 = vld [vmem:[#allocation3 + $0x90] sm:$0xff] }
 0x22c   : > { %v1113_v29 = vsel %vm1057_vm4, %v21815_v16, 0.0  ;;  %3343 = vmatmul.mubr.f32.gmra.mrb[96].mxu1 %v21790_v12  ;;  %v15966_v62 = vsel %vm2210_vm2, %v2276_v43, %v2277_v11  ;;  %v1216_v39 = vmul.f32 %v21815_v16, %v21815_v16  ;;  %11795 = vmatprep.subr.bf16.mxu0 %v21670_v44  ;;  %v21817_v14 = vrot.slane %v15921_v17, 4 }
 0x22d   : > { %v15957_v36 = vsel %vm5061_vm5, %v21812_v2, %v5085_v49  ;;  %21816 = vst [vmem:[#allocation73_spill] sm:$0xff] %v15966_v62  ;;  %v1354_v27 = vadd.f32 %v1353_v10, %v1352_v47  ;;  %8309 = vmatmul.mubr.f32.gmra.mrb[92].mxu0 %v15902_v9  ;;  %3347 = vmatprep.mubr.f32.mxu1 %v15905_v59  ;;  %v5234_v12 = vrot.slane %v15952_v51, 4  ;;  %v1115_v43 = vsel %vm1057_vm4, %v21814_v30, 0.0  ;;  %v21821_v2 = vld [vmem:[#allocation83_spill] sm:$0xff]  ;;  %v4653_v59 = vld [vmem:[#allocation3 + $0xa0] sm:$0xf] }
 0x22e   : > { %21813 = vst [vmem:[#allocation19_spill] sm:$0xff] %v15957_v36  ;;  %v15976_v49 = vsel %vm492_vm0, %v5231_v45, %v21817_v14  ;;  %v1114_v1 = vadd.f32 %v1113_v29, %v1112_v6  ;;  %8313 = vmatprep.mubr.f32.mxu0 %v15918_v46  ;;  %v15991_v45 = vsel %vm5061_vm5, %v5087_v7, %v21146_v56  ;;  %v1357_v0 = vsel %vm1057_vm4, %v1219_v23, 0.0  ;;  %v16000_v29 = vld [vmem:[#allocation3 + $0x98] sm:$0xff]  ;;  %v21822_v46 = vld [vmem:[#allocation23_spill] sm:$0xff]  ;;  %v3077_v56 = vld [vmem:[%s20911_s4 + $0x1f8] sm:$0xff] }
 0x22f   : > { %21818 = vst [vmem:[#allocation36_spill] sm:$0xff] %v15976_v49  ;;  %21819 = vst [vmem:[#allocation75_spill] sm:$0xff] %v15991_v45  ;;  %v15994_v10 = vsel %vm2210_vm2, %v2277_v11, %v2279_v57  ;;  %v1355_v60 = vsel %vm1057_vm4, %v1216_v39, 0.0  ;;  %v5090_v47 = vrot.slane %v15952_v51, 3  ;;  %v2281_v6 = vrot.slane %v21821_v2, 1  ;;  %v7086_v57 = vld [vmem:[%s20914_s7 + $0x560] sm:$0xff] }
 0x230   : > { %21820 = vst [vmem:[#allocation76_spill] sm:$0xff] %v15994_v10  ;;  %v1356_v14 = vadd.f32 %v1355_v60, %v1354_v27  ;;  %v1225_v15 = vmul.f32 %v21822_v46, %v21822_v46  ;;  %v7087_v11 = vld [vmem:[%s20914_s7 + $0x568] sm:$0xff]  ;;  %3348 = vmatmul.mubr.f32.gmra.mrb[98].mxu1 %v21791_v20  ;;  %v11404_v23 = vpack.c.bf16 %v3075_v41, %v3074_v38  ;;  %v3076_v60 = vld [vmem:[%s20911_s4 + $0x1f0] sm:$0xff]  ;;  %v5236_v20 = vrot.slane %v4651_v58, 4  ;;  %v13068_v30 = vld [vmem:[#allocation2 + $0x138] sm:$0xff] }
 0x231   : > { %v21823_v7 = vld [vmem:[#allocation84_spill] sm:$0xff]  ;;  %v1116_v39 = vadd.f32 %v1115_v43, %v1114_v1  ;;  %8314 = vmatmul.mubr.f32.gmra.mrb[94].mxu0 %v15957_v36  ;;  %3352 = vmatprep.mubr.f32.mxu1 %v15966_v62  ;;  %v1119_v43 = vsel %vm1057_vm4, %v21822_v46, 0.0  ;;  %v5237_v41 = vrot.slane %v16000_v29, 4  ;;  %v11796_v21 = vpack.c.bf16 %v7087_v11, %v7086_v57  ;;  %v4654_v57 = vld [vmem:[#allocation3 + $0xa8] sm:$0xff] }
 0x232   : > { %v2282_v51 = vrot.slane %v21823_v7, 1  ;;  %v21824_v2 = vld [vmem:[#allocation24_spill] sm:$0xff]  ;;  %v1358_v38 = vadd.f32 %v1357_v0, %v1356_v14  ;;  %8318 = vmatprep.mubr.f32.mxu0 %v15976_v49  ;;  %v5092_v7 = vrot.slane %v4651_v58, 3  ;;  %11405 = vmatpush1.bf16.msra.mxu1 %v11404_v23  ;;  %v5093_v36 = vrot.slane %v16000_v29, 3  ;;  %v21825_v0 = vld [vmem:[#allocation85_spill] sm:$0xff] }
 0x233   : > { %v1117_v27 = vsel %vm1057_vm4, %v21824_v2, 0.0  ;;  %v1222_v1 = vmul.f32 %v21824_v2, %v21824_v2  ;;  %v1361_v62 = vsel %vm1057_vm4, %v1225_v15, 0.0  ;;  %11406 = vmatprep.subr.bf16.mxu1 %v21670_v44  ;;  %v11407_v46 = vpack.c.bf16 %v3077_v56, %v3076_v60  ;;  %11797 = vmatpush1.bf16.msra.mxu0 %v11796_v21  ;;  %v7088_v58 = vld [vmem:[%s20914_s7 + $0x570] sm:$0xff]  ;;  %v7089_v15 = vld [vmem:[%s20914_s7 + $0x578] sm:$0xff] }
 0x234   : > { %v1118_v9 = vadd.f32 %v1117_v27, %v1116_v39  ;;  %3353 = vmatmul.mubr.f32.gmra.mrb[100].mxu1 %v13068_v30  ;;  %v2284_v14 = vrot.slane %v21825_v0, 1  ;;  %v5239_v49 = vrot.slane %v4653_v59, 4  ;;  %v21826_v56 = vrot.slane %v15921_v17, 4  ;;  %11798 = vmatprep.subr.bf16.mxu0 %v21670_v44  ;;  %v4656_v27 = vld [vmem:[#allocation3 + $0xb8] sm:$0xf] }
 0x235   : > { %v1359_v55 = vsel %vm1057_vm4, %v1222_v1, 0.0  ;;  %8319 = vmatmul.mubr.f32.gmra.mrb[96].mxu0 %v15991_v45  ;;  %3357 = vmatprep.mubr.f32.mxu1 %v15994_v10  ;;  %v16053_v29 = vsel %vm2210_vm2, %v2281_v6, %v2282_v51  ;;  %v16056_v39 = vsel %vm492_vm0, %v5236_v20, %v5237_v41  ;;  %v2286_v20 = vrot.slane %v15394_v40, 1  ;;  %v7091_v40 = vld [vmem:[%s20914_s7 + $0x588] sm:$0xff] }
 0x236   : > { %v1120_v16 = vadd.f32 %v1119_v43, %v1118_v9  ;;  %v1360_v3 = vadd.f32 %v1359_v55, %v1358_v38  ;;  %v16044_v30 = vsel %vm492_vm0, %v21826_v56, %v5234_v12  ;;  %v5095_v9 = vrot.slane %v4653_v59, 3  ;;  %21830 = vst [vmem:[#allocation24_spill] sm:$0xff] %v16053_v29  ;;  %11408 = vmatpush1.bf16.msra.mxu1 %v11407_v46  ;;  %v16061_v59 = vld [vmem:[#allocation3 + $0xb0] sm:$0xff]  ;;  %v16078_v38 = vld [vmem:[#allocation3 + $0xc8] sm:$0xff]  ;;  %v13070_v56 = vld [vmem:[#allocation2 + $0x150] sm:$0xff] }
 0x237   : > { %21827 = vst [vmem:[#allocation83_spill] sm:$0xff] %v16044_v30  ;;  %8323 = vmatprep.mubr.f32.mxu0 %v16044_v30  ;;  %v21828_v55 = vrot.slane %v15921_v17, 3  ;;  %21831 = vst [vmem:[#allocation85_spill] sm:$0xff] %v16056_v39  ;;  %v16059_v12 = vsel %vm5061_vm5, %v5092_v7, %v5093_v36  ;;  %v11799_v17 = vpack.c.bf16 %v7089_v15, %v7088_v58  ;;  %11409 = vmatprep.subr.bf16.mxu1 %v21670_v44  ;;  %v16090_v15 = vld [vmem:[#allocation3 + $0xd0] sm:$0xf] }
 0x238   : > { %v1121_v11 = vrot.slane %v1120_v16, 4  ;;  %v1362_v23 = vadd.f32 %v1361_v62, %v1360_v3  ;;  %21832 = vst [vmem:[#allocation97_spill] sm:$0xff] %v16059_v12  ;;  %v16066_v6 = vsel %vm2210_vm2, %v2282_v51, %v2284_v14  ;;  %v16069_v46 = vsel %vm492_vm0, %v5237_v41, %v5239_v49  ;;  %v4657_v51 = vld [vmem:[#allocation3 + $0xc0] sm:$0xff] }
 0x239   : > { %v16050_v21 = vsel %vm5061_vm5, %v21828_v55, %v5090_v47  ;;  %v13069_v47 = vld [vmem:[#allocation2 + $0x140] sm:$0xff]  ;;  %21833 = vst [vmem:[#allocation98_spill] sm:$0xff] %v16066_v6  ;;  %21834 = vst [vmem:[#allocation99_spill] sm:$0xff] %v16069_v46  ;;  %v16074_v60 = vsel %vm5061_vm5, %v5093_v36, %v5095_v9  ;;  %v2287_v43 = vrot.slane %v15404_v22, 1  ;;  %v5241_v1 = vrot.slane %v4654_v57, 4  ;;  %11800 = vmatpush1.bf16.msra.mxu0 %v11799_v17 }
 0x23a   : > { %21829 = vst [vmem:[#allocation84_spill] sm:$0xff] %v16050_v21  ;;  %3358 = vmatmul.mubr.f32.gmra.mrb[102].mxu1 %v13069_v47  ;;  %v1122_v3 = vadd.f32 %v1121_v11, %v1120_v16  ;;  %v1363_v62 = vrot.slane %v1362_v23, 4  ;;  %8324 = vmatmul.mubr.f32.gmra.mrb[98].mxu0 %v16050_v21  ;;  %21835 = vst [vmem:[#allocation100_spill] sm:$0xff] %v16074_v60  ;;  %v5242_v16 = vrot.slane %v16061_v59, 4  ;;  %v5097_v7 = vrot.slane %v4654_v57, 3  ;;  %v7090_v36 = vld [vmem:[%s20914_s7 + $0x580] sm:$0xff] }
 0x23b   : > { %3362 = vmatprep.mubr.f32.mxu1 %v16053_v29  ;;  %8328 = vmatprep.mubr.f32.mxu0 %v16056_v39  ;;  %v5098_v22 = vrot.slane %v16061_v59, 3  ;;  %v2289_v0 = vrot.slane %v15418_v26, 1  ;;  %v5244_v14 = vrot.slane %v4656_v27, 4  ;;  %v5100_v58 = vrot.slane %v4656_v27, 3 }
 0x23c   : > { %v1123_v49 = vrot.slane %v1122_v3, 2  ;;  %v1364_v41 = vadd.f32 %v1363_v62, %v1362_v23  ;;  %11801 = vmatprep.subr.bf16.mxu0 %v21670_v44  ;;  %v5246_v57 = vrot.slane %v4657_v51, 4  ;;  %v5247_v11 = vrot.slane %v16078_v38, 4 }
 0x23d   : > { %v5102_v23 = vrot.slane %v4657_v51, 3  ;;  %v21169_v26 = vrot.slane %v16078_v38, 3  ;;  %v11802_v59 = vpack.c.bf16 %v7091_v40, %v7090_v36  ;;  %v16099_v17 = vsel %vm2210_vm2, %v2286_v20, %v2287_v43  ;;  %v7092_v20 = vld [vmem:[%s20914_s7 + $0x590] sm:$0xff]  ;;  %v16117_v40 = vld [vmem:[#allocation2 + $0x158] sm:$0xff] }
 0x23e   : > { %3363 = vmatmul.mubr.f32.gmra.mrb[104].mxu1 %v13070_v56  ;;  %v1124_v9 = vadd.f32 %v1123_v49, %v1122_v3  ;;  %v1365_v55 = vrot.slane %v1364_v41, 2  ;;  %8329 = vmatmul.mubr.f32.gmra.mrb[100].mxu0 %v16059_v12  ;;  %21836 = vst [vmem:[#allocation101_spill] sm:$0xff] %v16099_v17  ;;  %v5249_v3 = vrot.slane %v16090_v15, 4  ;;  %v16103_v27 = vsel %vm492_vm0, %v5241_v1, %v5242_v16  ;;  %v13071_v56 = vld [vmem:[#allocation2 + $0x10] sm:$0x3]  ;;  %v16269_v12 = vld [vmem:[#allocation3 + $0xf8] sm:$0xff] }
 0x23f   : > { %3367 = vmatprep.mubr.f32.mxu1 %v16066_v6  ;;  %8333 = vmatprep.mubr.f32.mxu0 %v16069_v46  ;;  %21837 = vst [vmem:[#allocation102_spill] sm:$0xff] %v16103_v27  ;;  %v16106_v49 = vsel %vm5061_vm5, %v5097_v7, %v5098_v22  ;;  %v16109_v51 = vsel %vm2210_vm2, %v2287_v43, %v2289_v0  ;;  %v2359_v36 = vrot.slane %v13071_v56, 2  ;;  %v16136_v56 = vld [vmem:[%s20911_s4 + $0x208] sm:$0xff]  ;;  %v21854_v39 = vrot.slane %v16090_v15, 3 }
 0x240   : > { %v1125_v47 = vrot.slane %v1124_v9, 1  ;;  %v1366_v62 = vadd.f32 %v1365_v55, %v1364_v41  ;;  %21838 = vst [vmem:[#allocation103_spill] sm:$0xff] %v16106_v49  ;;  %21839 = vst [vmem:[#allocation104_spill] sm:$0xff] %v16109_v51  ;;  %11803 = vmatpush1.bf16.msra.mxu0 %v11802_v59  ;;  %v7093_v41 = vld [vmem:[%s20914_s7 + $0x598] sm:$0xff]  ;;  %v16121_v43 = vsel %vm492_vm0, %v5242_v16, %v5244_v14  ;;  %v16126_v55 = vld [vmem:[#allocation3 + $0xd8] sm:$0xff] }
 0x241   : > { %21840 = vst [vmem:[#allocation105_spill] sm:$0xff] %v16121_v43  ;;  %v16124_v0 = vsel %vm5061_vm5, %v5098_v22, %v5100_v58  ;;  %v16131_v59 = vld [vmem:[%s20911_s4 + $0x200] sm:$0xff]  ;;  %11804 = vmatprep.subr.bf16.mxu0 %v21670_v44  ;;  %v16142_v16 = vsel %vm492_vm0, %v5246_v57, %v5247_v11  ;;  %v16147_v22 = vsel %vm5061_vm5, %v5102_v23, %v21169_v26  ;;  %v21849_v57 = vld [vmem:[#allocation20_spill] sm:$0xff]  ;;  %v5107_v15 = vrot.slane %v16126_v55, 3 }
 0x242   : > { %3368 = vmatmul.mubr.f32.gmra.mrb[106].mxu1 %v16117_v40  ;;  %v1126_v1 = vadd.f32 %v1125_v47, %v1124_v9  ;;  %v1367_v7 = vrot.slane %v1366_v62, 1  ;;  %21841 = vst [vmem:[#allocation106_spill] sm:$0xff] %v16124_v0  ;;  %8334 = vmatmul.mubr.f32.gmra.mrb[102].mxu0 %v16074_v60  ;;  %21842 = vst [vmem:[#allocation107_spill] sm:$0xff] %v16142_v16  ;;  %v16153_v9 = vsel %vm492_vm0, %v5247_v11, %v5249_v3  ;;  %v21848_v23 = vld [vmem:[#allocation27_spill] sm:$0xff]  ;;  %v13075_v11 = vld [vmem:[#allocation2 + $0x18] sm:$0xff] }
 0x243   : > { %3372 = vmatprep.mubr.f32.mxu1 %v16099_v17  ;;  %21843 = vst [vmem:[#allocation108_spill] sm:$0xff] %v16147_v22  ;;  %8338 = vmatprep.mubr.f32.mxu0 %v16103_v27  ;;  %21844 = vst [vmem:[#allocation109_spill] sm:$0xff] %v16153_v9  ;;  %v11805_v47 = vpack.c.bf16 %v7093_v41, %v7092_v20  ;;  %v16157_v46 = vsel %vm2355_vm3, %v15517_v53, %v2359_v36  ;;  %v16169_v20 = vld [vmem:[#allocation2 + $0x168] sm:$0xff]  ;;  %v21846_v36 = vld [vmem:[#allocation10_spill] sm:$0xff]  ;;  %v2361_v29 = vrot.slane %v13075_v11, 2 }
 0x244   : > { %v16150_v14 = vmul.f32 0.00390625, %v1126_v1  ;;  %v1368_v58 = vadd.f32 %v1367_v7, %v1366_v62  ;;  %v21845_v62 = vld [vmem:[#allocation12_spill] sm:$0xff]  ;;  %v16203_v7 = vld [vmem:[#allocation2 + $0x170] sm:$0xff]  ;;  %v16254_v17 = vld [vmem:[#allocation3 + $0xe8] sm:$0xf]  ;;  %v21857_v6 = vpack.c.bf16 %v16136_v56, %v16131_v59 }
 0x245   : > { %11806 = vmatpush1.bf16.msra.mxu0 %v11805_v47  ;;  %v16223_v41 = vld [vmem:[#allocation3 + $0xe0] sm:$0xff]  ;;  %v13076_v60 = vld [vmem:[#allocation2 + $0x20] sm:$0xff]  ;;  %v5110_v45 = vrot.slane %v16254_v17, 3 }
 0x246   : > { %v1371_v26 = vmul.f32 0.00390625, %v1368_v58  ;;  %v1374_v1 = vmul.f32 %v16150_v14, %v16150_v14  ;;  %3373 = vmatmul.mubr.f32.gmra.mrb[108].mxu1 %v16169_v20  ;;  %v21847_v58 = vld [vmem:[#allocation14_spill] sm:$0xff]  ;;  %8339 = vmatmul.mubr.f32.gmra.mrb[104].mxu0 %v16106_v49  ;;  %v3080_v27 = vld [vmem:[%s20911_s4 + $0x210] sm:$0xff]  ;;  %v21853_v49 = vld [vmem:[#allocation23_spill] sm:$0xff] }
 0x247   : > { %3377 = vmatprep.mubr.f32.mxu1 %v16109_v51  ;;  %8343 = vmatprep.mubr.f32.mxu0 %v16121_v43  ;;  %v21852_v51 = vld [vmem:[#allocation21_spill] sm:$0xff]  ;;  %v21855_v43 = vrot.slane %v16078_v38, 3 }
 0x248   : > { %v1377_v3 = vsub.f32 %v1371_v26, %v1374_v1  ;;  %11807 = vmatprep.subr.bf16.mxu0 %v21670_v44  ;;  %v21850_v26 = vld [vmem:[#allocation18_spill] sm:$0xff]  ;;  %v7096_v59 = vld [vmem:[%s20914_s7 + $0x5b0] sm:$0xff] }
 0x249   : > { %v21851_v1 = vld [vmem:[#allocation22_spill] sm:$0xff]  ;;  %v16264_v30 = vsel %vm5061_vm5, %v21855_v43, %v21854_v39  ;;  %v5108_v39 = vrot.slane %v16223_v41, 3  ;;  %v5254_v43 = vrot.slane %v16254_v17, 4 }
 0x24a   : > { %v1476_v47 = vadd.f32 1e-05, %v1377_v3  ;;  %3378 = vmatmul.mubr.f32.gmra.mrb[110].mxu1 %v16203_v7  ;;  %8344 = vmatmul.mubr.f32.gmra.mrb[106].mxu0 %v16124_v0  ;;  %v3081_v3 = vld [vmem:[%s20911_s4 + $0x218] sm:$0xff]  ;;  %21856 = vst [vmem:[#allocation12_spill] sm:$0xff] %v16264_v30  ;;  %v5252_v0 = vrot.slane %v16223_v41, 4 }
 0x24b   : > { %3447 = vmatprep.mubr.f32.mxu1 %v13075_v11  ;;  %8348 = vmatprep.mubr.f32.mxu0 %v16142_v16  ;;  %v7094_v16 = vld [vmem:[%s20914_s7 + $0x5a0] sm:$0xff]  ;;  %v11413_v38 = vpack.c.bf16 %v3081_v3, %v3080_v27  ;;  %v13077_v11 = vld [vmem:[#allocation2 + $0x28] sm:$0x3]  ;;  %v13078_v3 = vld [vmem:[#allocation2 + $0x30] sm:$0xff] }
 0x24c   : > { %13060 = vrsqrt.f32 %v1476_v47  ;;  %v7095_v47 = vld [vmem:[%s20914_s7 + $0x5a8] sm:$0xff]  ;;  %v2364_v21 = vrot.slane %v13077_v11, 2 }
 0x24d   : > { %v11808_v10 = vpack.c.bf16 %v7095_v47, %v7094_v16  ;;  %v21858_v47 = vrot.slane %v16126_v55, 4  ;;  %v16307_v16 = vsel %vm492_vm0, %v5252_v0, %v5254_v43  ;;  %v21867_v43 = vsub.f32 %v21824_v2, %v16150_v14 }
 0x24e   : > { %3448 = vmatmul.mubr.f32.vlgmr.msra.gmra.mrb[48].mxu1 %v15517_v53  ;;  %8349 = vmatmul.mubr.f32.gmra.mrb[108].mxu0 %v16147_v22  ;;  %v16267_v53 = vld [vmem:[#allocation3 + $0xf0] sm:$0xff]  ;;  %v2362_v22 = vrot.slane %v13076_v60, 2  ;;  %21861 = vst [vmem:[#allocation27_spill] sm:$0xff] %v16307_v16  ;;  %v21875_v2 = vsub.f32 %v21847_v58, %v16150_v14  ;;  %v21883_v58 = vsub.f32 %v21734_v33, %v16150_v14 }
 0x24f   : > { %3452 = vmatprep.mubr.f32.mxu1 %v13076_v60  ;;  %8353 = vmatprep.mubr.f32.mxu0 %v16153_v9  ;;  %v5256_v60 = vrot.slane %v16267_v53, 4  ;;  %v5112_v56 = vrot.slane %v16267_v53, 3  ;;  %v16295_v11 = vsel %vm492_vm0, %v21858_v47, %v5252_v0  ;;  %v16297_v9 = vld [vmem:[#allocation3 + $0x100] sm:$0xf]  ;;  %v21865_v0 = vrot.slane %v16269_v12, 3 }
 0x250   : > { %11411 = vmatpush1.bf16.msra.mxu1 %v21857_v6  ;;  %v7097_v6 = vld [vmem:[%s20914_s7 + $0x5b8] sm:$0xff]  ;;  %11809 = vmatpush1.bf16.msra.mxu0 %v11808_v10  ;;  %21859 = vst [vmem:[#allocation10_spill] sm:$0xff] %v16295_v11  ;;  %v16304_v10 = vsel %vm5061_vm5, %v5107_v15, %v5108_v39  ;;  %v16310_v55 = vsel %vm2355_vm3, %v2362_v22, %v2364_v21 }
 0x251   : > { %11412 = vmatprep.subr.bf16.mxu1 %v21670_v44  ;;  %v11811_v27 = vpack.c.bf16 %v7097_v6, %v7096_v59  ;;  %21860 = vst [vmem:[#allocation14_spill] sm:$0xff] %v16304_v10  ;;  %11810 = vmatprep.subr.bf16.mxu0 %v21670_v44  ;;  %v16326_v21 = vsel %vm5061_vm5, %v5112_v56, %v21865_v0 }
 0x252   : > { %3453 = vmatmul.mubr.f32.gmra.mrb[50].mxu1 %v16157_v46  ;;  %8354 = vmatmul.mubr.f32.gmra.mrb[110].mxu0 %v16264_v30  ;;  %v16301_v46 = vsel %vm2355_vm3, %v2361_v29, %v2362_v22  ;;  %v16316_v29 = vsel %vm5061_vm5, %v5108_v39, %v5110_v45  ;;  %21866 = vst [vmem:[#allocation22_spill] sm:$0xff] %v16326_v21  ;;  %v5259_v22 = vrot.slane %v16297_v9, 4  ;;  %v7111_v30 = vld [vmem:[%s20914_s7 + $0x628] sm:$0xff] }
 0x253   : > { %3457 = vmatprep.mubr.f32.mxu1 %v13078_v3  ;;  %8358 = vmatprep.mubr.f32.mxu0 %v16295_v11  ;;  %21862 = vst [vmem:[#allocation20_spill] sm:$0xff] %v16316_v29  ;;  %v21869_v45 = vsub.f32 %v21845_v62, %v16150_v14  ;;  %v21871_v6 = vsub.f32 %v21846_v36, %v16150_v14  ;;  %v21963_v11 = vld [vmem:[#allocation60_spill] sm:$0xff] }
 0x254   : > { %11414 = vmatpush1.bf16.msra.mxu1 %v11413_v38  ;;  %v21863_v38 = vrot.slane %v16269_v12, 4  ;;  %11812 = vmatpush1.bf16.msra.mxu0 %v11811_v27  ;;  %v21873_v56 = vsub.f32 %v21724_v25, %v16150_v14  ;;  %v21877_v62 = vsub.f32 %v21848_v23, %v16150_v14  ;;  %v21879_v36 = vsub.f32 %v21849_v57, %v16150_v14 }
 0x255   : > { %11415 = vmatprep.subr.bf16.mxu1 %v21670_v44  ;;  %v21881_v25 = vsub.f32 %v21736_v8, %v16150_v14  ;;  %v21885_v23 = vsub.f32 %v21741_v4, %v16150_v14  ;;  %v21887_v57 = vsub.f32 %v21740_v34, %v16150_v14  ;;  %v5115_v8 = vrot.slane %v16297_v9, 3  ;;  %11813 = vmatprep.subr.bf16.mxu0 %v21670_v44 }
 0x256   : > { %v13061_v3 = vpop.eup %13060  ;;  %3458 = vmatmul.mubr.f32.gmra.mrb[52].mxu1 %v16301_v46  ;;  %v16321_v15 = vsel %vm492_vm0, %v5256_v60, %v21863_v38  ;;  %8359 = vmatmul.mubr.f32.gmra.mrb[112].mxu0 %v16304_v10  ;;  %v7110_v10 = vld [vmem:[%s20914_s7 + $0x620] sm:$0xff] }
 0x257   : > { %21864 = vst [vmem:[#allocation18_spill] sm:$0xff] %v16321_v15  ;;  %v16332_v59 = vmul.f32 %v13061_v3, %v21867_v43  ;;  %v16337_v39 = vmul.f32 %v13061_v3, %v21869_v45  ;;  %v16342_v60 = vmul.f32 %v13061_v3, %v21871_v6  ;;  %v16347_v47 = vmul.f32 %v13061_v3, %v21873_v56  ;;  %v13079_v45 = vld [vmem:[#allocation2 + $0x38] sm:$0xff] }
 0x258   : > { %v16353_v27 = vmul.f32 %v13061_v3, %v21875_v2  ;;  %v16358_v38 = vmul.f32 %v13061_v3, %v21877_v62  ;;  %v16363_v0 = vmul.f32 %v13061_v3, %v21879_v36  ;;  %v16368_v43 = vmul.f32 %v13061_v3, %v21881_v25  ;;  %3462 = vmatprep.mubr.f32.mxu1 %v13079_v45 }
 0x259   : > { %21868 = vst [vmem:[#allocation21_spill] sm:$0xff] %v16332_v59  ;;  %21870 = vst [vmem:[#allocation23_spill] sm:$0xff] %v16337_v39  ;;  %v16373_v6 = vmul.f32 %v13061_v3, %v21883_v58  ;;  %v16378_v56 = vmul.f32 %v13061_v3, %v21885_v23  ;;  %v16383_v2 = vmul.f32 %v13061_v3, %v21887_v57  ;;  %8363 = vmatprep.mubr.f32.mxu0 %v16307_v16  ;;  %v21929_v59 = vld [vmem:[#allocation26_spill] sm:$0xff] }
 0x25a   : > { %21872 = vst [vmem:[#allocation110_spill] sm:$0xff] %v16342_v60  ;;  %21874 = vst [vmem:[#allocation111_spill] sm:$0xff] %v16347_v47  ;;  %v21889_v62 = vsub.f32 %v21748_v48, %v16150_v14  ;;  %v21891_v36 = vsub.f32 %v21745_v31, %v16150_v14  ;;  %v21893_v25 = vsub.f32 %v21753_v35, %v16150_v14  ;;  %3463 = vmatmul.mubr.f32.gmra.mrb[54].mxu1 %v16310_v55  ;;  %v21954_v47 = vld [vmem:[#allocation53_spill] sm:$0xff] }
 0x25b   : > { %21876 = vst [vmem:[#allocation112_spill] sm:$0xff] %v16353_v27  ;;  %21878 = vst [vmem:[#allocation113_spill] sm:$0xff] %v16358_v38  ;;  %v21895_v45 = vsub.f32 %v21752_v50, %v16150_v14  ;;  %v21897_v48 = vsub.f32 %v21758_v18, %v16150_v14  ;;  %v21899_v31 = vsub.f32 %v21757_v32, %v16150_v14  ;;  %8364 = vmatmul.mubr.f32.gmra.mrb[114].mxu0 %v16316_v29 }
 0x25c   : > { %21880 = vst [vmem:[#allocation114_spill] sm:$0xff] %v16363_v0  ;;  %21882 = vst [vmem:[#allocation115_spill] sm:$0xff] %v16368_v43  ;;  %v16390_v33 = vmul.f32 %v13061_v3, %v21889_v62  ;;  %v16395_v4 = vmul.f32 %v13061_v3, %v21891_v36  ;;  %v16400_v34 = vmul.f32 %v13061_v3, %v21893_v25  ;;  %8368 = vmatprep.mubr.f32.mxu0 %v16321_v15  ;;  %v13090_v15 = vld [vmem:[#allocation2 + $0xc0] sm:$0xff] }
 0x25d   : > { %21884 = vst [vmem:[#allocation116_spill] sm:$0xff] %v16373_v6  ;;  %21886 = vst [vmem:[#allocation117_spill] sm:$0xff] %v16378_v56  ;;  %v16405_v58 = vmul.f32 %v13061_v3, %v21895_v45  ;;  %v16411_v23 = vmul.f32 %v13061_v3, %v21897_v48  ;;  %v16416_v57 = vmul.f32 %v13061_v3, %v21899_v31 }
 0x25e   : > { %21888 = vst [vmem:[#allocation118_spill] sm:$0xff] %v16383_v2  ;;  %21890 = vst [vmem:[#allocation119_spill] sm:$0xff] %v16390_v33  ;;  %v21901_v35 = vsub.f32 %v21766_v52, %v16150_v14  ;;  %v21903_v50 = vsub.f32 %v21763_v61, %v16150_v14  ;;  %v21905_v18 = vsub.f32 %v21774_v42, %v16150_v14 }
 0x25f   : > { %21892 = vst [vmem:[#allocation120_spill] sm:$0xff] %v16395_v4  ;;  %21894 = vst [vmem:[#allocation121_spill] sm:$0xff] %v16400_v34  ;;  %v21907_v32 = vsub.f32 %v21773_v54, %v16150_v14  ;;  %v21909_v52 = vsub.f32 %v21785_v28, %v16150_v14  ;;  %v21911_v61 = vsub.f32 %v21782_v63, %v16150_v14  ;;  %8369 = vmatmul.mubr.f32.gmra.mrb[116].mxu0 %v16326_v21  ;;  %v21945_v4 = vld [vmem:[#allocation9_spill] sm:$0xff] }
 0x260   : > { %21896 = vst [vmem:[#allocation122_spill] sm:$0xff] %v16405_v58  ;;  %21898 = vst [vmem:[#allocation123_spill] sm:$0xff] %v16411_v23  ;;  %v16421_v62 = vmul.f32 %v13061_v3, %v21901_v35  ;;  %v16426_v36 = vmul.f32 %v13061_v3, %v21903_v50  ;;  %v16432_v25 = vmul.f32 %v13061_v3, %v21905_v18  ;;  %v13080_v35 = vld [vmem:[#allocation2 + $0x48] sm:$0xff] }
 0x261   : > { %21900 = vst [vmem:[#allocation124_spill] sm:$0xff] %v16416_v57  ;;  %v16437_v45 = vmul.f32 %v13061_v3, %v21907_v32  ;;  %v16442_v48 = vmul.f32 %v13061_v3, %v21909_v52  ;;  %v16447_v31 = vmul.f32 %v13061_v3, %v21911_v61  ;;  %3467 = vmatprep.mubr.f32.mxu1 %v13080_v35  ;;  %v16472_v61 = vld [vmem:[#allocation3 + $0x110] sm:$0xff]  ;;  %v21942_v57 = vld [vmem:[#allocation33_spill] sm:$0xff] }
 0x262   : > { %21902 = vst [vmem:[#allocation125_spill] sm:$0xff] %v16421_v62  ;;  %21904 = vst [vmem:[#allocation126_spill] sm:$0xff] %v16426_v36  ;;  %v21913_v42 = vsub.f32 %v21793_v37, %v16150_v14  ;;  %v21915_v54 = vsub.f32 %v21792_v24, %v16150_v14  ;;  %v21917_v28 = vsub.f32 %v21800_v5, %v16150_v14  ;;  %v16470_v37 = vld [vmem:[#allocation3 + $0x108] sm:$0xff]  ;;  %3468 = vmatmul.mubr.f32.gmra.mrb[56].mxu1 %v21929_v59 }
 0x263   : > { %21906 = vst [vmem:[#allocation127_spill] sm:$0xff] %v16432_v25  ;;  %21908 = vst [vmem:[#allocation128_spill] sm:$0xff] %v16437_v45  ;;  %v21919_v63 = vsub.f32 %v21797_v19, %v16150_v14  ;;  %v21921_v24 = vsub.f32 %v21809_v13, %v16150_v14  ;;  %v21923_v5 = vsub.f32 %v21850_v26, %v16150_v14  ;;  %v3082_v26 = vld [vmem:[%s20911_s4 + $0x220] sm:$0xff] }
 0x264   : > { %21910 = vst [vmem:[#allocation129_spill] sm:$0xff] %v16442_v48  ;;  %21912 = vst [vmem:[#allocation130_spill] sm:$0xff] %v16447_v31  ;;  %v16452_v50 = vmul.f32 %v13061_v3, %v21913_v42  ;;  %v16457_v18 = vmul.f32 %v13061_v3, %v21915_v54  ;;  %v16462_v32 = vmul.f32 %v13061_v3, %v21917_v28 }
 0x265   : > { %v16467_v52 = vmul.f32 %v13061_v3, %v21919_v63  ;;  %v16477_v35 = vmul.f32 %v13061_v3, %v21921_v24  ;;  %v16482_v42 = vmul.f32 %v13061_v3, %v21923_v5  ;;  %v21925_v19 = vsub.f32 %v21851_v1, %v16150_v14  ;;  %v3083_v1 = vld [vmem:[%s20911_s4 + $0x228] sm:$0xff] }
 0x266   : > { %21914 = vst [vmem:[#allocation131_spill] sm:$0xff] %v16452_v50  ;;  %21916 = vst [vmem:[#allocation132_spill] sm:$0xff] %v16457_v18  ;;  %v21927_v28 = vsub.f32 %v21852_v51, %v16150_v14  ;;  %v21930_v13 = vsub.f32 %v21853_v49, %v16150_v14  ;;  %v13081_v51 = vld [vmem:[#allocation2 + $0x50] sm:$0xff]  ;;  %v21932_v5 = vrot.slane %v16269_v12, 4  ;;  %v5261_v49 = vrot.slane %v16470_v37, 4 }
 0x267   : > { %21918 = vst [vmem:[#allocation133_spill] sm:$0xff] %v16462_v32  ;;  %21920 = vst [vmem:[#allocation134_spill] sm:$0xff] %v16467_v52  ;;  %v16487_v54 = vmul.f32 %v13061_v3, %v21925_v19  ;;  %3472 = vmatprep.mubr.f32.mxu1 %v13081_v51  ;;  %v5262_v14 = vrot.slane %v16472_v61, 4  ;;  %v11416_v51 = vpack.c.bf16 %v3083_v1, %v3082_v26  ;;  %v7099_v26 = vld [vmem:[%s20914_s7 + $0x5c8] sm:$0xff]  ;;  %v13082_v1 = vld [vmem:[#allocation2 + $0x60] sm:$0xff] }
 0x268   : > { %21922 = vst [vmem:[#allocation135_spill] sm:$0xff] %v16477_v35  ;;  %21924 = vst [vmem:[#allocation136_spill] sm:$0xff] %v16482_v42  ;;  %v16492_v63 = vmul.f32 %v13061_v3, %v21927_v28  ;;  %v16498_v24 = vmul.f32 %v13061_v3, %v21930_v13  ;;  %v16510_v19 = vsel %vm492_vm0, %v21932_v5, %v5259_v22  ;;  %v16514_v3 = vld [vmem:[#allocation3 + $0x118] sm:$0xf]  ;;  %v21934_v28 = vld [vmem:[#allocation29_spill] sm:$0xff]  ;;  %v21935_v13 = vrot.slane %v16269_v12, 3 }
 0x269   : > { %21926 = vst [vmem:[#allocation137_spill] sm:$0xff] %v16487_v54  ;;  %21933 = vst [vmem:[#allocation139_spill] sm:$0xff] %v16510_v19  ;;  %8373 = vmatprep.mubr.f32.mxu0 %v16510_v19  ;;  %3473 = vmatmul.mubr.f32.gmra.mrb[58].mxu1 %v21934_v28  ;;  %v5118_v22 = vrot.slane %v16472_v61, 3  ;;  %v3084_v5 = vld [vmem:[%s20911_s4 + $0x230] sm:$0xff]  ;;  %v5264_v54 = vrot.slane %v16514_v3, 4  ;;  %v3085_v42 = vld [vmem:[%s20911_s4 + $0x238] sm:$0xff] }
 0x26a   : > { %21928 = vst [vmem:[#allocation138_spill] sm:$0xff] %v16492_v63  ;;  %21931 = vst [vmem:[#allocation26_spill] sm:$0xff] %v16498_v24  ;;  %v16521_v24 = vsel %vm5061_vm5, %v21935_v13, %v5115_v8  ;;  %v5117_v63 = vrot.slane %v16470_v37, 3  ;;  %v7098_v8 = vld [vmem:[%s20914_s7 + $0x5c0] sm:$0xff]  ;;  %3477 = vmatprep.mubr.f32.mxu1 %v13082_v1  ;;  %v16540_v13 = vsel %vm492_vm0, %v5261_v49, %v5262_v14  ;;  %v16542_v35 = vld [vmem:[#allocation3 + $0x120] sm:$0xff]  ;;  %11417 = vmatpush1.bf16.msra.mxu1 %v11416_v51 }
 0x26b   : > { %21936 = vst [vmem:[#allocation29_spill] sm:$0xff] %v16521_v24  ;;  %8374 = vmatmul.mubr.f32.gmra.mrb[118].mxu0 %v16521_v24  ;;  %21937 = vst [vmem:[#allocation140_spill] sm:$0xff] %v16540_v13  ;;  %v16544_v52 = vld [vmem:[#allocation3 + $0x128] sm:$0xff]  ;;  %v5120_v18 = vrot.slane %v16514_v3, 3  ;;  %v11419_v50 = vpack.c.bf16 %v3085_v42, %v3084_v5  ;;  %v3086_v1 = vld [vmem:[%s20911_s4 + $0x240] sm:$0xff]  ;;  %v11814_v31 = vpack.c.bf16 %v7099_v26, %v7098_v8  ;;  %v5266_v51 = vrot.slane %v16542_v35, 4 }
 0x26c   : > { %8378 = vmatprep.mubr.f32.mxu0 %v16540_v13  ;;  %v16548_v32 = vsel %vm5061_vm5, %v5117_v63, %v5118_v22  ;;  %v21939_v49 = vld [vmem:[#allocation32_spill] sm:$0xff]  ;;  %v16557_v48 = vsel %vm492_vm0, %v5262_v14, %v5264_v54  ;;  %v5267_v63 = vrot.slane %v16544_v52, 4  ;;  %v7100_v5 = vld [vmem:[%s20914_s7 + $0x5d0] sm:$0xff]  ;;  %v7101_v8 = vld [vmem:[%s20914_s7 + $0x5d8] sm:$0xff]  ;;  %11418 = vmatprep.subr.bf16.mxu1 %v21670_v44  ;;  %v5122_v14 = vrot.slane %v16542_v35, 3 }
 0x26d   : > { %21938 = vst [vmem:[#allocation141_spill] sm:$0xff] %v16548_v32  ;;  %3478 = vmatmul.mubr.f32.gmra.mrb[60].mxu1 %v21939_v49  ;;  %21940 = vst [vmem:[#allocation32_spill] sm:$0xff] %v16557_v48  ;;  %v3087_v42 = vld [vmem:[%s20911_s4 + $0x248] sm:$0xff]  ;;  %v16571_v54 = vld [vmem:[#allocation3 + $0x130] sm:$0xf]  ;;  %v16577_v45 = vsel %vm5061_vm5, %v5118_v22, %v5120_v18  ;;  %v5123_v25 = vrot.slane %v16544_v52, 3  ;;  %11815 = vmatpush1.bf16.msra.mxu0 %v11814_v31  ;;  %v11817_v62 = vpack.c.bf16 %v7101_v8, %v7100_v5 }
 0x26e   : > { %v13083_v26 = vld [vmem:[#allocation2 + $0x68] sm:$0xff]  ;;  %21941 = vst [vmem:[#allocation142_spill] sm:$0xff] %v16577_v45  ;;  %11420 = vmatpush1.bf16.msra.mxu1 %v11419_v50  ;;  %v11422_v36 = vpack.c.bf16 %v3087_v42, %v3086_v1  ;;  %v16586_v23 = vsel %vm492_vm0, %v5266_v51, %v5267_v63  ;;  %v5269_v18 = vrot.slane %v16571_v54, 4  ;;  %v3089_v50 = vld [vmem:[%s20911_s4 + $0x258] sm:$0xff]  ;;  %v7102_v31 = vld [vmem:[%s20914_s7 + $0x5e0] sm:$0xff]  ;;  %11816 = vmatprep.subr.bf16.mxu0 %v21670_v44  ;;  %v5125_v8 = vrot.slane %v16571_v54, 3 }
 0x26f   : > { %8379 = vmatmul.mubr.f32.gmra.mrb[120].mxu0 %v16548_v32  ;;  %3482 = vmatprep.mubr.f32.mxu1 %v13083_v26  ;;  %v3088_v26 = vld [vmem:[%s20911_s4 + $0x250] sm:$0xff]  ;;  %21943 = vst [vmem:[#allocation33_spill] sm:$0xff] %v16586_v23  ;;  %v7103_v22 = vld [vmem:[%s20914_s7 + $0x5e8] sm:$0xff]  ;;  %v13084_v1 = vld [vmem:[#allocation2 + $0x78] sm:$0xff]  ;;  %v16606_v5 = vsel %vm5061_vm5, %v5122_v14, %v5123_v25 }
 0x270   : > { %8383 = vmatprep.mubr.f32.mxu0 %v16557_v48  ;;  %v16599_v51 = vld [vmem:[#allocation3 + $0x138] sm:$0xff]  ;;  %v16601_v42 = vld [vmem:[#allocation3 + $0x140] sm:$0xff]  ;;  %11421 = vmatprep.subr.bf16.mxu1 %v21670_v44  ;;  %21944 = vst [vmem:[#allocation143_spill] sm:$0xff] %v16606_v5  ;;  %v11425_v58 = vpack.c.bf16 %v3089_v50, %v3088_v26  ;;  %v11820_v34 = vpack.c.bf16 %v7103_v22, %v7102_v31  ;;  %v7105_v26 = vld [vmem:[%s20914_s7 + $0x5f8] sm:$0xff] }
 0x271   : > { %3483 = vmatmul.mubr.f32.gmra.mrb[62].mxu1 %v21942_v57  ;;  %11818 = vmatpush1.bf16.msra.mxu0 %v11817_v62  ;;  %v16615_v33 = vsel %vm492_vm0, %v5267_v63, %v5269_v18  ;;  %v5271_v14 = vrot.slane %v16599_v51, 4  ;;  %v5272_v2 = vrot.slane %v16601_v42, 4  ;;  %v3091_v62 = vld [vmem:[%s20911_s4 + $0x268] sm:$0xff]  ;;  %v13085_v50 = vld [vmem:[#allocation2 + $0x80] sm:$0xff]  ;;  %v16629_v63 = vld [vmem:[#allocation3 + $0x148] sm:$0xf]  ;;  %v16635_v31 = vsel %vm5061_vm5, %v5123_v25, %v5125_v8 }
 0x272   : > { %3487 = vmatprep.mubr.f32.mxu1 %v13084_v1  ;;  %11423 = vmatpush1.bf16.msra.mxu1 %v11422_v36  ;;  %v3090_v1 = vld [vmem:[%s20911_s4 + $0x260] sm:$0xff]  ;;  %21946 = vst [vmem:[#allocation9_spill] sm:$0xff] %v16615_v33  ;;  %v7104_v36 = vld [vmem:[%s20914_s7 + $0x5f0] sm:$0xff]  ;;  %v5127_v18 = vrot.slane %v16599_v51, 3  ;;  %21947 = vst [vmem:[#allocation144_spill] sm:$0xff] %v16635_v31  ;;  %v5128_v22 = vrot.slane %v16601_v42, 3 }
 0x273   : > { %8384 = vmatmul.mubr.f32.gmra.mrb[122].mxu0 %v16577_v45  ;;  %11424 = vmatprep.subr.bf16.mxu1 %v21670_v44  ;;  %v11428_v56 = vpack.c.bf16 %v3091_v62, %v3090_v1  ;;  %v11823_v6 = vpack.c.bf16 %v7105_v26, %v7104_v36  ;;  %v16641_v43 = vsel %vm492_vm0, %v5271_v14, %v5272_v2  ;;  %v5274_v0 = vrot.slane %v16629_v63, 4  ;;  %v3092_v25 = vld [vmem:[%s20911_s4 + $0x270] sm:$0xff]  ;;  %v16653_v1 = vld [vmem:[#allocation3 + $0x158] sm:$0xff]  ;;  %v21972_v45 = vld [vmem:[#allocation66_spill] sm:$0xff] }
 0x274   : > { %8388 = vmatprep.mubr.f32.mxu0 %v16586_v23  ;;  %11819 = vmatprep.subr.bf16.mxu0 %v21670_v44  ;;  %v13086_v8 = vld [vmem:[#allocation2 + $0x90] sm:$0xff]  ;;  %v16658_v14 = vsel %vm5061_vm5, %v5127_v18, %v5128_v22  ;;  %v5130_v62 = vrot.slane %v16629_v63, 3  ;;  %v21951_v26 = vld [vmem:[#allocation52_spill] sm:$0xff]  ;;  %v5277_v27 = vrot.slane %v16653_v1, 4  ;;  %v3094_v18 = vld [vmem:[%s20911_s4 + $0x280] sm:$0xff] }
 0x275   : > { %3488 = vmatmul.mubr.f32.gmra.mrb[64].mxu1 %v21945_v4  ;;  %11821 = vmatpush1.bf16.msra.mxu0 %v11820_v34  ;;  %v16651_v34 = vld [vmem:[#allocation3 + $0x150] sm:$0xff]  ;;  %21950 = vst [vmem:[#allocation145_spill] sm:$0xff] %v16658_v14  ;;  %v21960_v19 = vld [vmem:[#allocation57_spill] sm:$0xff] }
 0x276   : > { %3492 = vmatprep.mubr.f32.mxu1 %v13085_v50  ;;  %11426 = vmatpush1.bf16.msra.mxu1 %v11425_v58  ;;  %v21948_v50 = vld [vmem:[#allocation50_spill] sm:$0xff]  ;;  %v5276_v38 = vrot.slane %v16651_v34, 4  ;;  %v16824_v24 = vld [vmem:[#allocation3 + $0x40] sm:$0xf] }
 0x277   : > { %8389 = vmatmul.mubr.f32.gmra.mrb[124].mxu0 %v16606_v5  ;;  %21949 = vst [vmem:[#allocation50_spill] sm:$0xff] %v16641_v43  ;;  %v3093_v58 = vld [vmem:[%s20911_s4 + $0x278] sm:$0xff]  ;;  %11427 = vmatprep.subr.bf16.mxu1 %v21670_v44  ;;  %21974 = vst [vmem:[#allocation153_spill] sm:$0xff] %v16824_v24  ;;  %v4786_v21 = vrot.slane %v16824_v24, 1 }
 0x278   : > { %8393 = vmatprep.mubr.f32.mxu0 %v16615_v33  ;;  %11822 = vmatprep.subr.bf16.mxu0 %v21670_v44  ;;  %v11431_v36 = vpack.c.bf16 %v3093_v58, %v3092_v25  ;;  %v16675_v25 = vld [vmem:[#allocation3 + $0x160] sm:$0xf]  ;;  %v5133_v58 = vrot.slane %v16653_v1, 3  ;;  %v21957_v33 = vld [vmem:[#allocation55_spill] sm:$0xff] }
 0x279   : > { %3493 = vmatmul.mubr.f32.gmra.mrb[66].mxu1 %v21948_v50  ;;  %11824 = vmatpush1.bf16.msra.mxu0 %v11823_v6  ;;  %v13087_v6 = vld [vmem:[#allocation2 + $0x98] sm:$0xff]  ;;  %v5279_v39 = vrot.slane %v16675_v25, 4 }
 0x27a   : > { %3497 = vmatprep.mubr.f32.mxu1 %v13086_v8  ;;  %11429 = vmatpush1.bf16.msra.mxu1 %v11428_v56  ;;  %v16664_v8 = vsel %vm492_vm0, %v5272_v2, %v5274_v0  ;;  %v3095_v56 = vld [vmem:[%s20911_s4 + $0x288] sm:$0xff]  ;;  %v16680_v0 = vsel %vm5061_vm5, %v5128_v22, %v5130_v62  ;;  %v5132_v2 = vrot.slane %v16651_v34, 3  ;;  %v3096_v22 = vld [vmem:[%s20911_s4 + $0x290] sm:$0xff]  ;;  %v3097_v62 = vld [vmem:[%s20911_s4 + $0x298] sm:$0xff] }
 0x27b   : > { %8394 = vmatmul.mubr.f32.gmra.mrb[126].mxu0 %v16635_v31  ;;  %21952 = vst [vmem:[#allocation52_spill] sm:$0xff] %v16664_v8  ;;  %11430 = vmatprep.subr.bf16.mxu1 %v21670_v44  ;;  %21953 = vst [vmem:[#allocation146_spill] sm:$0xff] %v16680_v0  ;;  %v11434_v60 = vpack.c.bf16 %v3095_v56, %v3094_v18  ;;  %v16699_v18 = vld [vmem:[#allocation3 + $0x170] sm:$0xff]  ;;  %v5135_v56 = vrot.slane %v16675_v25, 3 }
 0x27c   : > { %8398 = vmatprep.mubr.f32.mxu0 %v16641_v43  ;;  %11825 = vmatprep.subr.bf16.mxu0 %v21670_v44  ;;  %v11437_v43 = vpack.c.bf16 %v3097_v62, %v3096_v22  ;;  %v5282_v23 = vrot.slane %v16699_v18, 4  ;;  %v13089_v22 = vld [vmem:[#allocation2 + $0xb0] sm:$0xff]  ;;  %v16720_v62 = vld [vmem:[#allocation3 + $0x178] sm:$0xf]  ;;  %v5138_v48 = vrot.slane %v16699_v18, 3  ;;  %v16795_v31 = vld [vmem:[#allocation3 + $0x30] sm:$0xff] }
 0x27d   : > { %3498 = vmatmul.mubr.f32.gmra.mrb[68].mxu1 %v21951_v26 }
 0x27e   : > { %3502 = vmatprep.mubr.f32.mxu1 %v13087_v6  ;;  %11432 = vmatpush1.bf16.msra.mxu1 %v11431_v36  ;;  %v16687_v6 = vsel %vm492_vm0, %v5276_v38, %v5277_v27  ;;  %v16697_v36 = vld [vmem:[#allocation3 + $0x168] sm:$0xff]  ;;  %v16703_v38 = vsel %vm5061_vm5, %v5132_v2, %v5133_v58  ;;  %v3098_v2 = vld [vmem:[%s20911_s4 + $0x2a0] sm:$0xff] }
 0x27f   : > { %8399 = vmatmul.mubr.f32.gmra.mrb[128].mxu0 %v16658_v14  ;;  %21955 = vst [vmem:[#allocation53_spill] sm:$0xff] %v16687_v6  ;;  %11433 = vmatprep.subr.bf16.mxu1 %v21670_v44  ;;  %21956 = vst [vmem:[#allocation147_spill] sm:$0xff] %v16703_v38  ;;  %v13092_v14 = vld [vmem:[#allocation2 + $0xd8] sm:$0xff] }
 0x280   : > { %8403 = vmatprep.mubr.f32.mxu0 %v16664_v8  ;;  %v13088_v8 = vld [vmem:[#allocation2 + $0xa8] sm:$0xff] }
 0x281   : > { %3503 = vmatmul.mubr.f32.gmra.mrb[70].mxu1 %v21954_v47 }
 0x282   : > { %3507 = vmatprep.mubr.f32.mxu1 %v13088_v8  ;;  %11435 = vmatpush1.bf16.msra.mxu1 %v11434_v60  ;;  %v16709_v8 = vsel %vm492_vm0, %v5277_v27, %v5279_v39  ;;  %v3099_v60 = vld [vmem:[%s20911_s4 + $0x2a8] sm:$0xff]  ;;  %v16724_v39 = vsel %vm5061_vm5, %v5133_v58, %v5135_v56  ;;  %v5137_v27 = vrot.slane %v16697_v36, 3  ;;  %v3100_v58 = vld [vmem:[%s20911_s4 + $0x2b0] sm:$0xff]  ;;  %v3101_v56 = vld [vmem:[%s20911_s4 + $0x2b8] sm:$0xff] }
 0x283   : > { %8404 = vmatmul.mubr.f32.gmra.mrb[130].mxu0 %v16680_v0  ;;  %21958 = vst [vmem:[#allocation55_spill] sm:$0xff] %v16709_v8  ;;  %11436 = vmatprep.subr.bf16.mxu1 %v21670_v44  ;;  %21959 = vst [vmem:[#allocation148_spill] sm:$0xff] %v16724_v39  ;;  %v11440_v13 = vpack.c.bf16 %v3099_v60, %v3098_v2  ;;  %v16743_v2 = vld [vmem:[#allocation3 + $0x188] sm:$0xff]  ;;  %v5140_v60 = vrot.slane %v16720_v62, 3  ;;  %v11443_v16 = vpack.c.bf16 %v3101_v56, %v3100_v58  ;;  %v13091_v58 = vld [vmem:[#allocation2 + $0xc8] sm:$0xff] }
 0x284   : > { %8408 = vmatprep.mubr.f32.mxu0 %v16687_v6  ;;  %v5281_v6 = vrot.slane %v16697_v36, 4  ;;  %v16764_v56 = vld [vmem:[#allocation3 + $0x190] sm:$0xf] }
 0x285   : > { %3508 = vmatmul.mubr.f32.gmra.mrb[72].mxu1 %v21957_v33  ;;  %v21966_v0 = vld [vmem:[#allocation63_spill] sm:$0xff] }
 0x286   : > { %3512 = vmatprep.mubr.f32.mxu1 %v13089_v22  ;;  %11438 = vmatpush1.bf16.msra.mxu1 %v11437_v43  ;;  %v16731_v22 = vsel %vm492_vm0, %v5281_v6, %v5282_v23  ;;  %v16741_v43 = vld [vmem:[#allocation3 + $0x180] sm:$0xff]  ;;  %v16747_v6 = vsel %vm5061_vm5, %v5137_v27, %v5138_v48  ;;  %v3102_v27 = vld [vmem:[%s20911_s4 + $0x2c0] sm:$0xff] }
 0x287   : > { %8409 = vmatmul.mubr.f32.gmra.mrb[132].mxu0 %v16703_v38  ;;  %21961 = vst [vmem:[#allocation57_spill] sm:$0xff] %v16731_v22  ;;  %11439 = vmatprep.subr.bf16.mxu1 %v21670_v44  ;;  %21962 = vst [vmem:[#allocation149_spill] sm:$0xff] %v16747_v6 }
 0x288   : > { %8413 = vmatprep.mubr.f32.mxu0 %v16709_v8  ;;  %v5284_v8 = vrot.slane %v16720_v62, 4 }
 0x289   : > { %3513 = vmatmul.mubr.f32.gmra.mrb[74].mxu1 %v21960_v19 }
 0x28a   : > { %3517 = vmatprep.mubr.f32.mxu1 %v13090_v15  ;;  %11441 = vmatpush1.bf16.msra.mxu1 %v11440_v13  ;;  %v16753_v15 = vsel %vm492_vm0, %v5282_v23, %v5284_v8  ;;  %v3103_v13 = vld [vmem:[%s20911_s4 + $0x2c8] sm:$0xff]  ;;  %v16768_v23 = vsel %vm5061_vm5, %v5138_v48, %v5140_v60  ;;  %v5463_v8 = vrot.slane %v16741_v43, 3  ;;  %v3104_v48 = vld [vmem:[%s20911_s4 + $0x2d0] sm:$0xff]  ;;  %v3105_v60 = vld [vmem:[%s20911_s4 + $0x2d8] sm:$0xff] }
 0x28b   : > { %8414 = vmatmul.mubr.f32.gmra.mrb[134].mxu0 %v16724_v39  ;;  %21964 = vst [vmem:[#allocation60_spill] sm:$0xff] %v16753_v15  ;;  %v5503_v39 = vrot.slane %v16743_v2, 4  ;;  %11442 = vmatprep.subr.bf16.mxu1 %v21670_v44  ;;  %21965 = vst [vmem:[#allocation150_spill] sm:$0xff] %v16768_v23  ;;  %v11446_v38 = vpack.c.bf16 %v3103_v13, %v3102_v27  ;;  %v11449_v27 = vpack.c.bf16 %v3105_v60, %v3104_v48  ;;  %v21969_v13 = vld [vmem:[#allocation65_spill] sm:$0xff]  ;;  %v3107_v48 = vld [vmem:[%s20911_s4 + $0x2e8] sm:$0xff] }
 0x28c   : > { %8418 = vmatprep.mubr.f32.mxu0 %v16731_v22  ;;  %v5502_v22 = vrot.slane %v16741_v43, 4  ;;  %v13095_v60 = vld [vmem:[#allocation2 + $0xe0] sm:$0xff] }
 0x28d   : > { %3518 = vmatmul.mubr.f32.gmra.mrb[76].mxu1 %v21963_v11 }
 0x28e   : > { %3522 = vmatprep.mubr.f32.mxu1 %v13091_v58  ;;  %11444 = vmatpush1.bf16.msra.mxu1 %v11443_v16  ;;  %v16775_v58 = vsel %vm492_vm0, %v5502_v22, %v5503_v39  ;;  %v5466_v22 = vrot.slane %v16764_v56, 3 }
 0x28f   : > { %8419 = vmatmul.mubr.f32.gmra.mrb[136].mxu0 %v16747_v6  ;;  %v5464_v6 = vrot.slane %v16743_v2, 3  ;;  %21967 = vst [vmem:[#allocation63_spill] sm:$0xff] %v16775_v58  ;;  %11445 = vmatprep.subr.bf16.mxu1 %v21670_v44 }
 0x290   : > { %8423 = vmatprep.mubr.f32.mxu0 %v16753_v15  ;;  %v5505_v15 = vrot.slane %v16764_v56, 4 }
 0x291   : > { %3523 = vmatmul.mubr.f32.gmra.mrb[78].mxu1 %v21966_v0  ;;  %v16787_v16 = vsel %vm5061_vm5, %v5463_v8, %v5464_v6 }
 0x292   : > { %3527 = vmatprep.mubr.f32.mxu1 %v13092_v14  ;;  %21968 = vst [vmem:[#allocation151_spill] sm:$0xff] %v16787_v16  ;;  %11447 = vmatpush1.bf16.msra.mxu1 %v11446_v38  ;;  %v4783_v14 = vrot.slane %v16795_v31, 1  ;;  %v3106_v38 = vld [vmem:[%s20911_s4 + $0x2e0] sm:$0xff] }
 0x293   : > { %8424 = vmatmul.mubr.f32.gmra.mrb[138].mxu0 %v16768_v23  ;;  %v16793_v23 = vsel %vm492_vm0, %v5503_v39, %v5505_v15  ;;  %v7106_v39 = vld [vmem:[%s20914_s7 + $0x600] sm:$0xff]  ;;  %v7107_v15 = vld [vmem:[%s20914_s7 + $0x608] sm:$0xff]  ;;  %11448 = vmatprep.subr.bf16.mxu1 %v21670_v44  ;;  %v11452_v5 = vpack.c.bf16 %v3107_v48, %v3106_v38  ;;  %v16842_v38 = vld [vmem:[#allocation3 + $0x48] sm:$0xff] }
 0x294   : > { %8428 = vmatprep.mubr.f32.mxu0 %v16775_v58  ;;  %21970 = vst [vmem:[#allocation65_spill] sm:$0xff] %v16793_v23  ;;  %v16798_v58 = vld [vmem:[#allocation3 + $0x38] sm:$0xff]  ;;  %v11826_v32 = vpack.c.bf16 %v7107_v15, %v7106_v39  ;;  %v4788_v48 = vrot.slane %v16842_v38, 1  ;;  %v16845_v39 = vld [vmem:[#allocation3 + $0x50] sm:$0xff]  ;;  %v13100_v15 = vld [vmem:[#allocation2 + $0xf8] sm:$0xff] }
 0x295   : > { %3528 = vmatmul.mubr.f32.gmra.mrb[80].mxu1 %v21969_v13  ;;  %v4784_v8 = vrot.slane %v16798_v58, 1  ;;  %21977 = vst [vmem:[#allocation154_spill] sm:$0xff] %v16845_v39 }
 0x296   : > { %3532 = vmatprep.mubr.f32.mxu1 %v13095_v60  ;;  %11450 = vmatpush1.bf16.msra.mxu1 %v11449_v27  ;;  %v3109_v27 = vld [vmem:[%s20911_s4 + $0x2f8] sm:$0xff] }
 0x297   : > { %8429 = vmatmul.mubr.f32.gmra.mrb[140].mxu0 %v16787_v16  ;;  %v16816_v16 = vsel %vm5061_vm5, %v5464_v6, %v5466_v22  ;;  %v16821_v60 = vsel %vm2210_vm2, %v4783_v14, %v4784_v8  ;;  %v7108_v6 = vld [vmem:[%s20914_s7 + $0x610] sm:$0xff]  ;;  %11451 = vmatprep.subr.bf16.mxu1 %v21670_v44  ;;  %v7109_v22 = vld [vmem:[%s20914_s7 + $0x618] sm:$0xff] }
 0x298   : > { %8433 = vmatprep.mubr.f32.mxu0 %v16793_v23  ;;  %21971 = vst [vmem:[#allocation152_spill] sm:$0xff] %v16816_v16  ;;  %21973 = vst [vmem:[#allocation66_spill] sm:$0xff] %v16821_v60  ;;  %v13096_v23 = vld [vmem:[#allocation2 + $0xf0] sm:$0xff] }
 0x299   : > { %3533 = vmatmul.mubr.f32.gmra.mrb[82].mxu1 %v21972_v45  ;;  %v21975_v14 = vld [vmem:[#allocation69_spill] sm:$0xff] }
 0x29a   : > { %3537 = vmatprep.mubr.f32.mxu1 %v13096_v23  ;;  %11453 = vmatpush1.bf16.msra.mxu1 %v11452_v5  ;;  %v3108_v23 = vld [vmem:[%s20911_s4 + $0x2f0] sm:$0xff]  ;;  %21976 = vst [vmem:[#allocation69_spill] sm:$0xff] %v16842_v38  ;;  %v4789_v5 = vrot.slane %v16845_v39, 1 }
 0x29b   : > { %8434 = vmatmul.mubr.f32.gmra.mrb[142].mxu0 %v16816_v16  ;;  %v11829_v16 = vpack.c.bf16 %v7109_v22, %v7108_v6  ;;  %v11455_v29 = vpack.c.bf16 %v3109_v27, %v3108_v23  ;;  %11454 = vmatprep.subr.bf16.mxu1 %v21670_v44  ;;  %v13102_v22 = vld [vmem:[#allocation2 + $0x108] sm:$0xff]  ;;  %v11832_v23 = vpack.c.bf16 %v7111_v30, %v7110_v10  ;;  %v7112_v27 = vld [vmem:[%s20914_s7 + $0x630] sm:$0xff] }
 0x29c   : > { %8503 = vmatprep.mubr.f32.mxu0 %v16821_v60  ;;  %v16849_v60 = vsel %vm2210_vm2, %v4784_v8, %v4786_v21  ;;  %v16863_v21 = vsel %vm2210_vm2, %v4788_v48, %v4789_v5  ;;  %v16865_v8 = vld [vmem:[#allocation3 + $0x58] sm:$0xf]  ;;  %v7113_v48 = vld [vmem:[%s20914_s7 + $0x638] sm:$0xff]  ;;  %v16882_v30 = vld [vmem:[#allocation3 + $0x60] sm:$0xff] }
 0x29d   : > { %3538 = vmatmul.mubr.f32.gmra.mrb[84].mxu1 %v21975_v14  ;;  %21978 = vst [vmem:[#allocation155_spill] sm:$0xff] %v16849_v60  ;;  %21981 = vst [vmem:[#allocation156_spill] sm:$0xff] %v16865_v8  ;;  %v4791_v6 = vrot.slane %v16865_v8, 1  ;;  %v4793_v10 = vrot.slane %v16882_v30, 1  ;;  %v21986_v8 = vld [vmem:[#allocation78_spill] sm:$0xff] }
 0x29e   : > { %3542 = vmatprep.mubr.f32.mxu1 %v13100_v15  ;;  %11456 = vmatpush1.bf16.msra.mxu1 %v11455_v29  ;;  %v21982_v15 = vld [vmem:[#allocation77_spill] sm:$0xff]  ;;  %21984 = vst [vmem:[#allocation157_spill] sm:$0xff] %v16882_v30  ;;  %v16885_v29 = vld [vmem:[#allocation3 + $0x68] sm:$0xff] }
 0x29f   : > { %8504 = vmatmul.mubr.f32.vlgmr.msra.gmra.mrb[80].mxu0 %v16795_v31  ;;  %11457 = vmatprep.subr.bf16.mxu1 %v21670_v44  ;;  %21985 = vst [vmem:[#allocation158_spill] sm:$0xff] %v16885_v29 }
 0x2a0   : > { %11827 = vmatpush1.bf16.msra.mxu0 %v11826_v32  ;;  %8508 = vmatprep.mubr.f32.mxu0 %v16849_v60  ;;  %v21979_v32 = vld [vmem:[#allocation70_spill] sm:$0xff]  ;;  %v11835_v60 = vpack.c.bf16 %v7113_v48, %v7112_v27  ;;  %v13107_v27 = vld [vmem:[#allocation2 + $0x120] sm:$0xff] }
 0x2a1   : > { %11828 = vmatprep.subr.bf16.mxu0 %v21670_v44  ;;  %3543 = vmatmul.mubr.f32.gmra.mrb[86].mxu1 %v21979_v32  ;;  %21980 = vst [vmem:[#allocation70_spill] sm:$0xff] %v16863_v21 }
 0x2a2   : > { %3547 = vmatprep.mubr.f32.mxu1 %v13102_v22  ;;  %v4794_v22 = vrot.slane %v16885_v29, 1 }
 0x2a3   : > { %8509 = vmatmul.mubr.f32.gmra.mrb[82].mxu0 %v16798_v58 }
 0x2a4   : > { %8513 = vmatprep.mubr.f32.mxu0 %v16863_v21  ;;  %11830 = vmatpush1.bf16.msra.mxu0 %v11829_v16  ;;  %v16880_v16 = vsel %vm2210_vm2, %v4789_v5, %v4791_v6  ;;  %v13105_v21 = vld [vmem:[#allocation2 + $0x110] sm:$0xff]  ;;  %v7114_v5 = vld [vmem:[%s20914_s7 + $0x640] sm:$0xff]  ;;  %v7115_v6 = vld [vmem:[%s20914_s7 + $0x648] sm:$0xff] }
 0x2a5   : > { %11831 = vmatprep.subr.bf16.mxu0 %v21670_v44  ;;  %3548 = vmatmul.mubr.f32.gmra.mrb[88].mxu1 %v21982_v15  ;;  %21983 = vst [vmem:[#allocation77_spill] sm:$0xff] %v16880_v16  ;;  %v11838_v48 = vpack.c.bf16 %v7115_v6, %v7114_v5  ;;  %v16920_v5 = vld [vmem:[#allocation3 + $0x80] sm:$0xff] }
 0x2a6   : > { %3552 = vmatprep.mubr.f32.mxu1 %v13105_v21  ;;  %v16899_v21 = vsel %vm2210_vm2, %v4793_v10, %v4794_v22  ;;  %v7117_v10 = vld [vmem:[%s20914_s7 + $0x658] sm:$0xff]  ;;  %21992 = vst [vmem:[#allocation163_spill] sm:$0xff] %v16920_v5  ;;  %v4799_v6 = vrot.slane %v16920_v5, 1 }
 0x2a7   : > { %8514 = vmatmul.mubr.f32.gmra.mrb[84].mxu0 %v16842_v38  ;;  %21987 = vst [vmem:[#allocation159_spill] sm:$0xff] %v16899_v21  ;;  %v7116_v38 = vld [vmem:[%s20914_s7 + $0x650] sm:$0xff] }
 0x2a8   : > { %8518 = vmatprep.mubr.f32.mxu0 %v16880_v16  ;;  %11833 = vmatpush1.bf16.msra.mxu0 %v11832_v23  ;;  %v16901_v16 = vld [vmem:[#allocation3 + $0x70] sm:$0xf] }
 0x2a9   : > { %11834 = vmatprep.subr.bf16.mxu0 %v21670_v44  ;;  %3553 = vmatmul.mubr.f32.gmra.mrb[90].mxu1 %v21986_v8  ;;  %21988 = vst [vmem:[#allocation160_spill] sm:$0xff] %v16901_v16  ;;  %v4796_v23 = vrot.slane %v16901_v16, 1  ;;  %v13110_v16 = vld [vmem:[#allocation2 + $0x128] sm:$0xff]  ;;  %v11841_v8 = vpack.c.bf16 %v7117_v10, %v7116_v38  ;;  %v13112_v10 = vld [vmem:[#allocation2 + $0x138] sm:$0xff] }
 0x2aa   : > { %3557 = vmatprep.mubr.f32.mxu1 %v13107_v27 }
 0x2ab   : > { %8519 = vmatmul.mubr.f32.gmra.mrb[86].mxu0 %v16845_v39  ;;  %v21989_v39 = vld [vmem:[#allocation80_spill] sm:$0xff]  ;;  %v16915_v27 = vsel %vm2210_vm2, %v4794_v22, %v4796_v23  ;;  %v7118_v22 = vld [vmem:[%s20914_s7 + $0x660] sm:$0xff] }
 0x2ac   : > { %8523 = vmatprep.mubr.f32.mxu0 %v16899_v21  ;;  %11836 = vmatpush1.bf16.msra.mxu0 %v11835_v60  ;;  %21990 = vst [vmem:[#allocation161_spill] sm:$0xff] %v16915_v27  ;;  %v16917_v21 = vld [vmem:[#allocation3 + $0x78] sm:$0xff] }
 0x2ad   : > { %11837 = vmatprep.subr.bf16.mxu0 %v21670_v44  ;;  %3558 = vmatmul.mubr.f32.gmra.mrb[92].mxu1 %v21989_v39  ;;  %21991 = vst [vmem:[#allocation162_spill] sm:$0xff] %v16917_v21  ;;  %v4798_v60 = vrot.slane %v16917_v21, 1  ;;  %v16924_v39 = vpop.f32.mrb[48].mxu0  ;;  %v7119_v23 = vld [vmem:[%s20914_s7 + $0x668] sm:$0xff] }
 0x2ae   : > { %3562 = vmatprep.mubr.f32.mxu1 %v13110_v16  ;;  %21993 = vst [vmem:[#allocation164_spill] sm:$0xff] %v16924_v39  ;;  %v16934_v24 = vpop.f32.mrb[49].mxu0  ;;  %v16940_v16 = vld [vmem:[#allocation3 + $0x88] sm:$0xf]  ;;  %v11844_v39 = vpack.c.bf16 %v7119_v23, %v7118_v22  ;;  %v16960_v22 = vld [vmem:[#allocation3 + $0x90] sm:$0xff] }
 0x2af   : > { %8524 = vmatmul.mubr.f32.gmra.mrb[88].mxu0 %v16882_v30  ;;  %v21994_v30 = vld [vmem:[#allocation81_spill] sm:$0xff]  ;;  %21995 = vst [vmem:[#allocation165_spill] sm:$0xff] %v16934_v24  ;;  %v16938_v38 = vsel %vm2210_vm2, %v4798_v60, %v4799_v6  ;;  %21997 = vst [vmem:[#allocation167_spill] sm:$0xff] %v16940_v16  ;;  %v7121_v60 = vld [vmem:[%s20914_s7 + $0x678] sm:$0xff]  ;;  %v4803_v23 = vrot.slane %v16960_v22, 1 }
 0x2b0   : > { %8528 = vmatprep.mubr.f32.mxu0 %v16915_v27  ;;  %11839 = vmatpush1.bf16.msra.mxu0 %v11838_v48  ;;  %21996 = vst [vmem:[#allocation166_spill] sm:$0xff] %v16938_v38  ;;  %v4801_v48 = vrot.slane %v16940_v16, 1  ;;  %v16944_v27 = vpop.f32.mrb[50].mxu0  ;;  %v7120_v24 = vld [vmem:[%s20914_s7 + $0x670] sm:$0xff]  ;;  %22002 = vst [vmem:[#allocation171_spill] sm:$0xff] %v16960_v22 }
 0x2b1   : > { %11840 = vmatprep.subr.bf16.mxu0 %v21670_v44  ;;  %3563 = vmatmul.mubr.f32.gmra.mrb[94].mxu1 %v21994_v30  ;;  %21998 = vst [vmem:[#allocation168_spill] sm:$0xff] %v16944_v27  ;;  %v16954_v16 = vpop.f32.mrb[51].mxu0 }
 0x2b2   : > { %3567 = vmatprep.mubr.f32.mxu1 %v13112_v10  ;;  %22000 = vst [vmem:[#allocation169_spill] sm:$0xff] %v16954_v16  ;;  %v16963_v10 = vld [vmem:[#allocation3 + $0x98] sm:$0xff]  ;;  %v16967_v16 = vpop.f32.mrb[52].mxu0 }
 0x2b3   : > { %8529 = vmatmul.mubr.f32.gmra.mrb[90].mxu0 %v16885_v29  ;;  %v21999_v29 = vld [vmem:[#allocation86_spill] sm:$0xff]  ;;  %v4804_v27 = vrot.slane %v16963_v10, 1  ;;  %22003 = vst [vmem:[#allocation172_spill] sm:$0xff] %v16967_v16  ;;  %v16977_v30 = vpop.f32.mrb[53].mxu0 }
 0x2b4   : > { %8533 = vmatprep.mubr.f32.mxu0 %v16938_v38  ;;  %11842 = vmatpush1.bf16.msra.mxu0 %v11841_v8  ;;  %v16958_v8 = vsel %vm2210_vm2, %v4799_v6, %v4801_v48  ;;  %v13115_v38 = vld [vmem:[#allocation2 + $0x140] sm:$0xff]  ;;  %v7123_v48 = vld [vmem:[%s20914_s7 + $0x688] sm:$0xff] }
 0x2b5   : > { %11843 = vmatprep.subr.bf16.mxu0 %v21670_v44  ;;  %3568 = vmatmul.mubr.f32.gmra.mrb[96].mxu1 %v21999_v29  ;;  %22001 = vst [vmem:[#allocation170_spill] sm:$0xff] %v16958_v8  ;;  %v11847_v29 = vpack.c.bf16 %v7121_v60, %v7120_v24  ;;  %v7122_v6 = vld [vmem:[%s20914_s7 + $0x680] sm:$0xff]  ;;  %v16981_v24 = vsel %vm2210_vm2, %v4803_v23, %v4804_v27  ;;  %v13117_v60 = vld [vmem:[#allocation2 + $0x150] sm:$0xff]  ;;  %v7125_v23 = vld [vmem:[%s20914_s7 + $0x698] sm:$0xff] }
 0x2b6   : > { %3572 = vmatprep.mubr.f32.mxu1 %v13115_v38  ;;  %22006 = vst [vmem:[#allocation173_spill] sm:$0xff] %v16981_v24  ;;  %v11850_v16 = vpack.c.bf16 %v7123_v48, %v7122_v6  ;;  %v17003_v6 = vld [vmem:[#allocation3 + $0xa8] sm:$0xff] }
 0x2b7   : > { %8534 = vmatmul.mubr.f32.gmra.mrb[92].mxu0 %v16917_v21  ;;  %v22004_v21 = vld [vmem:[#allocation87_spill] sm:$0xff]  ;;  %22012 = vst [vmem:[#allocation178_spill] sm:$0xff] %v17003_v6  ;;  %v4808_v48 = vrot.slane %v17003_v6, 1 }
 0x2b8   : > { %8538 = vmatprep.mubr.f32.mxu0 %v16958_v8  ;;  %11845 = vmatpush1.bf16.msra.mxu0 %v11844_v39  ;;  %22005 = vst [vmem:[#allocation87_spill] sm:$0xff] %v16977_v30  ;;  %v16983_v39 = vld [vmem:[#allocation3 + $0xa0] sm:$0xf]  ;;  %v16987_v8 = vpop.f32.mrb[54].mxu0 }
 0x2b9   : > { %11846 = vmatprep.subr.bf16.mxu0 %v21670_v44  ;;  %3573 = vmatmul.mubr.f32.gmra.mrb[98].mxu1 %v22004_v21  ;;  %22007 = vst [vmem:[#allocation174_spill] sm:$0xff] %v16983_v39  ;;  %v4806_v38 = vrot.slane %v16983_v39, 1  ;;  %22008 = vst [vmem:[#allocation175_spill] sm:$0xff] %v16987_v8  ;;  %v7124_v30 = vld [vmem:[%s20914_s7 + $0x690] sm:$0xff]  ;;  %v16997_v39 = vpop.f32.mrb[55].mxu0 }
 0x2ba   : > { %3577 = vmatprep.mubr.f32.mxu1 %v13117_v60  ;;  %22010 = vst [vmem:[#allocation176_spill] sm:$0xff] %v16997_v39  ;;  %v17006_v60 = vld [vmem:[#allocation3 + $0xb0] sm:$0xff]  ;;  %v17011_v39 = vpop.f32.mrb[56].mxu0 }
 0x2bb   : > { %8539 = vmatmul.mubr.f32.gmra.mrb[94].mxu0 %v16920_v5  ;;  %v22009_v5 = vld [vmem:[#allocation89_spill] sm:$0xff]  ;;  %22013 = vst [vmem:[#allocation179_spill] sm:$0xff] %v17006_v60  ;;  %v4809_v8 = vrot.slane %v17006_v60, 1  ;;  %22014 = vst [vmem:[#allocation180_spill] sm:$0xff] %v17011_v39 }
 0x2bc   : > { %8543 = vmatprep.mubr.f32.mxu0 %v16981_v24  ;;  %11848 = vmatpush1.bf16.msra.mxu0 %v11847_v29  ;;  %v17001_v29 = vsel %vm2210_vm2, %v4804_v27, %v4806_v38  ;;  %v11853_v24 = vpack.c.bf16 %v7125_v23, %v7124_v30  ;;  %v7126_v27 = vld [vmem:[%s20914_s7 + $0x6a0] sm:$0xff]  ;;  %v7127_v38 = vld [vmem:[%s20914_s7 + $0x6a8] sm:$0xff] }
 0x2bd   : > { %11849 = vmatprep.subr.bf16.mxu0 %v21670_v44  ;;  %3578 = vmatmul.mubr.f32.gmra.mrb[100].mxu1 %v22009_v5  ;;  %22011 = vst [vmem:[#allocation177_spill] sm:$0xff] %v17001_v29  ;;  %v17021_v5 = vpop.f32.mrb[57].mxu0  ;;  %v17027_v30 = vld [vmem:[#allocation3 + $0xb8] sm:$0xf]  ;;  %v11856_v23 = vpack.c.bf16 %v7127_v38, %v7126_v27  ;;  %v17051_v38 = vld [vmem:[#allocation3 + $0xc8] sm:$0xff] }
 0x2be   : > { %3582 = vmatprep.mubr.f32.mxu1 %v16117_v40  ;;  %v17025_v40 = vsel %vm2210_vm2, %v4808_v48, %v4809_v8  ;;  %22018 = vst [vmem:[#allocation182_spill] sm:$0xff] %v17027_v30  ;;  %v17032_v39 = vpop.f32.mrb[58].mxu0  ;;  %v7129_v48 = vld [vmem:[%s20914_s7 + $0x6b8] sm:$0xff] }
 0x2bf   : > { %8544 = vmatmul.mubr.f32.gmra.mrb[96].mxu0 %v16960_v22  ;;  %v22015_v22 = vld [vmem:[#allocation90_spill] sm:$0xff]  ;;  %22017 = vst [vmem:[#allocation181_spill] sm:$0xff] %v17025_v40  ;;  %22019 = vst [vmem:[#allocation183_spill] sm:$0xff] %v17032_v39  ;;  %v4814_v39 = vrot.slane %v17051_v38, 1 }
 0x2c0   : > { %8548 = vmatprep.mubr.f32.mxu0 %v17001_v29  ;;  %11851 = vmatpush1.bf16.msra.mxu0 %v11850_v16  ;;  %22016 = vst [vmem:[#allocation90_spill] sm:$0xff] %v17021_v5  ;;  %v4811_v16 = vrot.slane %v17027_v30, 1  ;;  %v7128_v5 = vld [vmem:[%s20914_s7 + $0x6b0] sm:$0xff]  ;;  %v22020_v29 = vld [vmem:[#allocation16_spill] sm:$0xff]  ;;  %v17042_v30 = vpop.f32.mrb[59].mxu0 }
 0x2c1   : > { %11852 = vmatprep.subr.bf16.mxu0 %v21670_v44  ;;  %3583 = vmatmul.mubr.f32.gmra.mrb[102].mxu1 %v22015_v22  ;;  %22021 = vst [vmem:[#allocation184_spill] sm:$0xff] %v17042_v30  ;;  %v17056_v30 = vpop.f32.mrb[60].mxu0 }
 0x2c2   : > { %3587 = vmatprep.mubr.f32.mxu1 %v16169_v20  ;;  %v17046_v20 = vsel %vm2210_vm2, %v4809_v8, %v4811_v16  ;;  %22024 = vst [vmem:[#allocation187_spill] sm:$0xff] %v17056_v30  ;;  %v7130_v8 = vld [vmem:[%s20914_s7 + $0x6c0] sm:$0xff]  ;;  %v7131_v16 = vld [vmem:[%s20914_s7 + $0x6c8] sm:$0xff] }
 0x2c3   : > { %8549 = vmatmul.mubr.f32.gmra.mrb[98].mxu0 %v16963_v10  ;;  %22022 = vst [vmem:[#allocation185_spill] sm:$0xff] %v17046_v20  ;;  %v11862_v30 = vpack.c.bf16 %v7131_v16, %v7130_v8  ;;  %v17095_v8 = vld [vmem:[#allocation3 + $0xd8] sm:$0xff] }
 0x2c4   : > { %8553 = vmatprep.mubr.f32.mxu0 %v17025_v40  ;;  %11854 = vmatpush1.bf16.msra.mxu0 %v11853_v24  ;;  %v17048_v24 = vld [vmem:[#allocation3 + $0xc0] sm:$0xff]  ;;  %v11859_v40 = vpack.c.bf16 %v7129_v48, %v7128_v5  ;;  %v17072_v5 = vld [vmem:[#allocation3 + $0xd0] sm:$0xf]  ;;  %v4818_v16 = vrot.slane %v17095_v8, 1 }
 0x2c5   : > { %11855 = vmatprep.subr.bf16.mxu0 %v21670_v44  ;;  %3588 = vmatmul.mubr.f32.gmra.mrb[104].mxu1 %v22020_v29  ;;  %22023 = vst [vmem:[#allocation186_spill] sm:$0xff] %v17048_v24  ;;  %v4813_v27 = vrot.slane %v17048_v24, 1  ;;  %v17066_v29 = vpop.f32.mrb[61].mxu0  ;;  %22028 = vst [vmem:[#allocation189_spill] sm:$0xff] %v17072_v5  ;;  %v17075_v48 = vld [vmem:[#allocation2 + $0x180] sm:$0xff] }
 0x2c6   : > { %3592 = vmatprep.mubr.f32.mxu1 %v16203_v7  ;;  %22029 = vst [vmem:[#allocation190_spill] sm:$0xff] %v17075_v48 }
 0x2c7   : > { %8554 = vmatmul.mubr.f32.gmra.mrb[100].mxu0 %v17003_v6  ;;  %v22025_v6 = vld [vmem:[#allocation92_spill] sm:$0xff]  ;;  %v17070_v7 = vsel %vm2210_vm2, %v4813_v27, %v4814_v39  ;;  %v7132_v27 = vld [vmem:[%s20914_s7 + $0x6d0] sm:$0xff] }
 0x2c8   : > { %8558 = vmatprep.mubr.f32.mxu0 %v17046_v20  ;;  %11857 = vmatpush1.bf16.msra.mxu0 %v11856_v23  ;;  %22026 = vst [vmem:[#allocation92_spill] sm:$0xff] %v17066_v29  ;;  %22027 = vst [vmem:[#allocation188_spill] sm:$0xff] %v17070_v7  ;;  %v4816_v23 = vrot.slane %v17072_v5, 1  ;;  %v17079_v20 = vpop.f32.mrb[62].mxu0  ;;  %v7133_v29 = vld [vmem:[%s20914_s7 + $0x6d8] sm:$0xff] }
 0x2c9   : > { %11858 = vmatprep.subr.bf16.mxu0 %v21670_v44  ;;  %3593 = vmatmul.mubr.f32.gmra.mrb[106].mxu1 %v22025_v6  ;;  %22030 = vst [vmem:[#allocation191_spill] sm:$0xff] %v17079_v20  ;;  %v22031_v5 = vld [vmem:[#allocation94_spill] sm:$0xff]  ;;  %v4819_v20 = vrot.slane %v16223_v41, 1  ;;  %v7134_v41 = vld [vmem:[%s20914_s7 + $0x6e0] sm:$0xff] }
 0x2ca   : > { %3597 = vmatprep.mubr.f32.mxu1 %v17075_v48  ;;  %v3112_v48 = vld [vmem:[%s20911_s4 + $0x310] sm:$0xff] }
 0x2cb   : > { %8559 = vmatmul.mubr.f32.gmra.mrb[102].mxu0 %v17006_v60  ;;  %v17089_v60 = vpop.f32.mrb[63].mxu0 }
 0x2cc   : > { %8563 = vmatprep.mubr.f32.mxu0 %v17070_v7  ;;  %11860 = vmatpush1.bf16.msra.mxu0 %v11859_v40  ;;  %22032 = vst [vmem:[#allocation192_spill] sm:$0xff] %v17089_v60  ;;  %v17093_v40 = vsel %vm2210_vm2, %v4814_v39, %v4816_v23  ;;  %v17099_v7 = vld [vmem:[#allocation2 + $0x188] sm:$0xff]  ;;  %v3110_v60 = vld [vmem:[%s20911_s4 + $0x300] sm:$0xff]  ;;  %v17106_v39 = vpop.f32.mrb[64].mxu0 }
 0x2cd   : > { %11861 = vmatprep.subr.bf16.mxu0 %v21670_v44  ;;  %3598 = vmatmul.mubr.f32.gmra.mrb[108].mxu1 %v22031_v5  ;;  %22033 = vst [vmem:[#allocation193_spill] sm:$0xff] %v17093_v40  ;;  %22034 = vst [vmem:[#allocation194_spill] sm:$0xff] %v17099_v7  ;;  %v3111_v23 = vld [vmem:[%s20911_s4 + $0x308] sm:$0xff] }
 0x2ce   : > { %3602 = vmatprep.mubr.f32.mxu1 %v17099_v7  ;;  %22035 = vst [vmem:[#allocation195_spill] sm:$0xff] %v17106_v39  ;;  %v22036_v7 = vld [vmem:[#allocation28_spill] sm:$0xff]  ;;  %v11458_v39 = vpack.c.bf16 %v3111_v23, %v3110_v60  ;;  %v22040_v60 = vld [vmem:[#allocation25_spill] sm:$0xff]  ;;  %v4823_v23 = vrot.slane %v16267_v53, 1  ;;  %v22044_v53 = vld [vmem:[#allocation30_spill] sm:$0xff] }
 0x2cf   : > { %8564 = vmatmul.mubr.f32.gmra.mrb[104].mxu0 %v17048_v24  ;;  %v11865_v24 = vpack.c.bf16 %v7133_v29, %v7132_v27  ;;  %v17123_v29 = vsel %vm2210_vm2, %v4818_v16, %v4819_v20  ;;  %v4821_v27 = vrot.slane %v16254_v17, 1  ;;  %v3113_v16 = vld [vmem:[%s20911_s4 + $0x318] sm:$0xff]  ;;  %v7136_v17 = vld [vmem:[%s20914_s7 + $0x6f0] sm:$0xff] }
 0x2d0   : > { %8568 = vmatprep.mubr.f32.mxu0 %v17093_v40  ;;  %11863 = vmatpush1.bf16.msra.mxu0 %v11862_v30  ;;  %v7135_v40 = vld [vmem:[%s20914_s7 + $0x6e8] sm:$0xff]  ;;  %v17119_v30 = vpop.f32.mrb[65].mxu0  ;;  %22038 = vst [vmem:[#allocation197_spill] sm:$0xff] %v17123_v29 }
 0x2d1   : > { %11864 = vmatprep.subr.bf16.mxu0 %v21670_v44  ;;  %3603 = vmatmul.mubr.f32.gmra.mrb[110].mxu1 %v22036_v7  ;;  %22037 = vst [vmem:[#allocation196_spill] sm:$0xff] %v17119_v30  ;;  %v11868_v7 = vpack.c.bf16 %v7135_v40, %v7134_v41  ;;  %v17131_v5 = vpop.f32.mrb[66].mxu0  ;;  %v17148_v40 = vsel %vm2210_vm2, %v4819_v20, %v4821_v27  ;;  %v4824_v41 = vrot.slane %v16269_v12, 1  ;;  %v3114_v20 = vld [vmem:[%s20911_s4 + $0x320] sm:$0xff]  ;;  %v3115_v12 = vld [vmem:[%s20911_s4 + $0x328] sm:$0xff] }
 0x2d2   : > { %3672 = vmatprep.mubr.f32.mxu1 %v16301_v46  ;;  %22039 = vst [vmem:[#allocation198_spill] sm:$0xff] %v17131_v5  ;;  %v7137_v46 = vld [vmem:[%s20914_s7 + $0x6f8] sm:$0xff]  ;;  %22042 = vst [vmem:[#allocation199_spill] sm:$0xff] %v17148_v40  ;;  %v11461_v5 = vpack.c.bf16 %v3113_v16, %v3112_v48  ;;  %v11464_v27 = vpack.c.bf16 %v3115_v12, %v3114_v20  ;;  %v4829_v20 = vrot.slane %v16472_v61, 1 }
 0x2d3   : > { %8569 = vmatmul.mubr.f32.gmra.mrb[106].mxu0 %v17051_v38  ;;  %v11871_v30 = vpack.c.bf16 %v7137_v46, %v7136_v17  ;;  %v17171_v48 = vsel %vm2210_vm2, %v4823_v23, %v4824_v41  ;;  %v3116_v17 = vld [vmem:[%s20911_s4 + $0x330] sm:$0xff]  ;;  %v3117_v46 = vld [vmem:[%s20911_s4 + $0x338] sm:$0xff]  ;;  %v4828_v23 = vrot.slane %v16470_v37, 1 }
 0x2d4   : > { %8573 = vmatprep.mubr.f32.mxu0 %v17123_v29  ;;  %11866 = vmatpush1.bf16.msra.mxu0 %v11865_v24  ;;  %v17144_v24 = vpop.f32.mrb[67].mxu0  ;;  %22046 = vst [vmem:[#allocation201_spill] sm:$0xff] %v17171_v48  ;;  %v11467_v12 = vpack.c.bf16 %v3117_v46, %v3116_v17  ;;  %v4831_v17 = vrot.slane %v16514_v3, 1 }
 0x2d5   : > { %11867 = vmatprep.subr.bf16.mxu0 %v21670_v44  ;;  %3673 = vmatmul.mubr.f32.vlgmr.msra.gmra.mrb[48].mxu1 %v22040_v60  ;;  %22041 = vst [vmem:[#allocation25_spill] sm:$0xff] %v17144_v24  ;;  %v17154_v60 = vpop.f32.mrb[68].mxu0  ;;  %v22107_v24 = vld [vmem:[#allocation158_spill] sm:$0xff] }
 0x2d6   : > { %3677 = vmatprep.mubr.f32.mxu1 %v16310_v55  ;;  %11459 = vmatpush1.bf16.msra.mxu1 %v11458_v39  ;;  %22043 = vst [vmem:[#allocation200_spill] sm:$0xff] %v17154_v60  ;;  %v17165_v55 = vpop.f32.mrb[69].mxu0  ;;  %v4826_v39 = vrot.slane %v16297_v9, 1  ;;  %v22048_v9 = vld [vmem:[#allocation34_spill] sm:$0xff] }
 0x2d7   : > { %8574 = vmatmul.mubr.f32.gmra.mrb[108].mxu0 %v17095_v8  ;;  %11460 = vmatprep.subr.bf16.mxu1 %v21670_v44  ;;  %22045 = vst [vmem:[#allocation30_spill] sm:$0xff] %v17165_v55  ;;  %v17176_v16 = vpop.f32.mrb[70].mxu0  ;;  %v22056_v60 = vld [vmem:[#allocation54_spill] sm:$0xff] }
 0x2d8   : > { %8578 = vmatprep.mubr.f32.mxu0 %v17148_v40  ;;  %11869 = vmatpush1.bf16.msra.mxu0 %v11868_v7  ;;  %v17167_v7 = vld [vmem:[#allocation3 + $0xe0] sm:$0xff]  ;;  %22047 = vst [vmem:[#allocation202_spill] sm:$0xff] %v17176_v16  ;;  %v3118_v16 = vld [vmem:[%s20911_s4 + $0x340] sm:$0xff] }
 0x2d9   : > { %11870 = vmatprep.subr.bf16.mxu0 %v21670_v44  ;;  %3678 = vmatmul.mubr.f32.gmra.mrb[50].mxu1 %v22044_v53 }
 0x2da   : > { %3682 = vmatprep.mubr.f32.mxu1 %v21929_v59  ;;  %11462 = vmatpush1.bf16.msra.mxu1 %v11461_v5  ;;  %v17187_v59 = vpop.f32.mrb[71].mxu0  ;;  %v17189_v5 = vld [vmem:[#allocation3 + $0xf0] sm:$0xff] }
 0x2db   : > { %8579 = vmatmul.mubr.f32.gmra.mrb[110].mxu0 %v17167_v7  ;;  %11463 = vmatprep.subr.bf16.mxu1 %v21670_v44  ;;  %22049 = vst [vmem:[#allocation34_spill] sm:$0xff] %v17187_v59  ;;  %v17199_v53 = vpop.f32.mrb[72].mxu0 }
 0x2dc   : > { %8583 = vmatprep.mubr.f32.mxu0 %v17171_v48  ;;  %11872 = vmatpush1.bf16.msra.mxu0 %v11871_v30  ;;  %v17193_v30 = vsel %vm2210_vm2, %v4824_v41, %v4826_v39  ;;  %22051 = vst [vmem:[#allocation204_spill] sm:$0xff] %v17199_v53  ;;  %v3119_v41 = vld [vmem:[%s20911_s4 + $0x348] sm:$0xff]  ;;  %v22052_v39 = vld [vmem:[#allocation51_spill] sm:$0xff]  ;;  %v17209_v59 = vpop.f32.mrb[73].mxu0 }
 0x2dd   : > { %11873 = vmatprep.subr.bf16.mxu0 %v21670_v44  ;;  %3683 = vmatmul.mubr.f32.gmra.mrb[52].mxu1 %v22048_v9  ;;  %22050 = vst [vmem:[#allocation203_spill] sm:$0xff] %v17193_v30  ;;  %22053 = vst [vmem:[#allocation51_spill] sm:$0xff] %v17209_v59  ;;  %v11470_v46 = vpack.c.bf16 %v3119_v41, %v3118_v16  ;;  %v17220_v53 = vpop.f32.mrb[74].mxu0  ;;  %v3120_v59 = vld [vmem:[%s20911_s4 + $0x350] sm:$0xff]  ;;  %v4833_v16 = vrot.slane %v16542_v35, 1 }
 0x2de   : > { %3687 = vmatprep.mubr.f32.mxu1 %v21934_v28  ;;  %11465 = vmatpush1.bf16.msra.mxu1 %v11464_v27  ;;  %v17211_v28 = vld [vmem:[#allocation3 + $0xf8] sm:$0xff]  ;;  %v17215_v27 = vsel %vm2210_vm2, %v4828_v23, %v4829_v20  ;;  %22055 = vst [vmem:[#allocation206_spill] sm:$0xff] %v17220_v53  ;;  %v3121_v23 = vld [vmem:[%s20911_s4 + $0x358] sm:$0xff]  ;;  %v17230_v3 = vpop.f32.mrb[75].mxu0 }
 0x2df   : > { %8584 = vmatmul.mubr.f32.gmra.mrb[112].mxu0 %v17189_v5  ;;  %11466 = vmatprep.subr.bf16.mxu1 %v21670_v44  ;;  %22054 = vst [vmem:[#allocation205_spill] sm:$0xff] %v17215_v27  ;;  %22057 = vst [vmem:[#allocation54_spill] sm:$0xff] %v17230_v3  ;;  %v11473_v41 = vpack.c.bf16 %v3121_v23, %v3120_v59  ;;  %v17240_v53 = vpop.f32.mrb[76].mxu0  ;;  %v4836_v59 = vrot.slane %v16571_v54, 1 }
 0x2e0   : > { %8588 = vmatprep.mubr.f32.mxu0 %v17193_v30  ;;  %22059 = vst [vmem:[#allocation208_spill] sm:$0xff] %v17240_v53  ;;  %v17250_v3 = vpop.f32.mrb[77].mxu0  ;;  %v3124_v53 = vld [vmem:[%s20911_s4 + $0x370] sm:$0xff] }
 0x2e1   : > { %3688 = vmatmul.mubr.f32.gmra.mrb[54].mxu1 %v22052_v39 }
 0x2e2   : > { %3692 = vmatprep.mubr.f32.mxu1 %v21939_v49  ;;  %11468 = vmatpush1.bf16.msra.mxu1 %v11467_v12  ;;  %v17234_v49 = vsel %vm2210_vm2, %v4829_v20, %v4831_v17  ;;  %v4834_v12 = vrot.slane %v16544_v52, 1  ;;  %v3123_v20 = vld [vmem:[%s20911_s4 + $0x368] sm:$0xff]  ;;  %v22060_v17 = vld [vmem:[#allocation58_spill] sm:$0xff] }
 0x2e3   : > { %8589 = vmatmul.mubr.f32.gmra.mrb[114].mxu0 %v17211_v28  ;;  %11469 = vmatprep.subr.bf16.mxu1 %v21670_v44  ;;  %22058 = vst [vmem:[#allocation207_spill] sm:$0xff] %v17234_v49  ;;  %22061 = vst [vmem:[#allocation58_spill] sm:$0xff] %v17250_v3  ;;  %v17259_v23 = vpop.f32.mrb[78].mxu0  ;;  %v22096_v3 = vld [vmem:[#allocation154_spill] sm:$0xff] }
 0x2e4   : > { %8593 = vmatprep.mubr.f32.mxu0 %v17215_v27  ;;  %22063 = vst [vmem:[#allocation210_spill] sm:$0xff] %v17259_v23  ;;  %v17269_v54 = vpop.f32.mrb[79].mxu0  ;;  %v3126_v23 = vld [vmem:[%s20911_s4 + $0x380] sm:$0xff] }
 0x2e5   : > { %3693 = vmatmul.mubr.f32.gmra.mrb[56].mxu1 %v22056_v60 }
 0x2e6   : > { %3697 = vmatprep.mubr.f32.mxu1 %v21942_v57  ;;  %11471 = vmatpush1.bf16.msra.mxu1 %v11470_v46  ;;  %v17254_v57 = vsel %vm2210_vm2, %v4833_v16, %v4834_v12  ;;  %v22064_v16 = vld [vmem:[#allocation64_spill] sm:$0xff] }
 0x2e7   : > { %8594 = vmatmul.mubr.f32.gmra.mrb[116].mxu0 %v16470_v37  ;;  %11472 = vmatprep.subr.bf16.mxu1 %v21670_v44  ;;  %v3122_v37 = vld [vmem:[%s20911_s4 + $0x360] sm:$0xff]  ;;  %22062 = vst [vmem:[#allocation209_spill] sm:$0xff] %v17254_v57  ;;  %22065 = vst [vmem:[#allocation64_spill] sm:$0xff] %v17269_v54 }
 0x2e8   : > { %8598 = vmatprep.mubr.f32.mxu0 %v17234_v49  ;;  %v11476_v46 = vpack.c.bf16 %v3123_v20, %v3122_v37  ;;  %v4839_v37 = vrot.slane %v16601_v42, 1 }
 0x2e9   : > { %3698 = vmatmul.mubr.f32.gmra.mrb[58].mxu1 %v22060_v17 }
 0x2ea   : > { %3702 = vmatprep.mubr.f32.mxu1 %v21945_v4  ;;  %11474 = vmatpush1.bf16.msra.mxu1 %v11473_v41  ;;  %v17273_v4 = vsel %vm2210_vm2, %v4834_v12, %v4836_v59  ;;  %v4838_v41 = vrot.slane %v16599_v51, 1  ;;  %v22067_v12 = vld [vmem:[#allocation68_spill] sm:$0xff]  ;;  %v4841_v59 = vrot.slane %v16629_v63, 1 }
 0x2eb   : > { %8599 = vmatmul.mubr.f32.gmra.mrb[118].mxu0 %v16472_v61  ;;  %11475 = vmatprep.subr.bf16.mxu1 %v21670_v44  ;;  %v3125_v61 = vld [vmem:[%s20911_s4 + $0x378] sm:$0xff]  ;;  %22066 = vst [vmem:[#allocation211_spill] sm:$0xff] %v17273_v4 }
 0x2ec   : > { %8603 = vmatprep.mubr.f32.mxu0 %v17254_v57  ;;  %v11479_v20 = vpack.c.bf16 %v3125_v61, %v3124_v53  ;;  %v22069_v61 = vld [vmem:[#allocation74_spill] sm:$0xff]  ;;  %v17304_v63 = vsel %vm2210_vm2, %v4839_v37, %v4841_v59 }
 0x2ed   : > { %3703 = vmatmul.mubr.f32.gmra.mrb[60].mxu1 %v22064_v16  ;;  %22070 = vst [vmem:[#allocation74_spill] sm:$0xff] %v17304_v63 }
 0x2ee   : > { %3707 = vmatprep.mubr.f32.mxu1 %v21948_v50  ;;  %11477 = vmatpush1.bf16.msra.mxu1 %v11476_v46  ;;  %v17289_v50 = vsel %vm2210_vm2, %v4838_v41, %v4839_v37  ;;  %v3128_v46 = vld [vmem:[%s20911_s4 + $0x390] sm:$0xff]  ;;  %v22071_v37 = vld [vmem:[#allocation79_spill] sm:$0xff] }
 0x2ef   : > { %8604 = vmatmul.mubr.f32.gmra.mrb[120].mxu0 %v16542_v35  ;;  %11478 = vmatprep.subr.bf16.mxu1 %v21670_v44  ;;  %v3127_v35 = vld [vmem:[%s20911_s4 + $0x388] sm:$0xff]  ;;  %22068 = vst [vmem:[#allocation68_spill] sm:$0xff] %v17289_v50 }
 0x2f0   : > { %8608 = vmatprep.mubr.f32.mxu0 %v17273_v4  ;;  %v11482_v53 = vpack.c.bf16 %v3127_v35, %v3126_v23  ;;  %v4844_v23 = vrot.slane %v16653_v1, 1  ;;  %v4846_v35 = vrot.slane %v16675_v25, 1  ;;  %v4848_v25 = vrot.slane %v16697_v36, 1 }
 0x2f1   : > { %3708 = vmatmul.mubr.f32.gmra.mrb[62].mxu1 %v22067_v12 }
 0x2f2   : > { %3712 = vmatprep.mubr.f32.mxu1 %v21951_v26  ;;  %11480 = vmatpush1.bf16.msra.mxu1 %v11479_v20  ;;  %v4843_v26 = vrot.slane %v16651_v34, 1  ;;  %v3130_v20 = vld [vmem:[%s20911_s4 + $0x3a0] sm:$0xff] }
 0x2f3   : > { %8609 = vmatmul.mubr.f32.gmra.mrb[122].mxu0 %v16544_v52  ;;  %11481 = vmatprep.subr.bf16.mxu1 %v21670_v44  ;;  %v3129_v52 = vld [vmem:[%s20911_s4 + $0x398] sm:$0xff] }
 0x2f4   : > { %8613 = vmatprep.mubr.f32.mxu0 %v17289_v50  ;;  %v11485_v41 = vpack.c.bf16 %v3129_v52, %v3128_v46  ;;  %v22073_v46 = vld [vmem:[#allocation82_spill] sm:$0xff]  ;;  %v4849_v52 = vrot.slane %v16699_v18, 1 }
 0x2f5   : > { %3713 = vmatmul.mubr.f32.gmra.mrb[64].mxu1 %v22069_v61  ;;  %v7161_v50 = vld [vmem:[%s20914_s7 + $0x7b8] sm:$0xff] }
 0x2f6   : > { %3717 = vmatprep.mubr.f32.mxu1 %v21954_v47  ;;  %11483 = vmatpush1.bf16.msra.mxu1 %v11482_v53  ;;  %v17320_v47 = vsel %vm2210_vm2, %v4843_v26, %v4844_v23  ;;  %v3132_v53 = vld [vmem:[%s20911_s4 + $0x3b0] sm:$0xff] }
 0x2f7   : > { %8614 = vmatmul.mubr.f32.gmra.mrb[124].mxu0 %v16599_v51  ;;  %11484 = vmatprep.subr.bf16.mxu1 %v21670_v44  ;;  %v3131_v51 = vld [vmem:[%s20911_s4 + $0x3a8] sm:$0xff]  ;;  %22072 = vst [vmem:[#allocation79_spill] sm:$0xff] %v17320_v47 }
 0x2f8   : > { %8618 = vmatprep.mubr.f32.mxu0 %v17304_v63  ;;  %v11488_v59 = vpack.c.bf16 %v3131_v51, %v3130_v20  ;;  %v4851_v20 = vrot.slane %v16720_v62, 1  ;;  %v5385_v62 = vrot.slane %v16741_v43, 1  ;;  %v7158_v63 = vld [vmem:[%s20914_s7 + $0x7a0] sm:$0xff] }
 0x2f9   : > { %3718 = vmatmul.mubr.f32.gmra.mrb[66].mxu1 %v22071_v37 }
 0x2fa   : > { %3722 = vmatprep.mubr.f32.mxu1 %v21957_v33  ;;  %11486 = vmatpush1.bf16.msra.mxu1 %v11485_v41  ;;  %v17335_v33 = vsel %vm2210_vm2, %v4844_v23, %v4846_v35  ;;  %v3134_v41 = vld [vmem:[%s20911_s4 + $0x3c0] sm:$0xff]  ;;  %v22075_v23 = vld [vmem:[#allocation88_spill] sm:$0xff]  ;;  %v3136_v35 = vld [vmem:[%s20911_s4 + $0x3d0] sm:$0xff] }
 0x2fb   : > { %8619 = vmatmul.mubr.f32.gmra.mrb[126].mxu0 %v16601_v42  ;;  %11487 = vmatprep.subr.bf16.mxu1 %v21670_v44  ;;  %v3133_v42 = vld [vmem:[%s20911_s4 + $0x3b8] sm:$0xff]  ;;  %22074 = vst [vmem:[#allocation82_spill] sm:$0xff] %v17335_v33 }
 0x2fc   : > { %8623 = vmatprep.mubr.f32.mxu0 %v17320_v47  ;;  %v11491_v26 = vpack.c.bf16 %v3133_v42, %v3132_v53  ;;  %v5386_v53 = vrot.slane %v16743_v2, 1 }
 0x2fd   : > { %3723 = vmatmul.mubr.f32.gmra.mrb[68].mxu1 %v22073_v46 }
 0x2fe   : > { %3727 = vmatprep.mubr.f32.mxu1 %v21960_v19  ;;  %11489 = vmatpush1.bf16.msra.mxu1 %v11488_v59  ;;  %v17351_v19 = vsel %vm2210_vm2, %v4848_v25, %v4849_v52  ;;  %v22077_v59 = vld [vmem:[#allocation91_spill] sm:$0xff] }
 0x2ff   : > { %8624 = vmatmul.mubr.f32.gmra.mrb[128].mxu0 %v16651_v34  ;;  %11490 = vmatprep.subr.bf16.mxu1 %v21670_v44  ;;  %v3135_v34 = vld [vmem:[%s20911_s4 + $0x3c8] sm:$0xff]  ;;  %22076 = vst [vmem:[#allocation88_spill] sm:$0xff] %v17351_v19  ;;  %v3138_v25 = vld [vmem:[%s20911_s4 + $0x3e0] sm:$0xff] }
 0x300   : > { %8628 = vmatprep.mubr.f32.mxu0 %v17335_v33  ;;  %v11494_v51 = vpack.c.bf16 %v3135_v34, %v3134_v41  ;;  %v17387_v41 = vld [vmem:[#allocation3 + $0x198] sm:$0xff]  ;;  %v17389_v34 = vld [vmem:[#allocation3 + $0x1a0] sm:$0xff]  ;;  %v7157_v33 = vld [vmem:[%s20914_s7 + $0x798] sm:$0xff] }
 0x301   : > { %3728 = vmatmul.mubr.f32.gmra.mrb[70].mxu1 %v22075_v23 }
 0x302   : > { %3732 = vmatprep.mubr.f32.mxu1 %v21963_v11  ;;  %11492 = vmatpush1.bf16.msra.mxu1 %v11491_v26  ;;  %v17366_v11 = vsel %vm2210_vm2, %v4849_v52, %v4851_v20  ;;  %v22079_v52 = vld [vmem:[#allocation93_spill] sm:$0xff]  ;;  %v5388_v26 = vrot.slane %v16764_v56, 1  ;;  %v3141_v56 = vld [vmem:[%s20911_s4 + $0x3f8] sm:$0xff] }
 0x303   : > { %8629 = vmatmul.mubr.f32.gmra.mrb[130].mxu0 %v16653_v1  ;;  %11493 = vmatprep.subr.bf16.mxu1 %v21670_v44  ;;  %v3137_v1 = vld [vmem:[%s20911_s4 + $0x3d8] sm:$0xff]  ;;  %22078 = vst [vmem:[#allocation91_spill] sm:$0xff] %v17366_v11 }
 0x304   : > { %8633 = vmatprep.mubr.f32.mxu0 %v17351_v19  ;;  %v11497_v42 = vpack.c.bf16 %v3137_v1, %v3136_v35  ;;  %v5576_v35 = vrot.slane %v17387_v41, 1  ;;  %v5577_v1 = vrot.slane %v17389_v34, 1  ;;  %v7154_v19 = vld [vmem:[%s20914_s7 + $0x780] sm:$0xff] }
 0x305   : > { %3733 = vmatmul.mubr.f32.gmra.mrb[72].mxu1 %v22077_v59 }
 0x306   : > { %3737 = vmatprep.mubr.f32.mxu1 %v21966_v0  ;;  %11495 = vmatpush1.bf16.msra.mxu1 %v11494_v51  ;;  %v17382_v0 = vsel %vm2210_vm2, %v5385_v62, %v5386_v53  ;;  %v22081_v51 = vld [vmem:[#allocation31_spill] sm:$0xff]  ;;  %v17407_v62 = vld [vmem:[#allocation3 + $0x1a8] sm:$0xf] }
 0x307   : > { %8634 = vmatmul.mubr.f32.gmra.mrb[132].mxu0 %v16697_v36  ;;  %11496 = vmatprep.subr.bf16.mxu1 %v21670_v44  ;;  %v3139_v36 = vld [vmem:[%s20911_s4 + $0x3e8] sm:$0xff]  ;;  %22080 = vst [vmem:[#allocation93_spill] sm:$0xff] %v17382_v0 }
 0x308   : > { %8638 = vmatprep.mubr.f32.mxu0 %v17366_v11  ;;  %v11500_v20 = vpack.c.bf16 %v3139_v36, %v3138_v25  ;;  %v22083_v25 = vld [vmem:[#allocation38_spill] sm:$0xff] }
 0x309   : > { %3738 = vmatmul.mubr.f32.gmra.mrb[74].mxu1 %v22079_v52  ;;  %v7153_v11 = vld [vmem:[%s20914_s7 + $0x778] sm:$0xff] }
 0x30a   : > { %3742 = vmatprep.mubr.f32.mxu1 %v21969_v13  ;;  %11498 = vmatpush1.bf16.msra.mxu1 %v11497_v42  ;;  %v17401_v13 = vsel %vm2210_vm2, %v5386_v53, %v5388_v26  ;;  %v5579_v53 = vrot.slane %v17407_v62, 1  ;;  %v4927_v26 = vrot.slane %v16795_v31, 2  ;;  %v7140_v31 = vld [vmem:[%s20914_s7 + $0x710] sm:$0xff] }
 0x30b   : > { %8639 = vmatmul.mubr.f32.gmra.mrb[134].mxu0 %v16699_v18  ;;  %11499 = vmatprep.subr.bf16.mxu1 %v21670_v44  ;;  %v3140_v18 = vld [vmem:[%s20911_s4 + $0x3f0] sm:$0xff]  ;;  %22082 = vst [vmem:[#allocation31_spill] sm:$0xff] %v17401_v13 }
 0x30c   : > { %8643 = vmatprep.mubr.f32.mxu0 %v17382_v0  ;;  %v11503_v42 = vpack.c.bf16 %v3141_v56, %v3140_v18  ;;  %v17422_v36 = vsel %vm2210_vm2, %v5577_v1, %v5579_v53  ;;  %v22087_v18 = vld [vmem:[#allocation41_spill] sm:$0xff]  ;;  %v22091_v53 = vld [vmem:[#allocation44_spill] sm:$0xff]  ;;  %v7145_v0 = vld [vmem:[%s20914_s7 + $0x738] sm:$0xff] }
 0x30d   : > { %3743 = vmatmul.mubr.f32.gmra.mrb[76].mxu1 %v22081_v51 }
 0x30e   : > { %3747 = vmatprep.mubr.f32.mxu1 %v21972_v45  ;;  %11501 = vmatpush1.bf16.msra.mxu1 %v11500_v20  ;;  %v22085_v45 = vld [vmem:[#allocation96_spill] sm:$0xff]  ;;  %v4928_v20 = vrot.slane %v16798_v58, 2  ;;  %v7141_v58 = vld [vmem:[%s20914_s7 + $0x718] sm:$0xff] }
 0x30f   : > { %8644 = vmatmul.mubr.f32.gmra.mrb[136].mxu0 %v16741_v43  ;;  %11502 = vmatprep.subr.bf16.mxu1 %v21670_v44  ;;  %v17413_v43 = vsel %vm2210_vm2, %v5576_v35, %v5577_v1  ;;  %22086 = vst [vmem:[#allocation96_spill] sm:$0xff] %v17422_v36  ;;  %v22090_v1 = vld [vmem:[#allocation153_spill] sm:$0xff] }
 0x310   : > { %8648 = vmatprep.mubr.f32.mxu0 %v17401_v13  ;;  %22084 = vst [vmem:[#allocation38_spill] sm:$0xff] %v17413_v43  ;;  %v17439_v35 = vsel %vm2355_vm3, %v4927_v26, %v4928_v20  ;;  %v7144_v13 = vld [vmem:[%s20914_s7 + $0x730] sm:$0xff] }
 0x311   : > { %3748 = vmatmul.mubr.f32.gmra.mrb[78].mxu1 %v22083_v25  ;;  %22089 = vst [vmem:[#allocation41_spill] sm:$0xff] %v17439_v35 }
 0x312   : > { %3752 = vmatprep.mubr.f32.mxu1 %v21975_v14  ;;  %11504 = vmatpush1.bf16.msra.mxu1 %v11503_v42  ;;  %v7139_v14 = vld [vmem:[%s20914_s7 + $0x708] sm:$0xff]  ;;  %v4930_v42 = vrot.slane %v22090_v1, 2  ;;  %v22095_v1 = vld [vmem:[#allocation69_spill] sm:$0xff] }
 0x313   : > { %8649 = vmatmul.mubr.f32.gmra.mrb[138].mxu0 %v16743_v2  ;;  %11537 = vmatprep.subr.bf16.mxu1 %v21670_v44  ;;  %v7138_v2 = vld [vmem:[%s20914_s7 + $0x700] sm:$0xff]  ;;  %v4932_v54 = vrot.slane %v22095_v1, 2 }
 0x314   : > { %8653 = vmatprep.mubr.f32.mxu0 %v17413_v43  ;;  %v11874_v56 = vpack.c.bf16 %v7139_v14, %v7138_v2  ;;  %v22093_v2 = vld [vmem:[#allocation61_spill] sm:$0xff]  ;;  %v11877_v14 = vpack.c.bf16 %v7141_v58, %v7140_v31  ;;  %v17454_v26 = vsel %vm2355_vm3, %v4928_v20, %v4930_v42  ;;  %v7142_v43 = vld [vmem:[%s20914_s7 + $0x720] sm:$0xff]  ;;  %v22098_v31 = vld [vmem:[#allocation80_spill] sm:$0xff] }
 0x315   : > { %3753 = vmatmul.mubr.f32.gmra.mrb[80].mxu1 %v22085_v45  ;;  %22094 = vst [vmem:[#allocation153_spill] sm:$0xff] %v17454_v26  ;;  %v22099_v20 = vld [vmem:[#allocation62_spill] sm:$0xff]  ;;  %v22101_v58 = vld [vmem:[#allocation156_spill] sm:$0xff] }
 0x316   : > { %3757 = vmatprep.mubr.f32.mxu1 %v21979_v32  ;;  %v22088_v32 = vld [vmem:[#allocation45_spill] sm:$0xff]  ;;  %v4935_v1 = vrot.slane %v22101_v58, 2 }
 0x317   : > { %8654 = vmatmul.mubr.f32.gmra.mrb[140].mxu0 %v17387_v41  ;;  %v22106_v58 = vld [vmem:[#allocation157_spill] sm:$0xff] }
 0x318   : > { %8658 = vmatprep.mubr.f32.mxu0 %v17422_v36  ;;  %v4933_v36 = vrot.slane %v22096_v3, 2  ;;  %v4937_v55 = vrot.slane %v22106_v58, 2  ;;  %v7148_v58 = vld [vmem:[%s20914_s7 + $0x750] sm:$0xff] }
 0x319   : > { %3758 = vmatmul.mubr.f32.gmra.mrb[82].mxu1 %v22087_v18 }
 0x31a   : > { %3762 = vmatprep.mubr.f32.mxu1 %v21982_v15  ;;  %v22092_v15 = vld [vmem:[#allocation78_spill] sm:$0xff]  ;;  %v17469_v3 = vsel %vm2355_vm3, %v4932_v54, %v4933_v36  ;;  %v22104_v54 = vld [vmem:[#allocation67_spill] sm:$0xff] }
 0x31b   : > { %8659 = vmatmul.mubr.f32.gmra.mrb[142].mxu0 %v17389_v34  ;;  %22100 = vst [vmem:[#allocation44_spill] sm:$0xff] %v17469_v3 }
 0x31c   : > { %8728 = vmatprep.mubr.f32.mxu0 %v22088_v32  ;;  %v7150_v32 = vld [vmem:[%s20914_s7 + $0x760] sm:$0xff] }
 0x31d   : > { %3763 = vmatmul.mubr.f32.gmra.mrb[84].mxu1 %v22091_v53 }
 0x31e   : > { %3767 = vmatprep.mubr.f32.mxu1 %v22092_v15  ;;  %v22097_v15 = vld [vmem:[#allocation46_spill] sm:$0xff] }
 0x31f   : > { %8729 = vmatmul.mubr.f32.vlgmr.msra.gmra.mrb[80].mxu0 %v17439_v35 }
 0x320   : > { %11875 = vmatpush1.bf16.msra.mxu0 %v11874_v56  ;;  %8733 = vmatprep.mubr.f32.mxu0 %v22093_v2  ;;  %v7143_v56 = vld [vmem:[%s20914_s7 + $0x728] sm:$0xff]  ;;  %v7149_v2 = vld [vmem:[%s20914_s7 + $0x758] sm:$0xff] }
 0x321   : > { %11876 = vmatprep.subr.bf16.mxu0 %v21670_v44  ;;  %3768 = vmatmul.mubr.f32.gmra.mrb[86].mxu1 %v22097_v15  ;;  %v11880_v42 = vpack.c.bf16 %v7143_v56, %v7142_v43  ;;  %v22103_v43 = vld [vmem:[#allocation81_spill] sm:$0xff]  ;;  %v17484_v56 = vsel %vm2355_vm3, %v4933_v36, %v4935_v1 }
 0x322   : > { %3772 = vmatprep.mubr.f32.mxu1 %v22098_v31  ;;  %v22102_v31 = vld [vmem:[#allocation47_spill] sm:$0xff]  ;;  %22105 = vst [vmem:[#allocation78_spill] sm:$0xff] %v17484_v56 }
 0x323   : > { %8734 = vmatmul.mubr.f32.gmra.mrb[82].mxu0 %v17454_v26  ;;  %v7146_v26 = vld [vmem:[%s20914_s7 + $0x740] sm:$0xff] }
 0x324   : > { %8738 = vmatprep.mubr.f32.mxu0 %v22099_v20  ;;  %11878 = vmatpush1.bf16.msra.mxu0 %v11877_v14  ;;  %v11883_v14 = vpack.c.bf16 %v7145_v0, %v7144_v13  ;;  %v4938_v20 = vrot.slane %v22107_v24, 2  ;;  %v22109_v0 = vld [vmem:[#allocation86_spill] sm:$0xff]  ;;  %v22110_v13 = vld [vmem:[#allocation15_spill] sm:$0xff] }
 0x325   : > { %11879 = vmatprep.subr.bf16.mxu0 %v21670_v44  ;;  %3773 = vmatmul.mubr.f32.gmra.mrb[88].mxu1 %v22102_v31 }
 0x326   : > { %3777 = vmatprep.mubr.f32.mxu1 %v22103_v43  ;;  %v7147_v43 = vld [vmem:[%s20914_s7 + $0x748] sm:$0xff]  ;;  %v17500_v36 = vsel %vm2355_vm3, %v4937_v55, %v4938_v20  ;;  %v22114_v55 = vld [vmem:[#allocation19_spill] sm:$0xff] }
 0x327   : > { %8739 = vmatmul.mubr.f32.gmra.mrb[84].mxu0 %v17469_v3  ;;  %v11886_v24 = vpack.c.bf16 %v7147_v43, %v7146_v26  ;;  %22111 = vst [vmem:[#allocation69_spill] sm:$0xff] %v17500_v36  ;;  %v11889_v26 = vpack.c.bf16 %v7149_v2, %v7148_v58  ;;  %v22116_v43 = vld [vmem:[#allocation162_spill] sm:$0xff]  ;;  %v22119_v2 = vld [vmem:[#allocation89_spill] sm:$0xff] }
 0x328   : > { %8743 = vmatprep.mubr.f32.mxu0 %v22104_v54  ;;  %11881 = vmatpush1.bf16.msra.mxu0 %v11880_v42  ;;  %v22108_v54 = vld [vmem:[#allocation49_spill] sm:$0xff]  ;;  %v22112_v42 = vld [vmem:[#allocation160_spill] sm:$0xff] }
 0x329   : > { %11882 = vmatprep.subr.bf16.mxu0 %v21670_v44  ;;  %3778 = vmatmul.mubr.f32.gmra.mrb[90].mxu1 %v22108_v54  ;;  %v4940_v1 = vrot.slane %v22112_v42, 2  ;;  %v4942_v42 = vrot.slane %v22116_v43, 2  ;;  %v7152_v43 = vld [vmem:[%s20914_s7 + $0x770] sm:$0xff] }
 0x32a   : > { %3782 = vmatprep.mubr.f32.mxu1 %v22109_v0  ;;  %v22113_v0 = vld [vmem:[#allocation71_spill] sm:$0xff] }
 0x32b   : > { %8744 = vmatmul.mubr.f32.gmra.mrb[86].mxu0 %v17484_v56 }
 0x32c   : > { %8748 = vmatprep.mubr.f32.mxu0 %v22110_v13  ;;  %11884 = vmatpush1.bf16.msra.mxu0 %v11883_v14  ;;  %v17515_v14 = vsel %vm2355_vm3, %v4938_v20, %v4940_v1  ;;  %v22117_v13 = vld [vmem:[#allocation163_spill] sm:$0xff] }
 0x32d   : > { %11885 = vmatprep.subr.bf16.mxu0 %v21670_v44  ;;  %3783 = vmatmul.mubr.f32.gmra.mrb[92].mxu1 %v22113_v0  ;;  %22115 = vst [vmem:[#allocation154_spill] sm:$0xff] %v17515_v14  ;;  %v4943_v35 = vrot.slane %v22117_v13, 2  ;;  %v22120_v20 = vld [vmem:[#allocation75_spill] sm:$0xff] }
 0x32e   : > { %3787 = vmatprep.mubr.f32.mxu1 %v22004_v21  ;;  %v7151_v21 = vld [vmem:[%s20914_s7 + $0x768] sm:$0xff]  ;;  %v22122_v1 = vld [vmem:[#allocation167_spill] sm:$0xff] }
 0x32f   : > { %8749 = vmatmul.mubr.f32.gmra.mrb[88].mxu0 %v17500_v36  ;;  %v11892_v13 = vpack.c.bf16 %v7151_v21, %v7150_v32  ;;  %v4945_v58 = vrot.slane %v22122_v1, 2  ;;  %v22124_v32 = vld [vmem:[#allocation84_spill] sm:$0xff]  ;;  %v22126_v21 = vld [vmem:[#allocation171_spill] sm:$0xff] }
 0x330   : > { %8753 = vmatprep.mubr.f32.mxu0 %v22114_v55  ;;  %11887 = vmatpush1.bf16.msra.mxu0 %v11886_v24  ;;  %v22118_v55 = vld [vmem:[#allocation72_spill] sm:$0xff]  ;;  %v17531_v24 = vsel %vm2355_vm3, %v4942_v42, %v4943_v35  ;;  %v4947_v1 = vrot.slane %v22126_v21, 2  ;;  %v7156_v21 = vld [vmem:[%s20914_s7 + $0x790] sm:$0xff] }
 0x331   : > { %11888 = vmatprep.subr.bf16.mxu0 %v21670_v44  ;;  %3788 = vmatmul.mubr.f32.gmra.mrb[94].mxu1 %v22118_v55  ;;  %22121 = vst [vmem:[#allocation46_spill] sm:$0xff] %v17531_v24  ;;  %v17546_v42 = vsel %vm2355_vm3, %v4943_v35, %v4945_v58  ;;  %v22129_v35 = vld [vmem:[#allocation97_spill] sm:$0xff]  ;;  %v22131_v58 = vld [vmem:[#allocation174_spill] sm:$0xff] }
 0x332   : > { %3792 = vmatprep.mubr.f32.mxu1 %v22119_v2  ;;  %v22123_v2 = vld [vmem:[#allocation73_spill] sm:$0xff]  ;;  %22125 = vst [vmem:[#allocation80_spill] sm:$0xff] %v17546_v42 }
 0x333   : > { %8754 = vmatmul.mubr.f32.gmra.mrb[90].mxu0 %v17515_v14 }
 0x334   : > { %8758 = vmatprep.mubr.f32.mxu0 %v22120_v20  ;;  %11890 = vmatpush1.bf16.msra.mxu0 %v11889_v26  ;;  %v11895_v26 = vpack.c.bf16 %v7153_v11, %v7152_v43  ;;  %v4948_v20 = vrot.slane %v16963_v10, 2  ;;  %v22128_v11 = vld [vmem:[#allocation16_spill] sm:$0xff]  ;;  %v4950_v43 = vrot.slane %v22131_v58, 2 }
 0x335   : > { %11891 = vmatprep.subr.bf16.mxu0 %v21670_v44  ;;  %3793 = vmatmul.mubr.f32.gmra.mrb[96].mxu1 %v22123_v2 }
 0x336   : > { %3797 = vmatprep.mubr.f32.mxu1 %v22015_v22  ;;  %v7155_v22 = vld [vmem:[%s20914_s7 + $0x788] sm:$0xff] }
 0x337   : > { %8759 = vmatmul.mubr.f32.gmra.mrb[92].mxu0 %v17531_v24  ;;  %v11898_v10 = vpack.c.bf16 %v7155_v22, %v7154_v19  ;;  %v22133_v19 = vld [vmem:[#allocation100_spill] sm:$0xff]  ;;  %v22135_v22 = vld [vmem:[#allocation178_spill] sm:$0xff] }
 0x338   : > { %8763 = vmatprep.mubr.f32.mxu0 %v22124_v32  ;;  %11893 = vmatpush1.bf16.msra.mxu0 %v11892_v13  ;;  %v22127_v32 = vld [vmem:[#allocation76_spill] sm:$0xff]  ;;  %v17562_v13 = vsel %vm2355_vm3, %v4947_v1, %v4948_v20  ;;  %v17577_v1 = vsel %vm2355_vm3, %v4948_v20, %v4950_v43  ;;  %v4952_v58 = vrot.slane %v22135_v22, 2  ;;  %v22139_v20 = vld [vmem:[#allocation103_spill] sm:$0xff]  ;;  %v22141_v43 = vld [vmem:[#allocation182_spill] sm:$0xff] }
 0x339   : > { %11894 = vmatprep.subr.bf16.mxu0 %v21670_v44  ;;  %3798 = vmatmul.mubr.f32.gmra.mrb[98].mxu1 %v22127_v32  ;;  %22130 = vst [vmem:[#allocation156_spill] sm:$0xff] %v17562_v13  ;;  %22134 = vst [vmem:[#allocation47_spill] sm:$0xff] %v17577_v1  ;;  %v7160_v22 = vld [vmem:[%s20914_s7 + $0x7b0] sm:$0xff] }
 0x33a   : > { %3802 = vmatprep.mubr.f32.mxu1 %v22128_v11  ;;  %v22132_v11 = vld [vmem:[#allocation24_spill] sm:$0xff] }
 0x33b   : > { %8764 = vmatmul.mubr.f32.gmra.mrb[94].mxu0 %v17546_v42  ;;  %v4958_v42 = vrot.slane %v17051_v38, 2 }
 0x33c   : > { %8768 = vmatprep.mubr.f32.mxu0 %v22129_v35  ;;  %11896 = vmatpush1.bf16.msra.mxu0 %v11895_v26  ;;  %v11901_v26 = vpack.c.bf16 %v7157_v33, %v7156_v21  ;;  %v22136_v35 = vld [vmem:[#allocation179_spill] sm:$0xff]  ;;  %v22138_v33 = vld [vmem:[#allocation94_spill] sm:$0xff]  ;;  %v4955_v21 = vrot.slane %v22141_v43, 2  ;;  %v11907_v43 = vpack.c.bf16 %v7161_v50, %v7160_v22  ;;  %v22149_v50 = vld [vmem:[#allocation104_spill] sm:$0xff] }
 0x33d   : > { %11897 = vmatprep.subr.bf16.mxu0 %v21670_v44  ;;  %3803 = vmatmul.mubr.f32.gmra.mrb[100].mxu1 %v22132_v11  ;;  %v4953_v47 = vrot.slane %v22136_v35, 2  ;;  %v13130_v22 = vld [vmem:[#allocation2 + $0x190] sm:$0x3] }
 0x33e   : > { %3807 = vmatprep.mubr.f32.mxu1 %v22025_v6  ;;  %v7159_v6 = vld [vmem:[%s20914_s7 + $0x7a8] sm:$0xff] }
 0x33f   : > { %8769 = vmatmul.mubr.f32.gmra.mrb[96].mxu0 %v17562_v13  ;;  %v11904_v35 = vpack.c.bf16 %v7159_v6, %v7158_v63  ;;  %v22143_v63 = vld [vmem:[#allocation28_spill] sm:$0xff]  ;;  %v22148_v13 = vld [vmem:[#allocation186_spill] sm:$0xff] }
 0x340   : > { %8773 = vmatprep.mubr.f32.mxu0 %v22133_v19  ;;  %11899 = vmatpush1.bf16.msra.mxu0 %v11898_v10  ;;  %v22137_v19 = vld [vmem:[#allocation98_spill] sm:$0xff]  ;;  %v17593_v10 = vsel %vm2355_vm3, %v4952_v58, %v4953_v47  ;;  %v4957_v57 = vrot.slane %v22148_v13, 2 }
 0x341   : > { %11900 = vmatprep.subr.bf16.mxu0 %v21670_v44  ;;  %3808 = vmatmul.mubr.f32.gmra.mrb[102].mxu1 %v22137_v19  ;;  %22140 = vst [vmem:[#allocation81_spill] sm:$0xff] %v17593_v10  ;;  %v22145_v58 = vld [vmem:[#allocation190_spill] sm:$0xff] }
 0x342   : > { %3812 = vmatprep.mubr.f32.mxu1 %v22138_v33  ;;  %v22142_v33 = vld [vmem:[#allocation101_spill] sm:$0xff]  ;;  %v2535_v6 = vrot.slane %v22145_v58, 1  ;;  %v2538_v58 = vrot.slane %v13130_v22, 1 }
 0x343   : > { %8774 = vmatmul.mubr.f32.gmra.mrb[98].mxu0 %v17577_v1  ;;  %v22147_v1 = vld [vmem:[#allocation194_spill] sm:$0xff] }
 0x344   : > { %8778 = vmatprep.mubr.f32.mxu0 %v22139_v20  ;;  %11902 = vmatpush1.bf16.msra.mxu0 %v11901_v26  ;;  %v22144_v26 = vld [vmem:[#allocation106_spill] sm:$0xff]  ;;  %v17609_v20 = vsel %vm2355_vm3, %v4953_v47, %v4955_v21  ;;  %v2536_v4 = vrot.slane %v22147_v1, 1  ;;  %v22150_v47 = vld [vmem:[#allocation95_spill] sm:$0xff]  ;;  %v22151_v1 = vld [vmem:[#allocation108_spill] sm:$0xff]  ;;  %v17629_v21 = vsel %vm2355_vm3, %v4957_v57, %v4958_v42 }
 0x345   : > { %11903 = vmatprep.subr.bf16.mxu0 %v21670_v44  ;;  %3813 = vmatmul.mubr.f32.gmra.mrb[104].mxu1 %v22142_v33  ;;  %22146 = vst [vmem:[#allocation157_spill] sm:$0xff] %v17609_v20  ;;  %22152 = vst [vmem:[#allocation158_spill] sm:$0xff] %v17629_v21  ;;  %v22154_v57 = vld [vmem:[#allocation37_spill] sm:$0xff] }
 0x346   : > { %3817 = vmatprep.mubr.f32.mxu1 %v22143_v63  ;;  %v7162_v63 = vld [vmem:[%s20914_s7 + $0x7c0] sm:$0xff]  ;;  %v17626_v13 = vsel %vm2210_vm2, %v2535_v6, %v2536_v4  ;;  %v22155_v6 = vld [vmem:[#allocation12_spill] sm:$0xff] }
 0x347   : > { %8779 = vmatmul.mubr.f32.gmra.mrb[100].mxu0 %v17593_v10 }
 0x348   : > { %8783 = vmatprep.mubr.f32.mxu0 %v22144_v26  ;;  %11905 = vmatpush1.bf16.msra.mxu0 %v11904_v35  ;;  %v7163_v35 = vld [vmem:[%s20914_s7 + $0x7c8] sm:$0xff]  ;;  %v22153_v26 = vld [vmem:[#allocation189_spill] sm:$0xff] }
 0x349   : > { %11906 = vmatprep.subr.bf16.mxu0 %v21670_v44  ;;  %3818 = vmatmul.mubr.f32.gmra.mrb[106].mxu1 %v22149_v50  ;;  %v11910_v38 = vpack.c.bf16 %v7163_v35, %v7162_v63  ;;  %v4960_v10 = vrot.slane %v22153_v26, 2  ;;  %v6914_v26 = vld [vmem:[%s20914_s7] sm:$0xff]  ;;  %v17647_v35 = vsel %vm2210_vm2, %v2536_v4, %v2538_v58  ;;  %v7167_v4 = vld [vmem:[%s20914_s7 + $0x7e8] sm:$0xff] }
 0x34a   : > { %3822 = vmatprep.mubr.f32.mxu1 %v22150_v47  ;;  %v7164_v47 = vld [vmem:[%s20914_s7 + $0x7d0] sm:$0xff] }
 0x34b   : > { %8784 = vmatmul.mubr.f32.gmra.mrb[102].mxu0 %v17609_v20  ;;  %v17650_v22 = vsel %vm2355_vm3, %v4958_v42, %v4960_v10  ;;  %v6916_v42 = vld [vmem:[%s20914_s7 + $0x10] sm:$0xff] }
 0x34c   : > { %8788 = vmatprep.mubr.f32.mxu0 %v22151_v1  ;;  %11908 = vmatpush1.bf16.msra.mxu0 %v11907_v43  ;;  %v7165_v43 = vld [vmem:[%s20914_s7 + $0x7d8] sm:$0xff]  ;;  %22156 = vst [vmem:[#allocation49_spill] sm:$0xff] %v17650_v22  ;;  %v4962_v1 = vrot.slane %v17095_v8, 2 }
 0x34d   : > { %11909 = vmatprep.subr.bf16.mxu0 %v21670_v44  ;;  %3823 = vmatmul.mubr.f32.gmra.mrb[108].mxu1 %v17626_v13  ;;  %v11913_v63 = vpack.c.bf16 %v7165_v43, %v7164_v47  ;;  %v22157_v8 = vld [vmem:[#allocation14_spill] sm:$0xff] }
 0x34e   : > { %3827 = vmatprep.mubr.f32.mxu1 %v22154_v57  ;;  %v6915_v57 = vld [vmem:[%s20914_s7 + $0x8] sm:$0xff]  ;;  %v13131_v47 = vld [vmem:[#allocation3 + $0xe8] sm:$0xf] }
 0x34f   : > { %8789 = vmatmul.mubr.f32.gmra.mrb[104].mxu0 %v17629_v21  ;;  %v4963_v21 = vrot.slane %v17167_v7, 2  ;;  %v11538_v7 = vpack.c.bf16 %v6915_v57, %v6914_v26  ;;  %v4965_v43 = vrot.slane %v13131_v47, 2  ;;  %v7169_v26 = vld [vmem:[%s20914_s7 + $0x7f8] sm:$0xff]  ;;  %v4967_v47 = vrot.slane %v17189_v5, 2 }
 0x350   : > { %8793 = vmatprep.mubr.f32.mxu0 %v22155_v6  ;;  %11911 = vmatpush1.bf16.msra.mxu0 %v11910_v38  ;;  %v7166_v38 = vld [vmem:[%s20914_s7 + $0x7e0] sm:$0xff]  ;;  %v6917_v6 = vld [vmem:[%s20914_s7 + $0x18] sm:$0xff] }
 0x351   : > { %11912 = vmatprep.subr.bf16.mxu0 %v21670_v44  ;;  %3828 = vmatmul.mubr.f32.gmra.mrb[110].mxu1 %v17647_v35  ;;  %v11916_v10 = vpack.c.bf16 %v7167_v4, %v7166_v38  ;;  %v17672_v58 = vsel %vm2355_vm3, %v4962_v1, %v4963_v21  ;;  %v22159_v1 = vld [vmem:[#allocation20_spill] sm:$0xff]  ;;  %v11541_v57 = vpack.c.bf16 %v6917_v6, %v6916_v42  ;;  %v13133_v6 = vld [vmem:[#allocation2 + $0x38] sm:$0xff] }
 0x352   : > { %3897 = vmatprep.mubr.f32.mxu1 %v22048_v9  ;;  %22158 = vst [vmem:[#allocation86_spill] sm:$0xff] %v17672_v58  ;;  %v7168_v9 = vld [vmem:[%s20914_s7 + $0x7f0] sm:$0xff]  ;;  %v17688_v4 = vsel %vm2355_vm3, %v4963_v21, %v4965_v43  ;;  %v22161_v5 = vld [vmem:[#allocation22_spill] sm:$0xff]  ;;  %v13135_v43 = vld [vmem:[#allocation2 + $0x48] sm:$0xff] }
 0x353   : > { %8794 = vmatmul.mubr.f32.gmra.mrb[106].mxu0 %v17650_v22  ;;  %v11919_v38 = vpack.c.bf16 %v7169_v26, %v7168_v9  ;;  %22160 = vst [vmem:[#allocation160_spill] sm:$0xff] %v17688_v4  ;;  %v22163_v9 = vld [vmem:[#allocation29_spill] sm:$0xff] }
 0x354   : > { %8798 = vmatprep.mubr.f32.mxu0 %v22157_v8  ;;  %11914 = vmatpush1.bf16.msra.mxu0 %v11913_v63  ;;  %v13132_v63 = vld [vmem:[#allocation2 + $0x30] sm:$0xff]  ;;  %v4968_v8 = vrot.slane %v17211_v28, 2 }
 0x355   : > { %11915 = vmatprep.subr.bf16.mxu0 %v21670_v44  ;;  %3898 = vmatmul.mubr.f32.vlgmr.msra.gmra.mrb[48].mxu1 %v13132_v63  ;;  %v6918_v63 = vld [vmem:[%s20914_s7 + $0x20] sm:$0xff] }
 0x356   : > { %3902 = vmatprep.mubr.f32.mxu1 %v22052_v39  ;;  %11539 = vmatpush1.bf16.msra.mxu1 %v11538_v7  ;;  %v6919_v39 = vld [vmem:[%s20914_s7 + $0x28] sm:$0xff]  ;;  %v17704_v21 = vsel %vm2355_vm3, %v4967_v47, %v4968_v8  ;;  %v13134_v7 = vld [vmem:[#allocation3 + $0x100] sm:$0xf] }
 0x357   : > { %8799 = vmatmul.mubr.f32.gmra.mrb[108].mxu0 %v17672_v58  ;;  %11540 = vmatprep.subr.bf16.mxu1 %v21670_v44  ;;  %v11544_v28 = vpack.c.bf16 %v6919_v39, %v6918_v63  ;;  %22162 = vst [vmem:[#allocation71_spill] sm:$0xff] %v17704_v21  ;;  %v4970_v42 = vrot.slane %v13134_v7, 2  ;;  %v17723_v63 = vld [vmem:[#allocation3 + $0x110] sm:$0xff] }
 0x358   : > { %8803 = vmatprep.mubr.f32.mxu0 %v22159_v1  ;;  %11917 = vmatpush1.bf16.msra.mxu0 %v11916_v10  ;;  %v6920_v10 = vld [vmem:[%s20914_s7 + $0x30] sm:$0xff]  ;;  %v4973_v39 = vrot.slane %v17723_v63, 2 }
 0x359   : > { %11918 = vmatprep.subr.bf16.mxu0 %v21670_v44  ;;  %3903 = vmatmul.mubr.f32.gmra.mrb[50].mxu1 %v13133_v6  ;;  %v6923_v6 = vld [vmem:[%s20914_s7 + $0x48] sm:$0xff] }
 0x35a   : > { %3907 = vmatprep.mubr.f32.mxu1 %v22056_v60  ;;  %11542 = vmatpush1.bf16.msra.mxu1 %v11541_v57  ;;  %v6921_v60 = vld [vmem:[%s20914_s7 + $0x38] sm:$0xff]  ;;  %v17718_v57 = vsel %vm2355_vm3, %v4968_v8, %v4970_v42  ;;  %v13138_v8 = vld [vmem:[#allocation2 + $0x50] sm:$0xff] }
 0x35b   : > { %8804 = vmatmul.mubr.f32.gmra.mrb[110].mxu0 %v17688_v4  ;;  %11543 = vmatprep.subr.bf16.mxu1 %v21670_v44  ;;  %v11547_v26 = vpack.c.bf16 %v6921_v60, %v6920_v10  ;;  %22164 = vst [vmem:[#allocation162_spill] sm:$0xff] %v17718_v57  ;;  %v13139_v10 = vld [vmem:[#allocation3 + $0x118] sm:$0xf] }
 0x35c   : > { %8808 = vmatprep.mubr.f32.mxu0 %v22161_v5  ;;  %11920 = vmatpush1.bf16.msra.mxu0 %v11919_v38  ;;  %v17720_v38 = vld [vmem:[#allocation3 + $0x108] sm:$0xff]  ;;  %v4975_v60 = vrot.slane %v13139_v10, 2  ;;  %v6928_v5 = vld [vmem:[%s20914_s7 + $0x70] sm:$0xff] }
 0x35d   : > { %11921 = vmatprep.subr.bf16.mxu0 %v21670_v44  ;;  %3908 = vmatmul.mubr.f32.gmra.mrb[52].mxu1 %v13135_v43  ;;  %v4972_v47 = vrot.slane %v17720_v38, 2  ;;  %v6924_v43 = vld [vmem:[%s20914_s7 + $0x50] sm:$0xff] }
 0x35e   : > { %3912 = vmatprep.mubr.f32.mxu1 %v22060_v17  ;;  %11545 = vmatpush1.bf16.msra.mxu1 %v11544_v28  ;;  %v6922_v17 = vld [vmem:[%s20914_s7 + $0x40] sm:$0xff]  ;;  %v22165_v28 = vld [vmem:[#allocation141_spill] sm:$0xff] }
 0x35f   : > { %8809 = vmatmul.mubr.f32.gmra.mrb[112].mxu0 %v17704_v21  ;;  %11546 = vmatprep.subr.bf16.mxu1 %v21670_v44  ;;  %v11550_v7 = vpack.c.bf16 %v6923_v6, %v6922_v17  ;;  %v17737_v42 = vsel %vm2355_vm3, %v4972_v47, %v4973_v39  ;;  %v17750_v17 = vsel %vm2355_vm3, %v4973_v39, %v4975_v60  ;;  %v17752_v6 = vld [vmem:[#allocation3 + $0x120] sm:$0xff]  ;;  %v13143_v39 = vld [vmem:[#allocation2 + $0x68] sm:$0xff]  ;;  %v22169_v60 = vld [vmem:[#allocation143_spill] sm:$0xff] }
 0x360   : > { %8813 = vmatprep.mubr.f32.mxu0 %v22163_v9  ;;  %22166 = vst [vmem:[#allocation163_spill] sm:$0xff] %v17737_v42  ;;  %22168 = vst [vmem:[#allocation72_spill] sm:$0xff] %v17750_v17  ;;  %v4977_v10 = vrot.slane %v17752_v6, 2 }
 0x361   : > { %3913 = vmatmul.mubr.f32.gmra.mrb[54].mxu1 %v13138_v8  ;;  %v6925_v8 = vld [vmem:[%s20914_s7 + $0x58] sm:$0xff] }
 0x362   : > { %3917 = vmatprep.mubr.f32.mxu1 %v22064_v16  ;;  %11548 = vmatpush1.bf16.msra.mxu1 %v11547_v26  ;;  %v13140_v16 = vld [vmem:[#allocation2 + $0x60] sm:$0xff]  ;;  %v22167_v26 = vld [vmem:[#allocation142_spill] sm:$0xff]  ;;  %v11553_v47 = vpack.c.bf16 %v6925_v8, %v6924_v43 }
 0x363   : > { %8814 = vmatmul.mubr.f32.gmra.mrb[114].mxu0 %v17718_v57  ;;  %11549 = vmatprep.subr.bf16.mxu1 %v21670_v44 }
 0x364   : > { %8818 = vmatprep.mubr.f32.mxu0 %v22165_v28  ;;  %v17755_v28 = vld [vmem:[#allocation3 + $0x128] sm:$0xff] }
 0x365   : > { %3918 = vmatmul.mubr.f32.gmra.mrb[56].mxu1 %v13140_v16  ;;  %v4978_v9 = vrot.slane %v17755_v28, 2  ;;  %v13144_v16 = vld [vmem:[#allocation3 + $0x130] sm:$0xf] }
 0x366   : > { %3922 = vmatprep.mubr.f32.mxu1 %v22067_v12  ;;  %11551 = vmatpush1.bf16.msra.mxu1 %v11550_v7  ;;  %v6926_v12 = vld [vmem:[%s20914_s7 + $0x60] sm:$0xff]  ;;  %v6927_v7 = vld [vmem:[%s20914_s7 + $0x68] sm:$0xff] }
 0x367   : > { %8819 = vmatmul.mubr.f32.gmra.mrb[116].mxu0 %v17737_v42  ;;  %11552 = vmatprep.subr.bf16.mxu1 %v21670_v44  ;;  %v11556_v43 = vpack.c.bf16 %v6927_v7, %v6926_v12  ;;  %v17769_v8 = vsel %vm2355_vm3, %v4977_v10, %v4978_v9  ;;  %v17784_v7 = vld [vmem:[#allocation3 + $0x138] sm:$0xff] }
 0x368   : > { %8823 = vmatprep.mubr.f32.mxu0 %v22167_v26  ;;  %22170 = vst [vmem:[#allocation89_spill] sm:$0xff] %v17769_v8  ;;  %v4980_v26 = vrot.slane %v13144_v16, 2  ;;  %v4982_v16 = vrot.slane %v17784_v7, 2 }
 0x369   : > { %3923 = vmatmul.mubr.f32.gmra.mrb[58].mxu1 %v13143_v39  ;;  %v6929_v39 = vld [vmem:[%s20914_s7 + $0x78] sm:$0xff] }
 0x36a   : > { %3927 = vmatprep.mubr.f32.mxu1 %v22069_v61  ;;  %11554 = vmatpush1.bf16.msra.mxu1 %v11553_v47  ;;  %v13145_v61 = vld [vmem:[#allocation2 + $0x78] sm:$0xff]  ;;  %v22171_v47 = vld [vmem:[#allocation144_spill] sm:$0xff]  ;;  %v11559_v10 = vpack.c.bf16 %v6929_v39, %v6928_v5  ;;  %v17782_v12 = vsel %vm2355_vm3, %v4978_v9, %v4980_v26  ;;  %v13148_v9 = vld [vmem:[#allocation2 + $0x80] sm:$0xff] }
 0x36b   : > { %8824 = vmatmul.mubr.f32.gmra.mrb[118].mxu0 %v17750_v17  ;;  %11555 = vmatprep.subr.bf16.mxu1 %v21670_v44  ;;  %22172 = vst [vmem:[#allocation167_spill] sm:$0xff] %v17782_v12  ;;  %v6931_v5 = vld [vmem:[%s20914_s7 + $0x88] sm:$0xff]  ;;  %v22173_v26 = vld [vmem:[#allocation145_spill] sm:$0xff] }
 0x36c   : > { %8828 = vmatprep.mubr.f32.mxu0 %v22169_v60  ;;  %v17787_v60 = vld [vmem:[#allocation3 + $0x140] sm:$0xff] }
 0x36d   : > { %3928 = vmatmul.mubr.f32.gmra.mrb[60].mxu1 %v13145_v61  ;;  %v4983_v1 = vrot.slane %v17787_v60, 2  ;;  %v13149_v61 = vld [vmem:[#allocation3 + $0x148] sm:$0xf] }
 0x36e   : > { %3932 = vmatprep.mubr.f32.mxu1 %v22071_v37  ;;  %11557 = vmatpush1.bf16.msra.mxu1 %v11556_v43  ;;  %v6930_v37 = vld [vmem:[%s20914_s7 + $0x80] sm:$0xff] }
 0x36f   : > { %8829 = vmatmul.mubr.f32.gmra.mrb[120].mxu0 %v17769_v8  ;;  %11558 = vmatprep.subr.bf16.mxu1 %v21670_v44  ;;  %v11562_v43 = vpack.c.bf16 %v6931_v5, %v6930_v37  ;;  %v17801_v39 = vsel %vm2355_vm3, %v4982_v16, %v4983_v1  ;;  %v6932_v8 = vld [vmem:[%s20914_s7 + $0x90] sm:$0xff]  ;;  %v17816_v5 = vld [vmem:[#allocation3 + $0x150] sm:$0xff] }
 0x370   : > { %8833 = vmatprep.mubr.f32.mxu0 %v22171_v47  ;;  %22174 = vst [vmem:[#allocation73_spill] sm:$0xff] %v17801_v39  ;;  %v4985_v47 = vrot.slane %v13149_v61, 2  ;;  %v4987_v61 = vrot.slane %v17816_v5, 2 }
 0x371   : > { %3933 = vmatmul.mubr.f32.gmra.mrb[62].mxu1 %v13148_v9  ;;  %v6933_v9 = vld [vmem:[%s20914_s7 + $0x98] sm:$0xff] }
 0x372   : > { %3937 = vmatprep.mubr.f32.mxu1 %v22073_v46  ;;  %11560 = vmatpush1.bf16.msra.mxu1 %v11559_v10  ;;  %v13150_v46 = vld [vmem:[#allocation2 + $0x90] sm:$0xff]  ;;  %v22175_v10 = vld [vmem:[#allocation146_spill] sm:$0xff]  ;;  %v11565_v16 = vpack.c.bf16 %v6933_v9, %v6932_v8  ;;  %v17814_v37 = vsel %vm2355_vm3, %v4983_v1, %v4985_v47  ;;  %v6935_v8 = vld [vmem:[%s20914_s7 + $0xa8] sm:$0xff] }
 0x373   : > { %8834 = vmatmul.mubr.f32.gmra.mrb[122].mxu0 %v17782_v12  ;;  %11561 = vmatprep.subr.bf16.mxu1 %v21670_v44  ;;  %22176 = vst [vmem:[#allocation171_spill] sm:$0xff] %v17814_v37  ;;  %v13153_v1 = vld [vmem:[#allocation2 + $0x98] sm:$0xff]  ;;  %v22177_v47 = vld [vmem:[#allocation147_spill] sm:$0xff] }
 0x374   : > { %8838 = vmatprep.mubr.f32.mxu0 %v22173_v26  ;;  %v17819_v26 = vld [vmem:[#allocation3 + $0x158] sm:$0xff] }
 0x375   : > { %3938 = vmatmul.mubr.f32.gmra.mrb[64].mxu1 %v13150_v46  ;;  %v4988_v12 = vrot.slane %v17819_v26, 2  ;;  %v13154_v46 = vld [vmem:[#allocation3 + $0x160] sm:$0xf] }
 0x376   : > { %3942 = vmatprep.mubr.f32.mxu1 %v22075_v23  ;;  %11563 = vmatpush1.bf16.msra.mxu1 %v11562_v43  ;;  %v6934_v23 = vld [vmem:[%s20914_s7 + $0xa0] sm:$0xff] }
 0x377   : > { %8839 = vmatmul.mubr.f32.gmra.mrb[124].mxu0 %v17801_v39  ;;  %11564 = vmatprep.subr.bf16.mxu1 %v21670_v44  ;;  %v11568_v43 = vpack.c.bf16 %v6935_v8, %v6934_v23  ;;  %v17833_v9 = vsel %vm2355_vm3, %v4987_v61, %v4988_v12  ;;  %v6936_v39 = vld [vmem:[%s20914_s7 + $0xb0] sm:$0xff]  ;;  %v17848_v8 = vld [vmem:[#allocation3 + $0x168] sm:$0xff] }
 0x378   : > { %8843 = vmatprep.mubr.f32.mxu0 %v22175_v10  ;;  %22178 = vst [vmem:[#allocation76_spill] sm:$0xff] %v17833_v9  ;;  %v4990_v10 = vrot.slane %v13154_v46, 2  ;;  %v4992_v46 = vrot.slane %v17848_v8, 2 }
 0x379   : > { %3943 = vmatmul.mubr.f32.gmra.mrb[66].mxu1 %v13153_v1  ;;  %v6937_v1 = vld [vmem:[%s20914_s7 + $0xb8] sm:$0xff] }
 0x37a   : > { %3947 = vmatprep.mubr.f32.mxu1 %v22077_v59  ;;  %11566 = vmatpush1.bf16.msra.mxu1 %v11565_v16  ;;  %v13155_v59 = vld [vmem:[#allocation2 + $0xa8] sm:$0xff]  ;;  %v11571_v61 = vpack.c.bf16 %v6937_v1, %v6936_v39  ;;  %v17846_v23 = vsel %vm2355_vm3, %v4988_v12, %v4990_v10  ;;  %v13158_v12 = vld [vmem:[#allocation2 + $0xb0] sm:$0xff] }
 0x37b   : > { %8844 = vmatmul.mubr.f32.gmra.mrb[126].mxu0 %v17814_v37  ;;  %11567 = vmatprep.subr.bf16.mxu1 %v21670_v44  ;;  %v22179_v16 = vld [vmem:[#allocation148_spill] sm:$0xff]  ;;  %22180 = vst [vmem:[#allocation16_spill] sm:$0xff] %v17846_v23  ;;  %v22181_v10 = vld [vmem:[#allocation149_spill] sm:$0xff] }
 0x37c   : > { %8848 = vmatprep.mubr.f32.mxu0 %v22177_v47  ;;  %v17851_v47 = vld [vmem:[#allocation3 + $0x170] sm:$0xff]  ;;  %v6939_v39 = vld [vmem:[%s20914_s7 + $0xc8] sm:$0xff] }
 0x37d   : > { %3948 = vmatmul.mubr.f32.gmra.mrb[68].mxu1 %v13155_v59  ;;  %v4993_v37 = vrot.slane %v17851_v47, 2  ;;  %v13159_v59 = vld [vmem:[#allocation3 + $0x178] sm:$0xf] }
 0x37e   : > { %3952 = vmatprep.mubr.f32.mxu1 %v22079_v52  ;;  %11569 = vmatpush1.bf16.msra.mxu1 %v11568_v43  ;;  %v6938_v52 = vld [vmem:[%s20914_s7 + $0xc0] sm:$0xff] }
 0x37f   : > { %8849 = vmatmul.mubr.f32.gmra.mrb[128].mxu0 %v17833_v9  ;;  %11570 = vmatprep.subr.bf16.mxu1 %v21670_v44  ;;  %v11574_v43 = vpack.c.bf16 %v6939_v39, %v6938_v52  ;;  %v17865_v1 = vsel %vm2355_vm3, %v4992_v46, %v4993_v37  ;;  %v6940_v9 = vld [vmem:[%s20914_s7 + $0xd0] sm:$0xff] }
 0x380   : > { %8853 = vmatprep.mubr.f32.mxu0 %v22179_v16  ;;  %22182 = vst [vmem:[#allocation174_spill] sm:$0xff] %v17865_v1  ;;  %v4995_v16 = vrot.slane %v13159_v59, 2  ;;  %v17880_v39 = vld [vmem:[#allocation3 + $0x180] sm:$0xff] }
 0x381   : > { %3953 = vmatmul.mubr.f32.gmra.mrb[70].mxu1 %v13158_v12  ;;  %v6941_v12 = vld [vmem:[%s20914_s7 + $0xd8] sm:$0xff]  ;;  %v5424_v59 = vrot.slane %v17880_v39, 2 }
 0x382   : > { %3957 = vmatprep.mubr.f32.mxu1 %v22081_v51  ;;  %11572 = vmatpush1.bf16.msra.mxu1 %v11571_v61  ;;  %v13160_v51 = vld [vmem:[#allocation2 + $0xc0] sm:$0xff]  ;;  %v22183_v61 = vld [vmem:[#allocation150_spill] sm:$0xff]  ;;  %v11577_v46 = vpack.c.bf16 %v6941_v12, %v6940_v9  ;;  %v17878_v52 = vsel %vm2355_vm3, %v4993_v37, %v4995_v16  ;;  %v6943_v9 = vld [vmem:[%s20914_s7 + $0xe8] sm:$0xff] }
 0x383   : > { %8854 = vmatmul.mubr.f32.gmra.mrb[130].mxu0 %v17846_v23  ;;  %11573 = vmatprep.subr.bf16.mxu1 %v21670_v44  ;;  %22184 = vst [vmem:[#allocation24_spill] sm:$0xff] %v17878_v52  ;;  %v13163_v37 = vld [vmem:[#allocation2 + $0xc8] sm:$0xff]  ;;  %v22185_v16 = vld [vmem:[#allocation151_spill] sm:$0xff] }
 0x384   : > { %8858 = vmatprep.mubr.f32.mxu0 %v22181_v10  ;;  %v17883_v10 = vld [vmem:[#allocation3 + $0x188] sm:$0xff] }
 0x385   : > { %3958 = vmatmul.mubr.f32.gmra.mrb[72].mxu1 %v13160_v51  ;;  %v5425_v23 = vrot.slane %v17883_v10, 2  ;;  %v13164_v51 = vld [vmem:[#allocation3 + $0x190] sm:$0xf] }
 0x386   : > { %3962 = vmatprep.mubr.f32.mxu1 %v22083_v25  ;;  %11575 = vmatpush1.bf16.msra.mxu1 %v11574_v43  ;;  %v6942_v25 = vld [vmem:[%s20914_s7 + $0xe0] sm:$0xff] }
 0x387   : > { %8859 = vmatmul.mubr.f32.gmra.mrb[132].mxu0 %v17865_v1  ;;  %11576 = vmatprep.subr.bf16.mxu1 %v21670_v44  ;;  %v11580_v43 = vpack.c.bf16 %v6943_v9, %v6942_v25  ;;  %v17897_v12 = vsel %vm2355_vm3, %v5424_v59, %v5425_v23  ;;  %v6944_v1 = vld [vmem:[%s20914_s7 + $0xf0] sm:$0xff]  ;;  %v5655_v59 = vrot.slane %v17389_v34, 3  ;;  %v22187_v25 = vld [vmem:[#allocation152_spill] sm:$0xff] }
 0x388   : > { %8863 = vmatprep.mubr.f32.mxu0 %v22183_v61  ;;  %22186 = vst [vmem:[#allocation178_spill] sm:$0xff] %v17897_v12  ;;  %v5427_v61 = vrot.slane %v13164_v51, 2 }
 0x389   : > { %3963 = vmatmul.mubr.f32.gmra.mrb[74].mxu1 %v13163_v37  ;;  %v6945_v37 = vld [vmem:[%s20914_s7 + $0xf8] sm:$0xff] }
 0x38a   : > { %3967 = vmatprep.mubr.f32.mxu1 %v22085_v45  ;;  %11578 = vmatpush1.bf16.msra.mxu1 %v11577_v46  ;;  %v13165_v45 = vld [vmem:[#allocation2 + $0xd8] sm:$0xff]  ;;  %v5654_v46 = vrot.slane %v17387_v41, 3  ;;  %v11583_v9 = vpack.c.bf16 %v6945_v37, %v6944_v1  ;;  %v17912_v51 = vsel %vm2355_vm3, %v5425_v23, %v5427_v61  ;;  %v13167_v23 = vld [vmem:[#allocation2 + $0xf0] sm:$0xff] }
 0x38b   : > { %8864 = vmatmul.mubr.f32.gmra.mrb[134].mxu0 %v17878_v52  ;;  %11579 = vmatprep.subr.bf16.mxu1 %v21670_v44  ;;  %22188 = vst [vmem:[#allocation179_spill] sm:$0xff] %v17912_v51  ;;  %v5616_v52 = vrot.slane %v17389_v34, 2  ;;  %v5618_v34 = vrot.slane %v17407_v62, 2  ;;  %v7172_v37 = vld [vmem:[%s20914_s7 + $0x810] sm:$0xff] }
 0x38c   : > { %8868 = vmatprep.mubr.f32.mxu0 %v22185_v16  ;;  %v5615_v16 = vrot.slane %v17387_v41, 2 }
 0x38d   : > { %3968 = vmatmul.mubr.f32.gmra.mrb[76].mxu1 %v13165_v45  ;;  %v13166_v45 = vld [vmem:[#allocation2 + $0xe0] sm:$0xff]  ;;  %v17942_v61 = vsel %vm2355_vm3, %v5616_v52, %v5618_v34  ;;  %v13172_v34 = vld [vmem:[#allocation2 + $0x110] sm:$0xff] }
 0x38e   : > { %3972 = vmatprep.mubr.f32.mxu1 %v22087_v18  ;;  %11581 = vmatpush1.bf16.msra.mxu1 %v11580_v43  ;;  %v5657_v18 = vrot.slane %v17407_v62, 3  ;;  %v17925_v41 = vsel %vm2355_vm3, %v5615_v16, %v5616_v52  ;;  %v7171_v62 = vld [vmem:[%s20914_s7 + $0x808] sm:$0xff]  ;;  %22192 = vst [vmem:[#allocation101_spill] sm:$0xff] %v17942_v61  ;;  %v13168_v16 = vld [vmem:[#allocation2 + $0xf8] sm:$0xff] }
 0x38f   : > { %8869 = vmatmul.mubr.f32.gmra.mrb[136].mxu0 %v17897_v12  ;;  %11582 = vmatprep.subr.bf16.mxu1 %v21670_v44  ;;  %v17919_v12 = vsel %vm5061_vm5, %v5654_v46, %v5655_v59  ;;  %22190 = vst [vmem:[#allocation94_spill] sm:$0xff] %v17925_v41  ;;  %v7173_v52 = vld [vmem:[%s20914_s7 + $0x818] sm:$0xff]  ;;  %v13170_v46 = vld [vmem:[#allocation2 + $0x108] sm:$0xff] }
 0x390   : > { %8873 = vmatprep.mubr.f32.mxu0 %v22187_v25  ;;  %22189 = vst [vmem:[#allocation98_spill] sm:$0xff] %v17919_v12  ;;  %v17931_v1 = vsel %vm5061_vm5, %v5655_v59, %v5657_v18  ;;  %v22193_v59 = vld [vmem:[#allocation56_spill] sm:$0xff]  ;;  %v22201_v25 = vld [vmem:[#allocation85_spill] sm:$0xff] }
 0x391   : > { %3973 = vmatmul.mubr.f32.gmra.mrb[78].mxu1 %v13166_v45  ;;  %22191 = vst [vmem:[#allocation182_spill] sm:$0xff] %v17931_v1  ;;  %v7174_v45 = vld [vmem:[%s20914_s7 + $0x820] sm:$0xff]  ;;  %v7175_v18 = vld [vmem:[%s20914_s7 + $0x828] sm:$0xff] }
 0x392   : > { %3977 = vmatprep.mubr.f32.mxu1 %v22091_v53  ;;  %11584 = vmatpush1.bf16.msra.mxu1 %v11583_v9  ;;  %v7170_v53 = vld [vmem:[%s20914_s7 + $0x800] sm:$0xff]  ;;  %v11925_v9 = vpack.c.bf16 %v7173_v52, %v7172_v37  ;;  %v22195_v37 = vld [vmem:[#allocation48_spill] sm:$0xff] }
 0x393   : > { %8874 = vmatmul.mubr.f32.gmra.mrb[138].mxu0 %v17912_v51  ;;  %11585 = vmatprep.subr.bf16.mxu1 %v21670_v44  ;;  %v11922_v43 = vpack.c.bf16 %v7171_v62, %v7170_v53  ;;  %v11928_v53 = vpack.c.bf16 %v7175_v18, %v7174_v45  ;;  %v7176_v62 = vld [vmem:[%s20914_s7 + $0x830] sm:$0xff]  ;;  %v13176_v45 = vld [vmem:[#allocation2 + $0x128] sm:$0xff]  ;;  %v22196_v18 = vld [vmem:[#allocation11_spill] sm:$0xff] }
 0x394   : > { %8878 = vmatprep.mubr.f32.mxu0 %v17919_v12  ;;  %v22200_v12 = vld [vmem:[#allocation83_spill] sm:$0xff] }
 0x395   : > { %3978 = vmatmul.mubr.f32.gmra.mrb[80].mxu1 %v13167_v23  ;;  %v22194_v23 = vld [vmem:[#allocation59_spill] sm:$0xff] }
 0x396   : > { %3982 = vmatprep.mubr.f32.mxu1 %v22097_v15  ;;  %v17946_v15 = vld [vmem:[#allocation3 + $0x48] sm:$0xff]  ;;  %v6950_v51 = vld [vmem:[%s20914_s7 + $0x120] sm:$0xff] }
 0x397   : > { %8879 = vmatmul.mubr.f32.gmra.mrb[140].mxu0 %v17925_v41 }
 0x398   : > { %8883 = vmatprep.mubr.f32.mxu0 %v17931_v1  ;;  %v22199_v1 = vld [vmem:[#allocation36_spill] sm:$0xff] }
 0x399   : > { %3983 = vmatmul.mubr.f32.gmra.mrb[82].mxu1 %v13168_v16  ;;  %v7177_v16 = vld [vmem:[%s20914_s7 + $0x838] sm:$0xff] }
 0x39a   : > { %3987 = vmatprep.mubr.f32.mxu1 %v22102_v31  ;;  %v17957_v31 = vld [vmem:[#allocation3 + $0x50] sm:$0xff]  ;;  %v11931_v52 = vpack.c.bf16 %v7177_v16, %v7176_v62  ;;  %v7181_v62 = vld [vmem:[%s20914_s7 + $0x858] sm:$0xff] }
 0x39b   : > { %8884 = vmatmul.mubr.f32.gmra.mrb[142].mxu0 %v17942_v61  ;;  %v13178_v16 = vld [vmem:[#allocation2 + $0x138] sm:$0xff]  ;;  %v7200_v61 = vld [vmem:[%s20914_s7 + $0x8f0] sm:$0xff] }
 0x39c   : > { %8953 = vmatprep.mubr.f32.mxu0 %v17946_v15 }
 0x39d   : > { %3988 = vmatmul.mubr.f32.gmra.mrb[84].mxu1 %v13170_v46  ;;  %v7178_v46 = vld [vmem:[%s20914_s7 + $0x840] sm:$0xff] }
 0x39e   : > { %3992 = vmatprep.mubr.f32.mxu1 %v22108_v54  ;;  %v17969_v54 = vld [vmem:[#allocation3 + $0x60] sm:$0xff] }
 0x39f   : > { %8954 = vmatmul.mubr.f32.vlgmr.msra.gmra.mrb[80].mxu0 %v22193_v59  ;;  %v13191_v59 = vld [vmem:[#allocation2 + $0x180] sm:$0xff] }
 0x3a0   : > { %11923 = vmatpush1.bf16.msra.mxu0 %v11922_v43  ;;  %8958 = vmatprep.mubr.f32.mxu0 %v17957_v31  ;;  %v13174_v43 = vld [vmem:[#allocation2 + $0x120] sm:$0xff] }
 0x3a1   : > { %11924 = vmatprep.subr.bf16.mxu0 %v21670_v44  ;;  %3993 = vmatmul.mubr.f32.gmra.mrb[86].mxu1 %v13172_v34 }
 0x3a2   : > { %3997 = vmatprep.mubr.f32.mxu1 %v22113_v0  ;;  %v17981_v0 = vld [vmem:[#allocation3 + $0x68] sm:$0xff] }
 0x3a3   : > { %8959 = vmatmul.mubr.f32.gmra.mrb[82].mxu0 %v22194_v23  ;;  %v22202_v23 = vld [vmem:[#allocation99_spill] sm:$0xff] }
 0x3a4   : > { %8963 = vmatprep.mubr.f32.mxu0 %v17969_v54  ;;  %11926 = vmatpush1.bf16.msra.mxu0 %v11925_v9  ;;  %v7179_v9 = vld [vmem:[%s20914_s7 + $0x848] sm:$0xff] }
 0x3a5   : > { %11927 = vmatprep.subr.bf16.mxu0 %v21670_v44  ;;  %3998 = vmatmul.mubr.f32.gmra.mrb[88].mxu1 %v13174_v43  ;;  %v11934_v34 = vpack.c.bf16 %v7179_v9, %v7178_v46  ;;  %v22197_v43 = vld [vmem:[#allocation13_spill] sm:$0xff]  ;;  %v7182_v46 = vld [vmem:[%s20914_s7 + $0x860] sm:$0xff]  ;;  %v7183_v9 = vld [vmem:[%s20914_s7 + $0x868] sm:$0xff] }
 0x3a6   : > { %4002 = vmatprep.mubr.f32.mxu1 %v22118_v55  ;;  %v17993_v55 = vld [vmem:[#allocation3 + $0x78] sm:$0xff] }
 0x3a7   : > { %8964 = vmatmul.mubr.f32.gmra.mrb[84].mxu0 %v22195_v37 }
 0x3a8   : > { %8968 = vmatprep.mubr.f32.mxu0 %v17981_v0  ;;  %11929 = vmatpush1.bf16.msra.mxu0 %v11928_v53  ;;  %v7180_v53 = vld [vmem:[%s20914_s7 + $0x850] sm:$0xff] }
 0x3a9   : > { %11930 = vmatprep.subr.bf16.mxu0 %v21670_v44  ;;  %4003 = vmatmul.mubr.f32.gmra.mrb[90].mxu1 %v13176_v45  ;;  %v13180_v45 = vld [vmem:[#allocation2 + $0x140] sm:$0xff] }
 0x3aa   : > { %4007 = vmatprep.mubr.f32.mxu1 %v22123_v2  ;;  %v18005_v2 = vld [vmem:[#allocation3 + $0x80] sm:$0xff] }
 0x3ab   : > { %8969 = vmatmul.mubr.f32.gmra.mrb[86].mxu0 %v22196_v18  ;;  %v6948_v18 = vld [vmem:[%s20914_s7 + $0x110] sm:$0xff] }
 0x3ac   : > { %8973 = vmatprep.mubr.f32.mxu0 %v17993_v55  ;;  %11932 = vmatpush1.bf16.msra.mxu0 %v11931_v52  ;;  %v11937_v52 = vpack.c.bf16 %v7181_v62, %v7180_v53  ;;  %v7184_v53 = vld [vmem:[%s20914_s7 + $0x870] sm:$0xff]  ;;  %v7185_v62 = vld [vmem:[%s20914_s7 + $0x878] sm:$0xff] }
 0x3ad   : > { %11933 = vmatprep.subr.bf16.mxu0 %v21670_v44  ;;  %4008 = vmatmul.mubr.f32.gmra.mrb[92].mxu1 %v13178_v16  ;;  %v22198_v16 = vld [vmem:[#allocation17_spill] sm:$0xff] }
 0x3ae   : > { %4012 = vmatprep.mubr.f32.mxu1 %v22127_v32  ;;  %v18017_v32 = vld [vmem:[#allocation3 + $0x90] sm:$0xff] }
 0x3af   : > { %8974 = vmatmul.mubr.f32.gmra.mrb[88].mxu0 %v22197_v43  ;;  %v22207_v43 = vld [vmem:[#allocation109_spill] sm:$0xff] }
 0x3b0   : > { %8978 = vmatprep.mubr.f32.mxu0 %v18005_v2  ;;  %11935 = vmatpush1.bf16.msra.mxu0 %v11934_v34  ;;  %v11940_v34 = vpack.c.bf16 %v7183_v9, %v7182_v46  ;;  %v7186_v46 = vld [vmem:[%s20914_s7 + $0x880] sm:$0xff]  ;;  %v7187_v9 = vld [vmem:[%s20914_s7 + $0x888] sm:$0xff] }
 0x3b1   : > { %11936 = vmatprep.subr.bf16.mxu0 %v21670_v44  ;;  %4013 = vmatmul.mubr.f32.gmra.mrb[94].mxu1 %v13180_v45  ;;  %v13182_v45 = vld [vmem:[#allocation2 + $0x150] sm:$0xff] }
 0x3b2   : > { %4017 = vmatprep.mubr.f32.mxu1 %v22132_v11  ;;  %v18029_v11 = vld [vmem:[#allocation3 + $0x98] sm:$0xff] }
 0x3b3   : > { %8979 = vmatmul.mubr.f32.gmra.mrb[90].mxu0 %v22198_v16  ;;  %v18110_v16 = vld [vmem:[#allocation3 + $0xe0] sm:$0xff] }
 0x3b4   : > { %8983 = vmatprep.mubr.f32.mxu0 %v18017_v32  ;;  %11938 = vmatpush1.bf16.msra.mxu0 %v11937_v52  ;;  %v11943_v52 = vpack.c.bf16 %v7185_v62, %v7184_v53  ;;  %v7188_v53 = vld [vmem:[%s20914_s7 + $0x890] sm:$0xff]  ;;  %v7189_v62 = vld [vmem:[%s20914_s7 + $0x898] sm:$0xff] }
 0x3b5   : > { %11939 = vmatprep.subr.bf16.mxu0 %v21670_v44  ;;  %4018 = vmatmul.mubr.f32.gmra.mrb[96].mxu1 %v13182_v45  ;;  %v13184_v45 = vld [vmem:[#allocation2 + $0x158] sm:$0xff] }
 0x3b6   : > { %4022 = vmatprep.mubr.f32.mxu1 %v22137_v19  ;;  %v18041_v19 = vld [vmem:[#allocation3 + $0xa8] sm:$0xff] }
 0x3b7   : > { %8984 = vmatmul.mubr.f32.gmra.mrb[92].mxu0 %v22199_v1  ;;  %v18093_v1 = vld [vmem:[#allocation3 + $0xd8] sm:$0xff] }
 0x3b8   : > { %8988 = vmatprep.mubr.f32.mxu0 %v18029_v11  ;;  %11941 = vmatpush1.bf16.msra.mxu0 %v11940_v34  ;;  %v11946_v34 = vpack.c.bf16 %v7187_v9, %v7186_v46  ;;  %v7190_v46 = vld [vmem:[%s20914_s7 + $0x8a0] sm:$0xff]  ;;  %v7191_v9 = vld [vmem:[%s20914_s7 + $0x8a8] sm:$0xff] }
 0x3b9   : > { %11942 = vmatprep.subr.bf16.mxu0 %v21670_v44  ;;  %4023 = vmatmul.mubr.f32.gmra.mrb[98].mxu1 %v13184_v45  ;;  %v13186_v45 = vld [vmem:[#allocation2 + $0x168] sm:$0xff] }
 0x3ba   : > { %4027 = vmatprep.mubr.f32.mxu1 %v22142_v33  ;;  %v18053_v33 = vld [vmem:[#allocation3 + $0xb0] sm:$0xff] }
 0x3bb   : > { %8989 = vmatmul.mubr.f32.gmra.mrb[94].mxu0 %v22200_v12  ;;  %v7194_v12 = vld [vmem:[%s20914_s7 + $0x8c0] sm:$0xff] }
 0x3bc   : > { %8993 = vmatprep.mubr.f32.mxu0 %v18041_v19  ;;  %11944 = vmatpush1.bf16.msra.mxu0 %v11943_v52  ;;  %v11949_v52 = vpack.c.bf16 %v7189_v62, %v7188_v53  ;;  %v11952_v62 = vpack.c.bf16 %v7191_v9, %v7190_v46 }
 0x3bd   : > { %11945 = vmatprep.subr.bf16.mxu0 %v21670_v44  ;;  %4028 = vmatmul.mubr.f32.gmra.mrb[100].mxu1 %v13186_v45  ;;  %v13188_v45 = vld [vmem:[#allocation2 + $0x170] sm:$0xff] }
 0x3be   : > { %4032 = vmatprep.mubr.f32.mxu1 %v22149_v50  ;;  %v18065_v50 = vld [vmem:[#allocation3 + $0xc0] sm:$0xff] }
 0x3bf   : > { %8994 = vmatmul.mubr.f32.gmra.mrb[96].mxu0 %v22201_v25  ;;  %v18082_v25 = vld [vmem:[#allocation3 + $0xc8] sm:$0xff] }
 0x3c0   : > { %8998 = vmatprep.mubr.f32.mxu0 %v18053_v33  ;;  %11947 = vmatpush1.bf16.msra.mxu0 %v11946_v34  ;;  %v18068_v34 = vld [vmem:[#allocation2] sm:$0xff] }
 0x3c1   : > { %11948 = vmatprep.subr.bf16.mxu0 %v21670_v44  ;;  %4033 = vmatmul.mubr.f32.gmra.mrb[102].mxu1 %v13188_v45  ;;  %v18071_v53 = vrot.slane %v18068_v34, 1  ;;  %v7192_v45 = vld [vmem:[%s20914_s7 + $0x8b0] sm:$0xff] }
 0x3c2   : > { %4037 = vmatprep.mubr.f32.mxu1 %v17626_v13  ;;  %v7193_v13 = vld [vmem:[%s20914_s7 + $0x8b8] sm:$0xff] }
 0x3c3   : > { %8999 = vmatmul.mubr.f32.gmra.mrb[98].mxu0 %v22202_v23  ;;  %22203 = vst [vmem:[#allocation28_spill] sm:$0xff] %v18071_v53  ;;  %v22204_v23 = vld [vmem:[#allocation102_spill] sm:$0xff]  ;;  %v11955_v9 = vpack.c.bf16 %v7193_v13, %v7192_v45  ;;  %v18099_v13 = vld [vmem:[#allocation3 + $0x10] sm:$0xf] }
 0x3c4   : > { %9003 = vmatprep.mubr.f32.mxu0 %v18065_v50  ;;  %11950 = vmatpush1.bf16.msra.mxu0 %v11949_v52  ;;  %v13193_v52 = vld [vmem:[#allocation2 + $0x1a8] sm:$0x3] }
 0x3c5   : > { %11951 = vmatprep.subr.bf16.mxu0 %v21670_v44  ;;  %4038 = vmatmul.mubr.f32.gmra.mrb[104].mxu1 %v13191_v59  ;;  %v2651_v46 = vrot.slane %v13193_v52, 1  ;;  %v7195_v59 = vld [vmem:[%s20914_s7 + $0x8c8] sm:$0xff]  ;;  %v7197_v52 = vld [vmem:[%s20914_s7 + $0x8d8] sm:$0xff] }
 0x3c6   : > { %4042 = vmatprep.mubr.f32.mxu1 %v17647_v35  ;;  %v22205_v35 = vld [vmem:[#allocation105_spill] sm:$0xff]  ;;  %v11958_v45 = vpack.c.bf16 %v7195_v59, %v7194_v12  ;;  %v4776_v12 = vrot.slane %v18099_v13, 1  ;;  %v6947_v59 = vld [vmem:[%s20914_s7 + $0x108] sm:$0xff] }
 0x3c7   : > { %9004 = vmatmul.mubr.f32.gmra.mrb[100].mxu0 %v22204_v23  ;;  %v13194_v23 = vld [vmem:[#allocation2 + $0x188] sm:$0xff] }
 0x3c8   : > { %9008 = vmatprep.mubr.f32.mxu0 %v18082_v25  ;;  %11953 = vmatpush1.bf16.msra.mxu0 %v11952_v62  ;;  %v2652_v62 = vsel %vm2210_vm2, %v18071_v53, %v2651_v46  ;;  %v6946_v46 = vld [vmem:[%s20914_s7 + $0x100] sm:$0xff] }
 0x3c9   : > { %11954 = vmatprep.subr.bf16.mxu0 %v21670_v44  ;;  %4043 = vmatmul.mubr.f32.gmra.mrb[106].mxu1 %v13194_v23  ;;  %v7196_v23 = vld [vmem:[%s20914_s7 + $0x8d0] sm:$0xff] }
 0x3ca   : > { %4047 = vmatprep.mubr.f32.mxu1 %v18071_v53 }
 0x3cb   : > { %9009 = vmatmul.mubr.f32.gmra.mrb[102].mxu0 %v22205_v35  ;;  %v22206_v35 = vld [vmem:[#allocation107_spill] sm:$0xff] }
 0x3cc   : > { %9013 = vmatprep.mubr.f32.mxu0 %v18093_v1  ;;  %11956 = vmatpush1.bf16.msra.mxu0 %v11955_v9  ;;  %v11961_v9 = vpack.c.bf16 %v7197_v52, %v7196_v23  ;;  %v4777_v23 = vsel %vm2210_vm2, %v18071_v53, %v4776_v12  ;;  %v11586_v52 = vpack.c.bf16 %v6947_v59, %v6946_v46  ;;  %v7201_v12 = vld [vmem:[%s20914_s7 + $0x8f8] sm:$0xff] }
 0x3cd   : > { %11957 = vmatprep.subr.bf16.mxu0 %v21670_v44  ;;  %4048 = vmatmul.mubr.f32.gmra.mrb[108].mxu1 %v18068_v34  ;;  %v22208_v46 = vld [vmem:[#allocation10_spill] sm:$0xff]  ;;  %v11967_v41 = vpack.c.bf16 %v7201_v12, %v7200_v61  ;;  %v22212_v12 = vld [vmem:[#allocation139_spill] sm:$0xff] }
 0x3ce   : > { %4052 = vmatprep.mubr.f32.mxu1 %v2652_v62  ;;  %v7199_v62 = vld [vmem:[%s20914_s7 + $0x8e8] sm:$0xff] }
 0x3cf   : > { %9014 = vmatmul.mubr.f32.gmra.mrb[104].mxu0 %v22206_v35  ;;  %v7198_v35 = vld [vmem:[%s20914_s7 + $0x8e0] sm:$0xff] }
 0x3d0   : > { %9018 = vmatprep.mubr.f32.mxu0 %v18110_v16  ;;  %11959 = vmatpush1.bf16.msra.mxu0 %v11958_v45  ;;  %v18129_v45 = vld [vmem:[#allocation3 + $0xf0] sm:$0xff]  ;;  %v11964_v37 = vpack.c.bf16 %v7199_v62, %v7198_v35  ;;  %v18153_v35 = vld [vmem:[#allocation3 + $0x28] sm:$0xf] }
 0x3d1   : > { %11960 = vmatprep.subr.bf16.mxu0 %v21670_v44  ;;  %4053 = vmatmul.mubr.f32.gmra.mrb[110].mxu1 %v18068_v34  ;;  %v4781_v59 = vrot.slane %v18153_v35, 1 }
 0x3d2   : > { %7378 = vmatprep.mubr.f32.mxu1 %v18071_v53 }
 0x3d3   : > { %9019 = vmatmul.mubr.f32.gmra.mrb[106].mxu0 %v22207_v43  ;;  %v6949_v43 = vld [vmem:[%s20914_s7 + $0x118] sm:$0xff]  ;;  %v18170_v61 = vsel %vm2210_vm2, %v18071_v53, %v4781_v59  ;;  %v6956_v59 = vld [vmem:[%s20914_s7 + $0x150] sm:$0xff] }
 0x3d4   : > { %9023 = vmatprep.mubr.f32.mxu0 %v18129_v45  ;;  %11962 = vmatpush1.bf16.msra.mxu0 %v11961_v9  ;;  %v18150_v9 = vld [vmem:[#allocation3 + $0xf8] sm:$0xff]  ;;  %v11589_v62 = vpack.c.bf16 %v6949_v43, %v6948_v18  ;;  %22210 = vst [vmem:[#allocation190_spill] sm:$0xff] %v18170_v61  ;;  %v6952_v18 = vld [vmem:[%s20914_s7 + $0x130] sm:$0xff]  ;;  %v6953_v43 = vld [vmem:[%s20914_s7 + $0x138] sm:$0xff] }
 0x3d5   : > { %11963 = vmatprep.subr.bf16.mxu0 %v21670_v44  ;;  %7379 = vmatmul.mubr.f32.vlgmr.msra.gmra.mrb[112].mxu1 %v18068_v34 }
 0x3d6   : > { %7383 = vmatprep.mubr.f32.mxu1 %v4777_v23  ;;  %11587 = vmatpush1.bf16.msra.mxu1 %v11586_v52  ;;  %v22209_v23 = vld [vmem:[#allocation27_spill] sm:$0xff]  ;;  %v6955_v52 = vld [vmem:[%s20914_s7 + $0x148] sm:$0xff] }
 0x3d7   : > { %9024 = vmatmul.mubr.f32.gmra.mrb[108].mxu0 %v22208_v46  ;;  %11588 = vmatprep.subr.bf16.mxu1 %v21670_v44  ;;  %v6951_v46 = vld [vmem:[%s20914_s7 + $0x128] sm:$0xff] }
 0x3d8   : > { %9028 = vmatprep.mubr.f32.mxu0 %v18150_v9  ;;  %11965 = vmatpush1.bf16.msra.mxu0 %v11964_v37  ;;  %v11592_v37 = vpack.c.bf16 %v6951_v46, %v6950_v51  ;;  %v11595_v51 = vpack.c.bf16 %v6953_v43, %v6952_v18  ;;  %v22213_v46 = vld [vmem:[#allocation66_spill] sm:$0xff]  ;;  %v22214_v18 = vld [vmem:[#allocation140_spill] sm:$0xff]  ;;  %v22215_v43 = vld [vmem:[#allocation155_spill] sm:$0xff] }
 0x3d9   : > { %11966 = vmatprep.subr.bf16.mxu0 %v21670_v44  ;;  %7384 = vmatmul.mubr.f32.gmra.mrb[114].mxu1 %v18068_v34 }
 0x3da   : > { %7388 = vmatprep.mubr.f32.mxu1 %v18071_v53  ;;  %11590 = vmatpush1.bf16.msra.mxu1 %v11589_v62  ;;  %v6957_v62 = vld [vmem:[%s20914_s7 + $0x158] sm:$0xff]  ;;  %v22236_v53 = vld [vmem:[#allocation65_spill] sm:$0xff] }
 0x3db   : > { %9029 = vmatmul.mubr.f32.gmra.mrb[110].mxu0 %v22209_v23  ;;  %11591 = vmatprep.subr.bf16.mxu1 %v21670_v44 }
 0x3dc   : > { %9033 = vmatprep.mubr.f32.mxu0 %v17720_v38  ;;  %11968 = vmatpush1.bf16.msra.mxu0 %v11967_v41  ;;  %v22211_v38 = vld [vmem:[#allocation18_spill] sm:$0xff]  ;;  %v6954_v41 = vld [vmem:[%s20914_s7 + $0x140] sm:$0xff] }
 0x3dd   : > { %11969 = vmatprep.subr.bf16.mxu0 %v21670_v44  ;;  %7389 = vmatmul.mubr.f32.gmra.mrb[116].mxu1 %v18068_v34 }
 0x3de   : > { %7393 = vmatprep.mubr.f32.mxu1 %v18170_v61  ;;  %11593 = vmatpush1.bf16.msra.mxu1 %v11592_v37  ;;  %v13200_v37 = vld [vmem:[#allocation3 + $0x30] sm:$0xff]  ;;  %v13203_v61 = vld [vmem:[#allocation3 + $0x1a0] sm:$0xff] }
 0x3df   : > { %9034 = vmatmul.mubr.f32.gmra.mrb[112].mxu0 %v22211_v38  ;;  %11594 = vmatprep.subr.bf16.mxu1 %v21670_v44 }
 0x3e0   : > { %9038 = vmatprep.mubr.f32.mxu0 %v17723_v63  ;;  %v11598_v63 = vpack.c.bf16 %v6955_v52, %v6954_v41  ;;  %v6959_v41 = vld [vmem:[%s20914_s7 + $0x168] sm:$0xff] }
 0x3e1   : > { %7394 = vmatmul.mubr.f32.gmra.mrb[118].mxu1 %v18068_v34  ;;  %v13201_v52 = vld [vmem:[#allocation3 + $0x38] sm:$0xff] }
 0x3e2   : > { %7398 = vmatprep.mubr.f32.mxu1 %v22213_v46  ;;  %11596 = vmatpush1.bf16.msra.mxu1 %v11595_v51  ;;  %v6958_v51 = vld [vmem:[%s20914_s7 + $0x160] sm:$0xff]  ;;  %v22217_v46 = vld [vmem:[#allocation70_spill] sm:$0xff] }
 0x3e3   : > { %9039 = vmatmul.mubr.f32.gmra.mrb[114].mxu0 %v22212_v12  ;;  %11597 = vmatprep.subr.bf16.mxu1 %v21670_v44  ;;  %v22271_v12 = vld [vmem:[#allocation92_spill] sm:$0xff] }
 0x3e4   : > { %9043 = vmatprep.mubr.f32.mxu0 %v17752_v6  ;;  %v11601_v6 = vpack.c.bf16 %v6957_v62, %v6956_v59  ;;  %v6961_v59 = vld [vmem:[%s20914_s7 + $0x178] sm:$0xff]  ;;  %v22218_v62 = vld [vmem:[#allocation33_spill] sm:$0xff] }
 0x3e5   : > { %7399 = vmatmul.mubr.f32.gmra.mrb[120].mxu1 %v13200_v37  ;;  %v22216_v37 = vld [vmem:[#allocation32_spill] sm:$0xff] }
 0x3e6   : > { %7403 = vmatprep.mubr.f32.mxu1 %v22215_v43  ;;  %11599 = vmatpush1.bf16.msra.mxu1 %v11598_v63  ;;  %v6960_v63 = vld [vmem:[%s20914_s7 + $0x170] sm:$0xff]  ;;  %v13202_v43 = vld [vmem:[#allocation3 + $0x198] sm:$0xff] }
 0x3e7   : > { %9044 = vmatmul.mubr.f32.gmra.mrb[116].mxu0 %v22214_v18  ;;  %11600 = vmatprep.subr.bf16.mxu1 %v21670_v44  ;;  %v6980_v18 = vld [vmem:[%s20914_s7 + $0x210] sm:$0xff] }
 0x3e8   : > { %9048 = vmatprep.mubr.f32.mxu0 %v17755_v28  ;;  %v11604_v28 = vpack.c.bf16 %v6959_v41, %v6958_v51  ;;  %v6963_v51 = vld [vmem:[%s20914_s7 + $0x188] sm:$0xff]  ;;  %v22221_v41 = vld [vmem:[#allocation159_spill] sm:$0xff] }
 0x3e9   : > { %7404 = vmatmul.mubr.f32.gmra.mrb[122].mxu1 %v13201_v52  ;;  %v22219_v52 = vld [vmem:[#allocation77_spill] sm:$0xff] }
 0x3ea   : > { %7408 = vmatprep.mubr.f32.mxu1 %v22217_v46  ;;  %11602 = vmatpush1.bf16.msra.mxu1 %v11601_v6  ;;  %v6962_v6 = vld [vmem:[%s20914_s7 + $0x180] sm:$0xff] }
 0x3eb   : > { %9049 = vmatmul.mubr.f32.gmra.mrb[118].mxu0 %v22216_v37  ;;  %11603 = vmatprep.subr.bf16.mxu1 %v21670_v44 }
 0x3ec   : > { %9053 = vmatprep.mubr.f32.mxu0 %v17784_v7  ;;  %v11607_v7 = vpack.c.bf16 %v6961_v59, %v6960_v63  ;;  %v6965_v63 = vld [vmem:[%s20914_s7 + $0x198] sm:$0xff]  ;;  %v22223_v59 = vld [vmem:[#allocation161_spill] sm:$0xff] }
 0x3ed   : > { %7409 = vmatmul.mubr.f32.gmra.mrb[124].mxu1 %v17946_v15  ;;  %v22220_v15 = vld [vmem:[#allocation9_spill] sm:$0xff] }
 0x3ee   : > { %7413 = vmatprep.mubr.f32.mxu1 %v22219_v52  ;;  %11605 = vmatpush1.bf16.msra.mxu1 %v11604_v28  ;;  %v6964_v28 = vld [vmem:[%s20914_s7 + $0x190] sm:$0xff] }
 0x3ef   : > { %9054 = vmatmul.mubr.f32.gmra.mrb[120].mxu0 %v22218_v62  ;;  %11606 = vmatprep.subr.bf16.mxu1 %v21670_v44 }
 0x3f0   : > { %9058 = vmatprep.mubr.f32.mxu0 %v17787_v60  ;;  %v11610_v60 = vpack.c.bf16 %v6963_v51, %v6962_v6  ;;  %v6967_v6 = vld [vmem:[%s20914_s7 + $0x1a8] sm:$0xff]  ;;  %v22225_v51 = vld [vmem:[#allocation166_spill] sm:$0xff] }
 0x3f1   : > { %7414 = vmatmul.mubr.f32.gmra.mrb[126].mxu1 %v17957_v31  ;;  %v22222_v31 = vld [vmem:[#allocation50_spill] sm:$0xff] }
 0x3f2   : > { %7418 = vmatprep.mubr.f32.mxu1 %v22221_v41  ;;  %11608 = vmatpush1.bf16.msra.mxu1 %v11607_v7  ;;  %v6966_v7 = vld [vmem:[%s20914_s7 + $0x1a0] sm:$0xff] }
 0x3f3   : > { %9059 = vmatmul.mubr.f32.gmra.mrb[122].mxu0 %v22220_v15  ;;  %11609 = vmatprep.subr.bf16.mxu1 %v21670_v44 }
 0x3f4   : > { %9063 = vmatprep.mubr.f32.mxu0 %v17816_v5  ;;  %v11613_v5 = vpack.c.bf16 %v6965_v63, %v6964_v28  ;;  %v6969_v28 = vld [vmem:[%s20914_s7 + $0x1b8] sm:$0xff] }
 0x3f5   : > { %7419 = vmatmul.mubr.f32.gmra.mrb[128].mxu1 %v17969_v54  ;;  %v22224_v54 = vld [vmem:[#allocation52_spill] sm:$0xff]  ;;  %v22227_v63 = vld [vmem:[#allocation170_spill] sm:$0xff] }
 0x3f6   : > { %7423 = vmatprep.mubr.f32.mxu1 %v22223_v59  ;;  %11611 = vmatpush1.bf16.msra.mxu1 %v11610_v60  ;;  %v6968_v60 = vld [vmem:[%s20914_s7 + $0x1b0] sm:$0xff] }
 0x3f7   : > { %9064 = vmatmul.mubr.f32.gmra.mrb[124].mxu0 %v22222_v31  ;;  %11612 = vmatprep.subr.bf16.mxu1 %v21670_v44  ;;  %v6978_v31 = vld [vmem:[%s20914_s7 + $0x200] sm:$0xff] }
 0x3f8   : > { %9068 = vmatprep.mubr.f32.mxu0 %v17819_v26  ;;  %v11616_v26 = vpack.c.bf16 %v6967_v6, %v6966_v7  ;;  %v6971_v7 = vld [vmem:[%s20914_s7 + $0x1c8] sm:$0xff]  ;;  %v22229_v6 = vld [vmem:[#allocation173_spill] sm:$0xff] }
 0x3f9   : > { %7424 = vmatmul.mubr.f32.gmra.mrb[130].mxu1 %v17981_v0  ;;  %v22226_v0 = vld [vmem:[#allocation53_spill] sm:$0xff] }
 0x3fa   : > { %7428 = vmatprep.mubr.f32.mxu1 %v22225_v51  ;;  %11614 = vmatpush1.bf16.msra.mxu1 %v11613_v5  ;;  %v6970_v5 = vld [vmem:[%s20914_s7 + $0x1c0] sm:$0xff] }
 0x3fb   : > { %9069 = vmatmul.mubr.f32.gmra.mrb[126].mxu0 %v22224_v54  ;;  %11615 = vmatprep.subr.bf16.mxu1 %v21670_v44  ;;  %v13213_v54 = vld [vmem:[#allocation3 + $0x168] sm:$0xff] }
 0x3fc   : > { %9073 = vmatprep.mubr.f32.mxu0 %v17848_v8  ;;  %v11619_v8 = vpack.c.bf16 %v6969_v28, %v6968_v60  ;;  %v6973_v60 = vld [vmem:[%s20914_s7 + $0x1d8] sm:$0xff]  ;;  %v22231_v28 = vld [vmem:[#allocation177_spill] sm:$0xff] }
 0x3fd   : > { %7429 = vmatmul.mubr.f32.gmra.mrb[132].mxu1 %v17993_v55  ;;  %v22228_v55 = vld [vmem:[#allocation55_spill] sm:$0xff] }
 0x3fe   : > { %7433 = vmatprep.mubr.f32.mxu1 %v22227_v63  ;;  %11617 = vmatpush1.bf16.msra.mxu1 %v11616_v26  ;;  %v6972_v26 = vld [vmem:[%s20914_s7 + $0x1d0] sm:$0xff] }
 0x3ff   : > { %9074 = vmatmul.mubr.f32.gmra.mrb[128].mxu0 %v22226_v0  ;;  %11618 = vmatprep.subr.bf16.mxu1 %v21670_v44 }
 0x400   : > { %9078 = vmatprep.mubr.f32.mxu0 %v17851_v47  ;;  %v11622_v47 = vpack.c.bf16 %v6971_v7, %v6970_v5  ;;  %v6975_v5 = vld [vmem:[%s20914_s7 + $0x1e8] sm:$0xff]  ;;  %v22233_v7 = vld [vmem:[#allocation181_spill] sm:$0xff] }
 0x401   : > { %7434 = vmatmul.mubr.f32.gmra.mrb[134].mxu1 %v18005_v2  ;;  %v22230_v2 = vld [vmem:[#allocation57_spill] sm:$0xff] }
 0x402   : > { %7438 = vmatprep.mubr.f32.mxu1 %v22229_v6  ;;  %11620 = vmatpush1.bf16.msra.mxu1 %v11619_v8  ;;  %v6974_v8 = vld [vmem:[%s20914_s7 + $0x1e0] sm:$0xff] }
 0x403   : > { %9079 = vmatmul.mubr.f32.gmra.mrb[130].mxu0 %v22228_v55  ;;  %11621 = vmatprep.subr.bf16.mxu1 %v21670_v44  ;;  %v7226_v55 = vld [vmem:[%s20914_s7 + $0x9c0] sm:$0xff] }
 0x404   : > { %9083 = vmatprep.mubr.f32.mxu0 %v17880_v39  ;;  %v11625_v39 = vpack.c.bf16 %v6973_v60, %v6972_v26  ;;  %v6977_v26 = vld [vmem:[%s20914_s7 + $0x1f8] sm:$0xff]  ;;  %v22235_v60 = vld [vmem:[#allocation185_spill] sm:$0xff] }
 0x405   : > { %7439 = vmatmul.mubr.f32.gmra.mrb[136].mxu1 %v18017_v32  ;;  %v22232_v32 = vld [vmem:[#allocation60_spill] sm:$0xff] }
 0x406   : > { %7443 = vmatprep.mubr.f32.mxu1 %v22231_v28  ;;  %11623 = vmatpush1.bf16.msra.mxu1 %v11622_v47  ;;  %v6976_v47 = vld [vmem:[%s20914_s7 + $0x1f0] sm:$0xff] }
 0x407   : > { %9084 = vmatmul.mubr.f32.gmra.mrb[132].mxu0 %v22230_v2  ;;  %11624 = vmatprep.subr.bf16.mxu1 %v21670_v44 }
 0x408   : > { %9088 = vmatprep.mubr.f32.mxu0 %v17883_v10  ;;  %v11628_v10 = vpack.c.bf16 %v6975_v5, %v6974_v8  ;;  %v5693_v8 = vrot.slane %v13202_v43, 4  ;;  %v5694_v5 = vrot.slane %v13203_v61, 4 }
 0x409   : > { %7444 = vmatmul.mubr.f32.gmra.mrb[138].mxu1 %v18029_v11  ;;  %v22234_v11 = vld [vmem:[#allocation63_spill] sm:$0xff] }
 0x40a   : > { %7448 = vmatprep.mubr.f32.mxu1 %v22233_v7  ;;  %11626 = vmatpush1.bf16.msra.mxu1 %v11625_v39  ;;  %v11631_v39 = vpack.c.bf16 %v6977_v26, %v6976_v47  ;;  %v7204_v47 = vld [vmem:[%s20914_s7 + $0x910] sm:$0xff]  ;;  %v7205_v26 = vld [vmem:[%s20914_s7 + $0x918] sm:$0xff] }
 0x40b   : > { %9089 = vmatmul.mubr.f32.gmra.mrb[134].mxu0 %v22232_v32  ;;  %11627 = vmatprep.subr.bf16.mxu1 %v21670_v44  ;;  %v22237_v32 = vld [vmem:[#allocation188_spill] sm:$0xff] }
 0x40c   : > { %9093 = vmatprep.mubr.f32.mxu0 %v13202_v43  ;;  %v7203_v43 = vld [vmem:[%s20914_s7 + $0x908] sm:$0xff] }
 0x40d   : > { %7449 = vmatmul.mubr.f32.gmra.mrb[140].mxu1 %v18041_v19  ;;  %v18318_v19 = vsel %vm492_vm0, %v5693_v8, %v5694_v5  ;;  %v7209_v8 = vld [vmem:[%s20914_s7 + $0x938] sm:$0xff] }
 0x40e   : > { %7453 = vmatprep.mubr.f32.mxu1 %v22235_v60  ;;  %11629 = vmatpush1.bf16.msra.mxu1 %v11628_v10  ;;  %22238 = vst [vmem:[#allocation194_spill] sm:$0xff] %v18318_v19 }
 0x40f   : > { %9094 = vmatmul.mubr.f32.gmra.mrb[136].mxu0 %v22234_v11  ;;  %11630 = vmatprep.subr.bf16.mxu1 %v21670_v44  ;;  %v13204_v11 = vld [vmem:[#allocation3 + $0x1a8] sm:$0xf] }
 0x410   : > { %9098 = vmatprep.mubr.f32.mxu0 %v13203_v61  ;;  %v5696_v2 = vrot.slane %v13204_v11, 4  ;;  %v22239_v61 = vld [vmem:[#allocation193_spill] sm:$0xff]  ;;  %v7207_v11 = vld [vmem:[%s20914_s7 + $0x928] sm:$0xff] }
 0x411   : > { %7454 = vmatmul.mubr.f32.gmra.mrb[142].mxu1 %v18053_v33  ;;  %v7202_v33 = vld [vmem:[%s20914_s7 + $0x900] sm:$0xff] }
 0x412   : > { %7458 = vmatprep.mubr.f32.mxu1 %v22237_v32  ;;  %11632 = vmatpush1.bf16.msra.mxu1 %v11631_v39  ;;  %v18332_v10 = vsel %vm492_vm0, %v5694_v5, %v5696_v2  ;;  %v7206_v2 = vld [vmem:[%s20914_s7 + $0x920] sm:$0xff]  ;;  %v7208_v39 = vld [vmem:[%s20914_s7 + $0x930] sm:$0xff] }
 0x413   : > { %9099 = vmatmul.mubr.f32.gmra.mrb[138].mxu0 %v22236_v53  ;;  %11633 = vmatprep.subr.bf16.mxu1 %v21670_v44  ;;  %22240 = vst [vmem:[#allocation186_spill] sm:$0xff] %v18332_v10  ;;  %v7224_v53 = vld [vmem:[%s20914_s7 + $0x9b0] sm:$0xff] }
 0x414   : > { %9103 = vmatprep.mubr.f32.mxu0 %v18068_v34 }
 0x415   : > { %7459 = vmatmul.mubr.f32.gmra.mrb[144].mxu1 %v18065_v50  ;;  %v11970_v50 = vpack.c.bf16 %v7203_v43, %v7202_v33  ;;  %v7210_v33 = vld [vmem:[%s20914_s7 + $0x940] sm:$0xff]  ;;  %v7211_v43 = vld [vmem:[%s20914_s7 + $0x948] sm:$0xff] }
 0x416   : > { %7463 = vmatprep.mubr.f32.mxu1 %v22239_v61 }
 0x417   : > { %9104 = vmatmul.mubr.f32.gmra.mrb[140].mxu0 %v18318_v19 }
 0x418   : > { %9108 = vmatprep.mubr.f32.mxu0 %v18068_v34 }
 0x419   : > { %7464 = vmatmul.mubr.f32.gmra.mrb[146].mxu1 %v18082_v25  ;;  %v11973_v25 = vpack.c.bf16 %v7205_v26, %v7204_v47  ;;  %v11982_v26 = vpack.c.bf16 %v7211_v43, %v7210_v33  ;;  %v7214_v43 = vld [vmem:[%s20914_s7 + $0x960] sm:$0xff] }
 0x41a   : > { %7468 = vmatprep.mubr.f32.mxu1 %v17123_v29 }
 0x41b   : > { %9109 = vmatmul.mubr.f32.gmra.mrb[142].mxu0 %v18332_v10  ;;  %v7222_v10 = vld [vmem:[%s20914_s7 + $0x9a0] sm:$0xff] }
 0x41c   : > { %9178 = vmatprep.mubr.f32.mxu0 %v17469_v3 }
 0x41d   : > { %7469 = vmatmul.mubr.f32.gmra.mrb[148].mxu1 %v18093_v1  ;;  %v11976_v1 = vpack.c.bf16 %v7207_v11, %v7206_v2  ;;  %v7212_v2 = vld [vmem:[%s20914_s7 + $0x950] sm:$0xff]  ;;  %v7213_v11 = vld [vmem:[%s20914_s7 + $0x958] sm:$0xff] }
 0x41e   : > { %7473 = vmatprep.mubr.f32.mxu1 %v17148_v40 }
 0x41f   : > { %9179 = vmatmul.mubr.f32.vlgmr.msra.gmra.mrb[80].mxu0 %v22217_v46  ;;  %v13207_v46 = vld [vmem:[#allocation3 + $0x120] sm:$0xff] }
 0x420   : > { %11971 = vmatpush1.bf16.msra.mxu0 %v11970_v50  ;;  %9183 = vmatprep.mubr.f32.mxu0 %v17484_v56 }
 0x421   : > { %11972 = vmatprep.subr.bf16.mxu0 %v21670_v44  ;;  %7474 = vmatmul.mubr.f32.gmra.mrb[150].mxu1 %v18110_v16  ;;  %v11979_v16 = vpack.c.bf16 %v7209_v8, %v7208_v39  ;;  %v13205_v8 = vld [vmem:[#allocation3 + $0x108] sm:$0xff] }
 0x422   : > { %7478 = vmatprep.mubr.f32.mxu1 %v17171_v48 }
 0x423   : > { %9184 = vmatmul.mubr.f32.gmra.mrb[82].mxu0 %v22219_v52  ;;  %v7216_v52 = vld [vmem:[%s20914_s7 + $0x970] sm:$0xff] }
 0x424   : > { %9188 = vmatprep.mubr.f32.mxu0 %v17500_v36  ;;  %11974 = vmatpush1.bf16.msra.mxu0 %v11973_v25 }
 0x425   : > { %11975 = vmatprep.subr.bf16.mxu0 %v21670_v44  ;;  %7479 = vmatmul.mubr.f32.gmra.mrb[152].mxu1 %v18129_v45  ;;  %v22241_v45 = vld [vmem:[#allocation165_spill] sm:$0xff] }
 0x426   : > { %7483 = vmatprep.mubr.f32.mxu1 %v17193_v30 }
 0x427   : > { %9189 = vmatmul.mubr.f32.gmra.mrb[84].mxu0 %v22221_v41  ;;  %v7220_v41 = vld [vmem:[%s20914_s7 + $0x990] sm:$0xff] }
 0x428   : > { %9193 = vmatprep.mubr.f32.mxu0 %v17515_v14  ;;  %11977 = vmatpush1.bf16.msra.mxu0 %v11976_v1  ;;  %v3899_v5 = vpop.f32.mrb[48].mxu1 }
 0x429   : > { %11978 = vmatprep.subr.bf16.mxu0 %v21670_v44  ;;  %v18378_v50 = vadd.f32 %v22241_v45, %v3899_v5  ;;  %v3901_v47 = vpop.f32.mrb[49].mxu1  ;;  %7484 = vmatmul.mubr.f32.gmra.mrb[154].mxu1 %v18150_v9  ;;  %v22242_v9 = vld [vmem:[#allocation164_spill] sm:$0xff]  ;;  %v11985_v5 = vpack.c.bf16 %v7213_v11, %v7212_v2 }
 0x42a   : > { %7488 = vmatprep.mubr.f32.mxu1 %v17215_v27  ;;  %v7215_v45 = vld [vmem:[%s20914_s7 + $0x968] sm:$0xff]  ;;  %v22245_v47 = vld [vmem:[#allocation169_spill] sm:$0xff] }
 0x42b   : > { %9194 = vmatmul.mubr.f32.gmra.mrb[86].mxu0 %v22223_v59  ;;  %v22248_v2 = vld [vmem:[#allocation156_spill] sm:$0xff]  ;;  %v11988_v11 = vpack.c.bf16 %v7215_v45, %v7214_v43  ;;  %v22251_v43 = vld [vmem:[#allocation47_spill] sm:$0xff] }
 0x42c   : > { %9198 = vmatprep.mubr.f32.mxu0 %v17531_v24  ;;  %11980 = vmatpush1.bf16.msra.mxu0 %v11979_v16  ;;  %v3904_v25 = vpop.f32.mrb[50].mxu1  ;;  %v22244_v16 = vld [vmem:[#allocation80_spill] sm:$0xff] }
 0x42d   : > { %11981 = vmatprep.subr.bf16.mxu0 %v21670_v44  ;;  %v18392_v1 = vadd.f32 %v22242_v9, %v3904_v25  ;;  %v3906_v39 = vpop.f32.mrb[51].mxu1  ;;  %7489 = vmatmul.mubr.f32.gmra.mrb[156].mxu1 %v13205_v8 }
 0x42e   : > { %7493 = vmatprep.mubr.f32.mxu1 %v17234_v49  ;;  %v13206_v39 = vld [vmem:[#allocation3 + $0x110] sm:$0xff] }
 0x42f   : > { %22243 = vst [vmem:[#allocation104_spill] sm:$0xff] %v18392_v1  ;;  %9199 = vmatmul.mubr.f32.gmra.mrb[88].mxu0 %v22225_v51  ;;  %v7218_v51 = vld [vmem:[%s20914_s7 + $0x980] sm:$0xff] }
 0x430   : > { %9203 = vmatprep.mubr.f32.mxu0 %v22244_v16  ;;  %11983 = vmatpush1.bf16.msra.mxu0 %v11982_v26  ;;  %v3909_v33 = vpop.f32.mrb[52].mxu1  ;;  %v22247_v26 = vld [vmem:[#allocation209_spill] sm:$0xff] }
 0x431   : > { %11984 = vmatprep.subr.bf16.mxu0 %v21670_v44  ;;  %v18405_v25 = vadd.f32 %v22245_v47, %v3909_v33  ;;  %v3911_v9 = vpop.f32.mrb[53].mxu1  ;;  %7494 = vmatmul.mubr.f32.gmra.mrb[158].mxu1 %v13206_v39  ;;  %v7217_v33 = vld [vmem:[%s20914_s7 + $0x978] sm:$0xff]  ;;  %v22249_v47 = vld [vmem:[#allocation168_spill] sm:$0xff] }
 0x432   : > { %7498 = vmatprep.mubr.f32.mxu1 %v22247_v26  ;;  %v11991_v45 = vpack.c.bf16 %v7217_v33, %v7216_v52  ;;  %v22253_v52 = vld [vmem:[#allocation68_spill] sm:$0xff] }
 0x433   : > { %22246 = vst [vmem:[#allocation95_spill] sm:$0xff] %v18405_v25  ;;  %9204 = vmatmul.mubr.f32.gmra.mrb[90].mxu0 %v22227_v63 }
 0x434   : > { %9208 = vmatprep.mubr.f32.mxu0 %v22248_v2  ;;  %11986 = vmatpush1.bf16.msra.mxu0 %v11985_v5  ;;  %v3914_v8 = vpop.f32.mrb[54].mxu1  ;;  %v22250_v5 = vld [vmem:[#allocation211_spill] sm:$0xff] }
 0x435   : > { %11987 = vmatprep.subr.bf16.mxu0 %v21670_v44  ;;  %v18418_v9 = vadd.f32 %v22249_v47, %v3914_v8  ;;  %v3916_v39 = vpop.f32.mrb[55].mxu1  ;;  %7499 = vmatmul.mubr.f32.gmra.mrb[160].mxu1 %v13207_v46  ;;  %v7219_v8 = vld [vmem:[%s20914_s7 + $0x988] sm:$0xff]  ;;  %v22252_v46 = vld [vmem:[#allocation87_spill] sm:$0xff] }
 0x436   : > { %7503 = vmatprep.mubr.f32.mxu1 %v22250_v5  ;;  %v11994_v33 = vpack.c.bf16 %v7219_v8, %v7218_v51  ;;  %v22256_v51 = vld [vmem:[#allocation74_spill] sm:$0xff] }
 0x437   : > { %9209 = vmatmul.mubr.f32.gmra.mrb[92].mxu0 %v22229_v6  ;;  %v13208_v6 = vld [vmem:[#allocation3 + $0x128] sm:$0xff] }
 0x438   : > { %9213 = vmatprep.mubr.f32.mxu0 %v22251_v43  ;;  %11989 = vmatpush1.bf16.msra.mxu0 %v11988_v11  ;;  %v3919_v63 = vpop.f32.mrb[56].mxu1  ;;  %v22254_v11 = vld [vmem:[#allocation81_spill] sm:$0xff] }
 0x439   : > { %11990 = vmatprep.subr.bf16.mxu0 %v21670_v44  ;;  %v18431_v47 = vadd.f32 %v22252_v46, %v3919_v63  ;;  %v3921_v39 = vpop.f32.mrb[57].mxu1  ;;  %7504 = vmatmul.mubr.f32.gmra.mrb[162].mxu1 %v13208_v6  ;;  %v7221_v63 = vld [vmem:[%s20914_s7 + $0x998] sm:$0xff]  ;;  %v22255_v6 = vld [vmem:[#allocation172_spill] sm:$0xff] }
 0x43a   : > { %7508 = vmatprep.mubr.f32.mxu1 %v22253_v52 }
 0x43b   : > { %9214 = vmatmul.mubr.f32.gmra.mrb[94].mxu0 %v22231_v28  ;;  %v13209_v28 = vld [vmem:[#allocation3 + $0x138] sm:$0xff] }
 0x43c   : > { %9218 = vmatprep.mubr.f32.mxu0 %v22254_v11  ;;  %11992 = vmatpush1.bf16.msra.mxu0 %v11991_v45  ;;  %v3924_v59 = vpop.f32.mrb[58].mxu1  ;;  %v11997_v45 = vpack.c.bf16 %v7221_v63, %v7220_v41  ;;  %v22258_v41 = vld [vmem:[#allocation79_spill] sm:$0xff] }
 0x43d   : > { %11993 = vmatprep.subr.bf16.mxu0 %v21670_v44  ;;  %v18444_v46 = vadd.f32 %v22255_v6, %v3924_v59  ;;  %v3926_v39 = vpop.f32.mrb[59].mxu1  ;;  %7509 = vmatmul.mubr.f32.gmra.mrb[164].mxu1 %v13209_v28  ;;  %v7223_v59 = vld [vmem:[%s20914_s7 + $0x9a8] sm:$0xff] }
 0x43e   : > { %7513 = vmatprep.mubr.f32.mxu1 %v22256_v51  ;;  %v22257_v28 = vld [vmem:[#allocation176_spill] sm:$0xff]  ;;  %v12000_v63 = vpack.c.bf16 %v7223_v59, %v7222_v10  ;;  %v22261_v10 = vld [vmem:[#allocation82_spill] sm:$0xff] }
 0x43f   : > { %9219 = vmatmul.mubr.f32.gmra.mrb[96].mxu0 %v22233_v7  ;;  %v13210_v7 = vld [vmem:[#allocation3 + $0x140] sm:$0xff] }
 0x440   : > { %9223 = vmatprep.mubr.f32.mxu0 %v17609_v20  ;;  %11995 = vmatpush1.bf16.msra.mxu0 %v11994_v33  ;;  %v3929_v8 = vpop.f32.mrb[60].mxu1  ;;  %v22259_v33 = vld [vmem:[#allocation158_spill] sm:$0xff] }
 0x441   : > { %11996 = vmatprep.subr.bf16.mxu0 %v21670_v44  ;;  %v18457_v6 = vadd.f32 %v22257_v28, %v3929_v8  ;;  %v3931_v39 = vpop.f32.mrb[61].mxu1  ;;  %7514 = vmatmul.mubr.f32.gmra.mrb[166].mxu1 %v13210_v7  ;;  %v7225_v8 = vld [vmem:[%s20914_s7 + $0x9b8] sm:$0xff]  ;;  %v22260_v7 = vld [vmem:[#allocation175_spill] sm:$0xff] }
 0x442   : > { %7518 = vmatprep.mubr.f32.mxu1 %v22258_v41 }
 0x443   : > { %9224 = vmatmul.mubr.f32.gmra.mrb[98].mxu0 %v22235_v60  ;;  %v13211_v60 = vld [vmem:[#allocation3 + $0x150] sm:$0xff] }
 0x444   : > { %9228 = vmatprep.mubr.f32.mxu0 %v22259_v33  ;;  %11998 = vmatpush1.bf16.msra.mxu0 %v11997_v45  ;;  %v3934_v19 = vpop.f32.mrb[62].mxu1  ;;  %v12003_v45 = vpack.c.bf16 %v7225_v8, %v7224_v53  ;;  %v22264_v53 = vld [vmem:[#allocation88_spill] sm:$0xff] }
 0x445   : > { %11999 = vmatprep.subr.bf16.mxu0 %v21670_v44  ;;  %v18470_v28 = vadd.f32 %v22260_v7, %v3934_v19  ;;  %v3936_v39 = vpop.f32.mrb[63].mxu1  ;;  %7519 = vmatmul.mubr.f32.gmra.mrb[168].mxu1 %v13211_v60  ;;  %v7227_v19 = vld [vmem:[%s20914_s7 + $0x9c8] sm:$0xff]  ;;  %v22262_v60 = vld [vmem:[#allocation90_spill] sm:$0xff] }
 0x446   : > { %7523 = vmatprep.mubr.f32.mxu1 %v22261_v10  ;;  %v12006_v8 = vpack.c.bf16 %v7227_v19, %v7226_v55  ;;  %v22266_v55 = vld [vmem:[#allocation91_spill] sm:$0xff]  ;;  %v5065_v19 = vrot.slane %v18099_v13, 3 }
 0x447   : > { %9229 = vmatmul.mubr.f32.gmra.mrb[100].mxu0 %v22237_v32  ;;  %v13212_v32 = vld [vmem:[#allocation3 + $0x158] sm:$0xff] }
 0x448   : > { %9233 = vmatprep.mubr.f32.mxu0 %v17650_v22  ;;  %12001 = vmatpush1.bf16.msra.mxu0 %v12000_v63  ;;  %v3939_v59 = vpop.f32.mrb[64].mxu1  ;;  %v5062_v63 = vrot.slane %v18068_v34, 3 }
 0x449   : > { %12002 = vmatprep.subr.bf16.mxu0 %v21670_v44  ;;  %v18483_v7 = vadd.f32 %v22262_v60, %v3939_v59  ;;  %v3941_v39 = vpop.f32.mrb[65].mxu1  ;;  %7524 = vmatmul.mubr.f32.gmra.mrb[170].mxu1 %v13212_v32  ;;  %v7228_v59 = vld [vmem:[%s20914_s7 + $0x9d0] sm:$0xff]  ;;  %v7229_v32 = vld [vmem:[%s20914_s7 + $0x9d8] sm:$0xff]  ;;  %v22265_v60 = vld [vmem:[#allocation180_spill] sm:$0xff] }
 0x44a   : > { %7528 = vmatprep.mubr.f32.mxu1 %v22264_v53  ;;  %v5066_v62 = vsel %vm5061_vm5, %v5062_v63, %v5065_v19  ;;  %v22270_v19 = vld [vmem:[#allocation183_spill] sm:$0xff] }
 0x44b   : > { %22263 = vst [vmem:[#allocation189_spill] sm:$0xff] %v18483_v7  ;;  %9234 = vmatmul.mubr.f32.gmra.mrb[102].mxu0 %v22239_v61 }
 0x44c   : > { %9238 = vmatprep.mubr.f32.mxu0 %v17672_v58  ;;  %12004 = vmatpush1.bf16.msra.mxu0 %v12003_v45  ;;  %v3944_v0 = vpop.f32.mrb[66].mxu1  ;;  %v18503_v45 = vrot.slane %v18068_v34, 2  ;;  %v7230_v34 = vld [vmem:[%s20914_s7 + $0x9e0] sm:$0xff] }
 0x44d   : > { %12005 = vmatprep.subr.bf16.mxu0 %v21670_v44  ;;  %v18497_v39 = vadd.f32 %v22265_v60, %v3944_v0  ;;  %v3946_v61 = vpop.f32.mrb[67].mxu1  ;;  %7529 = vmatmul.mubr.f32.gmra.mrb[172].mxu1 %v13213_v54  ;;  %v12009_v0 = vpack.c.bf16 %v7229_v32, %v7228_v59  ;;  %v6979_v54 = vld [vmem:[%s20914_s7 + $0x208] sm:$0xff]  ;;  %v13214_v59 = vld [vmem:[#allocation3 + $0x170] sm:$0xff]  ;;  %v4920_v32 = vrot.slane %v18099_v13, 2  ;;  %v7232_v13 = vld [vmem:[%s20914_s7 + $0x9f0] sm:$0xff] }
 0x44e   : > { %7533 = vmatprep.mubr.f32.mxu1 %v22266_v55  ;;  %22267 = vst [vmem:[#allocation37_spill] sm:$0xff] %v18503_v45  ;;  %v7231_v60 = vld [vmem:[%s20914_s7 + $0x9e8] sm:$0xff]  ;;  %v11634_v37 = vpack.c.bf16 %v6979_v54, %v6978_v31  ;;  %v7233_v31 = vld [vmem:[%s20914_s7 + $0x9f8] sm:$0xff] }
 0x44f   : > { %9239 = vmatmul.mubr.f32.gmra.mrb[104].mxu0 %v17123_v29  ;;  %v22268_v29 = vld [vmem:[#allocation184_spill] sm:$0xff] }
 0x450   : > { %9243 = vmatprep.mubr.f32.mxu0 %v17688_v4  ;;  %12007 = vmatpush1.bf16.msra.mxu0 %v12006_v8  ;;  %v3949_v61 = vpop.f32.mrb[68].mxu1 }
 0x451   : > { %12008 = vmatprep.subr.bf16.mxu0 %v21670_v44  ;;  %v18520_v15 = vadd.f32 %v22268_v29, %v3949_v61  ;;  %v3951_v8 = vpop.f32.mrb[69].mxu1  ;;  %7534 = vmatmul.mubr.f32.gmra.mrb[174].mxu1 %v13214_v59  ;;  %v6981_v29 = vld [vmem:[%s20914_s7 + $0x218] sm:$0xff]  ;;  %v12012_v61 = vpack.c.bf16 %v7231_v60, %v7230_v34  ;;  %v4355_v60 = vmul.f32 %v18378_v50, %v18378_v50 }
 0x452   : > { %7603 = vmatprep.mubr.f32.mxu1 %v5062_v63  ;;  %v4356_v63 = vmul.f32 %v18392_v1, %v18392_v1  ;;  %v11637_v34 = vpack.c.bf16 %v6981_v29, %v6980_v18  ;;  %v12015_v18 = vpack.c.bf16 %v7233_v31, %v7232_v13  ;;  %v22273_v31 = vld [vmem:[#allocation40_spill] sm:$0xff] }
 0x453   : > { %22269 = vst [vmem:[#allocation165_spill] sm:$0xff] %v18520_v15  ;;  %9244 = vmatmul.mubr.f32.gmra.mrb[106].mxu0 %v17148_v40  ;;  %v4286_v40 = vsel %vm1057_vm4, %v18392_v1, 0.0 }
 0x454   : > { %9248 = vmatprep.mubr.f32.mxu0 %v17704_v21  ;;  %12010 = vmatpush1.bf16.msra.mxu0 %v12009_v0  ;;  %v3954_v8 = vpop.f32.mrb[70].mxu1  ;;  %v4921_v0 = vsel %vm2355_vm3, %v18503_v45, %v4920_v32  ;;  %v4285_v32 = vsel %vm1057_vm4, %v18378_v50, 0.0 }
 0x455   : > { %12011 = vmatprep.subr.bf16.mxu0 %v21670_v44  ;;  %v18542_v54 = vadd.f32 %v22270_v19, %v3954_v8  ;;  %v3956_v59 = vpop.f32.mrb[71].mxu1  ;;  %7604 = vmatmul.mubr.f32.vlgmr.msra.gmra.mrb[112].mxu1 %v18503_v45  ;;  %v4357_v8 = vmul.f32 %v18405_v25, %v18405_v25  ;;  %v6982_v19 = vld [vmem:[%s20914_s7 + $0x220] sm:$0xff]  ;;  %v4287_v13 = vadd.f32 %v4286_v40, %v4285_v32 }
 0x456   : > { %7608 = vmatprep.mubr.f32.mxu1 %v5066_v62  ;;  %11635 = vmatpush1.bf16.msra.mxu1 %v11634_v37  ;;  %v6983_v62 = vld [vmem:[%s20914_s7 + $0x228] sm:$0xff]  ;;  %v4388_v37 = vsel %vm1057_vm4, %v4356_v63, 0.0  ;;  %v4288_v59 = vsel %vm1057_vm4, %v18405_v25, 0.0  ;;  %v4925_v63 = vrot.slane %v18153_v35, 2  ;;  %v4387_v25 = vsel %vm1057_vm4, %v4355_v60, 0.0  ;;  %v6984_v35 = vld [vmem:[%s20914_s7 + $0x230] sm:$0xff] }
 0x457   : > { %9249 = vmatmul.mubr.f32.gmra.mrb[108].mxu0 %v17171_v48  ;;  %11636 = vmatprep.subr.bf16.mxu1 %v21670_v44  ;;  %v4358_v48 = vmul.f32 %v18418_v9, %v18418_v9  ;;  %v11640_v23 = vpack.c.bf16 %v6983_v62, %v6982_v19  ;;  %v4390_v1 = vsel %vm1057_vm4, %v4357_v8, 0.0  ;;  %v4389_v40 = vadd.f32 %v4388_v37, %v4387_v25  ;;  %v6985_v60 = vld [vmem:[%s20914_s7 + $0x238] sm:$0xff]  ;;  %v22274_v19 = vld [vmem:[#allocation187_spill] sm:$0xff] }
 0x458   : > { %9253 = vmatprep.mubr.f32.mxu0 %v17718_v57  ;;  %12013 = vmatpush1.bf16.msra.mxu0 %v12012_v61  ;;  %v3959_v29 = vpop.f32.mrb[72].mxu1  ;;  %v4289_v32 = vadd.f32 %v4288_v59, %v4287_v13  ;;  %v4360_v25 = vmul.f32 %v18444_v46, %v18444_v46 }
 0x459   : > { %12014 = vmatprep.subr.bf16.mxu0 %v21670_v44  ;;  %v18571_v38 = vadd.f32 %v22271_v12, %v3959_v29  ;;  %v3961_v61 = vpop.f32.mrb[73].mxu1  ;;  %7609 = vmatmul.mubr.f32.gmra.mrb[114].mxu1 %v4921_v0  ;;  %v4290_v12 = vsel %vm1057_vm4, %v18418_v9, 0.0  ;;  %v4359_v0 = vmul.f32 %v18431_v47, %v18431_v47  ;;  %v4392_v8 = vsel %vm1057_vm4, %v4358_v48, 0.0 }
 0x45a   : > { %7613 = vmatprep.mubr.f32.mxu1 %v22273_v31  ;;  %11638 = vmatpush1.bf16.msra.mxu1 %v11637_v34  ;;  %v4292_v34 = vsel %vm1057_vm4, %v18431_v47, 0.0  ;;  %v4391_v37 = vadd.f32 %v4390_v1, %v4389_v40  ;;  %v4291_v59 = vadd.f32 %v4290_v12, %v4289_v32  ;;  %v22275_v61 = vld [vmem:[#allocation43_spill] sm:$0xff]  ;;  %v18605_v48 = vsel %vm2355_vm3, %v18503_v45, %v4925_v63 }
 0x45b   : > { %22272 = vst [vmem:[#allocation164_spill] sm:$0xff] %v18571_v38  ;;  %9254 = vmatmul.mubr.f32.gmra.mrb[110].mxu0 %v17193_v30  ;;  %11639 = vmatprep.subr.bf16.mxu1 %v21670_v44  ;;  %22276 = vst [vmem:[#allocation169_spill] sm:$0xff] %v18605_v48  ;;  %v4394_v13 = vsel %vm1057_vm4, %v4359_v0, 0.0  ;;  %v4294_v31 = vsel %vm1057_vm4, %v18444_v46, 0.0  ;;  %v6986_v63 = vld [vmem:[%s20914_s7 + $0x240] sm:$0xff]  ;;  %v6987_v0 = vld [vmem:[%s20914_s7 + $0x248] sm:$0xff] }
 0x45c   : > { %9258 = vmatprep.mubr.f32.mxu0 %v17737_v42  ;;  %12016 = vmatpush1.bf16.msra.mxu0 %v12015_v18  ;;  %v3964_v29 = vpop.f32.mrb[74].mxu1  ;;  %v4393_v1 = vadd.f32 %v4392_v8, %v4391_v37  ;;  %v4293_v12 = vadd.f32 %v4292_v34, %v4291_v59  ;;  %v4396_v32 = vsel %vm1057_vm4, %v4360_v25, 0.0  ;;  %v22279_v59 = vld [vmem:[#allocation45_spill] sm:$0xff] }
 0x45d   : > { %12017 = vmatprep.subr.bf16.mxu0 %v21670_v44  ;;  %v18597_v62 = vadd.f32 %v22274_v19, %v3964_v29  ;;  %v3966_v18 = vpop.f32.mrb[75].mxu1  ;;  %7614 = vmatmul.mubr.f32.gmra.mrb[116].mxu1 %v18503_v45  ;;  %v4361_v29 = vmul.f32 %v18457_v6, %v18457_v6  ;;  %v11643_v19 = vpack.c.bf16 %v6985_v60, %v6984_v35  ;;  %v22277_v35 = vld [vmem:[#allocation192_spill] sm:$0xff] }
 0x45e   : > { %7618 = vmatprep.mubr.f32.mxu1 %v22275_v61  ;;  %11641 = vmatpush1.bf16.msra.mxu1 %v11640_v23  ;;  %v4296_v18 = vsel %vm1057_vm4, %v18457_v6, 0.0  ;;  %v4362_v23 = vmul.f32 %v18470_v28, %v18470_v28  ;;  %v4395_v34 = vadd.f32 %v4394_v13, %v4393_v1  ;;  %v4295_v37 = vadd.f32 %v4294_v31, %v4293_v12  ;;  %v22280_v61 = vld [vmem:[#allocation89_spill] sm:$0xff]  ;;  %v6989_v31 = vld [vmem:[%s20914_s7 + $0x258] sm:$0xff]  ;;  %v22281_v12 = vld [vmem:[#allocation191_spill] sm:$0xff] }
 0x45f   : > { %9259 = vmatmul.mubr.f32.gmra.mrb[112].mxu0 %v17215_v27  ;;  %11642 = vmatprep.subr.bf16.mxu1 %v21670_v44  ;;  %v4398_v25 = vsel %vm1057_vm4, %v4361_v29, 0.0  ;;  %v4298_v27 = vsel %vm1057_vm4, %v18470_v28, 0.0  ;;  %v6988_v13 = vld [vmem:[%s20914_s7 + $0x250] sm:$0xff]  ;;  %v4300_v1 = vsel %vm1057_vm4, %v18483_v7, 0.0 }
 0x460   : > { %9263 = vmatprep.mubr.f32.mxu0 %v17750_v17  ;;  %v3969_v40 = vpop.f32.mrb[76].mxu1  ;;  %v4400_v29 = vsel %vm1057_vm4, %v4362_v23, 0.0 }
 0x461   : > { %v18625_v60 = vadd.f32 %v22277_v35, %v3969_v40  ;;  %v3971_v8 = vpop.f32.mrb[77].mxu1  ;;  %7619 = vmatmul.mubr.f32.gmra.mrb[118].mxu1 %v18605_v48  ;;  %v4363_v40 = vmul.f32 %v18483_v7, %v18483_v7  ;;  %v11646_v35 = vpack.c.bf16 %v6987_v0, %v6986_v63  ;;  %v4297_v48 = vadd.f32 %v4296_v18, %v4295_v37  ;;  %v22283_v37 = vld [vmem:[#allocation61_spill] sm:$0xff] }
 0x462   : > { %7623 = vmatprep.mubr.f32.mxu1 %v22279_v59  ;;  %11644 = vmatpush1.bf16.msra.mxu1 %v11643_v19  ;;  %v4397_v8 = vadd.f32 %v4396_v32, %v4395_v34  ;;  %v4364_v19 = vmul.f32 %v18497_v39, %v18497_v39  ;;  %v22282_v32 = vld [vmem:[#allocation41_spill] sm:$0xff]  ;;  %v22284_v59 = vld [vmem:[#allocation167_spill] sm:$0xff] }
 0x463   : > { %22278 = vst [vmem:[#allocation168_spill] sm:$0xff] %v18625_v60  ;;  %9264 = vmatmul.mubr.f32.gmra.mrb[114].mxu0 %v17234_v49  ;;  %11645 = vmatprep.subr.bf16.mxu1 %v21670_v44  ;;  %v4299_v34 = vadd.f32 %v4298_v27, %v4297_v48  ;;  %v4402_v23 = vsel %vm1057_vm4, %v4363_v40, 0.0  ;;  %v4302_v49 = vsel %vm1057_vm4, %v18497_v39, 0.0  ;;  %v6990_v27 = vld [vmem:[%s20914_s7 + $0x260] sm:$0xff]  ;;  %v6991_v48 = vld [vmem:[%s20914_s7 + $0x268] sm:$0xff]  ;;  %v4304_v40 = vsel %vm1057_vm4, %v18520_v15, 0.0 }
 0x464   : > { %9268 = vmatprep.mubr.f32.mxu0 %v22280_v61  ;;  %v3974_v30 = vpop.f32.mrb[78].mxu1  ;;  %v4399_v18 = vadd.f32 %v4398_v25, %v4397_v8  ;;  %v4404_v25 = vsel %vm1057_vm4, %v4364_v19, 0.0  ;;  %v22285_v8 = vld [vmem:[#allocation196_spill] sm:$0xff] }
 0x465   : > { %v18649_v63 = vadd.f32 %v22281_v12, %v3974_v30  ;;  %v3976_v0 = vpop.f32.mrb[79].mxu1  ;;  %7624 = vmatmul.mubr.f32.gmra.mrb[120].mxu1 %v22282_v32  ;;  %v4365_v30 = vmul.f32 %v18520_v15, %v18520_v15  ;;  %v11649_v12 = vpack.c.bf16 %v6989_v31, %v6988_v13  ;;  %v4301_v32 = vadd.f32 %v4300_v1, %v4299_v34  ;;  %v22288_v34 = vld [vmem:[#allocation62_spill] sm:$0xff] }
 0x466   : > { %7628 = vmatprep.mubr.f32.mxu1 %v22283_v37  ;;  %11647 = vmatpush1.bf16.msra.mxu1 %v11646_v35  ;;  %v4401_v0 = vadd.f32 %v4400_v29, %v4399_v18  ;;  %v4366_v35 = vmul.f32 %v18542_v54, %v18542_v54  ;;  %v22287_v29 = vld [vmem:[#allocation153_spill] sm:$0xff] }
 0x467   : > { %9269 = vmatmul.mubr.f32.gmra.mrb[116].mxu0 %v22247_v26  ;;  %11648 = vmatprep.subr.bf16.mxu1 %v21670_v44  ;;  %v4303_v18 = vadd.f32 %v4302_v49, %v4301_v32  ;;  %v22289_v37 = vld [vmem:[#allocation73_spill] sm:$0xff]  ;;  %v4406_v19 = vsel %vm1057_vm4, %v4365_v30, 0.0  ;;  %v4306_v26 = vsel %vm1057_vm4, %v18542_v54, 0.0  ;;  %v6993_v32 = vld [vmem:[%s20914_s7 + $0x278] sm:$0xff]  ;;  %v4308_v30 = vsel %vm1057_vm4, %v18571_v38, 0.0 }
 0x468   : > { %9273 = vmatprep.mubr.f32.mxu0 %v22284_v59  ;;  %v3979_v7 = vpop.f32.mrb[80].mxu1  ;;  %v4403_v1 = vadd.f32 %v4402_v23, %v4401_v0  ;;  %v6992_v49 = vld [vmem:[%s20914_s7 + $0x270] sm:$0xff]  ;;  %v4408_v23 = vsel %vm1057_vm4, %v4366_v35, 0.0  ;;  %v22290_v0 = vld [vmem:[#allocation195_spill] sm:$0xff] }
 0x469   : > { %v18673_v13 = vadd.f32 %v22285_v8, %v3979_v7  ;;  %v3981_v31 = vpop.f32.mrb[81].mxu1  ;;  %7629 = vmatmul.mubr.f32.gmra.mrb[122].mxu1 %v22287_v29  ;;  %v4367_v7 = vmul.f32 %v18571_v38, %v18571_v38  ;;  %v11652_v8 = vpack.c.bf16 %v6991_v48, %v6990_v27  ;;  %v4305_v29 = vadd.f32 %v4304_v40, %v4303_v18  ;;  %v22292_v18 = vld [vmem:[#allocation171_spill] sm:$0xff] }
 0x46a   : > { %7633 = vmatprep.mubr.f32.mxu1 %v22288_v34  ;;  %11650 = vmatpush1.bf16.msra.mxu1 %v11649_v12  ;;  %v4405_v31 = vadd.f32 %v4404_v25, %v4403_v1  ;;  %v4368_v12 = vmul.f32 %v18597_v62, %v18597_v62  ;;  %v22291_v1 = vld [vmem:[#allocation67_spill] sm:$0xff] }
 0x46b   : > { %22286 = vst [vmem:[#allocation87_spill] sm:$0xff] %v18673_v13  ;;  %9274 = vmatmul.mubr.f32.gmra.mrb[118].mxu0 %v22250_v5  ;;  %11651 = vmatprep.subr.bf16.mxu1 %v21670_v44  ;;  %v4307_v40 = vadd.f32 %v4306_v26, %v4305_v29  ;;  %v4410_v35 = vsel %vm1057_vm4, %v4367_v7, 0.0  ;;  %v4310_v5 = vsel %vm1057_vm4, %v18597_v62, 0.0  ;;  %v6994_v26 = vld [vmem:[%s20914_s7 + $0x280] sm:$0xff]  ;;  %v6995_v29 = vld [vmem:[%s20914_s7 + $0x288] sm:$0xff]  ;;  %v4312_v7 = vsel %vm1057_vm4, %v18625_v60, 0.0 }
 0x46c   : > { %9278 = vmatprep.mubr.f32.mxu0 %v22289_v37  ;;  %v3984_v15 = vpop.f32.mrb[82].mxu1  ;;  %v4407_v25 = vadd.f32 %v4406_v19, %v4405_v31  ;;  %v4412_v19 = vsel %vm1057_vm4, %v4368_v12, 0.0  ;;  %v22293_v31 = vld [vmem:[#allocation25_spill] sm:$0xff] }
 0x46d   : > { %v18697_v27 = vadd.f32 %v22290_v0, %v3984_v15  ;;  %v3986_v48 = vpop.f32.mrb[83].mxu1  ;;  %7634 = vmatmul.mubr.f32.gmra.mrb[124].mxu1 %v17469_v3  ;;  %v4369_v15 = vmul.f32 %v18625_v60, %v18625_v60  ;;  %v11655_v0 = vpack.c.bf16 %v6993_v32, %v6992_v49  ;;  %v4309_v3 = vadd.f32 %v4308_v30, %v4307_v40  ;;  %v22295_v40 = vld [vmem:[#allocation76_spill] sm:$0xff] }
 0x46e   : > { %7638 = vmatprep.mubr.f32.mxu1 %v22291_v1  ;;  %11653 = vmatpush1.bf16.msra.mxu1 %v11652_v8  ;;  %v4409_v48 = vadd.f32 %v4408_v23, %v4407_v25  ;;  %v4370_v8 = vmul.f32 %v18649_v63, %v18649_v63  ;;  %v22294_v25 = vld [vmem:[#allocation15_spill] sm:$0xff] }
 0x46f   : > { %9279 = vmatmul.mubr.f32.gmra.mrb[120].mxu0 %v22253_v52  ;;  %11654 = vmatprep.subr.bf16.mxu1 %v21670_v44  ;;  %v4311_v30 = vadd.f32 %v4310_v5, %v4309_v3  ;;  %v4414_v12 = vsel %vm1057_vm4, %v4369_v15, 0.0  ;;  %v4314_v52 = vsel %vm1057_vm4, %v18649_v63, 0.0  ;;  %v6996_v3 = vld [vmem:[%s20914_s7 + $0x290] sm:$0xff]  ;;  %v6997_v5 = vld [vmem:[%s20914_s7 + $0x298] sm:$0xff]  ;;  %v4316_v15 = vsel %vm1057_vm4, %v18673_v13, 0.0 }
 0x470   : > { %9283 = vmatprep.mubr.f32.mxu0 %v22292_v18  ;;  %v3989_v38 = vpop.f32.mrb[84].mxu1  ;;  %v4411_v23 = vadd.f32 %v4410_v35, %v4409_v48  ;;  %v4416_v35 = vsel %vm1057_vm4, %v4370_v8, 0.0  ;;  %v22296_v48 = vld [vmem:[#allocation198_spill] sm:$0xff] }
 0x471   : > { %v18721_v49 = vadd.f32 %v22293_v31, %v3989_v38  ;;  %v3991_v32 = vpop.f32.mrb[85].mxu1  ;;  %7639 = vmatmul.mubr.f32.gmra.mrb[126].mxu1 %v17484_v56  ;;  %v4371_v38 = vmul.f32 %v18673_v13, %v18673_v13  ;;  %v11658_v31 = vpack.c.bf16 %v6995_v29, %v6994_v26  ;;  %v4313_v56 = vadd.f32 %v4312_v7, %v4311_v30  ;;  %v22299_v30 = vld [vmem:[#allocation16_spill] sm:$0xff] }
 0x472   : > { %7643 = vmatprep.mubr.f32.mxu1 %v22294_v25  ;;  %11656 = vmatpush1.bf16.msra.mxu1 %v11655_v0  ;;  %v4413_v32 = vadd.f32 %v4412_v19, %v4411_v23  ;;  %v4372_v0 = vmul.f32 %v18697_v27, %v18697_v27  ;;  %v22298_v23 = vld [vmem:[#allocation19_spill] sm:$0xff] }
 0x473   : > { %9284 = vmatmul.mubr.f32.gmra.mrb[122].mxu0 %v22256_v51  ;;  %11657 = vmatprep.subr.bf16.mxu1 %v21670_v44  ;;  %v4315_v7 = vadd.f32 %v4314_v52, %v4313_v56  ;;  %v4418_v8 = vsel %vm1057_vm4, %v4371_v38, 0.0  ;;  %v4318_v51 = vsel %vm1057_vm4, %v18697_v27, 0.0  ;;  %v6998_v56 = vld [vmem:[%s20914_s7 + $0x2a0] sm:$0xff]  ;;  %v6999_v52 = vld [vmem:[%s20914_s7 + $0x2a8] sm:$0xff]  ;;  %v4320_v38 = vsel %vm1057_vm4, %v18721_v49, 0.0 }
 0x474   : > { %9288 = vmatprep.mubr.f32.mxu0 %v22295_v40  ;;  %v3994_v60 = vpop.f32.mrb[86].mxu1  ;;  %v4415_v19 = vadd.f32 %v4414_v12, %v4413_v32  ;;  %v4420_v12 = vsel %vm1057_vm4, %v4372_v0, 0.0  ;;  %v22300_v32 = vld [vmem:[#allocation30_spill] sm:$0xff] }
 0x475   : > { %v18745_v26 = vadd.f32 %v22296_v48, %v3994_v60  ;;  %v3996_v29 = vpop.f32.mrb[87].mxu1  ;;  %7644 = vmatmul.mubr.f32.gmra.mrb[128].mxu1 %v17500_v36  ;;  %v4373_v60 = vmul.f32 %v18721_v49, %v18721_v49  ;;  %v11661_v48 = vpack.c.bf16 %v6997_v5, %v6996_v3  ;;  %v4317_v36 = vadd.f32 %v4316_v15, %v4315_v7  ;;  %v22303_v7 = vld [vmem:[#allocation174_spill] sm:$0xff] }
 0x476   : > { %7648 = vmatprep.mubr.f32.mxu1 %v22298_v23  ;;  %11659 = vmatpush1.bf16.msra.mxu1 %v11658_v31  ;;  %v4417_v29 = vadd.f32 %v4416_v35, %v4415_v19  ;;  %v22302_v19 = vld [vmem:[#allocation75_spill] sm:$0xff] }
 0x477   : > { %22297 = vst [vmem:[#allocation172_spill] sm:$0xff] %v18745_v26  ;;  %9289 = vmatmul.mubr.f32.gmra.mrb[124].mxu0 %v22258_v41  ;;  %11660 = vmatprep.subr.bf16.mxu1 %v21670_v44  ;;  %v4374_v31 = vmul.f32 %v18745_v26, %v18745_v26  ;;  %v4319_v15 = vadd.f32 %v4318_v51, %v4317_v36  ;;  %v4422_v0 = vsel %vm1057_vm4, %v4373_v60, 0.0  ;;  %v4322_v41 = vsel %vm1057_vm4, %v18745_v26, 0.0  ;;  %v7000_v36 = vld [vmem:[%s20914_s7 + $0x2b0] sm:$0xff]  ;;  %v7001_v51 = vld [vmem:[%s20914_s7 + $0x2b8] sm:$0xff]  ;;  %v22325_v26 = vld [vmem:[#allocation108_spill] sm:$0xff] }
 0x478   : > { %9293 = vmatprep.mubr.f32.mxu0 %v22299_v30  ;;  %v3999_v13 = vpop.f32.mrb[88].mxu1  ;;  %v4419_v35 = vadd.f32 %v4418_v8, %v4417_v29 }
 0x479   : > { %v18769_v3 = vadd.f32 %v22300_v32, %v3999_v13  ;;  %v4001_v5 = vpop.f32.mrb[89].mxu1  ;;  %7649 = vmatmul.mubr.f32.gmra.mrb[130].mxu1 %v17515_v14  ;;  %v11664_v32 = vpack.c.bf16 %v6999_v52, %v6998_v56  ;;  %v4321_v14 = vadd.f32 %v4320_v38, %v4319_v15  ;;  %v4424_v8 = vsel %vm1057_vm4, %v4374_v31, 0.0  ;;  %v22305_v38 = vld [vmem:[#allocation84_spill] sm:$0xff] }
 0x47a   : > { %7653 = vmatprep.mubr.f32.mxu1 %v22302_v19  ;;  %11662 = vmatpush1.bf16.msra.mxu1 %v11661_v48  ;;  %v4421_v5 = vadd.f32 %v4420_v12, %v4419_v35  ;;  %v22304_v48 = vld [vmem:[#allocation200_spill] sm:$0xff] }
 0x47b   : > { %22301 = vst [vmem:[#allocation176_spill] sm:$0xff] %v18769_v3  ;;  %9294 = vmatmul.mubr.f32.gmra.mrb[126].mxu0 %v22261_v10  ;;  %v4375_v13 = vmul.f32 %v18769_v3, %v18769_v3  ;;  %11663 = vmatprep.subr.bf16.mxu1 %v21670_v44  ;;  %v4324_v60 = vsel %vm1057_vm4, %v18769_v3, 0.0  ;;  %v4323_v12 = vadd.f32 %v4322_v41, %v4321_v14  ;;  %v22306_v35 = vld [vmem:[#allocation24_spill] sm:$0xff]  ;;  %v7002_v14 = vld [vmem:[%s20914_s7 + $0x2c0] sm:$0xff] }
 0x47c   : > { %9298 = vmatprep.mubr.f32.mxu0 %v22303_v7  ;;  %v4004_v30 = vpop.f32.mrb[90].mxu1  ;;  %v4423_v52 = vadd.f32 %v4422_v0, %v4421_v5  ;;  %v7003_v41 = vld [vmem:[%s20914_s7 + $0x2c8] sm:$0xff] }
 0x47d   : > { %v18791_v29 = vadd.f32 %v22304_v48, %v4004_v30  ;;  %v4006_v56 = vpop.f32.mrb[91].mxu1  ;;  %7654 = vmatmul.mubr.f32.gmra.mrb[132].mxu1 %v17531_v24  ;;  %v4426_v15 = vsel %vm1057_vm4, %v4375_v13, 0.0  ;;  %v11667_v48 = vpack.c.bf16 %v7001_v51, %v7000_v36  ;;  %v4325_v24 = vadd.f32 %v4324_v60, %v4323_v12  ;;  %v22307_v13 = vld [vmem:[#allocation34_spill] sm:$0xff]  ;;  %v22324_v7 = vld [vmem:[#allocation96_spill] sm:$0xff] }
 0x47e   : > { %7658 = vmatprep.mubr.f32.mxu1 %v22305_v38  ;;  %11665 = vmatpush1.bf16.msra.mxu1 %v11664_v32  ;;  %v4425_v56 = vadd.f32 %v4424_v8, %v4423_v52  ;;  %v22308_v8 = vld [vmem:[#allocation97_spill] sm:$0xff]  ;;  %v22309_v60 = vld [vmem:[#allocation178_spill] sm:$0xff] }
 0x47f   : > { %9299 = vmatmul.mubr.f32.gmra.mrb[128].mxu0 %v22264_v53  ;;  %v4326_v31 = vsel %vm1057_vm4, %v18791_v29, 0.0  ;;  %v4376_v30 = vmul.f32 %v18791_v29, %v18791_v29  ;;  %11666 = vmatprep.subr.bf16.mxu1 %v21670_v44 }
 0x480   : > { %9303 = vmatprep.mubr.f32.mxu0 %v22306_v35  ;;  %v4009_v10 = vpop.f32.mrb[92].mxu1  ;;  %v4427_v36 = vadd.f32 %v4426_v15, %v4425_v56  ;;  %v4327_v51 = vadd.f32 %v4326_v31, %v4325_v24  ;;  %v7004_v24 = vld [vmem:[%s20914_s7 + $0x2d0] sm:$0xff]  ;;  %v7005_v15 = vld [vmem:[%s20914_s7 + $0x2d8] sm:$0xff] }
 0x481   : > { %v4428_v0 = vsel %vm1057_vm4, %v4376_v30, 0.0  ;;  %v18811_v5 = vadd.f32 %v22307_v13, %v4009_v10  ;;  %v4011_v32 = vpop.f32.mrb[93].mxu1  ;;  %7659 = vmatmul.mubr.f32.gmra.mrb[134].mxu1 %v22244_v16  ;;  %v11670_v10 = vpack.c.bf16 %v7003_v41, %v7002_v14  ;;  %v22310_v56 = vld [vmem:[#allocation202_spill] sm:$0xff]  ;;  %v22311_v14 = vld [vmem:[#allocation93_spill] sm:$0xff]  ;;  %v18874_v16 = vld [vmem:[#allocation2] sm:$0xff] }
 0x482   : > { %7663 = vmatprep.mubr.f32.mxu1 %v22308_v8  ;;  %11668 = vmatpush1.bf16.msra.mxu1 %v11667_v48  ;;  %v4429_v30 = vadd.f32 %v4428_v0, %v4427_v36  ;;  %v22312_v0 = vld [vmem:[#allocation100_spill] sm:$0xff]  ;;  %v22313_v36 = vld [vmem:[#allocation179_spill] sm:$0xff]  ;;  %v18877_v53 = vrot.slane %v18874_v16, 1 }
 0x483   : > { %9304 = vmatmul.mubr.f32.gmra.mrb[130].mxu0 %v22266_v55  ;;  %v4328_v52 = vsel %vm1057_vm4, %v18811_v5, 0.0  ;;  %v4377_v12 = vmul.f32 %v18811_v5, %v18811_v5  ;;  %11669 = vmatprep.subr.bf16.mxu1 %v21670_v44 }
 0x484   : > { %9308 = vmatprep.mubr.f32.mxu0 %v22309_v60  ;;  %v4329_v13 = vadd.f32 %v4328_v52, %v4327_v51  ;;  %v4014_v32 = vpop.f32.mrb[94].mxu1  ;;  %22322 = vst [vmem:[#allocation175_spill] sm:$0xff] %v18877_v53 }
 0x485   : > { %v4430_v31 = vsel %vm1057_vm4, %v4377_v12, 0.0  ;;  %v18830_v60 = vadd.f32 %v22310_v56, %v4014_v32  ;;  %v4016_v48 = vpop.f32.mrb[95].mxu1  ;;  %7664 = vmatmul.mubr.f32.gmra.mrb[136].mxu1 %v22248_v2  ;;  %v11673_v12 = vpack.c.bf16 %v7005_v15, %v7004_v24  ;;  %v22316_v24 = vld [vmem:[#allocation103_spill] sm:$0xff]  ;;  %v22317_v15 = vld [vmem:[#allocation94_spill] sm:$0xff] }
 0x486   : > { %v4431_v41 = vadd.f32 %v4430_v31, %v4429_v30  ;;  %7668 = vmatprep.mubr.f32.mxu1 %v22312_v0  ;;  %11671 = vmatpush1.bf16.msra.mxu1 %v11670_v10  ;;  %v7006_v30 = vld [vmem:[%s20914_s7 + $0x2e0] sm:$0xff]  ;;  %v7007_v31 = vld [vmem:[%s20914_s7 + $0x2e8] sm:$0xff] }
 0x487   : > { %9309 = vmatmul.mubr.f32.gmra.mrb[132].mxu0 %v22311_v14  ;;  %v4330_v51 = vsel %vm1057_vm4, %v18830_v60, 0.0  ;;  %v4378_v52 = vmul.f32 %v18830_v60, %v18830_v60  ;;  %11672 = vmatprep.subr.bf16.mxu1 %v21670_v44  ;;  %v22315_v10 = vld [vmem:[#allocation31_spill] sm:$0xff] }
 0x488   : > { %9313 = vmatprep.mubr.f32.mxu0 %v22313_v36  ;;  %v4331_v32 = vadd.f32 %v4330_v51, %v4329_v13  ;;  %v4019_v56 = vpop.f32.mrb[96].mxu1  ;;  %v22314_v36 = vld [vmem:[#allocation51_spill] sm:$0xff] }
 0x489   : > { %v4432_v48 = vsel %vm1057_vm4, %v4378_v52, 0.0  ;;  %v18849_v14 = vadd.f32 %v22314_v36, %v4019_v56  ;;  %v4021_v2 = vpop.f32.mrb[97].mxu1  ;;  %7669 = vmatmul.mubr.f32.gmra.mrb[138].mxu1 %v22251_v43  ;;  %v11676_v52 = vpack.c.bf16 %v7007_v31, %v7006_v30  ;;  %v22320_v31 = vld [vmem:[#allocation106_spill] sm:$0xff] }
 0x48a   : > { %v4433_v13 = vadd.f32 %v4432_v48, %v4431_v41  ;;  %7673 = vmatprep.mubr.f32.mxu1 %v22316_v24  ;;  %11674 = vmatpush1.bf16.msra.mxu1 %v11673_v12  ;;  %v4689_v2 = vld [vmem:[#allocation3 + $0x1c0] sm:$0xf]  ;;  %v7009_v48 = vld [vmem:[%s20914_s7 + $0x2f8] sm:$0xff] }
 0x48b   : > { %9314 = vmatmul.mubr.f32.gmra.mrb[134].mxu0 %v22315_v10  ;;  %v4332_v51 = vsel %vm1057_vm4, %v18849_v14, 0.0  ;;  %v4379_v55 = vmul.f32 %v18849_v14, %v18849_v14  ;;  %11675 = vmatprep.subr.bf16.mxu1 %v21670_v44  ;;  %v7008_v41 = vld [vmem:[%s20914_s7 + $0x2f0] sm:$0xff]  ;;  %v22318_v10 = vld [vmem:[#allocation204_spill] sm:$0xff] }
 0x48c   : > { %9318 = vmatprep.mubr.f32.mxu0 %v22317_v15  ;;  %v4333_v36 = vadd.f32 %v4332_v51, %v4331_v32  ;;  %v4024_v56 = vpop.f32.mrb[98].mxu1  ;;  %v22319_v32 = vld [vmem:[#allocation38_spill] sm:$0xff]  ;;  %v22321_v51 = vld [vmem:[#allocation101_spill] sm:$0xff] }
 0x48d   : > { %v4434_v15 = vsel %vm1057_vm4, %v4379_v55, 0.0  ;;  %v18868_v43 = vadd.f32 %v22318_v10, %v4024_v56  ;;  %v4026_v12 = vpop.f32.mrb[99].mxu1  ;;  %7674 = vmatmul.mubr.f32.gmra.mrb[140].mxu1 %v22254_v11  ;;  %v5809_v56 = vrot.slane %v4689_v2, 2 }
 0x48e   : > { %v4435_v30 = vadd.f32 %v4434_v15, %v4433_v13  ;;  %7678 = vmatprep.mubr.f32.mxu1 %v22320_v31  ;;  %11677 = vmatpush1.bf16.msra.mxu1 %v11676_v52  ;;  %v11679_v12 = vpack.c.bf16 %v7009_v48, %v7008_v41  ;;  %v5770_v52 = vrot.slane %v4689_v2, 1 }
 0x48f   : > { %9319 = vmatmul.mubr.f32.gmra.mrb[136].mxu0 %v22319_v32  ;;  %v4334_v55 = vsel %vm1057_vm4, %v18868_v43, 0.0  ;;  %v4380_v10 = vmul.f32 %v18868_v43, %v18868_v43  ;;  %11678 = vmatprep.subr.bf16.mxu1 %v21670_v44  ;;  %v18898_v48 = vsel %vm2355_vm3, %v18503_v45, %v5809_v56 }
 0x490   : > { %9323 = vmatprep.mubr.f32.mxu0 %v22321_v51  ;;  %v4335_v32 = vadd.f32 %v4334_v55, %v4333_v36  ;;  %v4029_v13 = vpop.f32.mrb[100].mxu1  ;;  %v22323_v51 = vld [vmem:[#allocation54_spill] sm:$0xff]  ;;  %22326 = vst [vmem:[#allocation90_spill] sm:$0xff] %v18898_v48 }
 0x491   : > { %v4436_v15 = vsel %vm1057_vm4, %v4380_v10, 0.0  ;;  %v18886_v11 = vadd.f32 %v22323_v51, %v4029_v13  ;;  %v4031_v35 = vpop.f32.mrb[101].mxu1  ;;  %7679 = vmatmul.mubr.f32.gmra.mrb[142].mxu1 %v17609_v20  ;;  %v22327_v55 = vld [vmem:[#allocation206_spill] sm:$0xff]  ;;  %v22335_v20 = vld [vmem:[#allocation11_spill] sm:$0xff] }
 0x492   : > { %v4437_v3 = vadd.f32 %v4436_v15, %v4435_v30  ;;  %7683 = vmatprep.mubr.f32.mxu1 %v22325_v26  ;;  %11680 = vmatpush1.bf16.msra.mxu1 %v11679_v12  ;;  %v22328_v15 = vld [vmem:[#allocation12_spill] sm:$0xff] }
 0x493   : > { %9324 = vmatmul.mubr.f32.gmra.mrb[138].mxu0 %v22324_v7  ;;  %v4336_v36 = vsel %vm1057_vm4, %v18886_v11, 0.0  ;;  %v4381_v41 = vmul.f32 %v18886_v11, %v18886_v11  ;;  %11681 = vmatprep.subr.bf16.mxu1 %v21670_v44 }
 0x494   : > { %9328 = vmatprep.mubr.f32.mxu0 %v18503_v45  ;;  %v4337_v35 = vadd.f32 %v4336_v36, %v4335_v32  ;;  %v4034_v51 = vpop.f32.mrb[102].mxu1  ;;  %v18911_v32 = vsel %vm2210_vm2, %v18877_v53, %v5770_v52  ;;  %v7234_v36 = vld [vmem:[%s20914_s7 + $0xa00] sm:$0xff]  ;;  %v22330_v52 = vld [vmem:[#allocation58_spill] sm:$0xff] }
 0x495   : > { %v4438_v30 = vsel %vm1057_vm4, %v4381_v41, 0.0  ;;  %v18903_v10 = vadd.f32 %v22327_v55, %v4034_v51  ;;  %v4036_v2 = vpop.f32.mrb[103].mxu1  ;;  %7684 = vmatmul.mubr.f32.gmra.mrb[144].mxu1 %v22259_v33  ;;  %22329 = vst [vmem:[#allocation180_spill] sm:$0xff] %v18911_v32  ;;  %v22332_v33 = vld [vmem:[#allocation48_spill] sm:$0xff] }
 0x496   : > { %v4439_v13 = vadd.f32 %v4438_v30, %v4437_v3  ;;  %7688 = vmatprep.mubr.f32.mxu1 %v22328_v15  ;;  %v7235_v3 = vld [vmem:[%s20914_s7 + $0xa08] sm:$0xff] }
 0x497   : > { %9329 = vmatmul.mubr.f32.gmra.mrb[140].mxu0 %v18877_v53  ;;  %v4338_v56 = vsel %vm1057_vm4, %v18903_v10, 0.0  ;;  %v4382_v12 = vmul.f32 %v18903_v10, %v18903_v10  ;;  %v22331_v53 = vld [vmem:[#allocation14_spill] sm:$0xff]  ;;  %v12018_v7 = vpack.c.bf16 %v7235_v3, %v7234_v36 }
 0x498   : > { %9333 = vmatprep.mubr.f32.mxu0 %v18898_v48  ;;  %v4339_v41 = vadd.f32 %v4338_v56, %v4337_v35  ;;  %v4039_v51 = vpop.f32.mrb[104].mxu1 }
 0x499   : > { %v4440_v30 = vsel %vm1057_vm4, %v4382_v12, 0.0  ;;  %v18925_v55 = vadd.f32 %v22330_v52, %v4039_v51  ;;  %v4041_v2 = vpop.f32.mrb[105].mxu1  ;;  %7689 = vmatmul.mubr.f32.gmra.mrb[146].mxu1 %v17650_v22  ;;  %v7236_v52 = vld [vmem:[%s20914_s7 + $0xa10] sm:$0xff] }
 0x49a   : > { %v4441_v48 = vadd.f32 %v4440_v30, %v4439_v13  ;;  %7693 = vmatprep.mubr.f32.mxu1 %v22331_v53  ;;  %v7237_v13 = vld [vmem:[%s20914_s7 + $0xa18] sm:$0xff]  ;;  %v22333_v2 = vld [vmem:[#allocation208_spill] sm:$0xff] }
 0x49b   : > { %9334 = vmatmul.mubr.f32.gmra.mrb[142].mxu0 %v18911_v32  ;;  %v4340_v35 = vsel %vm1057_vm4, %v18925_v55, 0.0  ;;  %v4383_v56 = vmul.f32 %v18925_v55, %v18925_v55 }
 0x49c   : > { %9403 = vmatprep.mubr.f32.mxu0 %v22332_v33  ;;  %v4341_v12 = vadd.f32 %v4340_v35, %v4339_v41  ;;  %v4044_v51 = vpop.f32.mrb[106].mxu1  ;;  %v22334_v35 = vld [vmem:[#allocation20_spill] sm:$0xff] }
 0x49d   : > { %v4442_v30 = vsel %vm1057_vm4, %v4383_v56, 0.0  ;;  %v18943_v36 = vadd.f32 %v22333_v2, %v4044_v51  ;;  %v4046_v3 = vpop.f32.mrb[107].mxu1  ;;  %7694 = vmatmul.mubr.f32.gmra.mrb[148].mxu1 %v17672_v58  ;;  %v12021_v56 = vpack.c.bf16 %v7237_v13, %v7236_v52  ;;  %v22338_v52 = vld [vmem:[#allocation13_spill] sm:$0xff] }
 0x49e   : > { %v4443_v41 = vadd.f32 %v4442_v30, %v4441_v48  ;;  %7698 = vmatprep.mubr.f32.mxu1 %v22334_v35  ;;  %v22336_v30 = vld [vmem:[#allocation64_spill] sm:$0xff] }
 0x49f   : > { %9404 = vmatmul.mubr.f32.vlgmr.msra.gmra.mrb[80].mxu0 %v22288_v34  ;;  %v4342_v32 = vsel %vm1057_vm4, %v18943_v36, 0.0  ;;  %v4384_v22 = vmul.f32 %v18943_v36, %v18943_v36  ;;  %v7238_v34 = vld [vmem:[%s20914_s7 + $0xa20] sm:$0xff] }
 0x4a0   : > { %12019 = vmatpush1.bf16.msra.mxu0 %v12018_v7  ;;  %9408 = vmatprep.mubr.f32.mxu0 %v22335_v20  ;;  %v4343_v51 = vadd.f32 %v4342_v32, %v4341_v12  ;;  %v4049_v2 = vpop.f32.mrb[108].mxu1  ;;  %v7239_v7 = vld [vmem:[%s20914_s7 + $0xa28] sm:$0xff]  ;;  %v22337_v12 = vld [vmem:[#allocation22_spill] sm:$0xff] }
 0x4a1   : > { %12020 = vmatprep.subr.bf16.mxu0 %v21670_v44  ;;  %v4444_v48 = vsel %vm1057_vm4, %v4384_v22, 0.0  ;;  %v18962_v3 = vadd.f32 %v22336_v30, %v4049_v2  ;;  %v4051_v58 = vpop.f32.mrb[109].mxu1  ;;  %7699 = vmatmul.mubr.f32.gmra.mrb[150].mxu1 %v17688_v4  ;;  %v12024_v22 = vpack.c.bf16 %v7239_v7, %v7238_v34  ;;  %v22341_v34 = vld [vmem:[#allocation17_spill] sm:$0xff] }
 0x4a2   : > { %v4445_v32 = vadd.f32 %v4444_v48, %v4443_v41  ;;  %7703 = vmatprep.mubr.f32.mxu1 %v22337_v12  ;;  %v7240_v58 = vld [vmem:[%s20914_s7 + $0xa30] sm:$0xff]  ;;  %v22339_v48 = vld [vmem:[#allocation210_spill] sm:$0xff] }
 0x4a3   : > { %9409 = vmatmul.mubr.f32.gmra.mrb[82].mxu0 %v22291_v1  ;;  %v4344_v13 = vsel %vm1057_vm4, %v18962_v3, 0.0  ;;  %v4385_v45 = vmul.f32 %v18962_v3, %v18962_v3  ;;  %v7241_v1 = vld [vmem:[%s20914_s7 + $0xa38] sm:$0xff] }
 0x4a4   : > { %9413 = vmatprep.mubr.f32.mxu0 %v22338_v52  ;;  %12022 = vmatpush1.bf16.msra.mxu0 %v12021_v56  ;;  %v4345_v2 = vadd.f32 %v4344_v13, %v4343_v51  ;;  %v4054_v30 = vpop.f32.mrb[110].mxu1  ;;  %v22340_v51 = vld [vmem:[#allocation29_spill] sm:$0xff] }
 0x4a5   : > { %12023 = vmatprep.subr.bf16.mxu0 %v21670_v44  ;;  %v4446_v41 = vsel %vm1057_vm4, %v4385_v45, 0.0  ;;  %v18981_v4 = vadd.f32 %v22339_v48, %v4054_v30  ;;  %v4056_v52 = vpop.f32.mrb[111].mxu1  ;;  %7704 = vmatmul.mubr.f32.gmra.mrb[152].mxu1 %v17704_v21  ;;  %v12027_v45 = vpack.c.bf16 %v7241_v1, %v7240_v58  ;;  %v22342_v58 = vld [vmem:[#allocation141_spill] sm:$0xff] }
 0x4a6   : > { %v4447_v56 = vadd.f32 %v4446_v41, %v4445_v32  ;;  %7708 = vmatprep.mubr.f32.mxu1 %v22340_v51  ;;  %v7242_v52 = vld [vmem:[%s20914_s7 + $0xa40] sm:$0xff]  ;;  %v7243_v32 = vld [vmem:[%s20914_s7 + $0xa48] sm:$0xff] }
 0x4a7   : > { %9414 = vmatmul.mubr.f32.gmra.mrb[84].mxu0 %v22294_v25  ;;  %v4346_v7 = vsel %vm1057_vm4, %v18981_v4, 0.0  ;;  %v4386_v13 = vmul.f32 %v18981_v4, %v18981_v4  ;;  %v12030_v1 = vpack.c.bf16 %v7243_v32, %v7242_v52 }
 0x4a8   : > { %9418 = vmatprep.mubr.f32.mxu0 %v22341_v34  ;;  %12025 = vmatpush1.bf16.msra.mxu0 %v12024_v22  ;;  %v4347_v30 = vadd.f32 %v4346_v7, %v4345_v2  ;;  %v22343_v2 = vld [vmem:[#allocation36_spill] sm:$0xff] }
 0x4a9   : > { %12026 = vmatprep.subr.bf16.mxu0 %v21670_v44  ;;  %v4448_v41 = vsel %vm1057_vm4, %v4386_v13, 0.0  ;;  %7709 = vmatmul.mubr.f32.gmra.mrb[154].mxu1 %v17718_v57  ;;  %v7244_v13 = vld [vmem:[%s20914_s7 + $0xa50] sm:$0xff]  ;;  %v7246_v57 = vld [vmem:[%s20914_s7 + $0xa60] sm:$0xff] }
 0x4aa   : > { %v4348_v48 = vrot.slane %v4347_v30, 4  ;;  %v4449_v22 = vadd.f32 %v4448_v41, %v4447_v56  ;;  %7713 = vmatprep.mubr.f32.mxu1 %v22342_v58 }
 0x4ab   : > { %9419 = vmatmul.mubr.f32.gmra.mrb[86].mxu0 %v22298_v23  ;;  %v7245_v23 = vld [vmem:[%s20914_s7 + $0xa58] sm:$0xff] }
 0x4ac   : > { %9423 = vmatprep.mubr.f32.mxu0 %v22343_v2  ;;  %12028 = vmatpush1.bf16.msra.mxu0 %v12027_v45  ;;  %v4349_v7 = vadd.f32 %v4348_v48, %v4347_v30  ;;  %v4450_v25 = vrot.slane %v4449_v22, 4  ;;  %v22344_v45 = vld [vmem:[#allocation142_spill] sm:$0xff]  ;;  %v22345_v30 = vld [vmem:[#allocation83_spill] sm:$0xff]  ;;  %v12033_v52 = vpack.c.bf16 %v7245_v23, %v7244_v13  ;;  %v22347_v23 = vld [vmem:[#allocation85_spill] sm:$0xff] }
 0x4ad   : > { %12029 = vmatprep.subr.bf16.mxu0 %v21670_v44  ;;  %7714 = vmatmul.mubr.f32.gmra.mrb[156].mxu1 %v17737_v42  ;;  %v22356_v42 = vld [vmem:[#allocation95_spill] sm:$0xff] }
 0x4ae   : > { %v4350_v56 = vrot.slane %v4349_v7, 2  ;;  %v4451_v41 = vadd.f32 %v4450_v25, %v4449_v22  ;;  %7718 = vmatprep.mubr.f32.mxu1 %v22344_v45 }
 0x4af   : > { %9424 = vmatmul.mubr.f32.gmra.mrb[88].mxu0 %v22302_v19  ;;  %v7247_v19 = vld [vmem:[%s20914_s7 + $0xa68] sm:$0xff] }
 0x4b0   : > { %9428 = vmatprep.mubr.f32.mxu0 %v22345_v30  ;;  %12031 = vmatpush1.bf16.msra.mxu0 %v12030_v1  ;;  %v4351_v32 = vadd.f32 %v4350_v56, %v4349_v7  ;;  %v4452_v48 = vrot.slane %v4451_v41, 2  ;;  %v22346_v1 = vld [vmem:[#allocation143_spill] sm:$0xff]  ;;  %v12036_v7 = vpack.c.bf16 %v7247_v19, %v7246_v57  ;;  %v22348_v57 = vld [vmem:[#allocation144_spill] sm:$0xff] }
 0x4b1   : > { %12032 = vmatprep.subr.bf16.mxu0 %v21670_v44  ;;  %7719 = vmatmul.mubr.f32.gmra.mrb[158].mxu1 %v17750_v17  ;;  %v22349_v19 = vld [vmem:[#allocation99_spill] sm:$0xff] }
 0x4b2   : > { %v4352_v25 = vrot.slane %v4351_v32, 1  ;;  %v4453_v22 = vadd.f32 %v4452_v48, %v4451_v41  ;;  %7723 = vmatprep.mubr.f32.mxu1 %v22346_v1  ;;  %v7249_v41 = vld [vmem:[%s20914_s7 + $0xa78] sm:$0xff] }
 0x4b3   : > { %9429 = vmatmul.mubr.f32.gmra.mrb[90].mxu0 %v22305_v38  ;;  %v7248_v38 = vld [vmem:[%s20914_s7 + $0xa70] sm:$0xff] }
 0x4b4   : > { %9433 = vmatprep.mubr.f32.mxu0 %v22347_v23  ;;  %12034 = vmatpush1.bf16.msra.mxu0 %v12033_v52  ;;  %v4353_v13 = vadd.f32 %v4352_v25, %v4351_v32  ;;  %v4454_v56 = vrot.slane %v4453_v22, 1 }
 0x4b5   : > { %12035 = vmatprep.subr.bf16.mxu0 %v21670_v44  ;;  %7724 = vmatmul.mubr.f32.gmra.mrb[160].mxu1 %v22280_v61  ;;  %v12039_v61 = vpack.c.bf16 %v7249_v41, %v7248_v38  ;;  %v22353_v41 = vld [vmem:[#allocation105_spill] sm:$0xff] }
 0x4b6   : > { %v19034_v48 = vmul.f32 0.00390625, %v4353_v13  ;;  %v4455_v52 = vadd.f32 %v4454_v56, %v4453_v22  ;;  %7728 = vmatprep.mubr.f32.mxu1 %v22348_v57  ;;  %v7250_v22 = vld [vmem:[%s20914_s7 + $0xa80] sm:$0xff]  ;;  %v22350_v56 = vld [vmem:[#allocation145_spill] sm:$0xff] }
 0x4b7   : > { %9434 = vmatmul.mubr.f32.gmra.mrb[92].mxu0 %v22308_v8  ;;  %v22351_v8 = vld [vmem:[#allocation102_spill] sm:$0xff] }
 0x4b8   : > { %9438 = vmatprep.mubr.f32.mxu0 %v22349_v19  ;;  %12037 = vmatpush1.bf16.msra.mxu0 %v12036_v7  ;;  %v4456_v32 = vmul.f32 0.00390625, %v4455_v52  ;;  %v4457_v25 = vmul.f32 %v19034_v48, %v19034_v48  ;;  %v7251_v7 = vld [vmem:[%s20914_s7 + $0xa88] sm:$0xff] }
 0x4b9   : > { %12038 = vmatprep.subr.bf16.mxu0 %v21670_v44  ;;  %7729 = vmatmul.mubr.f32.gmra.mrb[162].mxu1 %v22284_v59  ;;  %v12042_v38 = vpack.c.bf16 %v7251_v7, %v7250_v22  ;;  %v22354_v7 = vld [vmem:[#allocation147_spill] sm:$0xff]  ;;  %v4464_v22 = vsub.f32 %v18444_v46, %v19034_v48  ;;  %v22360_v46 = vld [vmem:[#allocation164_spill] sm:$0xff] }
 0x4ba   : > { %v4458_v13 = vsub.f32 %v4456_v32, %v4457_v25  ;;  %7733 = vmatprep.mubr.f32.mxu1 %v22350_v56  ;;  %v22352_v32 = vld [vmem:[#allocation146_spill] sm:$0xff]  ;;  %v7252_v25 = vld [vmem:[%s20914_s7 + $0xa90] sm:$0xff] }
 0x4bb   : > { %9439 = vmatmul.mubr.f32.gmra.mrb[94].mxu0 %v22312_v0  ;;  %v22358_v0 = vld [vmem:[#allocation189_spill] sm:$0xff] }
 0x4bc   : > { %v4491_v52 = vadd.f32 1e-05, %v4458_v13  ;;  %9443 = vmatprep.mubr.f32.mxu0 %v22351_v8  ;;  %12040 = vmatpush1.bf16.msra.mxu0 %v12039_v61  ;;  %v7253_v13 = vld [vmem:[%s20914_s7 + $0xa98] sm:$0xff]  ;;  %v19081_v61 = vld [vmem:[%s20914_s7 + $0xaa8] sm:$0xff] }
 0x4bd   : > { %7734 = vmatmul.mubr.f32.gmra.mrb[164].mxu1 %v22289_v37  ;;  %12041 = vmatprep.subr.bf16.mxu0 %v21670_v44  ;;  %v12045_v59 = vpack.c.bf16 %v7253_v13, %v7252_v25  ;;  %v22355_v37 = vld [vmem:[#allocation104_spill] sm:$0xff]  ;;  %v22357_v25 = vld [vmem:[#allocation107_spill] sm:$0xff]  ;;  %v4463_v13 = vsub.f32 %v18431_v47, %v19034_v48  ;;  %v4470_v47 = vsub.f32 %v18542_v54, %v19034_v48  ;;  %v22364_v54 = vld [vmem:[#allocation109_spill] sm:$0xff] }
 0x4be   : > { %13062 = vrsqrt.f32 %v4491_v52  ;;  %7738 = vmatprep.mubr.f32.mxu1 %v22352_v32  ;;  %v4460_v17 = vsub.f32 %v22355_v37, %v19034_v48  ;;  %v4465_v52 = vsub.f32 %v18457_v6, %v19034_v48  ;;  %v4466_v37 = vsub.f32 %v18470_v28, %v19034_v48  ;;  %v22367_v8 = vld [vmem:[#allocation176_spill] sm:$0xff] }
 0x4bf   : > { %9444 = vmatmul.mubr.f32.gmra.mrb[96].mxu0 %v22316_v24  ;;  %v19076_v24 = vld [vmem:[%s20914_s7 + $0xaa0] sm:$0xff]  ;;  %v4471_v6 = vsub.f32 %v22360_v46, %v19034_v48  ;;  %v4472_v28 = vsub.f32 %v18597_v62, %v19034_v48  ;;  %v19140_v46 = vrot.slane %v18874_v16, 4 }
 0x4c0   : > { %9448 = vmatprep.mubr.f32.mxu0 %v22353_v41  ;;  %12043 = vmatpush1.bf16.msra.mxu0 %v12042_v38  ;;  %v4462_v38 = vsub.f32 %v18418_v9, %v19034_v48  ;;  %v4468_v9 = vsub.f32 %v18497_v39, %v19034_v48  ;;  %v22362_v39 = vld [vmem:[#allocation168_spill] sm:$0xff] }
 0x4c1   : > { %7739 = vmatmul.mubr.f32.gmra.mrb[166].mxu1 %v22292_v18  ;;  %12044 = vmatprep.subr.bf16.mxu0 %v21670_v44  ;;  %v22359_v18 = vld [vmem:[#allocation165_spill] sm:$0xff]  ;;  %22365 = vst [vmem:[#allocation184_spill] sm:$0xff] %v19140_v46  ;;  %v22366_v41 = vld [vmem:[#allocation172_spill] sm:$0xff] }
 0x4c2   : > { %7743 = vmatprep.mubr.f32.mxu1 %v22354_v7  ;;  %v4469_v21 = vsub.f32 %v22359_v18, %v19034_v48  ;;  %v4474_v18 = vsub.f32 %v18649_v63, %v19034_v48  ;;  %v4478_v63 = vsub.f32 %v22366_v41, %v19034_v48 }
 0x4c3   : > { %9449 = vmatmul.mubr.f32.gmra.mrb[98].mxu0 %v22320_v31  ;;  %v4467_v31 = vsub.f32 %v22358_v0, %v19034_v48  ;;  %v22361_v0 = vld [vmem:[#allocation148_spill] sm:$0xff] }
 0x4c4   : > { %9453 = vmatprep.mubr.f32.mxu0 %v22357_v25  ;;  %12046 = vmatpush1.bf16.msra.mxu0 %v12045_v59  ;;  %v4473_v25 = vsub.f32 %v22362_v39, %v19034_v48  ;;  %v22363_v59 = vld [vmem:[#allocation87_spill] sm:$0xff]  ;;  %v4477_v39 = vsub.f32 %v18721_v49, %v19034_v48 }
 0x4c5   : > { %7744 = vmatmul.mubr.f32.gmra.mrb[168].mxu1 %v22295_v40  ;;  %v4475_v40 = vsub.f32 %v22363_v59, %v19034_v48  ;;  %12047 = vmatprep.subr.bf16.mxu0 %v21670_v44  ;;  %v4479_v59 = vsub.f32 %v22367_v8, %v19034_v48 }
 0x4c6   : > { %7748 = vmatprep.mubr.f32.mxu1 %v22361_v0  ;;  %v22369_v0 = vld [vmem:[#allocation16_spill] sm:$0xff] }
 0x4c7   : > { %9454 = vmatmul.mubr.f32.gmra.mrb[100].mxu0 %v22325_v26  ;;  %v4476_v26 = vsub.f32 %v18697_v27, %v19034_v48 }
 0x4c8   : > { %9458 = vmatprep.mubr.f32.mxu0 %v22364_v54  ;;  %v13063_v62 = vpop.eup %13062  ;;  %v22368_v54 = vsub.f32 %v18981_v4, %v19034_v48 }
 0x4c9   : > { %v4494_v23 = vmul.f32 %v13063_v62, %v4460_v17  ;;  %v4496_v30 = vmul.f32 %v13063_v62, %v4462_v38  ;;  %v4497_v2 = vmul.f32 %v13063_v62, %v4463_v13  ;;  %7749 = vmatmul.mubr.f32.gmra.mrb[170].mxu1 %v22369_v0  ;;  %v4498_v27 = vmul.f32 %v13063_v62, %v4464_v22  ;;  %v22370_v38 = vld [vmem:[#allocation149_spill] sm:$0xff]  ;;  %v22388_v0 = vld [vmem:[#allocation18_spill] sm:$0xff] }
 0x4ca   : > { %v19154_v19 = vmul.f32 %v13063_v62, %v22368_v54  ;;  %v19157_v34 = vmul.f32 %v13063_v62, %v4465_v52  ;;  %v19159_v49 = vmul.f32 %v13063_v62, %v4466_v37  ;;  %v19161_v7 = vmul.f32 %v13063_v62, %v4467_v31  ;;  %7753 = vmatprep.mubr.f32.mxu1 %v22370_v38  ;;  %v22371_v37 = vld [vmem:[#allocation10_spill] sm:$0xff] }
 0x4cb   : > { %9459 = vmatmul.mubr.f32.gmra.mrb[102].mxu0 %v22328_v15  ;;  %v19164_v8 = vmul.f32 %v13063_v62, %v4468_v9  ;;  %v19166_v41 = vmul.f32 %v13063_v62, %v4469_v21  ;;  %v19168_v4 = vmul.f32 %v13063_v62, %v4470_v47  ;;  %v19170_v17 = vmul.f32 %v13063_v62, %v4471_v6  ;;  %v22372_v54 = vld [vmem:[#allocation174_spill] sm:$0xff] }
 0x4cc   : > { %v19173_v13 = vmul.f32 %v13063_v62, %v4472_v28  ;;  %v19175_v22 = vmul.f32 %v13063_v62, %v4473_v25  ;;  %v19177_v52 = vmul.f32 %v13063_v62, %v4474_v18  ;;  %v19179_v31 = vmul.f32 %v13063_v62, %v4475_v40  ;;  %9463 = vmatprep.mubr.f32.mxu0 %v22371_v37 }
 0x4cd   : > { %v19182_v9 = vmul.f32 %v13063_v62, %v4476_v26  ;;  %v19184_v21 = vmul.f32 %v13063_v62, %v4477_v39  ;;  %v19186_v47 = vmul.f32 %v13063_v62, %v4478_v63  ;;  %v19188_v6 = vmul.f32 %v13063_v62, %v4479_v59  ;;  %7754 = vmatmul.mubr.f32.gmra.mrb[172].mxu1 %v22372_v54  ;;  %v22381_v54 = vld [vmem:[#allocation150_spill] sm:$0xff] }
 0x4ce   : > { %v22373_v25 = vsub.f32 %v18791_v29, %v19034_v48  ;;  %v22374_v40 = vsub.f32 %v18811_v5, %v19034_v48  ;;  %v22375_v26 = vsub.f32 %v18830_v60, %v19034_v48  ;;  %v22376_v63 = vsub.f32 %v18849_v14, %v19034_v48  ;;  %v19215_v29 = vld [vmem:[%s20912_s5] ss:$0 sm:$0xff]  ;;  %7758 = vmatprep.mubr.f32.mxu1 %v22381_v54 }
 0x4cf   : > { %9464 = vmatmul.mubr.f32.gmra.mrb[104].mxu0 %v22331_v53  ;;  %v22377_v5 = vsub.f32 %v18868_v43, %v19034_v48  ;;  %v22378_v60 = vsub.f32 %v18886_v11, %v19034_v48  ;;  %v22379_v14 = vsub.f32 %v18903_v10, %v19034_v48  ;;  %v22382_v43 = vsub.f32 %v18943_v36, %v19034_v48  ;;  %v22384_v10 = vld [vmem:[#allocation27_spill] sm:$0xff] }
 0x4d0   : > { %v19194_v28 = vmul.f32 %v13063_v62, %v22373_v25  ;;  %v19199_v18 = vmul.f32 %v13063_v62, %v22374_v40  ;;  %v19204_v39 = vmul.f32 %v13063_v62, %v22375_v26  ;;  %v19209_v59 = vmul.f32 %v13063_v62, %v22376_v63  ;;  %9468 = vmatprep.mubr.f32.mxu0 %v22384_v10  ;;  %v7010_v36 = vld [vmem:[%s20914_s7 + $0x300] sm:$0xff] }
 0x4d1   : > { %v19220_v25 = vmul.f32 %v13063_v62, %v22377_v5  ;;  %v19225_v40 = vmul.f32 %v13063_v62, %v22378_v60  ;;  %v19230_v26 = vmul.f32 %v13063_v62, %v22379_v14  ;;  %v22380_v63 = vsub.f32 %v18925_v55, %v19034_v48 }
 0x4d2   : > { %v19241_v5 = vmul.f32 %v13063_v62, %v22382_v43  ;;  %v22383_v11 = vsub.f32 %v18962_v3, %v19034_v48  ;;  %v22385_v14 = vsub.f32 %v22356_v42, %v19034_v48  ;;  %v7011_v3 = vld [vmem:[%s20914_s7 + $0x308] sm:$0xff]  ;;  %v19264_v43 = vld [vmem:[%s20913_s6] ss:$0 sm:$0xff]  ;;  %v4534_v42 = vmul.f32 %v19215_v29, %v4496_v30  ;;  %v7012_v30 = vld [vmem:[%s20914_s7 + $0x310] sm:$0xff] }
 0x4d3   : > { %v19235_v53 = vmul.f32 %v13063_v62, %v22380_v63  ;;  %v22386_v63 = vsub.f32 %v18378_v50, %v19034_v48  ;;  %9469 = vmatmul.mubr.f32.gmra.mrb[106].mxu0 %v22334_v35  ;;  %v11682_v10 = vpack.c.bf16 %v7011_v3, %v7010_v36  ;;  %v4535_v36 = vmul.f32 %v19215_v29, %v4497_v2  ;;  %v7014_v2 = vld [vmem:[%s20914_s7 + $0x320] sm:$0xff] }
 0x4d4   : > { %v19246_v60 = vmul.f32 %v13063_v62, %v22383_v11  ;;  %v4495_v55 = vmul.f32 %v13063_v62, %v22385_v14  ;;  %v22387_v11 = vld [vmem:[#allocation24_spill] sm:$0xff]  ;;  %v13216_v14 = vld [vmem:[#allocation3 + $0x10] sm:$0xf]  ;;  %9473 = vmatprep.mubr.f32.mxu0 %v22388_v0 }
 0x4d5   : > { %v4493_v15 = vmul.f32 %v13063_v62, %v22386_v63  ;;  %7759 = vmatmul.mubr.f32.gmra.mrb[174].mxu1 %v22387_v11  ;;  %v5209_v50 = vrot.slane %v13216_v14, 4  ;;  %v4532_v63 = vmul.f32 %v19215_v29, %v4494_v23  ;;  %v4536_v23 = vmul.f32 %v19215_v29, %v4498_v27  ;;  %v7015_v27 = vld [vmem:[%s20914_s7 + $0x328] sm:$0xff] }
 0x4d6   : > { %v4533_v48 = vmul.f32 %v19215_v29, %v4495_v55  ;;  %7828 = vmatprep.mubr.f32.mxu1 %v18874_v16  ;;  %v22389_v55 = vpack.c.bf16 %v19081_v61, %v19076_v24  ;;  %v22390_v24 = vld [vmem:[#allocation139_spill] sm:$0xff] }
 0x4d7   : > { %v4531_v62 = vmul.f32 %v19215_v29, %v4493_v15  ;;  %v7013_v15 = vld [vmem:[%s20914_s7 + $0x318] sm:$0xff]  ;;  %v5210_v3 = vsel %vm492_vm0, %v19140_v46, %v5209_v50  ;;  %v4570_v35 = vadd.f32 %v19264_v43, %v4532_v63  ;;  %9474 = vmatmul.mubr.f32.gmra.mrb[108].mxu0 %v22337_v12  ;;  %v13217_v50 = vld [vmem:[#allocation3 + $0x30] sm:$0xff]  ;;  %v4537_v63 = vmul.f32 %v19215_v29, %v19157_v34 }
 0x4d8   : > { %v4571_v37 = vadd.f32 %v19264_v43, %v4533_v48  ;;  %12049 = vmatpush1.bf16.msra.mxu0 %v22389_v55  ;;  %9478 = vmatprep.mubr.f32.mxu0 %v22390_v24  ;;  %v11685_v61 = vpack.c.bf16 %v7013_v15, %v7012_v30  ;;  %v22391_v30 = vld [vmem:[#allocation140_spill] sm:$0xff]  ;;  %v11688_v15 = vpack.c.bf16 %v7015_v27, %v7014_v2  ;;  %v22392_v34 = vld [vmem:[#allocation39_spill] sm:$0xff]  ;;  %v7257_v2 = vld [vmem:[%s20914_s7 + $0xab8] sm:$0xff] }
 0x4d9   : > { %v4569_v11 = vadd.f32 %v19264_v43, %v4531_v62  ;;  %7829 = vmatmul.mubr.f32.vlgmr.msra.gmra.mrb[112].mxu1 %v19140_v46  ;;  %12050 = vmatprep.subr.bf16.mxu0 %v21670_v44  ;;  %v4572_v62 = vadd.f32 %v19264_v43, %v4534_v42  ;;  %v4573_v42 = vadd.f32 %v19264_v43, %v4535_v36  ;;  %v22393_v27 = vld [vmem:[#allocation32_spill] sm:$0xff] }
 0x4da   : > { %v4603_v14 = vmax.f32 %v4571_v37, 0.0  ;;  %7833 = vmatprep.mubr.f32.mxu1 %v18874_v16  ;;  %11683 = vmatpush1.bf16.msra.mxu1 %v11682_v10  ;;  %v4574_v37 = vadd.f32 %v19264_v43, %v4536_v23  ;;  %v4538_v16 = vmul.f32 %v19215_v29, %v19159_v49  ;;  %v7017_v49 = vld [vmem:[%s20914_s7 + $0x338] sm:$0xff] }
 0x4db   : > { %v4601_v48 = vmax.f32 %v4569_v11, 0.0  ;;  %11684 = vmatprep.subr.bf16.mxu1 %v21670_v44  ;;  %v4604_v10 = vmax.f32 %v4572_v62, 0.0  ;;  %v4602_v11 = vmax.f32 %v4570_v35, 0.0  ;;  %9479 = vmatmul.mubr.f32.gmra.mrb[110].mxu0 %v22340_v51  ;;  %v7016_v35 = vld [vmem:[%s20914_s7 + $0x330] sm:$0xff]  ;;  %v4605_v36 = vmax.f32 %v4573_v42, 0.0 }
 0x4dc   : > { %10625 = vrot.lane.b32.xlu1 %v4603_v14, %s13320_s20  ;;  %9483 = vmatprep.mubr.f32.mxu0 %v22391_v30  ;;  %v4606_v55 = vmax.f32 %v4574_v37, 0.0  ;;  %v4576_v23 = vadd.f32 %v19264_v43, %v4538_v16  ;;  %v13218_v14 = vld [vmem:[#allocation3 + $0x38] sm:$0xff]  ;;  %v4539_v62 = vmul.f32 %v19215_v29, %v19161_v7  ;;  %v11691_v37 = vpack.c.bf16 %v7017_v49, %v7016_v35  ;;  %v22394_v16 = vld [vmem:[#allocation42_spill] sm:$0xff]  ;;  %v22395_v35 = vld [vmem:[#allocation33_spill] sm:$0xff] }
 0x4dd   : > { %10621 = vrot.lane.b32.xlu0 %v4601_v48, %s13320_s20  ;;  %7834 = vmatmul.mubr.f32.gmra.mrb[114].mxu1 %v5210_v3  ;;  %v4575_v3 = vadd.f32 %v19264_v43, %v4537_v63  ;;  %v4540_v48 = vmul.f32 %v19215_v29, %v19164_v8  ;;  %v4542_v7 = vmul.f32 %v19215_v29, %v19168_v4  ;;  %v13219_v63 = vld [vmem:[#allocation3 + $0x48] sm:$0xff]  ;;  %v7018_v4 = vld [vmem:[%s20914_s7 + $0x340] sm:$0xff]  ;;  %v7019_v49 = vld [vmem:[%s20914_s7 + $0x348] sm:$0xff] }
 0x4de   : > { %7838 = vmatprep.mubr.f32.mxu1 %v13217_v50  ;;  %11686 = vmatpush1.bf16.msra.mxu1 %v11685_v61  ;;  %v7256_v61 = vld [vmem:[%s20914_s7 + $0xab0] sm:$0xff]  ;;  %v4608_v8 = vmax.f32 %v4576_v23, 0.0  ;;  %v4577_v50 = vadd.f32 %v19264_v43, %v4539_v62  ;;  %v4543_v23 = vmul.f32 %v19215_v29, %v19170_v17  ;;  %v7258_v62 = vld [vmem:[%s20914_s7 + $0xac0] sm:$0xff] }
 0x4df   : > { %11687 = vmatprep.subr.bf16.mxu1 %v21670_v44  ;;  %9484 = vmatmul.mubr.f32.gmra.mrb[112].mxu0 %v22342_v58  ;;  %v4578_v42 = vadd.f32 %v19264_v43, %v4540_v48  ;;  %v13220_v48 = vld [vmem:[#allocation3 + $0x50] sm:$0xff]  ;;  %v22397_v17 = vld [vmem:[#allocation9_spill] sm:$0xff] }
 0x4e0   : > { %10627 = vrot.lane.b32.xlu1 %v4604_v10, %s13320_s20  ;;  %9488 = vmatprep.mubr.f32.mxu0 %v22393_v27  ;;  %v12051_v10 = vpack.c.bf16 %v7257_v2, %v7256_v61  ;;  %v11694_v61 = vpack.c.bf16 %v7019_v49, %v7018_v4 }
 0x4e1   : > { %10623 = vrot.lane.b32.xlu0 %v4602_v11, %s13320_s20  ;;  %7839 = vmatmul.mubr.f32.gmra.mrb[116].mxu1 %v22392_v34  ;;  %v4607_v11 = vmax.f32 %v4575_v3, 0.0  ;;  %v4610_v34 = vmax.f32 %v4578_v42, 0.0  ;;  %v4580_v3 = vadd.f32 %v19264_v43, %v4542_v7  ;;  %v19382_v42 = vld [vmem:[#allocation3 + $0x60] sm:$0xff] }
 0x4e2   : > { %7843 = vmatprep.mubr.f32.mxu1 %v13218_v14  ;;  %11689 = vmatpush1.bf16.msra.mxu1 %v11688_v15  ;;  %v4541_v15 = vmul.f32 %v19215_v29, %v19166_v41  ;;  %v4544_v41 = vmul.f32 %v19215_v29, %v19173_v13  ;;  %v7259_v13 = vld [vmem:[%s20914_s7 + $0xac8] sm:$0xff] }
 0x4e3   : > { %11690 = vmatprep.subr.bf16.mxu1 %v21670_v44  ;;  %9489 = vmatmul.mubr.f32.gmra.mrb[114].mxu0 %v22344_v45  ;;  %v4612_v7 = vmax.f32 %v4580_v3, 0.0  ;;  %v22400_v3 = vld [vmem:[#allocation52_spill] sm:$0xff] }
 0x4e4   : > { %10631 = vrot.lane.b32.xlu1 %v4606_v55, %s13320_s20  ;;  %9493 = vmatprep.mubr.f32.mxu0 %v22395_v35  ;;  %v22396_v55 = vld [vmem:[#allocation56_spill] sm:$0xff]  ;;  %v4579_v14 = vadd.f32 %v19264_v43, %v4541_v15  ;;  %v4582_v2 = vadd.f32 %v19264_v43, %v4544_v41  ;;  %v7021_v15 = vld [vmem:[%s20914_s7 + $0x358] sm:$0xff] }
 0x4e5   : > { %10629 = vrot.lane.b32.xlu0 %v4605_v36, %s13320_s20  ;;  %7844 = vmatmul.mubr.f32.gmra.mrb[118].mxu1 %v22394_v16  ;;  %v4609_v36 = vmax.f32 %v4577_v50, 0.0  ;;  %v12054_v16 = vpack.c.bf16 %v7259_v13, %v7258_v62  ;;  %v4545_v50 = vmul.f32 %v19215_v29, %v19175_v22  ;;  %v19400_v41 = vld [vmem:[#allocation3 + $0x68] sm:$0xff] }
 0x4e6   : > { %7848 = vmatprep.mubr.f32.mxu1 %v13219_v63  ;;  %11692 = vmatpush1.bf16.msra.mxu1 %v11691_v37  ;;  %v22398_v37 = vld [vmem:[#allocation59_spill] sm:$0xff]  ;;  %v22399_v63 = vld [vmem:[#allocation50_spill] sm:$0xff]  ;;  %v4614_v4 = vmax.f32 %v4582_v2, 0.0 }
 0x4e7   : > { %12052 = vmatpush1.bf16.msra.mxu0 %v12051_v10  ;;  %11693 = vmatprep.subr.bf16.mxu1 %v21670_v44  ;;  %v4611_v10 = vmax.f32 %v4579_v14, 0.0 }
 0x4e8   : > { %10635 = vrot.lane.b32.xlu1 %v4608_v8, %s13320_s20  ;;  %9494 = vmatmul.mubr.f32.gmra.mrb[116].mxu0 %v22346_v1  ;;  %v4546_v8 = vmul.f32 %v19215_v29, %v19177_v52  ;;  %v7020_v52 = vld [vmem:[%s20914_s7 + $0x350] sm:$0xff] }
 0x4e9   : > { %10633 = vrot.lane.b32.xlu0 %v4607_v11, %s13320_s20  ;;  %7849 = vmatmul.mubr.f32.gmra.mrb[120].mxu1 %v22396_v55  ;;  %v4581_v11 = vadd.f32 %v19264_v43, %v4543_v23  ;;  %v4583_v55 = vadd.f32 %v19264_v43, %v4545_v50  ;;  %v4548_v23 = vmul.f32 %v19215_v29, %v19182_v9 }
 0x4ea   : > { %7853 = vmatprep.mubr.f32.mxu1 %v13220_v48  ;;  %9498 = vmatprep.mubr.f32.mxu0 %v22397_v17  ;;  %v4584_v49 = vadd.f32 %v19264_v43, %v4546_v8  ;;  %v11697_v14 = vpack.c.bf16 %v7021_v15, %v7020_v52  ;;  %v4549_v9 = vmul.f32 %v19215_v29, %v19184_v21  ;;  %v7022_v21 = vld [vmem:[%s20914_s7 + $0x360] sm:$0xff]  ;;  %v19444_v15 = vld [vmem:[#allocation3 + $0x80] sm:$0xff] }
 0x4eb   : > { %12053 = vmatprep.subr.bf16.mxu0 %v21670_v44  ;;  %11695 = vmatpush1.bf16.msra.mxu1 %v11694_v61  ;;  %v4613_v22 = vmax.f32 %v4581_v11, 0.0  ;;  %v4615_v13 = vmax.f32 %v4583_v55, 0.0  ;;  %v4586_v61 = vadd.f32 %v19264_v43, %v4548_v23  ;;  %v22403_v52 = vld [vmem:[#allocation147_spill] sm:$0xff] }
 0x4ec   : > { %10639 = vrot.lane.b32.xlu1 %v4610_v34, %s13320_s20  ;;  %9499 = vmatmul.mubr.f32.gmra.mrb[118].mxu0 %v22348_v57  ;;  %v4547_v34 = vmul.f32 %v19215_v29, %v19179_v31  ;;  %v4550_v31 = vmul.f32 %v19215_v29, %v19186_v47  ;;  %v4616_v62 = vmax.f32 %v4584_v49, 0.0  ;;  %v7023_v47 = vld [vmem:[%s20914_s7 + $0x368] sm:$0xff]  ;;  %v4587_v50 = vadd.f32 %v19264_v43, %v4549_v9  ;;  %v7262_v49 = vld [vmem:[%s20914_s7 + $0xae0] sm:$0xff] }
 0x4ed   : > { %10637 = vrot.lane.b32.xlu0 %v4609_v36, %s13320_s20  ;;  %7854 = vmatmul.mubr.f32.gmra.mrb[122].mxu1 %v22398_v37  ;;  %v7261_v36 = vld [vmem:[%s20914_s7 + $0xad8] sm:$0xff]  ;;  %v19426_v37 = vld [vmem:[#allocation3 + $0x78] sm:$0xff]  ;;  %v11700_v55 = vpack.c.bf16 %v7023_v47, %v7022_v21 }
 0x4ee   : > { %7858 = vmatprep.mubr.f32.mxu1 %v19382_v42  ;;  %9503 = vmatprep.mubr.f32.mxu0 %v22399_v63  ;;  %v4585_v2 = vadd.f32 %v19264_v43, %v4547_v34  ;;  %v4588_v8 = vadd.f32 %v19264_v43, %v4550_v31  ;;  %v4554_v34 = vmul.f32 %v19215_v29, %v19204_v39  ;;  %v22406_v9 = vld [vmem:[#allocation148_spill] sm:$0xff]  ;;  %v7024_v39 = vld [vmem:[%s20914_s7 + $0x370] sm:$0xff] }
 0x4ef   : > { %12055 = vmatpush1.bf16.msra.mxu0 %v12054_v16  ;;  %11696 = vmatprep.subr.bf16.mxu1 %v21670_v44  ;;  %v22402_v16 = vld [vmem:[#allocation13_spill] sm:$0xff]  ;;  %v22408_v47 = vld [vmem:[#allocation36_spill] sm:$0xff] }
 0x4f0   : > { %10643 = vrot.lane.b32.xlu1 %v4612_v7, %s13320_s20  ;;  %9504 = vmatmul.mubr.f32.gmra.mrb[120].mxu0 %v22350_v56  ;;  %v4552_v7 = vmul.f32 %v19215_v29, %v19194_v28  ;;  %v4617_v11 = vmax.f32 %v4585_v2, 0.0  ;;  %v7263_v28 = vld [vmem:[%s20914_s7 + $0xae8] sm:$0xff]  ;;  %v4592_v21 = vadd.f32 %v19264_v43, %v4554_v34 }
 0x4f1   : > { %10641 = vrot.lane.b32.xlu0 %v4611_v10, %s13320_s20  ;;  %7859 = vmatmul.mubr.f32.gmra.mrb[124].mxu1 %v22332_v33  ;;  %v7260_v33 = vld [vmem:[%s20914_s7 + $0xad0] sm:$0xff]  ;;  %v4618_v10 = vmax.f32 %v4586_v61, 0.0  ;;  %v7025_v61 = vld [vmem:[%s20914_s7 + $0x378] sm:$0xff] }
 0x4f2   : > { %7863 = vmatprep.mubr.f32.mxu1 %v19400_v41  ;;  %9508 = vmatprep.mubr.f32.mxu0 %v22400_v3  ;;  %v12057_v48 = vpack.c.bf16 %v7261_v36, %v7260_v33  ;;  %v4590_v23 = vadd.f32 %v19264_v43, %v4552_v7  ;;  %v12060_v33 = vpack.c.bf16 %v7263_v28, %v7262_v49  ;;  %v4620_v36 = vmax.f32 %v4588_v8, 0.0  ;;  %v19484_v7 = vld [vmem:[#allocation3 + $0x98] sm:$0xff] }
 0x4f3   : > { %12056 = vmatprep.subr.bf16.mxu0 %v21670_v44  ;;  %11698 = vmatpush1.bf16.msra.mxu1 %v11697_v14  ;;  %v4619_v14 = vmax.f32 %v4587_v50, 0.0  ;;  %v7264_v50 = vld [vmem:[%s20914_s7 + $0xaf0] sm:$0xff]  ;;  %v22409_v49 = vld [vmem:[#allocation60_spill] sm:$0xff]  ;;  %v11703_v28 = vpack.c.bf16 %v7025_v61, %v7024_v39  ;;  %v4624_v34 = vmax.f32 %v4592_v21, 0.0 }
 0x4f4   : > { %10647 = vrot.lane.b32.xlu1 %v4614_v4, %s13320_s20  ;;  %9509 = vmatmul.mubr.f32.gmra.mrb[122].mxu0 %v22352_v32  ;;  %v4551_v4 = vmul.f32 %v19215_v29, %v19188_v6  ;;  %v22405_v6 = vld [vmem:[#allocation17_spill] sm:$0xff]  ;;  %v4622_v2 = vmax.f32 %v4590_v23, 0.0 }
 0x4f5   : > { %10645 = vrot.lane.b32.xlu0 %v4613_v22, %s13320_s20  ;;  %7864 = vmatmul.mubr.f32.gmra.mrb[126].mxu1 %v22335_v20  ;;  %v22401_v20 = vld [vmem:[#allocation53_spill] sm:$0xff]  ;;  %v22404_v22 = vld [vmem:[#allocation55_spill] sm:$0xff] }
 0x4f6   : > { %7868 = vmatprep.mubr.f32.mxu1 %v19426_v37  ;;  %9513 = vmatprep.mubr.f32.mxu0 %v22401_v20  ;;  %v4589_v31 = vadd.f32 %v19264_v43, %v4551_v4  ;;  %v7265_v4 = vld [vmem:[%s20914_s7 + $0xaf8] sm:$0xff]  ;;  %v22412_v61 = vld [vmem:[#allocation85_spill] sm:$0xff] }
 0x4f7   : > { %12058 = vmatpush1.bf16.msra.mxu0 %v12057_v48  ;;  %11699 = vmatprep.subr.bf16.mxu1 %v21670_v44  ;;  %v19466_v48 = vld [vmem:[#allocation3 + $0x90] sm:$0xff]  ;;  %v12063_v23 = vpack.c.bf16 %v7265_v4, %v7264_v50  ;;  %v4559_v50 = vmul.f32 %v19215_v29, %v19235_v53  ;;  %v22414_v4 = vld [vmem:[#allocation65_spill] sm:$0xff] }
 0x4f8   : > { %10651 = vrot.lane.b32.xlu1 %v4616_v62, %s13320_s20  ;;  %9514 = vmatmul.mubr.f32.gmra.mrb[124].mxu0 %v22403_v52  ;;  %v4553_v62 = vmul.f32 %v19215_v29, %v19199_v18  ;;  %v4621_v18 = vmax.f32 %v4589_v31, 0.0  ;;  %v19510_v31 = vld [vmem:[#allocation3 + $0xa8] sm:$0xff]  ;;  %v22415_v53 = vld [vmem:[#allocation99_spill] sm:$0xff] }
 0x4f9   : > { %10649 = vrot.lane.b32.xlu0 %v4615_v13, %s13320_s20  ;;  %7869 = vmatmul.mubr.f32.gmra.mrb[128].mxu1 %v22402_v16  ;;  %v22407_v13 = vld [vmem:[#allocation57_spill] sm:$0xff] }
 0x4fa   : > { %7873 = vmatprep.mubr.f32.mxu1 %v19444_v15  ;;  %9518 = vmatprep.mubr.f32.mxu0 %v22404_v22  ;;  %v4591_v8 = vadd.f32 %v19264_v43, %v4553_v62  ;;  %v22411_v62 = vld [vmem:[#allocation63_spill] sm:$0xff] }
 0x4fb   : > { %12059 = vmatprep.subr.bf16.mxu0 %v21670_v44  ;;  %11701 = vmatpush1.bf16.msra.mxu1 %v11700_v55  ;;  %v4557_v55 = vmul.f32 %v19215_v29, %v19225_v40  ;;  %v7026_v40 = vld [vmem:[%s20914_s7 + $0x380] sm:$0xff] }
 0x4fc   : > { %10655 = vrot.lane.b32.xlu1 %v4618_v10, %s13320_s20  ;;  %9519 = vmatmul.mubr.f32.gmra.mrb[126].mxu0 %v22406_v9  ;;  %v4556_v10 = vmul.f32 %v19215_v29, %v19220_v25  ;;  %v22410_v25 = vld [vmem:[#allocation83_spill] sm:$0xff] }
 0x4fd   : > { %10653 = vrot.lane.b32.xlu0 %v4617_v11, %s13320_s20  ;;  %7874 = vmatmul.mubr.f32.gmra.mrb[130].mxu1 %v22405_v6  ;;  %v4555_v11 = vmul.f32 %v19215_v29, %v19209_v59  ;;  %v4558_v59 = vmul.f32 %v19215_v29, %v19230_v26  ;;  %v7027_v26 = vld [vmem:[%s20914_s7 + $0x388] sm:$0xff] }
 0x4fe   : > { %7878 = vmatprep.mubr.f32.mxu1 %v19466_v48  ;;  %9523 = vmatprep.mubr.f32.mxu0 %v22407_v13 }
 0x4ff   : > { %12061 = vmatpush1.bf16.msra.mxu0 %v12060_v33  ;;  %11702 = vmatprep.subr.bf16.mxu1 %v21670_v44  ;;  %v4623_v33 = vmax.f32 %v4591_v8, 0.0  ;;  %v4596_v39 = vadd.f32 %v19264_v43, %v4558_v59  ;;  %v4595_v8 = vadd.f32 %v19264_v43, %v4557_v55  ;;  %v7029_v59 = vld [vmem:[%s20914_s7 + $0x398] sm:$0xff] }
 0x500   : > { %10659 = vrot.lane.b32.xlu1 %v4620_v36, %s13320_s20  ;;  %9524 = vmatmul.mubr.f32.gmra.mrb[128].mxu0 %v22370_v38  ;;  %v4594_v36 = vadd.f32 %v19264_v43, %v4556_v10  ;;  %v22413_v10 = vld [vmem:[#allocation151_spill] sm:$0xff] }
 0x501   : > { %10657 = vrot.lane.b32.xlu0 %v4619_v14, %s13320_s20  ;;  %7879 = vmatmul.mubr.f32.gmra.mrb[132].mxu1 %v22408_v47  ;;  %v4593_v14 = vadd.f32 %v19264_v43, %v4555_v11  ;;  %v19528_v11 = vld [vmem:[#allocation3 + $0xb0] sm:$0xff] }
 0x502   : > { %7883 = vmatprep.mubr.f32.mxu1 %v19484_v7  ;;  %9528 = vmatprep.mubr.f32.mxu0 %v22409_v49  ;;  %v4626_v21 = vmax.f32 %v4594_v36, 0.0  ;;  %v4597_v36 = vadd.f32 %v19264_v43, %v4559_v50 }
 0x503   : > { %12062 = vmatprep.subr.bf16.mxu0 %v21670_v44  ;;  %11704 = vmatpush1.bf16.msra.mxu1 %v11703_v28  ;;  %v11706_v28 = vpack.c.bf16 %v7027_v26, %v7026_v40  ;;  %v19550_v40 = vld [vmem:[#allocation3 + $0xc0] sm:$0xff]  ;;  %v4561_v26 = vmul.f32 %v19215_v29, %v19246_v60 }
 0x504   : > { %10663 = vrot.lane.b32.xlu1 %v4622_v2, %s13320_s20  ;;  %9529 = vmatmul.mubr.f32.gmra.mrb[130].mxu0 %v22381_v54  ;;  %v4560_v2 = vmul.f32 %v19215_v29, %v19241_v5  ;;  %v7028_v5 = vld [vmem:[%s20914_s7 + $0x390] sm:$0xff]  ;;  %v4629_v60 = vmax.f32 %v4597_v36, 0.0  ;;  %v7273_v54 = vld [vmem:[%s20914_s7 + $0xb38] sm:$0xff] }
 0x505   : > { %10661 = vrot.lane.b32.xlu0 %v4621_v18, %s13320_s20  ;;  %7884 = vmatmul.mubr.f32.gmra.mrb[134].mxu1 %v22410_v25  ;;  %v4625_v18 = vmax.f32 %v4593_v14, 0.0  ;;  %v22416_v14 = vld [vmem:[#allocation152_spill] sm:$0xff]  ;;  %v4599_v50 = vadd.f32 %v19264_v43, %v4561_v26  ;;  %v7032_v36 = vld [vmem:[%s20914_s7 + $0x3b0] sm:$0xff]  ;;  %v7033_v26 = vld [vmem:[%s20914_s7 + $0x3b8] sm:$0xff] }
 0x506   : > { %7888 = vmatprep.mubr.f32.mxu1 %v19510_v31  ;;  %9533 = vmatprep.mubr.f32.mxu0 %v22411_v62  ;;  %v4598_v55 = vadd.f32 %v19264_v43, %v4560_v2  ;;  %v22417_v2 = vld [vmem:[#allocation194_spill] sm:$0xff]  ;;  %v7271_v62 = vld [vmem:[%s20914_s7 + $0xb28] sm:$0xff] }
 0x507   : > { %12064 = vmatpush1.bf16.msra.mxu0 %v12063_v23  ;;  %11705 = vmatprep.subr.bf16.mxu1 %v21670_v44  ;;  %v4562_v23 = vmul.f32 %v19215_v29, %v19154_v19  ;;  %v7030_v19 = vld [vmem:[%s20914_s7 + $0x3a0] sm:$0xff] }
 0x508   : > { %10667 = vrot.lane.b32.xlu1 %v4624_v34, %s13320_s20  ;;  %9534 = vmatmul.mubr.f32.gmra.mrb[132].mxu0 %v22413_v10  ;;  %v4628_v34 = vmax.f32 %v4596_v39, 0.0  ;;  %v7031_v39 = vld [vmem:[%s20914_s7 + $0x3a8] sm:$0xff]  ;;  %v4630_v29 = vmax.f32 %v4598_v55, 0.0 }
 0x509   : > { %10665 = vrot.lane.b32.xlu0 %v4623_v33, %s13320_s20  ;;  %7889 = vmatmul.mubr.f32.gmra.mrb[136].mxu1 %v22412_v61  ;;  %v4627_v33 = vmax.f32 %v4595_v8, 0.0  ;;  %v4600_v8 = vadd.f32 %v19264_v43, %v4562_v23  ;;  %v11712_v55 = vpack.c.bf16 %v7031_v39, %v7030_v19  ;;  %v13232_v43 = vld [vmem:[#allocation3 + $0x1c0] sm:$0xf]  ;;  %v4631_v19 = vmax.f32 %v4599_v50, 0.0  ;;  %v22423_v39 = vld [vmem:[#allocation182_spill] sm:$0xff]  ;;  %v7035_v50 = vld [vmem:[%s20914_s7 + $0x3c8] sm:$0xff] }
 0x50a   : > { %7893 = vmatprep.mubr.f32.mxu1 %v19528_v11  ;;  %9538 = vmatprep.mubr.f32.mxu0 %v22414_v4  ;;  %v5887_v23 = vrot.slane %v13232_v43, 4 }
 0x50b   : > { %12065 = vmatprep.subr.bf16.mxu0 %v21670_v44  ;;  %11707 = vmatpush1.bf16.msra.mxu1 %v11706_v28  ;;  %v22419_v28 = vld [vmem:[#allocation98_spill] sm:$0xff] }
 0x50c   : > { %10671 = vrot.lane.b32.xlu1 %v4626_v21, %s13320_s20  ;;  %9539 = vmatmul.mubr.f32.gmra.mrb[134].mxu0 %v22416_v14  ;;  %v11709_v21 = vpack.c.bf16 %v7029_v59, %v7028_v5  ;;  %v19569_v5 = vld [vmem:[#allocation3 + $0xc8] sm:$0xff]  ;;  %v19597_v4 = vsel %vm492_vm0, %v19140_v46, %v5887_v23  ;;  %v22431_v14 = vld [vmem:[#allocation27_spill] sm:$0xff] }
 0x50d   : > { %10669 = vrot.lane.b32.xlu0 %v4625_v18, %s13320_s20  ;;  %7894 = vmatmul.mubr.f32.gmra.mrb[138].mxu1 %v22415_v53  ;;  %v22418_v18 = vld [vmem:[#allocation102_spill] sm:$0xff]  ;;  %22424 = vst [vmem:[#allocation92_spill] sm:$0xff] %v19597_v4 }
 0x50e   : > { %7898 = vmatprep.mubr.f32.mxu1 %v19550_v40  ;;  %9543 = vmatprep.mubr.f32.mxu0 %v22417_v2  ;;  %v22420_v59 = vld [vmem:[#allocation186_spill] sm:$0xff]  ;;  %v11715_v2 = vpack.c.bf16 %v7033_v26, %v7032_v36  ;;  %v7266_v36 = vld [vmem:[%s20914_s7 + $0xb00] sm:$0xff]  ;;  %v7267_v26 = vld [vmem:[%s20914_s7 + $0xb08] sm:$0xff] }
 0x50f   : > { %11708 = vmatprep.subr.bf16.mxu1 %v21670_v44 }
 0x510   : > { %10675 = vrot.lane.b32.xlu1 %v4628_v34, %s13320_s20  ;;  %9544 = vmatmul.mubr.f32.gmra.mrb[136].mxu0 %v22419_v28  ;;  %v19573_v34 = vld [vmem:[#allocation2] sm:$0xff] }
 0x511   : > { %10673 = vrot.lane.b32.xlu0 %v4627_v33, %s13320_s20  ;;  %7899 = vmatmul.mubr.f32.gmra.mrb[140].mxu1 %v22418_v18  ;;  %v19576_v33 = vrot.slane %v19573_v34, 3  ;;  %v7038_v28 = vld [vmem:[%s20914_s7 + $0x3e0] sm:$0xff] }
 0x512   : > { %7903 = vmatprep.mubr.f32.mxu1 %v19569_v5  ;;  %9548 = vmatprep.mubr.f32.mxu0 %v22420_v59  ;;  %v22422_v59 = vld [vmem:[#allocation105_spill] sm:$0xff] }
 0x513   : > { %22421 = vst [vmem:[#allocation183_spill] sm:$0xff] %v19576_v33  ;;  %11710 = vmatpush1.bf16.msra.mxu1 %v11709_v21  ;;  %v4632_v21 = vmax.f32 %v4600_v8, 0.0  ;;  %v7034_v8 = vld [vmem:[%s20914_s7 + $0x3c0] sm:$0xff] }
 0x514   : > { %10679 = vrot.lane.b32.xlu1 %v4630_v29, %s13320_s20  ;;  %11711 = vmatprep.subr.bf16.mxu1 %v21670_v44  ;;  %v19589_v29 = vld [vmem:[#allocation3 + $0xd8] sm:$0xff]  ;;  %v11718_v23 = vpack.c.bf16 %v7035_v50, %v7034_v8  ;;  %v22428_v8 = vld [vmem:[#allocation159_spill] sm:$0xff]  ;;  %v12066_v50 = vpack.c.bf16 %v7267_v26, %v7266_v36  ;;  %v22430_v26 = vld [vmem:[#allocation161_spill] sm:$0xff] }
 0x515   : > { %10677 = vrot.lane.b32.xlu0 %v4629_v60, %s13320_s20  ;;  %7904 = vmatmul.mubr.f32.gmra.mrb[142].mxu1 %v22422_v59  ;;  %v5848_v60 = vrot.slane %v13232_v43, 3  ;;  %v19650_v36 = vld [vmem:[#allocation3 + $0xf8] sm:$0xff] }
 0x516   : > { %9549 = vmatmul.mubr.f32.gmra.mrb[138].mxu0 %v22423_v39  ;;  %7908 = vmatprep.mubr.f32.mxu1 %v19589_v29  ;;  %v22425_v39 = vld [vmem:[#allocation107_spill] sm:$0xff] }
 0x517   : > { %9553 = vmatprep.mubr.f32.mxu0 %v19140_v46  ;;  %11713 = vmatpush1.bf16.msra.mxu1 %v11712_v55  ;;  %v19608_v55 = vld [vmem:[#allocation3 + $0xe0] sm:$0xff]  ;;  %v19614_v43 = vsel %vm5061_vm5, %v19576_v33, %v5848_v60  ;;  %v19631_v60 = vld [vmem:[#allocation3 + $0xf0] sm:$0xff] }
 0x518   : > { %10683 = vrot.lane.b32.xlu1 %v4632_v21, %s13320_s20  ;;  %11714 = vmatprep.subr.bf16.mxu1 %v21670_v44  ;;  %22426 = vst [vmem:[#allocation40_spill] sm:$0xff] %v19614_v43  ;;  %v22427_v21 = vld [vmem:[#allocation109_spill] sm:$0xff] }
 0x519   : > { %10681 = vrot.lane.b32.xlu0 %v4631_v19, %s13320_s20  ;;  %7909 = vmatmul.mubr.f32.gmra.mrb[144].mxu1 %v22425_v39  ;;  %v7036_v19 = vld [vmem:[%s20914_s7 + $0x3d0] sm:$0xff] }
 0x51a   : > { %9554 = vmatmul.mubr.f32.gmra.mrb[140].mxu0 %v19576_v33  ;;  %7913 = vmatprep.mubr.f32.mxu1 %v19608_v55  ;;  %v7269_v33 = vld [vmem:[%s20914_s7 + $0xb18] sm:$0xff] }
 0x51b   : > { %9558 = vmatprep.mubr.f32.mxu0 %v19597_v4  ;;  %11716 = vmatpush1.bf16.msra.mxu1 %v11715_v2  ;;  %v7037_v2 = vld [vmem:[%s20914_s7 + $0x3d8] sm:$0xff]  ;;  %v7268_v4 = vld [vmem:[%s20914_s7 + $0xb10] sm:$0xff] }
 0x51c   : > { %11717 = vmatprep.subr.bf16.mxu1 %v21670_v44  ;;  %v11721_v46 = vpack.c.bf16 %v7037_v2, %v7036_v19  ;;  %v12069_v19 = vpack.c.bf16 %v7269_v33, %v7268_v4  ;;  %v7270_v2 = vld [vmem:[%s20914_s7 + $0xb20] sm:$0xff]  ;;  %v7040_v4 = vld [vmem:[%s20914_s7 + $0x3f0] sm:$0xff]  ;;  %v7041_v33 = vld [vmem:[%s20914_s7 + $0x3f8] sm:$0xff] }
 0x51d   : > { %7914 = vmatmul.mubr.f32.gmra.mrb[146].mxu1 %v22427_v21  ;;  %v12072_v10 = vpack.c.bf16 %v7271_v62, %v7270_v2  ;;  %v11727_v38 = vpack.c.bf16 %v7041_v33, %v7040_v4  ;;  %v19692_v62 = vld [vmem:[#allocation3 + $0x110] sm:$0xff]  ;;  %v7275_v4 = vld [vmem:[%s20914_s7 + $0xb48] sm:$0xff]  ;;  %v7277_v33 = vld [vmem:[%s20914_s7 + $0xb58] sm:$0xff] }
 0x51e   : > { %9559 = vmatmul.mubr.f32.gmra.mrb[142].mxu0 %v19614_v43  ;;  %7918 = vmatprep.mubr.f32.mxu1 %v19631_v60  ;;  %v22429_v43 = vld [vmem:[#allocation10_spill] sm:$0xff] }
 0x51f   : > { %9628 = vmatprep.mubr.f32.mxu0 %v22428_v8  ;;  %11719 = vmatpush1.bf16.msra.mxu1 %v11718_v23  ;;  %v7039_v23 = vld [vmem:[%s20914_s7 + $0x3e8] sm:$0xff] }
 0x520   : > { %11720 = vmatprep.subr.bf16.mxu1 %v21670_v44 }
 0x521   : > { %7919 = vmatmul.mubr.f32.gmra.mrb[148].mxu1 %v22429_v43  ;;  %v22447_v43 = vld [vmem:[#allocation113_spill] sm:$0xff] }
 0x522   : > { %9629 = vmatmul.mubr.f32.vlgmr.msra.gmra.mrb[80].mxu0 %v19382_v42  ;;  %7923 = vmatprep.mubr.f32.mxu1 %v19650_v36  ;;  %v11724_v42 = vpack.c.bf16 %v7039_v23, %v7038_v28  ;;  %v7299_v28 = vld [vmem:[%s20914_s7 + $0xc08] sm:$0xff]  ;;  %v22432_v23 = vld [vmem:[#allocation166_spill] sm:$0xff] }
 0x523   : > { %12067 = vmatpush1.bf16.msra.mxu0 %v12066_v50  ;;  %9633 = vmatprep.mubr.f32.mxu0 %v22430_v26  ;;  %v19670_v50 = vld [vmem:[#allocation3 + $0x108] sm:$0xff] }
 0x524   : > { %12068 = vmatprep.subr.bf16.mxu0 %v21670_v44  ;;  %11722 = vmatpush1.bf16.msra.mxu1 %v11721_v46  ;;  %v7298_v46 = vld [vmem:[%s20914_s7 + $0xc00] sm:$0xff] }
 0x525   : > { %7924 = vmatmul.mubr.f32.gmra.mrb[150].mxu1 %v22431_v14  ;;  %11723 = vmatprep.subr.bf16.mxu1 %v21670_v44  ;;  %v19689_v9 = vpack.c.bf16 %v7299_v28, %v7298_v46  ;;  %v22435_v46 = vld [vmem:[#allocation177_spill] sm:$0xff] }
 0x526   : > { %9634 = vmatmul.mubr.f32.gmra.mrb[82].mxu0 %v19400_v41  ;;  %7928 = vmatprep.mubr.f32.mxu1 %v19670_v50  ;;  %v7272_v41 = vld [vmem:[%s20914_s7 + $0xb30] sm:$0xff] }
 0x527   : > { %9638 = vmatprep.mubr.f32.mxu0 %v22432_v23  ;;  %12070 = vmatpush1.bf16.msra.mxu0 %v12069_v19  ;;  %v22433_v19 = vld [vmem:[#allocation170_spill] sm:$0xff]  ;;  %v12075_v2 = vpack.c.bf16 %v7273_v54, %v7272_v41  ;;  %v22434_v54 = vld [vmem:[#allocation173_spill] sm:$0xff]  ;;  %v7278_v41 = vld [vmem:[%s20914_s7 + $0xb60] sm:$0xff] }
 0x528   : > { %12071 = vmatprep.subr.bf16.mxu0 %v21670_v44  ;;  %11725 = vmatpush1.bf16.msra.mxu1 %v11724_v42  ;;  %v7274_v42 = vld [vmem:[%s20914_s7 + $0xb40] sm:$0xff] }
 0x529   : > { %7929 = vmatmul.mubr.f32.gmra.mrb[152].mxu1 %v22388_v0  ;;  %11726 = vmatprep.subr.bf16.mxu1 %v21670_v44  ;;  %v22443_v0 = vld [vmem:[#allocation197_spill] sm:$0xff] }
 0x52a   : > { %9639 = vmatmul.mubr.f32.gmra.mrb[84].mxu0 %v19426_v37  ;;  %7933 = vmatprep.mubr.f32.mxu1 %v19692_v62  ;;  %v19706_v37 = vld [vmem:[#allocation3 + $0x120] sm:$0xff] }
 0x52b   : > { %9643 = vmatprep.mubr.f32.mxu0 %v22433_v19  ;;  %12073 = vmatpush1.bf16.msra.mxu0 %v12072_v10  ;;  %v12078_v10 = vpack.c.bf16 %v7275_v4, %v7274_v42  ;;  %v22436_v42 = vld [vmem:[#allocation181_spill] sm:$0xff] }
 0x52c   : > { %12074 = vmatprep.subr.bf16.mxu0 %v21670_v44  ;;  %11728 = vmatpush1.bf16.msra.mxu1 %v11727_v38  ;;  %v7276_v38 = vld [vmem:[%s20914_s7 + $0xb50] sm:$0xff] }
 0x52d   : > { %7934 = vmatmul.mubr.f32.gmra.mrb[154].mxu1 %v22390_v24  ;;  %12114 = vmatprep.subr.bf16.mxu1 %v19689_v9  ;;  %v12081_v28 = vpack.c.bf16 %v7277_v33, %v7276_v38  ;;  %v7281_v38 = vld [vmem:[%s20914_s7 + $0xb78] sm:$0xff]  ;;  %v22437_v33 = vld [vmem:[#allocation185_spill] sm:$0xff]  ;;  %v22442_v24 = vld [vmem:[#allocation111_spill] sm:$0xff] }
 0x52e   : > { %9644 = vmatmul.mubr.f32.gmra.mrb[86].mxu0 %v19444_v15  ;;  %7938 = vmatprep.mubr.f32.mxu1 %v19706_v37  ;;  %v19719_v15 = vld [vmem:[#allocation3 + $0x128] sm:$0xff] }
 0x52f   : > { %9648 = vmatprep.mubr.f32.mxu0 %v22434_v54  ;;  %12076 = vmatpush1.bf16.msra.mxu0 %v12075_v2  ;;  %v7279_v2 = vld [vmem:[%s20914_s7 + $0xb68] sm:$0xff] }
 0x530   : > { %12077 = vmatprep.subr.bf16.mxu0 %v21670_v44  ;;  %v12084_v4 = vpack.c.bf16 %v7279_v2, %v7278_v41  ;;  %v7282_v41 = vld [vmem:[%s20914_s7 + $0xb80] sm:$0xff]  ;;  %v7283_v2 = vld [vmem:[%s20914_s7 + $0xb88] sm:$0xff] }
 0x531   : > { %7939 = vmatmul.mubr.f32.gmra.mrb[156].mxu1 %v22391_v30 }
 0x532   : > { %9649 = vmatmul.mubr.f32.gmra.mrb[88].mxu0 %v19466_v48  ;;  %7943 = vmatprep.mubr.f32.mxu1 %v19719_v15  ;;  %v19732_v48 = vld [vmem:[#allocation3 + $0x138] sm:$0xff] }
 0x533   : > { %9653 = vmatprep.mubr.f32.mxu0 %v22435_v46  ;;  %12079 = vmatpush1.bf16.msra.mxu0 %v12078_v10  ;;  %v7280_v10 = vld [vmem:[%s20914_s7 + $0xb70] sm:$0xff] }
 0x534   : > { %12080 = vmatprep.subr.bf16.mxu0 %v21670_v44 }
 0x535   : > { %7944 = vmatmul.mubr.f32.gmra.mrb[158].mxu1 %v22393_v27  ;;  %v19759_v27 = vld [vmem:[#allocation3 + $0x150] sm:$0xff] }
 0x536   : > { %9654 = vmatmul.mubr.f32.gmra.mrb[90].mxu0 %v19484_v7  ;;  %7948 = vmatprep.mubr.f32.mxu1 %v19732_v48  ;;  %v19745_v7 = vld [vmem:[#allocation3 + $0x140] sm:$0xff] }
 0x537   : > { %9658 = vmatprep.mubr.f32.mxu0 %v22436_v42  ;;  %12082 = vmatpush1.bf16.msra.mxu0 %v12081_v28  ;;  %v12087_v28 = vpack.c.bf16 %v7281_v38, %v7280_v10  ;;  %v12090_v10 = vpack.c.bf16 %v7283_v2, %v7282_v41  ;;  %v7284_v38 = vld [vmem:[%s20914_s7 + $0xb90] sm:$0xff] }
 0x538   : > { %12083 = vmatprep.subr.bf16.mxu0 %v21670_v44  ;;  %v22440_v41 = vld [vmem:[#allocation193_spill] sm:$0xff] }
 0x539   : > { %7949 = vmatmul.mubr.f32.gmra.mrb[160].mxu1 %v22395_v35  ;;  %v22438_v35 = vld [vmem:[#allocation35_spill] sm:$0xff] }
 0x53a   : > { %9659 = vmatmul.mubr.f32.gmra.mrb[92].mxu0 %v19510_v31  ;;  %7953 = vmatprep.mubr.f32.mxu1 %v19745_v7  ;;  %v1587_v31 = vsub.s32 2, %v22438_v35  ;;  %v7285_v35 = vld [vmem:[%s20914_s7 + $0xb98] sm:$0xff] }
 0x53b   : > { %9663 = vmatprep.mubr.f32.mxu0 %v22437_v33  ;;  %12085 = vmatpush1.bf16.msra.mxu0 %v12084_v4  ;;  %v22439_v4 = vld [vmem:[#allocation188_spill] sm:$0xff]  ;;  %v12093_v2 = vpack.c.bf16 %v7285_v35, %v7284_v38  ;;  %v19799_v35 = vld [vmem:[#allocation3 + $0x168] sm:$0xff] }
 0x53c   : > { %12086 = vmatprep.subr.bf16.mxu0 %v21670_v44 }
 0x53d   : > { %7954 = vmatmul.mubr.f32.gmra.mrb[162].mxu1 %v22397_v17 }
 0x53e   : > { %9664 = vmatmul.mubr.f32.gmra.mrb[94].mxu0 %v19528_v11  ;;  %7958 = vmatprep.mubr.f32.mxu1 %v19759_v27  ;;  %v13244_v11 = vld [vmem:[%s20909_s2] sm:$0x7] }
 0x53f   : > { %9668 = vmatprep.mubr.f32.mxu0 %v22439_v4  ;;  %12088 = vmatpush1.bf16.msra.mxu0 %v12087_v28  ;;  %v19773_v17 = vrot.slane %v13244_v11, %v1587_v31  ;;  %v19777_v28 = vld [vmem:[#allocation3 + $0x158] sm:$0xff]  ;;  %v7286_v11 = vld [vmem:[%s20914_s7 + $0xba0] sm:$0xff] }
 0x540   : > { %12089 = vmatprep.subr.bf16.mxu0 %v21670_v44 }
 0x541   : > { %7959 = vmatmul.mubr.f32.gmra.mrb[164].mxu1 %v22399_v63  ;;  %v7287_v63 = vld [vmem:[%s20914_s7 + $0xba8] sm:$0xff]  ;;  %v1600_v52 = vmul.f32 %v19773_v17, %v22442_v24 }
 0x542   : > { %9669 = vmatmul.mubr.f32.gmra.mrb[96].mxu0 %v19550_v40  ;;  %7963 = vmatprep.mubr.f32.mxu1 %v19777_v28  ;;  %v22441_v40 = vld [vmem:[#allocation23_spill] sm:$0xff]  ;;  %v12096_v24 = vpack.c.bf16 %v7287_v63, %v7286_v11 }
 0x543   : > { %9673 = vmatprep.mubr.f32.mxu0 %v22440_v41  ;;  %12091 = vmatpush1.bf16.msra.mxu0 %v12090_v10  ;;  %v1594_v30 = vmul.f32 %v19773_v17, %v22441_v40  ;;  %v13246_v10 = vld [vmem:[%s20910_s3] sm:$0x7]  ;;  %v7288_v40 = vld [vmem:[%s20914_s7 + $0xbb0] sm:$0xff] }
 0x544   : > { %12092 = vmatprep.subr.bf16.mxu0 %v21670_v44  ;;  %v19796_v38 = vrot.slane %v13246_v10, %v1587_v31  ;;  %v7289_v31 = vld [vmem:[%s20914_s7 + $0xbb8] sm:$0xff]  ;;  %v22446_v11 = vld [vmem:[#allocation199_spill] sm:$0xff] }
 0x545   : > { %7964 = vmatmul.mubr.f32.gmra.mrb[166].mxu1 %v22400_v3  ;;  %v22445_v3 = vld [vmem:[#allocation112_spill] sm:$0xff] }
 0x546   : > { %9674 = vmatmul.mubr.f32.gmra.mrb[98].mxu0 %v19569_v5  ;;  %7968 = vmatprep.mubr.f32.mxu1 %v19799_v35  ;;  %v22444_v5 = vld [vmem:[#allocation110_spill] sm:$0xff]  ;;  %v1603_v14 = vmul.f32 %v19773_v17, %v22445_v3  ;;  %v1712_v32 = vadd.f32 %v19796_v38, %v1600_v52  ;;  %v1706_v63 = vadd.f32 %v19796_v38, %v1594_v30 }
 0x547   : > { %9678 = vmatprep.mubr.f32.mxu0 %v22443_v0  ;;  %12094 = vmatpush1.bf16.msra.mxu0 %v12093_v2  ;;  %v1597_v10 = vmul.f32 %v19773_v17, %v22444_v5  ;;  %v19821_v2 = vld [vmem:[#allocation3 + $0x170] sm:$0xff]  ;;  %v12099_v5 = vpack.c.bf16 %v7289_v31, %v7288_v40  ;;  %v1606_v3 = vmul.f32 %v19773_v17, %v22447_v43  ;;  %v22448_v52 = vld [vmem:[#allocation114_spill] sm:$0xff] }
 0x548   : > { %12095 = vmatprep.subr.bf16.mxu0 %v21670_v44  ;;  %v1609_v30 = vmul.f32 %v19773_v17, %v22448_v52  ;;  %v1808_v21 = vmax.f32 %v1712_v32, 0.0  ;;  %v1802_v56 = vmax.f32 %v1706_v63, 0.0  ;;  %v19840_v52 = vld [vmem:[#allocation3 + $0x180] sm:$0xff]  ;;  %v22450_v63 = vld [vmem:[#allocation115_spill] sm:$0xff] }
 0x549   : > { %7969 = vmatmul.mubr.f32.gmra.mrb[168].mxu1 %v22401_v20  ;;  %v7291_v20 = vld [vmem:[%s20914_s7 + $0xbc8] sm:$0xff]  ;;  %v1709_v40 = vadd.f32 %v19796_v38, %v1597_v10  ;;  %v22449_v32 = vld [vmem:[#allocation201_spill] sm:$0xff]  ;;  %v1612_v10 = vmul.f32 %v19773_v17, %v22450_v63  ;;  %v22454_v63 = vld [vmem:[#allocation118_spill] sm:$0xff] }
 0x54a   : > { %9679 = vmatmul.mubr.f32.gmra.mrb[100].mxu0 %v19589_v29  ;;  %7973 = vmatprep.mubr.f32.mxu1 %v19821_v2  ;;  %v7290_v29 = vld [vmem:[%s20914_s7 + $0xbc0] sm:$0xff] }
 0x54b   : > { %9683 = vmatprep.mubr.f32.mxu0 %v22446_v11  ;;  %12097 = vmatpush1.bf16.msra.mxu0 %v12096_v24  ;;  %v1715_v24 = vadd.f32 %v19796_v38, %v1603_v14  ;;  %v12102_v14 = vpack.c.bf16 %v7291_v20, %v7290_v29  ;;  %v7293_v20 = vld [vmem:[%s20914_s7 + $0xbd8] sm:$0xff] }
 0x54c   : > { %12098 = vmatprep.subr.bf16.mxu0 %v21670_v44  ;;  %v19865_v29 = vld [vmem:[#allocation3 + $0x188] sm:$0xff] }
 0x54d   : > { %7974 = vmatmul.mubr.f32.gmra.mrb[170].mxu1 %v22404_v22  ;;  %v22451_v22 = vld [vmem:[#allocation116_spill] sm:$0xff] }
 0x54e   : > { %v10626_v43 = vpop.permute.xlu1 %10625  ;;  %9684 = vmatmul.mubr.f32.gmra.mrb[102].mxu0 %v19608_v55  ;;  %7978 = vmatprep.mubr.f32.mxu1 %v19840_v52  ;;  %v1615_v57 = vmul.f32 %v19773_v17, %v22451_v22  ;;  %v1811_v55 = vmax.f32 %v1715_v24, 0.0  ;;  %v1721_v22 = vadd.f32 %v19796_v38, %v1609_v30 }
 0x54f   : > { %v10622_v31 = vpop.permute.xlu0 %10621  ;;  %v10719_v39 = vsel %vm1057_vm4, %v1808_v21, %v10626_v43  ;;  %9688 = vmatprep.mubr.f32.mxu0 %v22449_v32  ;;  %12100 = vmatpush1.bf16.msra.mxu0 %v12099_v5  ;;  %v1805_v21 = vmax.f32 %v1709_v40, 0.0  ;;  %v1718_v5 = vadd.f32 %v19796_v38, %v1606_v3  ;;  %v22452_v40 = vld [vmem:[#allocation203_spill] sm:$0xff] }
 0x550   : > { %v10717_v59 = vsel %vm1057_vm4, %v1802_v56, %v10622_v31  ;;  %10753 = vst [vmem:[%s19850_s25 + $0x20] sm:$0xff] %v10719_v39  ;;  %12101 = vmatprep.subr.bf16.mxu0 %v21670_v44  ;;  %v7292_v56 = vld [vmem:[%s20914_s7 + $0xbd0] sm:$0xff] }
 0x551   : > { %10749 = vst [vmem:[%s19850_s25] sm:$0xff] %v10717_v59  ;;  %7979 = vmatmul.mubr.f32.gmra.mrb[172].mxu1 %v22407_v13  ;;  %v12105_v30 = vpack.c.bf16 %v7293_v20, %v7292_v56  ;;  %v22453_v31 = vld [vmem:[#allocation117_spill] sm:$0xff]  ;;  %v1621_v13 = vmul.f32 %v19773_v17, %v22454_v63  ;;  %v7301_v56 = vld [vmem:[%s20914_s7 + $0xc18] sm:$0xff]  ;;  %v7294_v20 = vld [vmem:[%s20914_s7 + $0xbe0] sm:$0xff] }
 0x552   : > { %v10628_v59 = vpop.permute.xlu1 %10627  ;;  %9689 = vmatmul.mubr.f32.gmra.mrb[104].mxu0 %v19631_v60  ;;  %7983 = vmatprep.mubr.f32.mxu1 %v19865_v29  ;;  %v1618_v3 = vmul.f32 %v19773_v17, %v22453_v31  ;;  %v7300_v60 = vld [vmem:[%s20914_s7 + $0xc10] sm:$0xff]  ;;  %v22457_v31 = vld [vmem:[#allocation119_spill] sm:$0xff] }
 0x553   : > { %v10624_v39 = vpop.permute.xlu0 %10623  ;;  %v10720_v43 = vsel %vm1057_vm4, %v1811_v55, %v10628_v59  ;;  %9693 = vmatprep.mubr.f32.mxu0 %v22452_v40  ;;  %12103 = vmatpush1.bf16.msra.mxu0 %v12102_v14  ;;  %v1817_v55 = vmax.f32 %v1721_v22, 0.0  ;;  %v1727_v59 = vadd.f32 %v19796_v38, %v1615_v57  ;;  %v1724_v14 = vadd.f32 %v19796_v38, %v1612_v10  ;;  %v7295_v22 = vld [vmem:[%s20914_s7 + $0xbe8] sm:$0xff]  ;;  %v22455_v10 = vld [vmem:[#allocation37_spill] sm:$0xff] }
 0x554   : > { %v10718_v24 = vsel %vm1057_vm4, %v1805_v21, %v10624_v39  ;;  %10755 = vst [vmem:[%s19850_s25 + $0x30] sm:$0xff] %v10720_v43  ;;  %12104 = vmatprep.subr.bf16.mxu0 %v21670_v44  ;;  %v1814_v21 = vmax.f32 %v1718_v5, 0.0  ;;  %v1624_v63 = vmul.f32 %v19773_v17, %v22457_v31  ;;  %v12117_v53 = vpack.c.bf16 %v7301_v56, %v7300_v60  ;;  %v22459_v31 = vld [vmem:[#allocation28_spill] sm:$0xff]  ;;  %v7296_v60 = vld [vmem:[%s20914_s7 + $0xbf0] sm:$0xff] }
 0x555   : > { %10751 = vst [vmem:[%s19850_s25 + $0x10] sm:$0xff] %v10718_v24  ;;  %7984 = vmatmul.mubr.f32.gmra.mrb[174].mxu1 %v22409_v49  ;;  %v22456_v24 = vld [vmem:[#allocation205_spill] sm:$0xff]  ;;  %v22458_v49 = vld [vmem:[#allocation120_spill] sm:$0xff] }
 0x556   : > { %v10632_v5 = vpop.permute.xlu1 %10631  ;;  %9694 = vmatmul.mubr.f32.gmra.mrb[106].mxu0 %v19650_v36  ;;  %8053 = vmatprep.mubr.f32.mxu1 %v22455_v10  ;;  %v1627_v18 = vmul.f32 %v19773_v17, %v22458_v49  ;;  %v7302_v36 = vld [vmem:[%s20914_s7 + $0xc20] sm:$0xff]  ;;  %v7303_v49 = vld [vmem:[%s20914_s7 + $0xc28] sm:$0xff]  ;;  %v22461_v56 = vld [vmem:[#allocation121_spill] sm:$0xff] }
 0x557   : > { %v10630_v57 = vpop.permute.xlu0 %10629  ;;  %v10722_v39 = vsel %vm1057_vm4, %v1817_v55, %v10632_v5  ;;  %9698 = vmatprep.mubr.f32.mxu0 %v22456_v24  ;;  %12106 = vmatpush1.bf16.msra.mxu0 %v12105_v30  ;;  %v12108_v55 = vpack.c.bf16 %v7295_v22, %v7294_v20  ;;  %v1820_v5 = vmax.f32 %v1724_v14, 0.0  ;;  %v1733_v30 = vadd.f32 %v19796_v38, %v1621_v13 }
 0x558   : > { %v10721_v43 = vsel %vm1057_vm4, %v1814_v21, %v10630_v57  ;;  %10759 = vst [vmem:[%s19850_s25 + $0x50] sm:$0xff] %v10722_v39  ;;  %12107 = vmatprep.subr.bf16.mxu0 %v21670_v44  ;;  %v1823_v21 = vmax.f32 %v1727_v59, 0.0  ;;  %v1730_v57 = vadd.f32 %v19796_v38, %v1618_v3  ;;  %v7297_v59 = vld [vmem:[%s20914_s7 + $0xbf8] sm:$0xff]  ;;  %v22460_v3 = vld [vmem:[#allocation169_spill] sm:$0xff]  ;;  %v1630_v20 = vmul.f32 %v19773_v17, %v22461_v56 }
 0x559   : > { %10757 = vst [vmem:[%s19850_s25 + $0x40] sm:$0xff] %v10721_v43  ;;  %8054 = vmatmul.mubr.f32.vlgmr.msra.gmra.mrb[112].mxu1 %v22459_v31  ;;  %v22462_v43 = vld [vmem:[#allocation207_spill] sm:$0xff]  ;;  %v22463_v31 = vld [vmem:[#allocation122_spill] sm:$0xff]  ;;  %v1829_v1 = vmax.f32 %v1733_v30, 0.0  ;;  %v1739_v56 = vadd.f32 %v19796_v38, %v1627_v18  ;;  %v22465_v18 = vld [vmem:[#allocation41_spill] sm:$0xff] }
 0x55a   : > { %v10636_v14 = vpop.permute.xlu1 %10635  ;;  %9699 = vmatmul.mubr.f32.gmra.mrb[108].mxu0 %v19670_v50  ;;  %8058 = vmatprep.mubr.f32.mxu1 %v22460_v3  ;;  %v1633_v10 = vmul.f32 %v19773_v17, %v22463_v31  ;;  %v12121_v50 = vpack.c.bf16 %v7303_v49, %v7302_v36  ;;  %v12111_v3 = vpack.c.bf16 %v7297_v59, %v7296_v60  ;;  %v1826_v61 = vmax.f32 %v1730_v57, 0.0  ;;  %v7305_v36 = vld [vmem:[%s20914_s7 + $0xc38] sm:$0xff]  ;;  %v22466_v49 = vld [vmem:[#allocation209_spill] sm:$0xff]  ;;  %v22467_v60 = vld [vmem:[#allocation123_spill] sm:$0xff] }
 0x55b   : > { %v10634_v13 = vpop.permute.xlu0 %10633  ;;  %v10724_v22 = vsel %vm1057_vm4, %v1823_v21, %v10636_v14  ;;  %9703 = vmatprep.mubr.f32.mxu0 %v22462_v43  ;;  %12116 = vmatpush3.bf16.msra.mxu1 %v19689_v9  ;;  %v1736_v21 = vadd.f32 %v19796_v38, %v1624_v63  ;;  %v7304_v9 = vld [vmem:[%s20914_s7 + $0xc30] sm:$0xff]  ;;  %v1636_v59 = vmul.f32 %v19773_v17, %v22467_v60  ;;  %v22468_v14 = vld [vmem:[#allocation124_spill] sm:$0xff] }
 0x55c   : > { %v10723_v39 = vsel %vm1057_vm4, %v1820_v5, %v10634_v13  ;;  %10763 = vst [vmem:[%s19850_s25 + $0x70] sm:$0xff] %v10724_v22  ;;  %12118 = vmatprep.subr.bf16.mxu1 %v12117_v53  ;;  %12109 = vmatpush1.bf16.msra.mxu0 %v12108_v55  ;;  %v22464_v5 = vld [vmem:[#allocation190_spill] sm:$0xff]  ;;  %v1639_v13 = vmul.f32 %v19773_v17, %v22468_v14  ;;  %v7307_v31 = vld [vmem:[%s20914_s7 + $0xc48] sm:$0xff]  ;;  %v22474_v14 = vld [vmem:[#allocation155_spill] sm:$0xff] }
 0x55d   : > { %10761 = vst [vmem:[%s19850_s25 + $0x60] sm:$0xff] %v10723_v39  ;;  %8059 = vmatmul.mubr.f32.gmra.mrb[114].mxu1 %v22464_v5  ;;  %12110 = vmatprep.subr.bf16.mxu0 %v21670_v44  ;;  %v12125_v44 = vpack.c.bf16 %v7305_v36, %v7304_v9  ;;  %v1832_v22 = vmax.f32 %v1736_v21, 0.0  ;;  %v7306_v39 = vld [vmem:[%s20914_s7 + $0xc40] sm:$0xff]  ;;  %v22472_v9 = vld [vmem:[#allocation125_spill] sm:$0xff]  ;;  %v1748_v60 = vadd.f32 %v19796_v38, %v1636_v59 }
 0x55e   : > { %v10640_v55 = vpop.permute.xlu1 %10639  ;;  %9704 = vmatmul.mubr.f32.gmra.mrb[110].mxu0 %v19692_v62  ;;  %8063 = vmatprep.mubr.f32.mxu1 %v22465_v18  ;;  %v1835_v62 = vmax.f32 %v1739_v56, 0.0  ;;  %v22470_v56 = vld [vmem:[#allocation153_spill] sm:$0xff]  ;;  %v22471_v21 = vld [vmem:[#allocation211_spill] sm:$0xff]  ;;  %v1642_v36 = vmul.f32 %v19773_v17, %v22472_v9  ;;  %v12129_v18 = vpack.c.bf16 %v7307_v31, %v7306_v39 }
 0x55f   : > { %v10638_v30 = vpop.permute.xlu0 %10637  ;;  %v10726_v63 = vsel %vm1057_vm4, %v1829_v1, %v10640_v55  ;;  %9708 = vmatprep.mubr.f32.mxu0 %v22466_v49  ;;  %12120 = vmatpush3.bf16.msra.mxu1 %v12117_v53  ;;  %v1745_v1 = vadd.f32 %v19796_v38, %v1633_v10  ;;  %v22469_v53 = vld [vmem:[#allocation66_spill] sm:$0xff]  ;;  %v22477_v39 = vld [vmem:[#allocation127_spill] sm:$0xff] }
 0x560   : > { %v10725_v57 = vsel %vm1057_vm4, %v1826_v61, %v10638_v30  ;;  %10767 = vst [vmem:[%s19850_s25 + $0x90] sm:$0xff] %v10726_v63  ;;  %12122 = vmatprep.subr.bf16.mxu1 %v12121_v50  ;;  %12112 = vmatpush1.bf16.msra.mxu0 %v12111_v3  ;;  %v1742_v61 = vadd.f32 %v19796_v38, %v1630_v20  ;;  %v22473_v55 = vld [vmem:[#allocation126_spill] sm:$0xff] }
 0x561   : > { %10765 = vst [vmem:[%s19850_s25 + $0x80] sm:$0xff] %v10725_v57  ;;  %8064 = vmatmul.mubr.f32.gmra.mrb[116].mxu1 %v22469_v53  ;;  %v1645_v30 = vmul.f32 %v19773_v17, %v22473_v55  ;;  %v1751_v57 = vadd.f32 %v19796_v38, %v1639_v13  ;;  %v1648_v31 = vmul.f32 %v19773_v17, %v22477_v39  ;;  %v22479_v55 = vld [vmem:[#allocation70_spill] sm:$0xff] }
 0x562   : > { %v10644_v5 = vpop.permute.xlu1 %10643  ;;  %9709 = vmatmul.mubr.f32.gmra.mrb[112].mxu0 %v19706_v37  ;;  %8068 = vmatprep.mubr.f32.mxu1 %v22470_v56  ;;  %v1841_v37 = vmax.f32 %v1745_v1, 0.0  ;;  %v1838_v63 = vmax.f32 %v1742_v61, 0.0  ;;  %v22475_v1 = vld [vmem:[#allocation44_spill] sm:$0xff]  ;;  %v1754_v9 = vadd.f32 %v19796_v38, %v1642_v36 }
 0x563   : > { %v10642_v3 = vpop.permute.xlu0 %10641  ;;  %v10728_v10 = vsel %vm1057_vm4, %v1835_v62, %v10644_v5  ;;  %9713 = vmatprep.mubr.f32.mxu0 %v22471_v21  ;;  %12124 = vmatpush3.bf16.msra.mxu1 %v12121_v50  ;;  %v7308_v50 = vld [vmem:[%s20914_s7 + $0xc50] sm:$0xff]  ;;  %v7309_v62 = vld [vmem:[%s20914_s7 + $0xc58] sm:$0xff]  ;;  %v22476_v61 = vld [vmem:[#allocation68_spill] sm:$0xff]  ;;  %v1760_v39 = vadd.f32 %v19796_v38, %v1648_v31 }
 0x564   : > { %v10727_v20 = vsel %vm1057_vm4, %v1832_v22, %v10642_v3  ;;  %10771 = vst [vmem:[%s19850_s25 + $0xb0] sm:$0xff] %v10728_v10  ;;  %12126 = vmatprep.subr.bf16.mxu1 %v12125_v44  ;;  %v22478_v5 = vld [vmem:[#allocation128_spill] sm:$0xff]  ;;  %v12133_v56 = vpack.c.bf16 %v7309_v62, %v7308_v50  ;;  %v1844_v10 = vmax.f32 %v1748_v60, 0.0  ;;  %v22481_v60 = vld [vmem:[#allocation74_spill] sm:$0xff]  ;;  %v22482_v50 = vld [vmem:[#allocation129_spill] sm:$0xff] }
 0x565   : > { %10769 = vst [vmem:[%s19850_s25 + $0xa0] sm:$0xff] %v10727_v20  ;;  %8069 = vmatmul.mubr.f32.gmra.mrb[118].mxu1 %v22474_v14  ;;  %v1651_v3 = vmul.f32 %v19773_v17, %v22478_v5  ;;  %v1757_v20 = vadd.f32 %v19796_v38, %v1645_v30  ;;  %v1654_v62 = vmul.f32 %v19773_v17, %v22482_v50  ;;  %v22484_v5 = vld [vmem:[#allocation77_spill] sm:$0xff] }
 0x566   : > { %v10648_v22 = vpop.permute.xlu1 %10647  ;;  %9714 = vmatmul.mubr.f32.gmra.mrb[114].mxu0 %v19719_v15  ;;  %8073 = vmatprep.mubr.f32.mxu1 %v22475_v1  ;;  %v1847_v15 = vmax.f32 %v1751_v57, 0.0  ;;  %v22480_v57 = vld [vmem:[#allocation78_spill] sm:$0xff] }
 0x567   : > { %v10646_v53 = vpop.permute.xlu0 %10645  ;;  %v10730_v13 = vsel %vm1057_vm4, %v1841_v37, %v10648_v22  ;;  %9718 = vmatprep.mubr.f32.mxu0 %v22476_v61  ;;  %12128 = vmatpush3.bf16.msra.mxu1 %v12125_v44  ;;  %v7310_v44 = vld [vmem:[%s20914_s7 + $0xc60] sm:$0xff]  ;;  %v7311_v37 = vld [vmem:[%s20914_s7 + $0xc68] sm:$0xff]  ;;  %v22483_v22 = vld [vmem:[#allocation130_spill] sm:$0xff]  ;;  %v1766_v50 = vadd.f32 %v19796_v38, %v1654_v62 }
 0x568   : > { %v10729_v59 = vsel %vm1057_vm4, %v1838_v63, %v10646_v53  ;;  %10775 = vst [vmem:[%s19850_s25 + $0xd0] sm:$0xff] %v10730_v13  ;;  %12130 = vmatprep.subr.bf16.mxu1 %v12129_v18  ;;  %v1657_v53 = vmul.f32 %v19773_v17, %v22483_v22  ;;  %v12137_v1 = vpack.c.bf16 %v7311_v37, %v7310_v44  ;;  %v1850_v13 = vmax.f32 %v1754_v9, 0.0  ;;  %v22486_v9 = vld [vmem:[#allocation79_spill] sm:$0xff] }
 0x569   : > { %10773 = vst [vmem:[%s19850_s25 + $0xc0] sm:$0xff] %v10729_v59  ;;  %8074 = vmatmul.mubr.f32.gmra.mrb[120].mxu1 %v22479_v55  ;;  %v1763_v59 = vadd.f32 %v19796_v38, %v1651_v3  ;;  %v22487_v44 = vld [vmem:[#allocation131_spill] sm:$0xff] }
 0x56a   : > { %v10652_v63 = vpop.permute.xlu1 %10651  ;;  %9719 = vmatmul.mubr.f32.gmra.mrb[116].mxu0 %v19732_v48  ;;  %8078 = vmatprep.mubr.f32.mxu1 %v22480_v57  ;;  %v1853_v48 = vmax.f32 %v1757_v20, 0.0  ;;  %v22485_v20 = vld [vmem:[#allocation69_spill] sm:$0xff]  ;;  %v1660_v37 = vmul.f32 %v19773_v17, %v22487_v44 }
 0x56b   : > { %v10650_v14 = vpop.permute.xlu0 %10649  ;;  %v10732_v30 = vsel %vm1057_vm4, %v1847_v15, %v10652_v63  ;;  %9723 = vmatprep.mubr.f32.mxu0 %v22481_v60  ;;  %12132 = vmatpush3.bf16.msra.mxu1 %v12129_v18  ;;  %v7312_v18 = vld [vmem:[%s20914_s7 + $0xc70] sm:$0xff]  ;;  %v7313_v15 = vld [vmem:[%s20914_s7 + $0xc78] sm:$0xff]  ;;  %v22488_v63 = vld [vmem:[#allocation132_spill] sm:$0xff] }
 0x56c   : > { %v10731_v36 = vsel %vm1057_vm4, %v1844_v10, %v10650_v14  ;;  %10779 = vst [vmem:[%s19850_s25 + $0xf0] sm:$0xff] %v10732_v30  ;;  %12134 = vmatprep.subr.bf16.mxu1 %v12133_v56  ;;  %v1663_v14 = vmul.f32 %v19773_v17, %v22488_v63  ;;  %v12141_v57 = vpack.c.bf16 %v7313_v15, %v7312_v18  ;;  %v1856_v30 = vmax.f32 %v1760_v39, 0.0  ;;  %v22490_v18 = vld [vmem:[#allocation82_spill] sm:$0xff]  ;;  %v22494_v63 = vld [vmem:[#allocation88_spill] sm:$0xff] }
 0x56d   : > { %10777 = vst [vmem:[%s19850_s25 + $0xe0] sm:$0xff] %v10731_v36  ;;  %8079 = vmatmul.mubr.f32.gmra.mrb[122].mxu1 %v22484_v5  ;;  %v1769_v36 = vadd.f32 %v19796_v38, %v1657_v53  ;;  %v22492_v39 = vld [vmem:[#allocation134_spill] sm:$0xff] }
 0x56e   : > { %v10656_v10 = vpop.permute.xlu1 %10655  ;;  %9724 = vmatmul.mubr.f32.gmra.mrb[118].mxu0 %v19745_v7  ;;  %8083 = vmatprep.mubr.f32.mxu1 %v22485_v20  ;;  %v1859_v7 = vmax.f32 %v1763_v59, 0.0  ;;  %v22491_v59 = vld [vmem:[#allocation133_spill] sm:$0xff]  ;;  %v1669_v62 = vmul.f32 %v19773_v17, %v22492_v39  ;;  %v1775_v15 = vadd.f32 %v19796_v38, %v1663_v14 }
 0x56f   : > { %v10654_v55 = vpop.permute.xlu0 %10653  ;;  %v10734_v3 = vsel %vm1057_vm4, %v1853_v48, %v10656_v10  ;;  %9728 = vmatprep.mubr.f32.mxu0 %v22486_v9  ;;  %12136 = vmatpush3.bf16.msra.mxu1 %v12133_v56  ;;  %v22489_v48 = vld [vmem:[#allocation154_spill] sm:$0xff]  ;;  %v1666_v53 = vmul.f32 %v19773_v17, %v22491_v59  ;;  %v1772_v10 = vadd.f32 %v19796_v38, %v1660_v37  ;;  %v22498_v59 = vld [vmem:[#allocation91_spill] sm:$0xff]  ;;  %v22499_v39 = vld [vmem:[#allocation137_spill] sm:$0xff] }
 0x570   : > { %v10733_v31 = vsel %vm1057_vm4, %v1850_v13, %v10654_v55  ;;  %10783 = vst [vmem:[%s19850_s25 + $0x110] sm:$0xff] %v10734_v3  ;;  %12138 = vmatprep.subr.bf16.mxu1 %v12137_v1  ;;  %v22493_v3 = vld [vmem:[#allocation46_spill] sm:$0xff] }
 0x571   : > { %10781 = vst [vmem:[%s19850_s25 + $0x100] sm:$0xff] %v10733_v31  ;;  %8084 = vmatmul.mubr.f32.gmra.mrb[124].mxu1 %v22428_v8  ;;  %v1862_v8 = vmax.f32 %v1766_v50, 0.0  ;;  %v1778_v50 = vadd.f32 %v19796_v38, %v1666_v53 }
 0x572   : > { %v10660_v56 = vpop.permute.xlu1 %10659  ;;  %9729 = vmatmul.mubr.f32.gmra.mrb[120].mxu0 %v19759_v27  ;;  %8088 = vmatprep.mubr.f32.mxu1 %v22489_v48  ;;  %v1865_v27 = vmax.f32 %v1769_v36, 0.0  ;;  %v1781_v36 = vadd.f32 %v19796_v38, %v1669_v62  ;;  %v22500_v62 = vld [vmem:[#allocation138_spill] sm:$0xff] }
 0x573   : > { %v10658_v22 = vpop.permute.xlu0 %10657  ;;  %v10736_v13 = vsel %vm1057_vm4, %v1859_v7, %v10660_v56  ;;  %9733 = vmatprep.mubr.f32.mxu0 %v22490_v18  ;;  %12140 = vmatpush3.bf16.msra.mxu1 %v12137_v1  ;;  %v22495_v7 = vld [vmem:[#allocation135_spill] sm:$0xff]  ;;  %v1681_v53 = vmul.f32 %v19773_v17, %v22500_v62 }
 0x574   : > { %v10735_v5 = vsel %vm1057_vm4, %v1856_v30, %v10658_v22  ;;  %10787 = vst [vmem:[%s19850_s25 + $0x130] sm:$0xff] %v10736_v13  ;;  %12142 = vmatprep.subr.bf16.mxu1 %v12141_v57  ;;  %v1672_v14 = vmul.f32 %v19773_v17, %v22495_v7  ;;  %v22496_v30 = vld [vmem:[#allocation136_spill] sm:$0xff]  ;;  %v22502_v7 = vld [vmem:[#allocation93_spill] sm:$0xff] }
 0x575   : > { %10785 = vst [vmem:[%s19850_s25 + $0x120] sm:$0xff] %v10735_v5  ;;  %8089 = vmatmul.mubr.f32.gmra.mrb[126].mxu1 %v22430_v26  ;;  %v1675_v37 = vmul.f32 %v19773_v17, %v22496_v30  ;;  %v1871_v26 = vmax.f32 %v1775_v15, 0.0  ;;  %v22497_v22 = vld [vmem:[#allocation80_spill] sm:$0xff]  ;;  %v22503_v30 = vld [vmem:[#allocation21_spill] sm:$0xff] }
 0x576   : > { %v10664_v1 = vpop.permute.xlu1 %10663  ;;  %9734 = vmatmul.mubr.f32.gmra.mrb[122].mxu0 %v19777_v28  ;;  %8093 = vmatprep.mubr.f32.mxu1 %v22493_v3  ;;  %v1868_v28 = vmax.f32 %v1772_v10, 0.0  ;;  %v1784_v15 = vadd.f32 %v19796_v38, %v1672_v14 }
 0x577   : > { %v10662_v55 = vpop.permute.xlu0 %10661  ;;  %v10738_v31 = vsel %vm1057_vm4, %v1865_v27, %v10664_v1  ;;  %9738 = vmatprep.mubr.f32.mxu0 %v22494_v63  ;;  %12144 = vmatpush3.bf16.msra.mxu1 %v12141_v57  ;;  %v1678_v27 = vmul.f32 %v19773_v17, %v22499_v39 }
 0x578   : > { %v10737_v44 = vsel %vm1057_vm4, %v1862_v8, %v10662_v55  ;;  %10791 = vst [vmem:[%s19850_s25 + $0x150] sm:$0xff] %v10738_v31  ;;  %v1787_v8 = vadd.f32 %v19796_v38, %v1675_v37  ;;  %v22501_v55 = vld [vmem:[#allocation156_spill] sm:$0xff]  ;;  %v22504_v37 = vld [vmem:[#allocation26_spill] sm:$0xff] }
 0x579   : > { %10789 = vst [vmem:[%s19850_s25 + $0x140] sm:$0xff] %v10737_v44  ;;  %8094 = vmatmul.mubr.f32.gmra.mrb[128].mxu1 %v22432_v23  ;;  %v1877_v23 = vmax.f32 %v1781_v36, 0.0  ;;  %v1687_v14 = vmul.f32 %v19773_v17, %v22504_v37  ;;  %v1790_v36 = vadd.f32 %v19796_v38, %v1678_v27  ;;  %v13252_v37 = vld [vmem:[#allocation3 + $0x1a0] sm:$0xff] }
 0x57a   : > { %v10668_v56 = vpop.permute.xlu1 %10667  ;;  %9739 = vmatmul.mubr.f32.gmra.mrb[124].mxu0 %v19799_v35  ;;  %8098 = vmatprep.mubr.f32.mxu1 %v22497_v22  ;;  %v1874_v35 = vmax.f32 %v1778_v50, 0.0 }
 0x57b   : > { %v10666_v57 = vpop.permute.xlu0 %10665  ;;  %v10740_v13 = vsel %vm1057_vm4, %v1871_v26, %v10668_v56  ;;  %9743 = vmatprep.mubr.f32.mxu0 %v22498_v59  ;;  %v1684_v26 = vmul.f32 %v19773_v17, %v22503_v30  ;;  %v1886_v27 = vmax.f32 %v1790_v36, 0.0  ;;  %v22514_v36 = vld [vmem:[#allocation180_spill] sm:$0xff] }
 0x57c   : > { %v10739_v5 = vsel %vm1057_vm4, %v1868_v28, %v10666_v57  ;;  %10795 = vst [vmem:[%s19850_s25 + $0x170] sm:$0xff] %v10740_v13  ;;  %v1793_v28 = vadd.f32 %v19796_v38, %v1681_v53  ;;  %v22505_v57 = vld [vmem:[#allocation47_spill] sm:$0xff] }
 0x57d   : > { %10793 = vst [vmem:[%s19850_s25 + $0x160] sm:$0xff] %v10739_v5  ;;  %8099 = vmatmul.mubr.f32.gmra.mrb[130].mxu1 %v22433_v19  ;;  %v1883_v19 = vmax.f32 %v1787_v8, 0.0  ;;  %v22506_v5 = vld [vmem:[#allocation31_spill] sm:$0xff]  ;;  %v1796_v62 = vadd.f32 %v19796_v38, %v1684_v26  ;;  %v22510_v26 = vld [vmem:[#allocation96_spill] sm:$0xff] }
 0x57e   : > { %v10672_v10 = vpop.permute.xlu1 %10671  ;;  %9744 = vmatmul.mubr.f32.gmra.mrb[126].mxu0 %v19821_v2  ;;  %8103 = vmatprep.mubr.f32.mxu1 %v22501_v55  ;;  %v1880_v2 = vmax.f32 %v1784_v15, 0.0  ;;  %v1889_v39 = vmax.f32 %v1793_v28, 0.0  ;;  %v22508_v15 = vld [vmem:[#allocation38_spill] sm:$0xff]  ;;  %v22513_v28 = vld [vmem:[#allocation49_spill] sm:$0xff] }
 0x57f   : > { %v10670_v1 = vpop.permute.xlu0 %10669  ;;  %v10742_v31 = vsel %vm1057_vm4, %v1877_v23, %v10672_v10  ;;  %9748 = vmatprep.mubr.f32.mxu0 %v22502_v7  ;;  %v22507_v23 = vld [vmem:[#allocation81_spill] sm:$0xff] }
 0x580   : > { %v10741_v44 = vsel %vm1057_vm4, %v1874_v35, %v10670_v1  ;;  %10799 = vst [vmem:[%s19850_s25 + $0x190] sm:$0xff] %v10742_v31  ;;  %v13251_v31 = vld [vmem:[#allocation3 + $0x198] sm:$0xff] }
 0x581   : > { %10797 = vst [vmem:[%s19850_s25 + $0x180] sm:$0xff] %v10741_v44  ;;  %8104 = vmatmul.mubr.f32.gmra.mrb[132].mxu1 %v22434_v54  ;;  %v1799_v54 = vadd.f32 %v19796_v38, %v1687_v14  ;;  %v1892_v38 = vmax.f32 %v1796_v62, 0.0  ;;  %v22511_v14 = vld [vmem:[#allocation158_spill] sm:$0xff] }
 0x582   : > { %v10676_v50 = vpop.permute.xlu1 %10675  ;;  %9749 = vmatmul.mubr.f32.gmra.mrb[128].mxu0 %v19840_v52  ;;  %8108 = vmatprep.mubr.f32.mxu1 %v22505_v57  ;;  %v22541_v62 = vld [vmem:[#allocation178_spill] sm:$0xff] }
 0x583   : > { %v10674_v56 = vpop.permute.xlu0 %10673  ;;  %v10744_v13 = vsel %vm1057_vm4, %v1883_v19, %v10676_v50  ;;  %9753 = vmatprep.mubr.f32.mxu0 %v22506_v5  ;;  %v1895_v10 = vmax.f32 %v1799_v54, 0.0  ;;  %v5958_v19 = vrot.slane %v19573_v34, 1  ;;  %v22515_v50 = vld [vmem:[#allocation86_spill] sm:$0xff]  ;;  %v22539_v54 = vld [vmem:[#allocation24_spill] sm:$0xff] }
 0x584   : > { %v10743_v17 = vsel %vm1057_vm4, %v1880_v2, %v10674_v56  ;;  %10803 = vst [vmem:[%s19850_s25 + $0x1b0] sm:$0xff] %v10744_v13  ;;  %v20121_v2 = vld [vmem:[#allocation3 + $0x1d8] sm:$0xf]  ;;  %v22517_v13 = vld [vmem:[#allocation71_spill] sm:$0xff] }
 0x585   : > { %10801 = vst [vmem:[%s19850_s25 + $0x1a0] sm:$0xff] %v10743_v17  ;;  %8109 = vmatmul.mubr.f32.gmra.mrb[134].mxu1 %v22435_v46  ;;  %v22519_v17 = vld [vmem:[#allocation162_spill] sm:$0xff] }
 0x586   : > { %v10680_v52 = vpop.permute.xlu1 %10679  ;;  %9754 = vmatmul.mubr.f32.gmra.mrb[130].mxu0 %v19865_v29  ;;  %8113 = vmatprep.mubr.f32.mxu1 %v22507_v23  ;;  %v22509_v29 = vld [vmem:[#allocation157_spill] sm:$0xff] }
 0x587   : > { %v10678_v53 = vpop.permute.xlu0 %10677  ;;  %v10746_v35 = vsel %vm1057_vm4, %v1889_v39, %v10680_v52  ;;  %9758 = vmatprep.mubr.f32.mxu0 %v22508_v15  ;;  %v22521_v39 = vld [vmem:[#allocation163_spill] sm:$0xff]  ;;  %v22555_v52 = vld [vmem:[#allocation18_spill] sm:$0xff]  ;;  %v22560_v15 = vld [vmem:[#allocation32_spill] sm:$0xff] }
 0x588   : > { %v10745_v8 = vsel %vm1057_vm4, %v1886_v27, %v10678_v53  ;;  %10807 = vst [vmem:[%s19850_s25 + $0x1d0] sm:$0xff] %v10746_v35  ;;  %v22537_v27 = vld [vmem:[#allocation174_spill] sm:$0xff]  ;;  %v22556_v53 = vld [vmem:[#allocation147_spill] sm:$0xff]  ;;  %v22558_v35 = vld [vmem:[#allocation140_spill] sm:$0xff] }
 0x589   : > { %10805 = vst [vmem:[%s19850_s25 + $0x1c0] sm:$0xff] %v10745_v8  ;;  %8114 = vmatmul.mubr.f32.gmra.mrb[136].mxu1 %v22436_v42  ;;  %v22512_v42 = vld [vmem:[#allocation175_spill] sm:$0xff]  ;;  %v22559_v8 = vld [vmem:[#allocation148_spill] sm:$0xff] }
 0x58a   : > { %v10684_v46 = vpop.permute.xlu1 %10683  ;;  %9759 = vmatmul.mubr.f32.gmra.mrb[132].mxu0 %v13251_v31  ;;  %8118 = vmatprep.mubr.f32.mxu1 %v22509_v29  ;;  %v22565_v31 = vld [vmem:[#allocation150_spill] sm:$0xff] }
 0x58b   : > { %v10682_v1 = vpop.permute.xlu0 %10681  ;;  %v10748_v44 = vsel %vm1057_vm4, %v1895_v10, %v10684_v46  ;;  %9763 = vmatprep.mubr.f32.mxu0 %v22510_v26  ;;  %v22561_v10 = vld [vmem:[#allocation33_spill] sm:$0xff]  ;;  %v22569_v26 = vld [vmem:[#allocation55_spill] sm:$0xff] }
 0x58c   : > { %v10747_v30 = vsel %vm1057_vm4, %v1892_v38, %v10682_v1  ;;  %10811 = vst [vmem:[%s19850_s25 + $0x1f0] sm:$0xff] %v10748_v44  ;;  %v22562_v38 = vld [vmem:[#allocation149_spill] sm:$0xff]  ;;  %v22564_v1 = vld [vmem:[#allocation50_spill] sm:$0xff] }
 0x58d   : > { %10809 = vst [vmem:[%s19850_s25 + $0x1e0] sm:$0xff] %v10747_v30  ;;  %8119 = vmatmul.mubr.f32.gmra.mrb[138].mxu1 %v22437_v33  ;;  %v5961_v33 = vrot.slane %v20121_v2, 1  ;;  %v22563_v46 = vld [vmem:[#allocation9_spill] sm:$0xff]  ;;  %v22568_v30 = vld [vmem:[#allocation151_spill] sm:$0xff] }
 0x58e   : > { %9764 = vmatmul.mubr.f32.gmra.mrb[134].mxu0 %v13252_v37  ;;  %8123 = vmatprep.mubr.f32.mxu1 %v22511_v14  ;;  %v22567_v44 = vld [vmem:[#allocation53_spill] sm:$0xff] }
 0x58f   : > { %9768 = vmatprep.mubr.f32.mxu0 %v22512_v42  ;;  %v5962_v56 = vsel %vm2210_vm2, %v5958_v19, %v5961_v33  ;;  %v22570_v37 = vld [vmem:[#allocation57_spill] sm:$0xff]  ;;  %v22572_v42 = vld [vmem:[#allocation60_spill] sm:$0xff]  ;;  %v22576_v33 = vld [vmem:[#allocation94_spill] sm:$0xff] }
 0x591   : > { %8124 = vmatmul.mubr.f32.gmra.mrb[140].mxu1 %v22439_v4  ;;  %v22516_v4 = vld [vmem:[#allocation160_spill] sm:$0xff] }
 0x592   : > { %9769 = vmatmul.mubr.f32.gmra.mrb[136].mxu0 %v19573_v34  ;;  %8128 = vmatprep.mubr.f32.mxu1 %v22513_v28 }
 0x593   : > { %9773 = vmatprep.mubr.f32.mxu0 %v22514_v36  ;;  %v22575_v36 = vld [vmem:[#allocation65_spill] sm:$0xff] }
 0x595   : > { %8129 = vmatmul.mubr.f32.gmra.mrb[142].mxu1 %v22440_v41  ;;  %v22518_v41 = vld [vmem:[#allocation15_spill] sm:$0xff] }
 0x596   : > { %9774 = vmatmul.mubr.f32.gmra.mrb[138].mxu0 %v19573_v34  ;;  %8133 = vmatprep.mubr.f32.mxu1 %v22515_v50 }
 0x597   : > { %9778 = vmatprep.mubr.f32.mxu0 %v5958_v19  ;;  %v22573_v19 = vld [vmem:[#allocation63_spill] sm:$0xff] }
 0x599   : > { %8134 = vmatmul.mubr.f32.gmra.mrb[144].mxu1 %v22443_v0  ;;  %v22520_v0 = vld [vmem:[#allocation19_spill] sm:$0xff] }
 0x59a   : > { %9779 = vmatmul.mubr.f32.gmra.mrb[140].mxu0 %v19573_v34  ;;  %8138 = vmatprep.mubr.f32.mxu1 %v22516_v4 }
 0x59b   : > { %9783 = vmatprep.mubr.f32.mxu0 %v5962_v56  ;;  %v22578_v56 = vld [vmem:[#allocation182_spill] sm:$0xff] }
 0x59d   : > { %8139 = vmatmul.mubr.f32.gmra.mrb[146].mxu1 %v22446_v11  ;;  %v22522_v11 = vld [vmem:[#allocation75_spill] sm:$0xff] }
 0x59e   : > { %9784 = vmatmul.mubr.f32.gmra.mrb[142].mxu0 %v19573_v34  ;;  %8143 = vmatprep.mubr.f32.mxu1 %v22517_v13  ;;  %v22523_v34 = vld [vmem:[#allocation72_spill] sm:$0xff] }
 0x59f   : > { %9853 = vmatprep.mubr.f32.mxu0 %v22518_v41  ;;  %v22579_v41 = vld [vmem:[#allocation186_spill] sm:$0xff] }
 0x5a1   : > { %8144 = vmatmul.mubr.f32.gmra.mrb[148].mxu1 %v22449_v32  ;;  %v22524_v32 = vld [vmem:[#allocation84_spill] sm:$0xff] }
 0x5a2   : > { %9854 = vmatmul.mubr.f32.vlgmr.msra.gmra.mrb[80].mxu0 %v22485_v20  ;;  %8148 = vmatprep.mubr.f32.mxu1 %v22519_v17  ;;  %v22525_v20 = vld [vmem:[#allocation89_spill] sm:$0xff] }
 0x5a3   : > { %9858 = vmatprep.mubr.f32.mxu0 %v22520_v0  ;;  %v22581_v0 = vld [vmem:[#allocation184_spill] sm:$0xff] }
 0x5a5   : > { %8149 = vmatmul.mubr.f32.gmra.mrb[150].mxu1 %v22452_v40  ;;  %v22526_v40 = vld [vmem:[#allocation97_spill] sm:$0xff] }
 0x5a6   : > { %9859 = vmatmul.mubr.f32.gmra.mrb[82].mxu0 %v22489_v48  ;;  %8153 = vmatprep.mubr.f32.mxu1 %v22521_v39  ;;  %v22527_v48 = vld [vmem:[#allocation167_spill] sm:$0xff] }
 0x5a7   : > { %9863 = vmatprep.mubr.f32.mxu0 %v22522_v11  ;;  %v22582_v11 = vld [vmem:[#allocation183_spill] sm:$0xff] }
 0x5a9   : > { %8154 = vmatmul.mubr.f32.gmra.mrb[152].mxu1 %v22456_v24  ;;  %v22528_v24 = vld [vmem:[#allocation100_spill] sm:$0xff] }
 0x5aa   : > { %9864 = vmatmul.mubr.f32.gmra.mrb[84].mxu0 %v22493_v3  ;;  %8158 = vmatprep.mubr.f32.mxu1 %v22523_v34  ;;  %v22529_v3 = vld [vmem:[#allocation73_spill] sm:$0xff] }
 0x5ab   : > { %9868 = vmatprep.mubr.f32.mxu0 %v22524_v32  ;;  %v22583_v32 = vld [vmem:[#allocation92_spill] sm:$0xff] }
 0x5ad   : > { %8159 = vmatmul.mubr.f32.gmra.mrb[154].mxu1 %v22462_v43  ;;  %v22530_v43 = vld [vmem:[#allocation103_spill] sm:$0xff] }
 0x5ae   : > { %9869 = vmatmul.mubr.f32.gmra.mrb[86].mxu0 %v22497_v22  ;;  %8163 = vmatprep.mubr.f32.mxu1 %v22525_v20  ;;  %v22531_v22 = vld [vmem:[#allocation171_spill] sm:$0xff] }
 0x5af   : > { %9873 = vmatprep.mubr.f32.mxu0 %v22526_v40 }
 0x5b1   : > { %8164 = vmatmul.mubr.f32.gmra.mrb[156].mxu1 %v22466_v49  ;;  %v22532_v49 = vld [vmem:[#allocation106_spill] sm:$0xff] }
 0x5b2   : > { %9874 = vmatmul.mubr.f32.gmra.mrb[88].mxu0 %v22501_v55  ;;  %8168 = vmatprep.mubr.f32.mxu1 %v22527_v48  ;;  %v22533_v55 = vld [vmem:[#allocation76_spill] sm:$0xff] }
 0x5b3   : > { %9878 = vmatprep.mubr.f32.mxu0 %v22528_v24 }
 0x5b5   : > { %8169 = vmatmul.mubr.f32.gmra.mrb[158].mxu1 %v22471_v21  ;;  %v22534_v21 = vld [vmem:[#allocation108_spill] sm:$0xff] }
 0x5b6   : > { %9879 = vmatmul.mubr.f32.gmra.mrb[90].mxu0 %v22505_v57  ;;  %8173 = vmatprep.mubr.f32.mxu1 %v22529_v3  ;;  %v22535_v57 = vld [vmem:[#allocation16_spill] sm:$0xff] }
 0x5b7   : > { %9883 = vmatprep.mubr.f32.mxu0 %v22530_v43  ;;  %v22586_v43 = vld [vmem:[#allocation90_spill] sm:$0xff] }
 0x5b9   : > { %8174 = vmatmul.mubr.f32.gmra.mrb[160].mxu1 %v22476_v61  ;;  %v22536_v61 = vld [vmem:[#allocation12_spill] sm:$0xff] }
 0x5ba   : > { %9884 = vmatmul.mubr.f32.gmra.mrb[92].mxu0 %v22507_v23  ;;  %8178 = vmatprep.mubr.f32.mxu1 %v22531_v22  ;;  %v22557_v23 = vld [vmem:[#allocation139_spill] sm:$0xff] }
 0x5bb   : > { %9888 = vmatprep.mubr.f32.mxu0 %v22532_v49 }
 0x5bd   : > { %8179 = vmatmul.mubr.f32.gmra.mrb[162].mxu1 %v22481_v60  ;;  %v22538_v60 = vld [vmem:[#allocation14_spill] sm:$0xff] }
 0x5be   : > { %9889 = vmatmul.mubr.f32.gmra.mrb[94].mxu0 %v22509_v29  ;;  %8183 = vmatprep.mubr.f32.mxu1 %v22533_v55  ;;  %v22566_v29 = vld [vmem:[#allocation52_spill] sm:$0xff] }
 0x5bf   : > { %9893 = vmatprep.mubr.f32.mxu0 %v22534_v21 }
 0x5c1   : > { %8184 = vmatmul.mubr.f32.gmra.mrb[164].mxu1 %v22486_v9  ;;  %v22540_v9 = vld [vmem:[#allocation20_spill] sm:$0xff] }
 0x5c2   : > { %9894 = vmatmul.mubr.f32.gmra.mrb[96].mxu0 %v22511_v14  ;;  %8188 = vmatprep.mubr.f32.mxu1 %v22535_v57  ;;  %v22571_v14 = vld [vmem:[#allocation152_spill] sm:$0xff] }
 0x5c3   : > { %9898 = vmatprep.mubr.f32.mxu0 %v22536_v61 }
 0x5c5   : > { %8189 = vmatmul.mubr.f32.gmra.mrb[166].mxu1 %v22490_v18  ;;  %v22542_v18 = vld [vmem:[#allocation179_spill] sm:$0xff] }
 0x5c6   : > { %9899 = vmatmul.mubr.f32.gmra.mrb[98].mxu0 %v22513_v28  ;;  %8193 = vmatprep.mubr.f32.mxu1 %v22537_v27  ;;  %v22574_v28 = vld [vmem:[#allocation98_spill] sm:$0xff] }
 0x5c7   : > { %9903 = vmatprep.mubr.f32.mxu0 %v22538_v60 }
 0x5c9   : > { %8194 = vmatmul.mubr.f32.gmra.mrb[168].mxu1 %v22494_v63  ;;  %v22545_v63 = vld [vmem:[#allocation99_spill] sm:$0xff] }
 0x5ca   : > { %9904 = vmatmul.mubr.f32.gmra.mrb[100].mxu0 %v22515_v50  ;;  %8198 = vmatprep.mubr.f32.mxu1 %v22539_v54  ;;  %v22577_v50 = vld [vmem:[#allocation194_spill] sm:$0xff] }
 0x5cb   : > { %9908 = vmatprep.mubr.f32.mxu0 %v22540_v9 }
 0x5cd   : > { %8199 = vmatmul.mubr.f32.gmra.mrb[170].mxu1 %v22498_v59  ;;  %v22552_v59 = vld [vmem:[#allocation10_spill] sm:$0xff] }
 0x5ce   : > { %9909 = vmatmul.mubr.f32.gmra.mrb[102].mxu0 %v22516_v4  ;;  %8203 = vmatprep.mubr.f32.mxu1 %v22541_v62  ;;  %v13253_v4 = vld [vmem:[#allocation2] sm:$0xff] }
 0x5cf   : > { %9913 = vmatprep.mubr.f32.mxu0 %v22337_v12  ;;  %v22543_v12 = vld [vmem:[#allocation85_spill] sm:$0xff]  ;;  %v5997_v24 = vrot.slane %v13253_v4, 2 }
 0x5d1   : > { %8204 = vmatmul.mubr.f32.gmra.mrb[172].mxu1 %v22502_v7  ;;  %v22553_v7 = vld [vmem:[#allocation146_spill] sm:$0xff] }
 0x5d2   : > { %9914 = vmatmul.mubr.f32.gmra.mrb[104].mxu0 %v22517_v13  ;;  %8208 = vmatprep.mubr.f32.mxu1 %v22542_v18  ;;  %v6075_v13 = vrot.slane %v13253_v4, 4 }
 0x5d3   : > { %9918 = vmatprep.mubr.f32.mxu0 %v22340_v51  ;;  %v22544_v51 = vld [vmem:[#allocation143_spill] sm:$0xff] }
 0x5d5   : > { %8209 = vmatmul.mubr.f32.gmra.mrb[174].mxu1 %v22506_v5  ;;  %v22554_v5 = vld [vmem:[#allocation27_spill] sm:$0xff] }
 0x5d6   : > { %9919 = vmatmul.mubr.f32.gmra.mrb[106].mxu0 %v22519_v17  ;;  %11265 = vmatprep.mubr.f32.mxu1 %v22402_v16  ;;  %v22547_v16 = vld [vmem:[#allocation144_spill] sm:$0xff]  ;;  %v22580_v17 = vld [vmem:[#allocation101_spill] sm:$0xff] }
 0x5d7   : > { %9923 = vmatprep.mubr.f32.mxu0 %v22342_v58  ;;  %v22546_v58 = vld [vmem:[#allocation102_spill] sm:$0xff] }
 0x5d9   : > { %11266 = vmatmul.mubr.f32.vlgmr.msra.gmra.mrb[176].mxu1 %v22405_v6  ;;  %v22548_v6 = vld [vmem:[#allocation105_spill] sm:$0xff] }
 0x5da   : > { %9924 = vmatmul.mubr.f32.gmra.mrb[108].mxu0 %v22521_v39  ;;  %11268 = vmatprep.mubr.f32.mxu1 %v22408_v47  ;;  %v22550_v47 = vld [vmem:[#allocation145_spill] sm:$0xff]  ;;  %v6078_v39 = vrot.slane %v20121_v2, 4 }
 0x5db   : > { %9928 = vmatprep.mubr.f32.mxu0 %v22344_v45  ;;  %v22549_v45 = vld [vmem:[#allocation107_spill] sm:$0xff] }
 0x5dc   : > { %v6079_v40 = vsel %vm492_vm0, %v6075_v13, %v6078_v39 }
 0x5dd   : > { %11269 = vmatmul.mubr.f32.gmra.mrb[178].mxu1 %v22410_v25  ;;  %v22551_v25 = vld [vmem:[#allocation109_spill] sm:$0xff] }
 0x5de   : > { %9929 = vmatmul.mubr.f32.gmra.mrb[110].mxu0 %v22523_v34  ;;  %11271 = vmatprep.mubr.f32.mxu1 %v22543_v12  ;;  %v6036_v34 = vrot.slane %v13253_v4, 3 }
 0x5df   : > { %9933 = vmatprep.mubr.f32.mxu0 %v22544_v51 }
 0x5e1   : > { %11272 = vmatmul.mubr.f32.gmra.mrb[180].mxu1 %v22545_v63 }
 0x5e2   : > { %9934 = vmatmul.mubr.f32.gmra.mrb[112].mxu0 %v22525_v20  ;;  %11274 = vmatprep.mubr.f32.mxu1 %v22546_v58  ;;  %v22584_v20 = vld [vmem:[#allocation37_spill] sm:$0xff] }
 0x5e3   : > { %9938 = vmatprep.mubr.f32.mxu0 %v22547_v16 }
 0x5e5   : > { %11275 = vmatmul.mubr.f32.gmra.mrb[182].mxu1 %v22548_v6 }
 0x5e6   : > { %9939 = vmatmul.mubr.f32.gmra.mrb[114].mxu0 %v22527_v48  ;;  %11277 = vmatprep.mubr.f32.mxu1 %v22549_v45  ;;  %v22585_v48 = vld [vmem:[#allocation40_spill] sm:$0xff] }
 0x5e7   : > { %9943 = vmatprep.mubr.f32.mxu0 %v22550_v47 }
 0x5e9   : > { %11278 = vmatmul.mubr.f32.gmra.mrb[184].mxu1 %v22551_v25 }
 0x5ea   : > { %9944 = vmatmul.mubr.f32.gmra.mrb[116].mxu0 %v22529_v3  ;;  %11280 = vmatprep.mubr.f32.mxu1 %v22552_v59  ;;  %v6039_v3 = vrot.slane %v20121_v2, 3 }
 0x5eb   : > { %9948 = vmatprep.mubr.f32.mxu0 %v22553_v7 }
 0x5ec   : > { %v6040_v49 = vsel %vm5061_vm5, %v6036_v34, %v6039_v3 }
 0x5ed   : > { %11281 = vmatmul.mubr.f32.gmra.mrb[186].mxu1 %v22554_v5 }
 0x5ee   : > { %9949 = vmatmul.mubr.f32.gmra.mrb[118].mxu0 %v22531_v22  ;;  %11283 = vmatprep.mubr.f32.mxu1 %v22555_v52  ;;  %v6000_v22 = vrot.slane %v20121_v2, 2 }
 0x5ef   : > { %9953 = vmatprep.mubr.f32.mxu0 %v22556_v53 }
 0x5f1   : > { %11284 = vmatmul.mubr.f32.gmra.mrb[188].mxu1 %v22557_v23 }
 0x5f2   : > { %9954 = vmatmul.mubr.f32.gmra.mrb[120].mxu0 %v22533_v55  ;;  %11286 = vmatprep.mubr.f32.mxu1 %v22558_v35  ;;  %v6001_v55 = vsel %vm2355_vm3, %v5997_v24, %v6000_v22 }
 0x5f3   : > { %9958 = vmatprep.mubr.f32.mxu0 %v22559_v8 }
 0x5f5   : > { %11287 = vmatmul.mubr.f32.gmra.mrb[190].mxu1 %v22560_v15 }
 0x5f6   : > { %9959 = vmatmul.mubr.f32.gmra.mrb[122].mxu0 %v22535_v57  ;;  %11289 = vmatprep.mubr.f32.mxu1 %v22561_v10 }
 0x5f7   : > { %9963 = vmatprep.mubr.f32.mxu0 %v22562_v38 }
 0x5f9   : > { %11290 = vmatmul.mubr.f32.gmra.mrb[192].mxu1 %v22563_v46 }
 0x5fa   : > { %9964 = vmatmul.mubr.f32.gmra.mrb[124].mxu0 %v22537_v27  ;;  %11292 = vmatprep.mubr.f32.mxu1 %v22564_v1 }
 0x5fb   : > { %9968 = vmatprep.mubr.f32.mxu0 %v22565_v31 }
 0x5fd   : > { %11293 = vmatmul.mubr.f32.gmra.mrb[194].mxu1 %v22566_v29 }
 0x5fe   : > { %9969 = vmatmul.mubr.f32.gmra.mrb[126].mxu0 %v22539_v54  ;;  %11295 = vmatprep.mubr.f32.mxu1 %v22567_v44 }
 0x5ff   : > { %9973 = vmatprep.mubr.f32.mxu0 %v22568_v30 }
 0x601   : > { %11296 = vmatmul.mubr.f32.gmra.mrb[196].mxu1 %v22569_v26 }
 0x602   : > { %9974 = vmatmul.mubr.f32.gmra.mrb[128].mxu0 %v22541_v62  ;;  %11298 = vmatprep.mubr.f32.mxu1 %v22570_v37 }
 0x603   : > { %9978 = vmatprep.mubr.f32.mxu0 %v22571_v14 }
 0x605   : > { %11299 = vmatmul.mubr.f32.gmra.mrb[198].mxu1 %v22572_v42 }
 0x606   : > { %9979 = vmatmul.mubr.f32.gmra.mrb[130].mxu0 %v22542_v18  ;;  %11301 = vmatprep.mubr.f32.mxu1 %v22573_v19 }
 0x607   : > { %9983 = vmatprep.mubr.f32.mxu0 %v22574_v28 }
 0x609   : > { %11302 = vmatmul.mubr.f32.gmra.mrb[200].mxu1 %v22575_v36 }
 0x60a   : > { %9984 = vmatmul.mubr.f32.gmra.mrb[132].mxu0 %v22576_v33  ;;  %11304 = vmatprep.mubr.f32.mxu1 %v22577_v50 }
 0x60b   : > { %9988 = vmatprep.mubr.f32.mxu0 %v22578_v56 }
 0x60d   : > { %11305 = vmatmul.mubr.f32.gmra.mrb[202].mxu1 %v22579_v41 }
 0x60e   : > { %9989 = vmatmul.mubr.f32.gmra.mrb[134].mxu0 %v22580_v17  ;;  %11307 = vmatprep.mubr.f32.mxu1 %v22581_v0 }
 0x60f   : > { %9993 = vmatprep.mubr.f32.mxu0 %v22582_v11 }
 0x611   : > { %11308 = vmatmul.mubr.f32.gmra.mrb[204].mxu1 %v22583_v32 }
 0x612   : > { %9994 = vmatmul.mubr.f32.gmra.mrb[136].mxu0 %v22584_v20  ;;  %11310 = vmatprep.mubr.f32.mxu1 %v6075_v13 }
 0x613   : > { %9998 = vmatprep.mubr.f32.mxu0 %v22585_v48 }
 0x615   : > { %11311 = vmatmul.mubr.f32.gmra.mrb[206].mxu1 %v6079_v40 }
 0x616   : > { %9999 = vmatmul.mubr.f32.gmra.mrb[138].mxu0 %v22586_v43 }
 0x617   : > { %10003 = vmatprep.mubr.f32.mxu0 %v6036_v34 }
 0x61a   : > { %10004 = vmatmul.mubr.f32.gmra.mrb[140].mxu0 %v5997_v24 }
 0x61b   : > { %10008 = vmatprep.mubr.f32.mxu0 %v6040_v49 }
 0x61e   : > { %10009 = vmatmul.mubr.f32.gmra.mrb[142].mxu0 %v6001_v55 }
 0x62c   : > { %v8055_v21 = vpop.f32.mrb[112].mxu1 }
 0x62d   : > { %v8057_v57 = vpop.f32.mrb[113].mxu1 }
 0x630   : > { %v8060_v61 = vpop.f32.mrb[114].mxu1 }
 0x631   : > { %v8062_v27 = vpop.f32.mrb[115].mxu1 }
 0x634   : > { %v8065_v60 = vpop.f32.mrb[116].mxu1 }
 0x635   : > { %v8067_v54 = vpop.f32.mrb[117].mxu1 }
 0x638   : > { %v8070_v9 = vpop.f32.mrb[118].mxu1 }
 0x639   : > { %v8072_v62 = vpop.f32.mrb[119].mxu1 }
 0x63c   : > { %v8075_v18 = vpop.f32.mrb[120].mxu1 }
 0x63d   : > { %v8077_v12 = vpop.f32.mrb[121].mxu1 }
 0x640   : > { %v8080_v51 = vpop.f32.mrb[122].mxu1 }
 0x641   : > { %v8082_v63 = vpop.f32.mrb[123].mxu1 }
 0x644   : > { %v8085_v2 = vpop.f32.mrb[124].mxu1 }
 0x645   : > { %v8087_v58 = vpop.f32.mrb[125].mxu1 }
 0x648   : > { %v8090_v16 = vpop.f32.mrb[126].mxu1 }
 0x649   : > { %v8092_v6 = vpop.f32.mrb[127].mxu1 }
 0x64c   : > { %v20260_v45 = vpop.f32.mrb[128].mxu1 }
 0x64d   : > { %v8097_v47 = vpop.f32.mrb[129].mxu1 }
 0x650   : > { %v20262_v25 = vpop.f32.mrb[130].mxu1 }
 0x651   : > { %v8102_v59 = vpop.f32.mrb[131].mxu1 }
 0x654   : > { %v20264_v7 = vpop.f32.mrb[132].mxu1 }
 0x655   : > { %v8107_v5 = vpop.f32.mrb[133].mxu1 }
 0x658   : > { %v20266_v52 = vpop.f32.mrb[134].mxu1 }
 0x659   : > { %v8112_v53 = vpop.f32.mrb[135].mxu1 }
 0x65c   : > { %v20268_v23 = vpop.f32.mrb[136].mxu1 }
 0x65d   : > { %v8117_v35 = vpop.f32.mrb[137].mxu1 }
 0x660   : > { %v20270_v8 = vpop.f32.mrb[138].mxu1 }
 0x661   : > { %v8122_v15 = vpop.f32.mrb[139].mxu1 }
 0x664   : > { %v20272_v10 = vpop.f32.mrb[140].mxu1 }
 0x665   : > { %v8127_v38 = vpop.f32.mrb[141].mxu1 }
 0x668   : > { %v20274_v46 = vpop.f32.mrb[142].mxu1 }
 0x669   : > { %v8132_v1 = vpop.f32.mrb[143].mxu1 }
 0x66c   : > { %v20276_v31 = vpop.f32.mrb[144].mxu1 }
 0x66d   : > { %v8137_v29 = vpop.f32.mrb[145].mxu1 }
 0x670   : > { %v20278_v44 = vpop.f32.mrb[146].mxu1 }
 0x671   : > { %v8142_v30 = vpop.f32.mrb[147].mxu1 }
 0x674   : > { %v20280_v26 = vpop.f32.mrb[148].mxu1 }
 0x675   : > { %v9855_v37 = vpop.f32.mrb[80].mxu0  ;;  %v8147_v14 = vpop.f32.mrb[149].mxu1 }
 0x676   : > { %v20282_v42 = vadd.f32 %v9855_v37, %v8055_v21  ;;  %v9857_v19 = vpop.f32.mrb[81].mxu0 }
 0x678   : > { %v20284_v28 = vpop.f32.mrb[150].mxu1 }
 0x679   : > { %v9860_v36 = vpop.f32.mrb[82].mxu0  ;;  %v8152_v33 = vpop.f32.mrb[151].mxu1 }
 0x67a   : > { %v20286_v50 = vadd.f32 %v9860_v36, %v8060_v61  ;;  %v9862_v56 = vpop.f32.mrb[83].mxu0 }
 0x67c   : > { %v20288_v4 = vpop.f32.mrb[152].mxu1 }
 0x67d   : > { %v9865_v13 = vpop.f32.mrb[84].mxu0  ;;  %v8157_v41 = vpop.f32.mrb[153].mxu1 }
 0x67e   : > { %v20290_v17 = vadd.f32 %v9865_v13, %v8065_v60  ;;  %v9867_v0 = vpop.f32.mrb[85].mxu0 }
 0x680   : > { %v20292_v39 = vpop.f32.mrb[154].mxu1 }
 0x681   : > { %v9870_v11 = vpop.f32.mrb[86].mxu0  ;;  %v8162_v34 = vpop.f32.mrb[155].mxu1 }
 0x682   : > { %v20294_v32 = vadd.f32 %v9870_v11, %v8070_v9  ;;  %v9872_v20 = vpop.f32.mrb[87].mxu0 }
 0x684   : > { %v20296_v40 = vpop.f32.mrb[156].mxu1 }
 0x685   : > { %v9875_v48 = vpop.f32.mrb[88].mxu0  ;;  %v8167_v24 = vpop.f32.mrb[157].mxu1 }
 0x686   : > { %v20298_v3 = vadd.f32 %v9875_v48, %v8075_v18  ;;  %v9877_v43 = vpop.f32.mrb[89].mxu0 }
 0x688   : > { %v20300_v22 = vpop.f32.mrb[158].mxu1 }
 0x689   : > { %v9880_v49 = vpop.f32.mrb[90].mxu0  ;;  %v8172_v55 = vpop.f32.mrb[159].mxu1 }
 0x68a   : > { %v20302_v21 = vadd.f32 %v9880_v49, %v8080_v51  ;;  %v9882_v57 = vpop.f32.mrb[91].mxu0 }
 0x68c   : > { %v20304_v61 = vpop.f32.mrb[160].mxu1 }
 0x68d   : > { %v9885_v27 = vpop.f32.mrb[92].mxu0  ;;  %v8177_v60 = vpop.f32.mrb[161].mxu1 }
 0x68e   : > { %v20306_v54 = vadd.f32 %v9885_v27, %v8085_v2  ;;  %v9887_v9 = vpop.f32.mrb[93].mxu0 }
 0x690   : > { %v20308_v62 = vpop.f32.mrb[162].mxu1 }
 0x691   : > { %v9890_v12 = vpop.f32.mrb[94].mxu0  ;;  %v8182_v18 = vpop.f32.mrb[163].mxu1 }
 0x692   : > { %v20310_v63 = vadd.f32 %v9890_v12, %v8090_v16  ;;  %v9892_v58 = vpop.f32.mrb[95].mxu0 }
 0x694   : > { %v20312_v6 = vpop.f32.mrb[164].mxu1 }
 0x695   : > { %v9895_v47 = vpop.f32.mrb[96].mxu0  ;;  %v8187_v51 = vpop.f32.mrb[165].mxu1 }
 0x696   : > { %v20315_v59 = vadd.f32 %v9895_v47, %v20260_v45  ;;  %v9897_v5 = vpop.f32.mrb[97].mxu0 }
 0x698   : > { %v20317_v53 = vpop.f32.mrb[166].mxu1 }
 0x699   : > { %v9900_v2 = vpop.f32.mrb[98].mxu0  ;;  %v8192_v35 = vpop.f32.mrb[167].mxu1 }
 0x69a   : > { %v20320_v15 = vadd.f32 %v9900_v2, %v20262_v25  ;;  %v9902_v38 = vpop.f32.mrb[99].mxu0 }
 0x69c   : > { %v20322_v1 = vpop.f32.mrb[168].mxu1 }
 0x69d   : > { %v9905_v16 = vpop.f32.mrb[100].mxu0  ;;  %v8197_v29 = vpop.f32.mrb[169].mxu1 }
 0x69e   : > { %v20325_v30 = vadd.f32 %v9905_v16, %v20264_v7  ;;  %v9907_v37 = vpop.f32.mrb[101].mxu0 }
 0x6a0   : > { %v20327_v14 = vpop.f32.mrb[170].mxu1 }
 0x6a1   : > { %v9910_v45 = vpop.f32.mrb[102].mxu0  ;;  %v8202_v19 = vpop.f32.mrb[171].mxu1 }
 0x6a2   : > { %v20330_v36 = vadd.f32 %v9910_v45, %v20266_v52  ;;  %v9912_v33 = vpop.f32.mrb[103].mxu0 }
 0x6a4   : > { %v20332_v56 = vpop.f32.mrb[172].mxu1 }
 0x6a5   : > { %v9915_v25 = vpop.f32.mrb[104].mxu0  ;;  %v8207_v13 = vpop.f32.mrb[173].mxu1 }
 0x6a6   : > { %v20335_v41 = vadd.f32 %v9915_v25, %v20268_v23  ;;  %v9917_v0 = vpop.f32.mrb[105].mxu0 }
 0x6a8   : > { %v20337_v11 = vpop.f32.mrb[174].mxu1 }
 0x6a9   : > { %v9920_v7 = vpop.f32.mrb[106].mxu0  ;;  %v8212_v34 = vpop.f32.mrb[175].mxu1 }
 0x6aa   : > { %v20340_v20 = vadd.f32 %v9920_v7, %v20270_v8  ;;  %v9922_v48 = vpop.f32.mrb[107].mxu0 }
 0x6ac   : > { %v11267_v24 = vpop.f32.mrb[176].mxu1 }
 0x6ad   : > { %v9925_v52 = vpop.f32.mrb[108].mxu0  ;;  %v20343_v43 = vadd.f32 %v20286_v50, %v11267_v24  ;;  %v10080_v49 = vpop.f32.mrb[177].mxu1 }
 0x6ae   : > { %v20346_v55 = vadd.f32 %v9925_v52, %v20272_v10  ;;  %v9927_v23 = vpop.f32.mrb[109].mxu0  ;;  %v20349_v57 = vadd.f32 %v20282_v42, %v10080_v49 }
 0x6af   : > { %v10312_v27 = vmul.f32 %v20343_v43, %v20343_v43  ;;  %v10242_v8 = vsel %vm1057_vm4, %v20343_v43, 0.0 }
 0x6b0   : > { %v10241_v60 = vsel %vm1057_vm4, %v20349_v57, 0.0  ;;  %v10311_v50 = vmul.f32 %v20349_v57, %v20349_v57  ;;  %v11270_v9 = vpop.f32.mrb[178].mxu1 }
 0x6b1   : > { %v9930_v12 = vpop.f32.mrb[110].mxu0  ;;  %v20360_v10 = vadd.f32 %v20294_v32, %v11270_v9  ;;  %v10090_v18 = vpop.f32.mrb[179].mxu1  ;;  %v10344_v42 = vsel %vm1057_vm4, %v10312_v27, 0.0  ;;  %v10243_v2 = vadd.f32 %v10242_v8, %v10241_v60 }
 0x6b2   : > { %v10343_v58 = vsel %vm1057_vm4, %v10311_v50, 0.0  ;;  %v20365_v47 = vadd.f32 %v9930_v12, %v20274_v46  ;;  %v9932_v51 = vpop.f32.mrb[111].mxu0  ;;  %v20368_v5 = vadd.f32 %v20290_v17, %v10090_v18 }
 0x6b3   : > { %v10314_v35 = vmul.f32 %v20360_v10, %v20360_v10  ;;  %v10345_v29 = vadd.f32 %v10344_v42, %v10343_v58  ;;  %v10246_v17 = vsel %vm1057_vm4, %v20360_v10, 0.0 }
 0x6b4   : > { %v10244_v32 = vsel %vm1057_vm4, %v20368_v5, 0.0  ;;  %v10313_v38 = vmul.f32 %v20368_v5, %v20368_v5  ;;  %v11273_v16 = vpop.f32.mrb[180].mxu1 }
 0x6b5   : > { %v10245_v37 = vadd.f32 %v10244_v32, %v10243_v2  ;;  %v9935_v45 = vpop.f32.mrb[112].mxu0  ;;  %v20377_v46 = vadd.f32 %v20302_v21, %v11273_v16  ;;  %v10100_v19 = vpop.f32.mrb[181].mxu1  ;;  %v10348_v48 = vsel %vm1057_vm4, %v10314_v35, 0.0 }
 0x6b6   : > { %v10346_v33 = vsel %vm1057_vm4, %v10313_v38, 0.0  ;;  %v20383_v25 = vadd.f32 %v9935_v45, %v20276_v31  ;;  %v9937_v13 = vpop.f32.mrb[113].mxu0  ;;  %v20386_v0 = vadd.f32 %v20298_v3, %v10100_v19 }
 0x6b7   : > { %v10347_v7 = vadd.f32 %v10346_v33, %v10345_v29  ;;  %v10247_v34 = vadd.f32 %v10246_v17, %v10245_v37  ;;  %v10316_v21 = vmul.f32 %v20377_v46, %v20377_v46  ;;  %v10250_v60 = vsel %vm1057_vm4, %v20377_v46, 0.0 }
 0x6b8   : > { %v10248_v24 = vsel %vm1057_vm4, %v20386_v0, 0.0  ;;  %v10315_v52 = vmul.f32 %v20386_v0, %v20386_v0  ;;  %v11276_v49 = vpop.f32.mrb[182].mxu1 }
 0x6b9   : > { %v10249_v31 = vadd.f32 %v10248_v24, %v10247_v34  ;;  %v10349_v23 = vadd.f32 %v10348_v48, %v10347_v7  ;;  %v9940_v27 = vpop.f32.mrb[114].mxu0  ;;  %v20396_v3 = vadd.f32 %v20310_v63, %v11276_v49  ;;  %v10110_v8 = vpop.f32.mrb[183].mxu1  ;;  %v10352_v51 = vsel %vm1057_vm4, %v10316_v21, 0.0 }
 0x6ba   : > { %v10350_v50 = vsel %vm1057_vm4, %v10315_v52, 0.0  ;;  %v20402_v9 = vadd.f32 %v9940_v27, %v20278_v44  ;;  %v9942_v12 = vpop.f32.mrb[115].mxu0  ;;  %v20405_v18 = vadd.f32 %v20306_v54, %v10110_v8 }
 0x6bb   : > { %v10351_v42 = vadd.f32 %v10350_v50, %v10349_v23  ;;  %v10251_v58 = vadd.f32 %v10250_v60, %v10249_v31  ;;  %v10318_v63 = vmul.f32 %v20396_v3, %v20396_v3  ;;  %v10254_v37 = vsel %vm1057_vm4, %v20396_v3, 0.0 }
 0x6bc   : > { %v10252_v2 = vsel %vm1057_vm4, %v20405_v18, 0.0  ;;  %v10317_v35 = vmul.f32 %v20405_v18, %v20405_v18  ;;  %v11279_v32 = vpop.f32.mrb[184].mxu1 }
 0x6bd   : > { %v10253_v44 = vadd.f32 %v10252_v2, %v10251_v58  ;;  %v10353_v38 = vadd.f32 %v10352_v51, %v10351_v42  ;;  %v9945_v16 = vpop.f32.mrb[116].mxu0  ;;  %v20415_v54 = vadd.f32 %v20320_v15, %v11279_v32  ;;  %v10120_v29 = vpop.f32.mrb[185].mxu1  ;;  %v10356_v34 = vsel %vm1057_vm4, %v10318_v63, 0.0 }
 0x6be   : > { %v10354_v45 = vsel %vm1057_vm4, %v10317_v35, 0.0  ;;  %v20421_v19 = vadd.f32 %v9945_v16, %v20280_v26  ;;  %v9947_v17 = vpop.f32.mrb[117].mxu0  ;;  %v20424_v33 = vadd.f32 %v20315_v59, %v10120_v29 }
 0x6bf   : > { %v10355_v13 = vadd.f32 %v10354_v45, %v10353_v38  ;;  %v10255_v7 = vadd.f32 %v10254_v37, %v10253_v44  ;;  %v10320_v15 = vmul.f32 %v20415_v54, %v20415_v54  ;;  %v10258_v23 = vsel %vm1057_vm4, %v20415_v54, 0.0 }
 0x6c0   : > { %v10256_v48 = vsel %vm1057_vm4, %v20424_v33, 0.0  ;;  %v10319_v21 = vmul.f32 %v20424_v33, %v20424_v33  ;;  %v11282_v24 = vpop.f32.mrb[186].mxu1 }
 0x6c1   : > { %v10257_v26 = vadd.f32 %v10256_v48, %v10255_v7  ;;  %v10357_v52 = vadd.f32 %v10356_v34, %v10355_v13  ;;  %v9950_v49 = vpop.f32.mrb[118].mxu0  ;;  %v20434_v59 = vadd.f32 %v20330_v36, %v11282_v24  ;;  %v10130_v31 = vpop.f32.mrb[187].mxu1  ;;  %v10360_v58 = vsel %vm1057_vm4, %v10320_v15, 0.0 }
 0x6c2   : > { %v10358_v27 = vsel %vm1057_vm4, %v10319_v21, 0.0  ;;  %v20440_v8 = vadd.f32 %v9950_v49, %v20284_v28  ;;  %v9952_v60 = vpop.f32.mrb[119].mxu0  ;;  %v20443_v50 = vadd.f32 %v20325_v30, %v10130_v31 }
 0x6c3   : > { %v10359_v12 = vadd.f32 %v10358_v27, %v10357_v52  ;;  %v10259_v42 = vadd.f32 %v10258_v23, %v10257_v26  ;;  %v10322_v36 = vmul.f32 %v20434_v59, %v20434_v59  ;;  %v10262_v38 = vsel %vm1057_vm4, %v20434_v59, 0.0 }
 0x6c4   : > { %v10260_v51 = vsel %vm1057_vm4, %v20443_v50, 0.0  ;;  %v10321_v63 = vmul.f32 %v20443_v50, %v20443_v50  ;;  %v11285_v2 = vpop.f32.mrb[188].mxu1 }
 0x6c5   : > { %v10261_v28 = vadd.f32 %v10260_v51, %v10259_v42  ;;  %v10361_v35 = vadd.f32 %v10360_v58, %v10359_v12  ;;  %v9955_v32 = vpop.f32.mrb[120].mxu0  ;;  %v20453_v30 = vadd.f32 %v20340_v20, %v11285_v2  ;;  %v10140_v44 = vpop.f32.mrb[189].mxu1  ;;  %v10364_v7 = vsel %vm1057_vm4, %v10322_v36, 0.0 }
 0x6c6   : > { %v10362_v16 = vsel %vm1057_vm4, %v10321_v63, 0.0  ;;  %v20459_v29 = vadd.f32 %v9955_v32, %v20288_v4  ;;  %v9957_v37 = vpop.f32.mrb[121].mxu0  ;;  %v20462_v45 = vadd.f32 %v20335_v41, %v10140_v44 }
 0x6c7   : > { %v10363_v17 = vadd.f32 %v10362_v16, %v10361_v35  ;;  %v10263_v13 = vadd.f32 %v10262_v38, %v10261_v28  ;;  %v10324_v20 = vmul.f32 %v20453_v30, %v20453_v30  ;;  %v10266_v52 = vsel %vm1057_vm4, %v20453_v30, 0.0 }
 0x6c8   : > { %v10264_v34 = vsel %vm1057_vm4, %v20462_v45, 0.0  ;;  %v10323_v15 = vmul.f32 %v20462_v45, %v20462_v45  ;;  %v11288_v48 = vpop.f32.mrb[190].mxu1 }
 0x6c9   : > { %v10265_v4 = vadd.f32 %v10264_v34, %v10263_v13  ;;  %v10365_v21 = vadd.f32 %v10364_v7, %v10363_v17  ;;  %v9960_v24 = vpop.f32.mrb[122].mxu0  ;;  %v20472_v41 = vadd.f32 %v20365_v47, %v11288_v48  ;;  %v10150_v26 = vpop.f32.mrb[191].mxu1  ;;  %v10368_v42 = vsel %vm1057_vm4, %v10324_v20, 0.0 }
 0x6ca   : > { %v10366_v49 = vsel %vm1057_vm4, %v10323_v15, 0.0  ;;  %v12168_v31 = vadd.f32 %v9960_v24, %v20292_v39  ;;  %v9962_v23 = vpop.f32.mrb[123].mxu0  ;;  %v20479_v27 = vadd.f32 %v20346_v55, %v10150_v26 }
 0x6cb   : > { %v10367_v60 = vadd.f32 %v10366_v49, %v10365_v21  ;;  %v10267_v12 = vadd.f32 %v10266_v52, %v10265_v4  ;;  %v10326_v47 = vmul.f32 %v20472_v41, %v20472_v41  ;;  %v10270_v35 = vsel %vm1057_vm4, %v20472_v41, 0.0 }
 0x6cc   : > { %v10268_v58 = vsel %vm1057_vm4, %v20479_v27, 0.0  ;;  %v10325_v36 = vmul.f32 %v20479_v27, %v20479_v27  ;;  %v11291_v51 = vpop.f32.mrb[192].mxu1 }
 0x6cd   : > { %v10269_v63 = vadd.f32 %v10268_v58, %v10267_v12  ;;  %v10369_v39 = vadd.f32 %v10368_v42, %v10367_v60  ;;  %v9965_v2 = vpop.f32.mrb[124].mxu0  ;;  %v20489_v55 = vadd.f32 %v20402_v9, %v11291_v51  ;;  %v10160_v28 = vpop.f32.mrb[193].mxu1  ;;  %v10372_v13 = vsel %vm1057_vm4, %v10326_v47, 0.0 }
 0x6ce   : > { %v10370_v32 = vsel %vm1057_vm4, %v10325_v36, 0.0  ;;  %v12169_v44 = vadd.f32 %v9965_v2, %v20296_v40  ;;  %v9967_v38 = vpop.f32.mrb[125].mxu0  ;;  %v20496_v16 = vadd.f32 %v20383_v25, %v10160_v28 }
 0x6cf   : > { %v10371_v37 = vadd.f32 %v10370_v32, %v10369_v39  ;;  %v10271_v17 = vadd.f32 %v10270_v35, %v10269_v63  ;;  %v10328_v9 = vmul.f32 %v20489_v55, %v20489_v55  ;;  %v10274_v21 = vsel %vm1057_vm4, %v20489_v55, 0.0 }
 0x6d0   : > { %v10272_v7 = vsel %vm1057_vm4, %v20496_v16, 0.0  ;;  %v10327_v20 = vmul.f32 %v20496_v16, %v20496_v16  ;;  %v11294_v34 = vpop.f32.mrb[194].mxu1 }
 0x6d1   : > { %v10273_v15 = vadd.f32 %v10272_v7, %v10271_v17  ;;  %v10373_v40 = vadd.f32 %v10372_v13, %v10371_v37  ;;  %v9970_v48 = vpop.f32.mrb[126].mxu0  ;;  %v20506_v25 = vadd.f32 %v20440_v8, %v11294_v34  ;;  %v10170_v4 = vpop.f32.mrb[195].mxu1  ;;  %v10376_v12 = vsel %vm1057_vm4, %v10328_v9, 0.0 }
 0x6d2   : > { %v10374_v24 = vsel %vm1057_vm4, %v10327_v20, 0.0  ;;  %v12170_v26 = vadd.f32 %v9970_v48, %v20300_v22  ;;  %v9972_v52 = vpop.f32.mrb[127].mxu0  ;;  %v20513_v49 = vadd.f32 %v20421_v19, %v10170_v4 }
 0x6d3   : > { %v10375_v23 = vadd.f32 %v10374_v24, %v10373_v40  ;;  %v10275_v60 = vadd.f32 %v10274_v21, %v10273_v15  ;;  %v10330_v8 = vmul.f32 %v20506_v25, %v20506_v25  ;;  %v10278_v39 = vsel %vm1057_vm4, %v20506_v25, 0.0 }
 0x6d4   : > { %v10276_v42 = vsel %vm1057_vm4, %v20513_v49, 0.0  ;;  %v10329_v47 = vmul.f32 %v20513_v49, %v20513_v49  ;;  %v11297_v58 = vpop.f32.mrb[196].mxu1 }
 0x6d5   : > { %v10277_v36 = vadd.f32 %v10276_v42, %v10275_v60  ;;  %v10377_v22 = vadd.f32 %v10376_v12, %v10375_v23  ;;  %v9975_v51 = vpop.f32.mrb[128].mxu0  ;;  %v20522_v63 = vadd.f32 %v12168_v31, %v11297_v58  ;;  %v10180_v19 = vpop.f32.mrb[197].mxu1  ;;  %v10380_v17 = vsel %vm1057_vm4, %v10330_v8, 0.0 }
 0x6d6   : > { %v10378_v2 = vsel %vm1057_vm4, %v10329_v47, 0.0  ;;  %v12171_v28 = vadd.f32 %v9975_v51, %v20304_v61  ;;  %v9977_v35 = vpop.f32.mrb[129].mxu0  ;;  %v20529_v32 = vadd.f32 %v20459_v29, %v10180_v19 }
 0x6d7   : > { %v10379_v38 = vadd.f32 %v10378_v2, %v10377_v22  ;;  %v10279_v37 = vadd.f32 %v10278_v39, %v10277_v36  ;;  %v10332_v31 = vmul.f32 %v20522_v63, %v20522_v63  ;;  %v10282_v40 = vsel %vm1057_vm4, %v20522_v63, 0.0 }
 0x6d8   : > { %v10280_v13 = vsel %vm1057_vm4, %v20529_v32, 0.0  ;;  %v10331_v9 = vmul.f32 %v20529_v32, %v20529_v32  ;;  %v11300_v7 = vpop.f32.mrb[198].mxu1 }
 0x6d9   : > { %v10281_v20 = vadd.f32 %v10280_v13, %v10279_v37  ;;  %v10381_v61 = vadd.f32 %v10380_v17, %v10379_v38  ;;  %v9980_v34 = vpop.f32.mrb[130].mxu0  ;;  %v20538_v15 = vadd.f32 %v12170_v26, %v11300_v7  ;;  %v10190_v29 = vpop.f32.mrb[199].mxu1  ;;  %v10384_v60 = vsel %vm1057_vm4, %v10332_v31, 0.0 }
 0x6da   : > { %v10382_v48 = vsel %vm1057_vm4, %v10331_v9, 0.0  ;;  %v12172_v4 = vadd.f32 %v9980_v34, %v20308_v62  ;;  %v9982_v21 = vpop.f32.mrb[131].mxu0  ;;  %v20544_v24 = vadd.f32 %v12169_v44, %v10190_v29 }
 0x6db   : > { %v10383_v52 = vadd.f32 %v10382_v48, %v10381_v61  ;;  %v10283_v23 = vadd.f32 %v10282_v40, %v10281_v20  ;;  %v10334_v12 = vmul.f32 %v20538_v15, %v20538_v15  ;;  %v10286_v22 = vsel %vm1057_vm4, %v20538_v15, 0.0 }
 0x6dc   : > { %v10284_v26 = vsel %vm1057_vm4, %v20544_v24, 0.0  ;;  %v10333_v8 = vmul.f32 %v20544_v24, %v20544_v24  ;;  %v11303_v42 = vpop.f32.mrb[200].mxu1 }
 0x6dd   : > { %v10285_v47 = vadd.f32 %v10284_v26, %v10283_v23  ;;  %v10385_v58 = vadd.f32 %v10384_v60, %v10383_v52  ;;  %v9985_v62 = vpop.f32.mrb[132].mxu0  ;;  %v20553_v36 = vadd.f32 %v12172_v4, %v11303_v42  ;;  %v10200_v44 = vpop.f32.mrb[201].mxu1  ;;  %v10388_v37 = vsel %vm1057_vm4, %v10334_v12, 0.0 }
 0x6de   : > { %v10386_v51 = vsel %vm1057_vm4, %v10333_v8, 0.0  ;;  %v12173_v19 = vadd.f32 %v9985_v62, %v20312_v6  ;;  %v9987_v39 = vpop.f32.mrb[133].mxu0  ;;  %v20559_v2 = vadd.f32 %v12171_v28, %v10200_v44 }
 0x6df   : > { %v10387_v35 = vadd.f32 %v10386_v51, %v10385_v58  ;;  %v10287_v38 = vadd.f32 %v10286_v22, %v10285_v47  ;;  %v10336_v17 = vmul.f32 %v20553_v36, %v20553_v36  ;;  %v10290_v28 = vsel %vm1057_vm4, %v20553_v36, 0.0 }
 0x6e0   : > { %v10288_v31 = vsel %vm1057_vm4, %v20559_v2, 0.0  ;;  %v10335_v13 = vmul.f32 %v20559_v2, %v20559_v2  ;;  %v11306_v9 = vpop.f32.mrb[202].mxu1 }
 0x6e1   : > { %v10289_v7 = vadd.f32 %v10288_v31, %v10287_v38  ;;  %v10389_v20 = vadd.f32 %v10388_v37, %v10387_v35  ;;  %v9990_v6 = vpop.f32.mrb[134].mxu0  ;;  %v10210_v61 = vpop.f32.mrb[203].mxu1  ;;  %v10392_v52 = vsel %vm1057_vm4, %v10336_v17, 0.0 }
 0x6e2   : > { %v10390_v34 = vsel %vm1057_vm4, %v10335_v13, 0.0  ;;  %v12174_v29 = vadd.f32 %v9990_v6, %v20317_v53  ;;  %v9992_v40 = vpop.f32.mrb[135].mxu0  ;;  %v20572_v48 = vadd.f32 %v12173_v19, %v10210_v61 }
 0x6e3   : > { %v10391_v4 = vadd.f32 %v10390_v34, %v10389_v20  ;;  %v10291_v21 = vadd.f32 %v10290_v28, %v10289_v7 }
 0x6e4   : > { %v20575_v23 = vadd.f32 %v12174_v29, %v11306_v9  ;;  %v10292_v60 = vsel %vm1057_vm4, %v20572_v48, 0.0  ;;  %v10337_v12 = vmul.f32 %v20572_v48, %v20572_v48  ;;  %v11309_v26 = vpop.f32.mrb[204].mxu1 }
 0x6e5   : > { %v10293_v8 = vadd.f32 %v10292_v60, %v10291_v21  ;;  %v10393_v42 = vadd.f32 %v10392_v52, %v10391_v4  ;;  %v9995_v47 = vpop.f32.mrb[136].mxu0  ;;  %v10220_v53 = vpop.f32.mrb[205].mxu1 }
 0x6e6   : > { %v10294_v58 = vsel %vm1057_vm4, %v20575_v23, 0.0  ;;  %v10338_v62 = vmul.f32 %v20575_v23, %v20575_v23  ;;  %v10394_v44 = vsel %vm1057_vm4, %v10337_v12, 0.0  ;;  %v12175_v22 = vadd.f32 %v9995_v47, %v20322_v1  ;;  %v9997_v51 = vpop.f32.mrb[137].mxu0 }
 0x6e7   : > { %v10395_v19 = vadd.f32 %v10394_v44, %v10393_v42  ;;  %v10295_v39 = vadd.f32 %v10294_v58, %v10293_v8 }
 0x6e8   : > { %v10396_v35 = vsel %vm1057_vm4, %v10338_v62, 0.0  ;;  %v20588_v38 = vadd.f32 %v12175_v22, %v10220_v53  ;;  %v11312_v37 = vpop.f32.mrb[206].mxu1 }
 0x6e9   : > { %v10397_v17 = vadd.f32 %v10396_v35, %v10395_v19  ;;  %v10000_v31 = vpop.f32.mrb[138].mxu0  ;;  %v10230_v13 = vpop.f32.mrb[207].mxu1 }
 0x6ea   : > { %v10296_v9 = vsel %vm1057_vm4, %v20588_v38, 0.0  ;;  %v10339_v7 = vmul.f32 %v20588_v38, %v20588_v38  ;;  %v12176_v20 = vadd.f32 %v10000_v31, %v20327_v14  ;;  %v10002_v1 = vpop.f32.mrb[139].mxu0 }
 0x6eb   : > { %v10297_v6 = vadd.f32 %v10296_v9, %v10295_v39 }
 0x6ec   : > { %v10398_v61 = vsel %vm1057_vm4, %v10339_v7, 0.0  ;;  %v20596_v28 = vadd.f32 %v12176_v20, %v11309_v26 }
 0x6ed   : > { %v10399_v34 = vadd.f32 %v10398_v61, %v10397_v17  ;;  %v10005_v29 = vpop.f32.mrb[140].mxu0 }
 0x6ee   : > { %v10298_v40 = vsel %vm1057_vm4, %v20596_v28, 0.0  ;;  %v10340_v4 = vmul.f32 %v20596_v28, %v20596_v28  ;;  %v12177_v21 = vadd.f32 %v10005_v29, %v20332_v56  ;;  %v10007_v52 = vpop.f32.mrb[141].mxu0 }
 0x6ef   : > { %v10299_v60 = vadd.f32 %v10298_v40, %v10297_v6 }
 0x6f0   : > { %v10400_v14 = vsel %vm1057_vm4, %v10340_v4, 0.0  ;;  %v20604_v12 = vadd.f32 %v12177_v21, %v10230_v13 }
 0x6f1   : > { %v10401_v8 = vadd.f32 %v10400_v14, %v10399_v34  ;;  %v10010_v42 = vpop.f32.mrb[142].mxu0 }
 0x6f2   : > { %v10300_v26 = vsel %vm1057_vm4, %v20604_v12, 0.0  ;;  %v10341_v47 = vmul.f32 %v20604_v12, %v20604_v12  ;;  %v12178_v53 = vadd.f32 %v10010_v42, %v20337_v11  ;;  %v10012_v58 = vpop.f32.mrb[143].mxu0 }
 0x6f3   : > { %v10301_v62 = vadd.f32 %v10300_v26, %v10299_v60 }
 0x6f4   : > { %v10402_v56 = vsel %vm1057_vm4, %v10341_v47, 0.0  ;;  %v10236_v44 = vadd.f32 %v12178_v53, %v11312_v37 }
 0x6f5   : > { %v10403_v22 = vadd.f32 %v10402_v56, %v10401_v8 }
 0x6f6   : > { %v10302_v51 = vsel %vm1057_vm4, %v10236_v44, 0.0  ;;  %v10342_v19 = vmul.f32 %v10236_v44, %v10236_v44 }
 0x6f7   : > { %v10303_v39 = vadd.f32 %v10302_v51, %v10301_v62  ;;  %v20689_v51 = vld [vmem:[%s20916_s9] ss:$0 sm:$0xff] }
 0x6f8   : > { %v10404_v35 = vsel %vm1057_vm4, %v10342_v19, 0.0 }
 0x6f9   : > { %v10304_v17 = vrot.slane %v10303_v39, 4  ;;  %v10405_v31 = vadd.f32 %v10404_v35, %v10403_v22 }
 0x6fb   : > { %v10305_v13 = vadd.f32 %v10304_v17, %v10303_v39  ;;  %v10406_v9 = vrot.slane %v10405_v31, 4 }
 0x6fd   : > { %v10306_v7 = vrot.slane %v10305_v13, 2  ;;  %v10407_v20 = vadd.f32 %v10406_v9, %v10405_v31 }
 0x6ff   : > { %v10307_v1 = vadd.f32 %v10306_v7, %v10305_v13  ;;  %v10408_v11 = vrot.slane %v10407_v20, 2 }
 0x701   : > { %v10308_v6 = vrot.slane %v10307_v1, 1  ;;  %v10409_v61 = vadd.f32 %v10408_v11, %v10407_v20 }
 0x703   : > { %v10309_v34 = vadd.f32 %v10308_v6, %v10307_v1  ;;  %v10410_v29 = vrot.slane %v10409_v61, 1 }
 0x705   : > { %v20614_v37 = vmul.f32 0.00390625, %v10309_v34  ;;  %v10411_v40 = vadd.f32 %v10410_v29, %v10409_v61 }
 0x707   : > { %v10412_v4 = vmul.f32 0.00390625, %v10411_v40  ;;  %v10413_v21 = vmul.f32 %v20614_v37, %v20614_v37  ;;  %v10446_v52 = vsub.f32 %v10236_v44, %v20614_v37  ;;  %v10429_v8 = vsub.f32 %v20479_v27, %v20614_v37 }
 0x708   : > { %v10431_v42 = vsub.f32 %v20496_v16, %v20614_v37  ;;  %v10432_v26 = vsub.f32 %v20489_v55, %v20614_v37  ;;  %v10433_v47 = vsub.f32 %v20513_v49, %v20614_v37  ;;  %v10434_v53 = vsub.f32 %v20506_v25, %v20614_v37 }
 0x709   : > { %v10414_v60 = vsub.f32 %v10412_v4, %v10413_v21  ;;  %v10435_v58 = vsub.f32 %v20529_v32, %v20614_v37  ;;  %v10436_v62 = vsub.f32 %v20522_v63, %v20614_v37  ;;  %v10437_v27 = vsub.f32 %v20544_v24, %v20614_v37 }
 0x70a   : > { %v10438_v16 = vsub.f32 %v20538_v15, %v20614_v37  ;;  %v10439_v55 = vsub.f32 %v20559_v2, %v20614_v37  ;;  %v10440_v49 = vsub.f32 %v20553_v36, %v20614_v37  ;;  %v10441_v25 = vsub.f32 %v20572_v48, %v20614_v37 }
 0x70b   : > { %v10447_v14 = vadd.f32 1e-05, %v10414_v60  ;;  %v10442_v32 = vsub.f32 %v20575_v23, %v20614_v37  ;;  %v10443_v63 = vsub.f32 %v20588_v38, %v20614_v37  ;;  %v10444_v24 = vsub.f32 %v20596_v28, %v20614_v37 }
 0x70c   : > { %v10445_v15 = vsub.f32 %v20604_v12, %v20614_v37  ;;  %v10415_v2 = vsub.f32 %v20349_v57, %v20614_v37  ;;  %v10416_v36 = vsub.f32 %v20343_v43, %v20614_v37  ;;  %v10417_v48 = vsub.f32 %v20368_v5, %v20614_v37 }
 0x70d   : > { %13064 = vrsqrt.f32 %v10447_v14  ;;  %v10418_v23 = vsub.f32 %v20360_v10, %v20614_v37  ;;  %v10419_v38 = vsub.f32 %v20386_v0, %v20614_v37  ;;  %v10420_v28 = vsub.f32 %v20377_v46, %v20614_v37  ;;  %v20676_v46 = vld [vmem:[%s20915_s8] ss:$0 sm:$0xff] }
 0x70e   : > { %v10421_v12 = vsub.f32 %v20405_v18, %v20614_v37  ;;  %v10422_v57 = vsub.f32 %v20396_v3, %v20614_v37  ;;  %v10423_v43 = vsub.f32 %v20424_v33, %v20614_v37  ;;  %v10424_v5 = vsub.f32 %v20415_v54, %v20614_v37 }
 0x70f   : > { %v10425_v10 = vsub.f32 %v20443_v50, %v20614_v37  ;;  %v10426_v0 = vsub.f32 %v20434_v59, %v20614_v37  ;;  %v10427_v3 = vsub.f32 %v20462_v45, %v20614_v37  ;;  %v10428_v18 = vsub.f32 %v20453_v30, %v20614_v37 }
 0x710   : > { %v10430_v54 = vsub.f32 %v20472_v41, %v20614_v37 }
 0x717   : > { %v13065_v56 = vpop.eup %13064 }
 0x718   : > { %v10480_v33 = vmul.f32 %v13065_v56, %v10446_v52  ;;  %v10449_v50 = vmul.f32 %v13065_v56, %v10415_v2  ;;  %v10450_v44 = vmul.f32 %v13065_v56, %v10416_v36  ;;  %v10451_v22 = vmul.f32 %v13065_v56, %v10417_v48 }
 0x719   : > { %v10452_v19 = vmul.f32 %v13065_v56, %v10418_v23  ;;  %v10453_v59 = vmul.f32 %v13065_v56, %v10419_v38  ;;  %v10454_v39 = vmul.f32 %v13065_v56, %v10420_v28  ;;  %v10455_v35 = vmul.f32 %v13065_v56, %v10421_v12 }
 0x71a   : > { %v10518_v45 = vmul.f32 %v20676_v46, %v10480_v33  ;;  %v10456_v17 = vmul.f32 %v13065_v56, %v10422_v57  ;;  %v10457_v30 = vmul.f32 %v13065_v56, %v10423_v43  ;;  %v10458_v31 = vmul.f32 %v13065_v56, %v10424_v5 }
 0x71b   : > { %v10459_v13 = vmul.f32 %v13065_v56, %v10425_v10  ;;  %v10460_v41 = vmul.f32 %v13065_v56, %v10426_v0  ;;  %v10461_v9 = vmul.f32 %v13065_v56, %v10427_v3  ;;  %v10462_v7 = vmul.f32 %v13065_v56, %v10428_v18 }
 0x71c   : > { %v10556_v20 = vadd.f32 %v20689_v51, %v10518_v45  ;;  %v10463_v1 = vmul.f32 %v13065_v56, %v10429_v8  ;;  %v10464_v11 = vmul.f32 %v13065_v56, %v10430_v54  ;;  %v10465_v6 = vmul.f32 %v13065_v56, %v10431_v42 }
 0x71d   : > { %v10466_v61 = vmul.f32 %v13065_v56, %v10432_v26  ;;  %v10467_v34 = vmul.f32 %v13065_v56, %v10433_v47  ;;  %v10468_v29 = vmul.f32 %v13065_v56, %v10434_v53  ;;  %v10469_v37 = vmul.f32 %v13065_v56, %v10435_v58 }
 0x71e   : > { %v10588_v40 = vmax.f32 %v10556_v20, 0.0  ;;  %v10470_v4 = vmul.f32 %v13065_v56, %v10436_v62  ;;  %v10471_v21 = vmul.f32 %v13065_v56, %v10437_v27  ;;  %v10472_v52 = vmul.f32 %v13065_v56, %v10438_v16 }
 0x71f   : > { %v10473_v60 = vmul.f32 %v13065_v56, %v10439_v55  ;;  %v10474_v14 = vmul.f32 %v13065_v56, %v10440_v49  ;;  %v10475_v2 = vmul.f32 %v13065_v56, %v10441_v25  ;;  %v10476_v36 = vmul.f32 %v13065_v56, %v10442_v32 }
 0x720   : > { %10812 = vst.msk [vmem:[%s19850_s25 + $0x1f8] sm:$0xff] %vm1057_vm4, %v10588_v40  ;;  %v10477_v48 = vmul.f32 %v13065_v56, %v10443_v63  ;;  %v10478_v23 = vmul.f32 %v13065_v56, %v10444_v24  ;;  %v10479_v38 = vmul.f32 %v13065_v56, %v10445_v15  ;;  %v10487_v8 = vmul.f32 %v20676_v46, %v10449_v50 }
 0x721   : > { %v10488_v42 = vmul.f32 %v20676_v46, %v10450_v44  ;;  %v10489_v26 = vmul.f32 %v20676_v46, %v10451_v22  ;;  %v10490_v47 = vmul.f32 %v20676_v46, %v10452_v19  ;;  %v10491_v53 = vmul.f32 %v20676_v46, %v10453_v59 }
 0x722   : > { %v10492_v58 = vmul.f32 %v20676_v46, %v10454_v39  ;;  %v10493_v62 = vmul.f32 %v20676_v46, %v10455_v35  ;;  %v10494_v27 = vmul.f32 %v20676_v46, %v10456_v17  ;;  %v10495_v16 = vmul.f32 %v20676_v46, %v10457_v30 }
 0x723   : > { %v10496_v55 = vmul.f32 %v20676_v46, %v10458_v31  ;;  %v10497_v49 = vmul.f32 %v20676_v46, %v10459_v13  ;;  %v10498_v25 = vmul.f32 %v20676_v46, %v10460_v41  ;;  %v10499_v32 = vmul.f32 %v20676_v46, %v10461_v9 }
 0x724   : > { %v10500_v63 = vmul.f32 %v20676_v46, %v10462_v7  ;;  %v10501_v24 = vmul.f32 %v20676_v46, %v10463_v1  ;;  %v10502_v15 = vmul.f32 %v20676_v46, %v10464_v11  ;;  %v10503_v28 = vmul.f32 %v20676_v46, %v10465_v6 }
 0x725   : > { %v10504_v12 = vmul.f32 %v20676_v46, %v10466_v61  ;;  %v10505_v57 = vmul.f32 %v20676_v46, %v10467_v34  ;;  %v10506_v43 = vmul.f32 %v20676_v46, %v10468_v29  ;;  %v10507_v5 = vmul.f32 %v20676_v46, %v10469_v37 }
 0x726   : > { %v10508_v10 = vmul.f32 %v20676_v46, %v10470_v4  ;;  %v10509_v56 = vmul.f32 %v20676_v46, %v10471_v21  ;;  %v10510_v0 = vmul.f32 %v20676_v46, %v10472_v52  ;;  %v10511_v3 = vmul.f32 %v20676_v46, %v10473_v60 }
 0x727   : > { %v10512_v18 = vmul.f32 %v20676_v46, %v10474_v14  ;;  %v10513_v54 = vmul.f32 %v20676_v46, %v10475_v2  ;;  %v10514_v33 = vmul.f32 %v20676_v46, %v10476_v36  ;;  %v10515_v50 = vmul.f32 %v20676_v46, %v10477_v48 }
 0x728   : > { %v10516_v44 = vmul.f32 %v20676_v46, %v10478_v23  ;;  %v10517_v22 = vmul.f32 %v20676_v46, %v10479_v38  ;;  %v10525_v19 = vadd.f32 %v20689_v51, %v10487_v8  ;;  %v10526_v59 = vadd.f32 %v20689_v51, %v10488_v42 }
 0x729   : > { %v10527_v39 = vadd.f32 %v20689_v51, %v10489_v26  ;;  %v10528_v35 = vadd.f32 %v20689_v51, %v10490_v47  ;;  %v10529_v45 = vadd.f32 %v20689_v51, %v10491_v53  ;;  %v10530_v17 = vadd.f32 %v20689_v51, %v10492_v58 }
 0x72a   : > { %v10531_v30 = vadd.f32 %v20689_v51, %v10493_v62  ;;  %v10532_v31 = vadd.f32 %v20689_v51, %v10494_v27  ;;  %v10533_v13 = vadd.f32 %v20689_v51, %v10495_v16  ;;  %v10534_v46 = vadd.f32 %v20689_v51, %v10496_v55 }
 0x72b   : > { %v10535_v41 = vadd.f32 %v20689_v51, %v10497_v49  ;;  %v10536_v9 = vadd.f32 %v20689_v51, %v10498_v25  ;;  %v10537_v7 = vadd.f32 %v20689_v51, %v10499_v32  ;;  %v10538_v20 = vadd.f32 %v20689_v51, %v10500_v63 }
 0x72c   : > { %v10539_v1 = vadd.f32 %v20689_v51, %v10501_v24  ;;  %v10540_v11 = vadd.f32 %v20689_v51, %v10502_v15  ;;  %v10541_v6 = vadd.f32 %v20689_v51, %v10503_v28  ;;  %v10542_v61 = vadd.f32 %v20689_v51, %v10504_v12 }
 0x72d   : > { %v10543_v34 = vadd.f32 %v20689_v51, %v10505_v57  ;;  %v20746_v29 = vadd.f32 %v20689_v51, %v10506_v43  ;;  %v20749_v37 = vadd.f32 %v20689_v51, %v10507_v5  ;;  %v20752_v40 = vadd.f32 %v20689_v51, %v10508_v10 }
 0x72e   : > { %v20755_v4 = vadd.f32 %v20689_v51, %v10509_v56  ;;  %v20758_v21 = vadd.f32 %v20689_v51, %v10510_v0  ;;  %v20761_v52 = vadd.f32 %v20689_v51, %v10511_v3  ;;  %v20764_v60 = vadd.f32 %v20689_v51, %v10512_v18 }
 0x72f   : > { %v20767_v14 = vadd.f32 %v20689_v51, %v10513_v54  ;;  %v20770_v2 = vadd.f32 %v20689_v51, %v10514_v33  ;;  %v20773_v36 = vadd.f32 %v20689_v51, %v10515_v50  ;;  %v20776_v48 = vadd.f32 %v20689_v51, %v10516_v44 }
 0x730   : > { %v20779_v23 = vadd.f32 %v20689_v51, %v10517_v22  ;;  %v10557_v38 = vmax.f32 %v10525_v19, 0.0  ;;  %v10558_v8 = vmax.f32 %v10526_v59, 0.0  ;;  %v10559_v42 = vmax.f32 %v10527_v39, 0.0 }
 0x731   : > { %v10560_v26 = vmax.f32 %v10528_v35, 0.0  ;;  %v10561_v47 = vmax.f32 %v10529_v45, 0.0  ;;  %v10562_v53 = vmax.f32 %v10530_v17, 0.0  ;;  %v10563_v58 = vmax.f32 %v10531_v30, 0.0 }
 0x732   : > { %v10564_v62 = vmax.f32 %v10532_v31, 0.0  ;;  %v10565_v27 = vmax.f32 %v10533_v13, 0.0  ;;  %v10566_v16 = vmax.f32 %v10534_v46, 0.0  ;;  %v10567_v55 = vmax.f32 %v10535_v41, 0.0  ;;  %10750 = vst.msk [vmem:[%s19850_s25 + $0x8] sm:$0xff] %vm1057_vm4, %v10557_v38  ;;  %10752 = vst.msk [vmem:[%s19850_s25 + $0x18] sm:$0xff] %vm1057_vm4, %v10558_v8 }
 0x733   : > { %10754 = vst.msk [vmem:[%s19850_s25 + $0x28] sm:$0xff] %vm1057_vm4, %v10559_v42  ;;  %v10568_v51 = vmax.f32 %v10536_v9, 0.0  ;;  %v10569_v49 = vmax.f32 %v10537_v7, 0.0  ;;  %v10570_v25 = vmax.f32 %v10538_v20, 0.0  ;;  %v10571_v32 = vmax.f32 %v10539_v1, 0.0  ;;  %10756 = vst.msk [vmem:[%s19850_s25 + $0x38] sm:$0xff] %vm1057_vm4, %v10560_v26 }
 0x734   : > { %10758 = vst.msk [vmem:[%s19850_s25 + $0x48] sm:$0xff] %vm1057_vm4, %v10561_v47  ;;  %10760 = vst.msk [vmem:[%s19850_s25 + $0x58] sm:$0xff] %vm1057_vm4, %v10562_v53  ;;  %v10572_v63 = vmax.f32 %v10540_v11, 0.0  ;;  %v10573_v24 = vmax.f32 %v10541_v6, 0.0  ;;  %v10574_v15 = vmax.f32 %v10542_v61, 0.0  ;;  %v10575_v28 = vmax.f32 %v10543_v34, 0.0 }
 0x735   : > { %10762 = vst.msk [vmem:[%s19850_s25 + $0x68] sm:$0xff] %vm1057_vm4, %v10563_v58  ;;  %10764 = vst.msk [vmem:[%s19850_s25 + $0x78] sm:$0xff] %vm1057_vm4, %v10564_v62  ;;  %v10576_v12 = vmax.f32 %v20746_v29, 0.0  ;;  %v10577_v57 = vmax.f32 %v20749_v37, 0.0  ;;  %v10578_v43 = vmax.f32 %v20752_v40, 0.0  ;;  %v10579_v5 = vmax.f32 %v20755_v4, 0.0 }
 0x736   : > { %10766 = vst.msk [vmem:[%s19850_s25 + $0x88] sm:$0xff] %vm1057_vm4, %v10565_v27  ;;  %10768 = vst.msk [vmem:[%s19850_s25 + $0x98] sm:$0xff] %vm1057_vm4, %v10566_v16  ;;  %v10580_v10 = vmax.f32 %v20758_v21, 0.0  ;;  %v10581_v56 = vmax.f32 %v20761_v52, 0.0  ;;  %v10582_v0 = vmax.f32 %v20764_v60, 0.0  ;;  %v10583_v3 = vmax.f32 %v20767_v14, 0.0 }
 0x737   : > { %10770 = vst.msk [vmem:[%s19850_s25 + $0xa8] sm:$0xff] %vm1057_vm4, %v10567_v55  ;;  %10772 = vst.msk [vmem:[%s19850_s25 + $0xb8] sm:$0xff] %vm1057_vm4, %v10568_v51  ;;  %v10584_v18 = vmax.f32 %v20770_v2, 0.0  ;;  %v10585_v54 = vmax.f32 %v20773_v36, 0.0  ;;  %v10586_v33 = vmax.f32 %v20776_v48, 0.0  ;;  %v10587_v50 = vmax.f32 %v20779_v23, 0.0 }
 0x738   : > { %10774 = vst.msk [vmem:[%s19850_s25 + $0xc8] sm:$0xff] %vm1057_vm4, %v10569_v49  ;;  %10776 = vst.msk [vmem:[%s19850_s25 + $0xd8] sm:$0xff] %vm1057_vm4, %v10570_v25 }
 0x739   : > { %10778 = vst.msk [vmem:[%s19850_s25 + $0xe8] sm:$0xff] %vm1057_vm4, %v10571_v32  ;;  %10780 = vst.msk [vmem:[%s19850_s25 + $0xf8] sm:$0xff] %vm1057_vm4, %v10572_v63 }
 0x73a   : > { %10782 = vst.msk [vmem:[%s19850_s25 + $0x108] sm:$0xff] %vm1057_vm4, %v10573_v24  ;;  %10784 = vst.msk [vmem:[%s19850_s25 + $0x118] sm:$0xff] %vm1057_vm4, %v10574_v15 }
 0x73b   : > { %10786 = vst.msk [vmem:[%s19850_s25 + $0x128] sm:$0xff] %vm1057_vm4, %v10575_v28  ;;  %10788 = vst.msk [vmem:[%s19850_s25 + $0x138] sm:$0xff] %vm1057_vm4, %v10576_v12 }
 0x73c   : > { %10790 = vst.msk [vmem:[%s19850_s25 + $0x148] sm:$0xff] %vm1057_vm4, %v10577_v57  ;;  %10792 = vst.msk [vmem:[%s19850_s25 + $0x158] sm:$0xff] %vm1057_vm4, %v10578_v43 }
 0x73d   : > { %10794 = vst.msk [vmem:[%s19850_s25 + $0x168] sm:$0xff] %vm1057_vm4, %v10579_v5  ;;  %10796 = vst.msk [vmem:[%s19850_s25 + $0x178] sm:$0xff] %vm1057_vm4, %v10580_v10 }
 0x73e   : > { %10798 = vst.msk [vmem:[%s19850_s25 + $0x188] sm:$0xff] %vm1057_vm4, %v10581_v56  ;;  %10800 = vst.msk [vmem:[%s19850_s25 + $0x198] sm:$0xff] %vm1057_vm4, %v10582_v0 }
 0x73f   : > { %10802 = vst.msk [vmem:[%s19850_s25 + $0x1a8] sm:$0xff] %vm1057_vm4, %v10583_v3  ;;  %10804 = vst.msk [vmem:[%s19850_s25 + $0x1b8] sm:$0xff] %vm1057_vm4, %v10584_v18 }
 0x740   : > { %10806 = vst.msk [vmem:[%s19850_s25 + $0x1c8] sm:$0xff] %vm1057_vm4, %v10585_v54  ;;  %10808 = vst.msk [vmem:[%s19850_s25 + $0x1d8] sm:$0xff] %vm1057_vm4, %v10586_v33 }
 0x741   : > { %10810 = vst.msk [vmem:[%s19850_s25 + $0x1e8] sm:$0xff] %vm1057_vm4, %v10587_v50 }
 0x742   : > { %13267 = shalt.err (!%p13264_p3)
}
 0x743   : > { %s13268_s26 = scalar_lea.hbm %s20832_s28, 8192  ;;  %s13272_s17 = scalar_lea.hbm %s20917_s10, 16384 }
 0x744   : > { %p13269_p4 = scmp.ne.s32.totalorder %s20832_s28, %s13268_s26  ;;  %p13273_p9 = scmp.lt.u32.totalorder %s20832_s28, %s20917_s10 }
 0x745   : > { %p13274_p10 = scmp.lt.u32.totalorder %s13272_s17, %s13268_s26  ;;  %p13276_p12 = scmp.lt.u32.totalorder %s13268_s26, %s20832_s28 }
 0x746   : > { %p13270_p7 = pnand %p13269_p4, %p13417_p5 }
 0x747   : > { %p13275_p11 = por %p13274_p10, %p13273_p9 }
 0x748   : > { %p13271_p8 = pneg %p13270_p7 }
 0x749   : > { %p13277_p13 = por %p13276_p12, %p13275_p11 }
 0x74b   : > { %p13278_p0 = pnand %p13277_p13, %p13271_p8 }
 0x74d   : > { %13281 = shalt.err (!%p13278_p0)
}
 0x74e   : > { %s13322_s30 = smov 256   ;;  %s13323_s12 = smov 16  }
 0x74f   : > { %13011 = dma.vmem_to_hbm [thread:$0]  (%p13417_p5), %s20834_s27, 8192, %s20832_s28, %s20866_s29, %s13322_s30, %s13322_s30, %s13323_s12  }
 0x750 PF: > { %p13017_p1 = scmp.ge.s32.totalorder %s13316_s16, 2  ;;  %s10842_s18 = sand.u32 1, %s13304_s13  }
 0x751   : > { %s10843_s26 = scalar_lea.sflag [#allocation7], %s10842_s18 }
 0x752   : > { %p13014_p2 = pnand %p13017_p1, %p13421_p6 }
 0x754   : > { %13299 = dma.done.wait (!%p13014_p2), %s10843_s26, 8192  }
 0x755   : > { %13301 = vsyncadd (!%p13014_p2), %s10843_s26, 4294959104  ;;  %p20_p3 = scmp.ge.s32.totalorder %s13404_s19, 4   ;;  %s22587_s13 = smov %s13308_s14 }
 0x756   : > { %s22588_s14 = smov %s13312_s15  ;;  %s22589_s15 = smov %s13415_s22 }
 0x757   : > { %s22590_s16 = smov %s13404_s19  ;;  %22 = sbr.rel (!%p20_p3) target bundleno = 3 (0x3), region = 97 }
 0x75e   :  { %10848 = vsyncpa [#allocation7], 1 }
 0x75f   :  { %10850 = vsyncpa [#allocation7 + $0x1], 1 }

</bundles_post_ra>
